<compile_context>
chip_gen: v7x
topology: tpu7x:2x2x1
jax: 0.10.0
libtpu: 0.0.40
codegen_flags: <defaults>
</compile_context>

<pallas_src>
import functools

import jax
import jax.numpy as jnp
from jax.experimental import pallas as pl
from jax.experimental.pallas import tpu as pltpu


# ------------------------------ config helpers -------------------------------

def _round_up(x, m):
    return ((x + m - 1) // m) * m


def _tpu_config():
    """Generation-aware row-tile / VMEM-limit defaults."""
    vmem_cap = 128 * 1024 * 1024
    try:
        info = pltpu.get_tpu_info()
        vmem_cap = int(getattr(info, "vmem_capacity_bytes", vmem_cap))
    except Exception:
        pass
    if vmem_cap >= 128 * 1024 * 1024:            # v5e / v6e (128 MiB physical)
        return {"tm": 256, "vmem_limit": 64 * 1024 * 1024}
    # v7x (64 MiB / TensorCore): leave headroom
    limit = max(32 * 1024 * 1024, min(48 * 1024 * 1024, vmem_cap - 16 * 1024 * 1024))
    return {"tm": 128, "vmem_limit": limit}


_CFG = _tpu_config()

# Set by _probe_single_buffering(); False = plain (double-buffered) BlockSpecs.
_SINGLE_BUFFER_WEIGHTS = False


def _probe_kernel(x_ref, o_ref):
    o_ref[...] = x_ref[...]


def _probe_single_buffering():
    """Enable pl.Buffered(1) for grid-invariant operands if this JAX supports it."""
    global _SINGLE_BUFFER_WEIGHTS
    try:
        fn = pl.pallas_call(
            _probe_kernel,
            out_shape=jax.ShapeDtypeStruct((16, 128), jnp.float32),
            grid=(2,),
            in_specs=[pl.BlockSpec((8, 128), lambda i: (0, 0),
                                   pipeline_mode=pl.Buffered(1))],
            out_specs=pl.BlockSpec((8, 128), lambda i: (i, 0)),
        )
        jax.block_until_ready(fn(jnp.ones((8, 128), jnp.float32)))
        _SINGLE_BUFFER_WEIGHTS = True
    except Exception:
        _SINGLE_BUFFER_WEIGHTS = False


def _const_spec(shape):
    """BlockSpec for an operand that is identical at every grid step."""
    idx = lambda i: (0,) * len(shape)
    if _SINGLE_BUFFER_WEIGHTS:
        return pl.BlockSpec(shape, idx, pipeline_mode=pl.Buffered(1))
    return pl.BlockSpec(shape, idx)


def _cparams(n_axes):
    return pltpu.CompilerParams(
        dimension_semantics=("parallel",) * n_axes,
        vmem_limit_bytes=_CFG["vmem_limit"],
    )


def _pad_rows(x, mp):
    m = x.shape[0]
    if mp == m:
        return x
    return jnp.pad(x, ((0, mp - m), (0, 0)))


def _pick_tm(m):
    max_tm = _CFG["tm"]
    for cand in (256, 128):
        if cand <= max_tm and m % cand == 0:
            return cand
    return min(max_tm, 128)


# ----------------------------- Pallas kernels --------------------------------

def _matmul_kernel(x_ref, w_ref, o_ref):
    # patch-embedding conv-as-matmul (no bias); bf16 MXU inputs, f32 accum
    o_ref[...] = jnp.dot(x_ref[...].astype(jnp.bfloat16), w_ref[...],
                         preferred_element_type=jnp.float32).astype(o_ref.dtype)


def _ln_matmul_kernel(x_ref, g_ref, b_ref, w_ref, bias_ref, o_ref, *, quick_gelu):
    # o = [QuickGELU](LayerNorm(x) @ W + bias)   (ln + linear fused; LN in f32)
    x = x_ref[...].astype(jnp.float32)
    mu = jnp.mean(x, axis=-1, keepdims=True)
    var = jnp.mean(jnp.square(x - mu), axis=-1, keepdims=True)
    h = (x - mu) * jax.lax.rsqrt(var + 1e-5) * g_ref[...] + b_ref[...]
    y = jnp.dot(h.astype(jnp.bfloat16), w_ref[...],
                preferred_element_type=jnp.float32) + bias_ref[...]
    if quick_gelu:
        y = y * jax.nn.sigmoid(1.702 * y)          # CLIP QuickGELU
    o_ref[...] = y.astype(o_ref.dtype)


def _matmul_bias_res_kernel(x_ref, w_ref, bias_ref, res_ref, o_ref):
    # o = x @ W + bias + residual
    y = jnp.dot(x_ref[...].astype(jnp.bfloat16), w_ref[...],
                preferred_element_type=jnp.float32)
    o_ref[...] = (y + bias_ref[...] + res_ref[...].astype(jnp.float32)).astype(o_ref.dtype)


def _mlp_kernel(x_ref, g_ref, b_ref, wfc_ref, bfc_ref, wproj_ref, bproj_ref, o_ref):
    # o = x + c_proj(QuickGELU(c_fc(LayerNorm(x))))   (whole MLP sublayer)
    x = x_ref[...].astype(jnp.float32)
    mu = jnp.mean(x, axis=-1, keepdims=True)
    var = jnp.mean(jnp.square(x - mu), axis=-1, keepdims=True)
    h = (x - mu) * jax.lax.rsqrt(var + 1e-5) * g_ref[...] + b_ref[...]
    h = (jnp.dot(h.astype(jnp.bfloat16), wfc_ref[...],
                 preferred_element_type=jnp.float32) + bfc_ref[...])
    h = h * jax.nn.sigmoid(1.702 * h)
    y = (jnp.dot(h.astype(jnp.bfloat16), wproj_ref[...],
                 preferred_element_type=jnp.float32) + bproj_ref[...] + x)
    o_ref[...] = y.astype(o_ref.dtype)


def _pos_ln_kernel(x_ref, pos_ref, g_ref, b_ref, o_ref):
    # o = LayerNorm(x + pos)
    x = x_ref[0].astype(jnp.float32) + pos_ref[...]
    mu = jnp.mean(x, axis=-1, keepdims=True)
    var = jnp.mean(jnp.square(x - mu), axis=-1, keepdims=True)
    h = (x - mu) * jax.lax.rsqrt(var + 1e-5) * g_ref[...] + b_ref[...]
    o_ref[0] = h.astype(o_ref.dtype)


def _attention_kernel(qkv_ref, o_ref, *, heads, head_dim, scale, t_actual):
    # One batch element per grid step.  qkv_ref block: [1, Tp, 3D] (lane-dense),
    # output block: [1, Tp, D] (lane-dense).  Heads are processed one at a time
    # so score memory is bounded to a single [Tp, Tp] tile.
    # TODO(synk): flash-style q-row tiling for very long Tp on v7x.
    tp = o_ref.shape[1]
    d = heads * head_dim
    key_ok = jax.lax.broadcasted_iota(jnp.int32, (1, tp), 1) < t_actual
    dn = (((1,), (1,)), ((), ()))                      # q @ k^T, contract head_dim
    for h in range(heads):
        lo = h * head_dim
        hi = lo + head_dim
        q_h = qkv_ref[0, :, lo:hi] * scale             # scale folded into q (bf16)
        k_h = qkv_ref[0, :, d + lo:d + hi]
        v_h = qkv_ref[0, :, 2 * d + lo:2 * d + hi]
        s = jax.lax.dot_general(q_h, k_h, dn,
                                preferred_element_type=jnp.float32)   # [Tp, Tp] f32
        s = jnp.where(key_ok, s, -1e30)                # mask padded keys
        m = jnp.max(s, axis=-1, keepdims=True)
        p = jnp.exp(s - m)                             # TODO(synk): bf16 exp on v6e/v7x
        denom = jnp.sum(p, axis=-1, keepdims=True)
        p = (p * pl.reciprocal(denom, approx=True)).astype(jnp.bfloat16)
        out_h = jnp.dot(p, v_h, preferred_element_type=jnp.float32)   # [Tp, hd]
        o_ref[0, :, lo:hi] = out_h.astype(o_ref.dtype)


def _head_kernel(x_ref, g_ref, b_ref, w_ref, o_ref):
    # o = l2_normalize(LayerNorm(x) @ vproj)
    x = x_ref[...].astype(jnp.float32)
    mu = jnp.mean(x, axis=-1, keepdims=True)
    var = jnp.mean(jnp.square(x - mu), axis=-1, keepdims=True)
    h = (x - mu) * jax.lax.rsqrt(var + 1e-5) * g_ref[...] + b_ref[...]
    f = jnp.dot(h.astype(jnp.bfloat16), w_ref[...],
                preferred_element_type=jnp.float32)
    n = jnp.sum(f * f, axis=-1, keepdims=True)
    o_ref[...] = f / jnp.sqrt(n + 1e-12)


# ----------------------------- wrappers ---------------------------------------

def tiled_matmul(x, w, tm):
    """x: [M, K], w: [K, N] bf16 -> [M, N] bf16, gridded over rows."""
    M, K = x.shape
    N = w.shape[1]
    Mp = _round_up(M, tm)
    xp = _pad_rows(x, Mp)
    out = pl.pallas_call(
        _matmul_kernel,
        out_shape=jax.ShapeDtypeStruct((Mp, N), jnp.bfloat16),
        grid=(Mp // tm,),
        in_specs=[pl.BlockSpec((tm, K), lambda i: (i, 0)),
                  _const_spec((K, N))],
        out_specs=pl.BlockSpec((tm, N), lambda i: (i, 0)),
        compiler_params=_cparams(1),
    )(xp, w)
    return out[:M] if Mp != M else out


def fused_ln_linear(x, g, b, w, bias, tm, quick_gelu=False):
    M, K = x.shape
    N = w.shape[1]
    Mp = _round_up(M, tm)
    xp = _pad_rows(x, Mp)
    out = pl.pallas_call(
        functools.partial(_ln_matmul_kernel, quick_gelu=quick_gelu),
        out_shape=jax.ShapeDtypeStruct((Mp, N), jnp.bfloat16),
        grid=(Mp // tm,),
        in_specs=[pl.BlockSpec((tm, K), lambda i: (i, 0)),
                  _const_spec((1, K)),
                  _const_spec((1, K)),
                  _const_spec((K, N)),
                  _const_spec((1, N))],
        out_specs=pl.BlockSpec((tm, N), lambda i: (i, 0)),
        compiler_params=_cparams(1),
    )(xp, g.reshape(1, K), b.reshape(1, K), w, bias.reshape(1, N))
    return out[:M] if Mp != M else out


def linear_bias_residual(x, w, bias, res, tm):
    M, K = x.shape
    N = w.shape[1]
    Mp = _round_up(M, tm)
    xp, rp = _pad_rows(x, Mp), _pad_rows(res, Mp)
    out = pl.pallas_call(
        _matmul_bias_res_kernel,
        out_shape=jax.ShapeDtypeStruct((Mp, N), jnp.bfloat16),
        grid=(Mp // tm,),
        in_specs=[pl.BlockSpec((tm, K), lambda i: (i, 0)),
                  _const_spec((K, N)),
                  _const_spec((1, N)),
                  pl.BlockSpec((tm, N), lambda i: (i, 0))],
        out_specs=pl.BlockSpec((tm, N), lambda i: (i, 0)),
        compiler_params=_cparams(1),
    )(xp, w, bias.reshape(1, N), rp)
    return out[:M] if Mp != M else out


def fused_mlp(x, g, b, wfc, bfc, wproj, bproj, tm):
    M, D = x.shape
    Dh = wfc.shape[1]
    Mp = _round_up(M, tm)
    xp = _pad_rows(x, Mp)
    out = pl.pallas_call(
        _mlp_kernel,
        out_shape=jax.ShapeDtypeStruct((Mp, D), jnp.bfloat16),
        grid=(Mp // tm,),
        in_specs=[pl.BlockSpec((tm, D), lambda i: (i, 0)),
                  _const_spec((1, D)),
                  _const_spec((1, D)),
                  _const_spec((D, Dh)),
                  _const_spec((1, Dh)),
                  _const_spec((Dh, D)),
                  _const_spec((1, D))],
        out_specs=pl.BlockSpec((tm, D), lambda i: (i, 0)),
        compiler_params=_cparams(1),
    )(xp, g.reshape(1, D), b.reshape(1, D), wfc, bfc.reshape(1, Dh),
      wproj, bproj.reshape(1, D))
    return out[:M] if Mp != M else out


def mlp_block(x, lp, tm):
    """Whole MLP sublayer; fully fused if it fits comfortably in VMEM, else split
    into (ln_2 + c_fc + QuickGELU) and (c_proj + residual) kernels (v7x / large D)."""
    D = x.shape[1]
    Dh = lp["fc_w"].shape[1]
    weight_bytes = 2 * (D * Dh + Dh * D)                       # bf16, single-buffered
    act_bytes = 4 * tm * D * 2 + 2 * tm * Dh * 4               # rough activation estimate
    if weight_bytes + act_bytes <= int(0.6 * _CFG["vmem_limit"]):
        return fused_mlp(x, lp["ln2_g"], lp["ln2_b"], lp["fc_w"], lp["fc_b"],
                         lp["cproj_w"], lp["cproj_b"], tm)
    # TODO(synk): stream wfc/wproj over a reduction grid axis instead of 2 calls.
    h = fused_ln_linear(x, lp["ln2_g"], lp["ln2_b"], lp["fc_w"], lp["fc_b"], tm,
                        quick_gelu=True)
    return linear_bias_residual(h, lp["cproj_w"], lp["cproj_b"], x, tm)


def add_pos_ln(x, pos, g, b):
    B, Tp, D = x.shape
    return pl.pallas_call(
        _pos_ln_kernel,
        out_shape=jax.ShapeDtypeStruct((B, Tp, D), jnp.bfloat16),
        grid=(B,),
        in_specs=[pl.BlockSpec((1, Tp, D), lambda i: (i, 0, 0)),
                  _const_spec((Tp, D)),
                  _const_spec((1, D)),
                  _const_spec((1, D))],
        out_specs=pl.BlockSpec((1, Tp, D), lambda i: (i, 0, 0)),
        compiler_params=_cparams(1),
    )(x, pos, g.reshape(1, D), b.reshape(1, D))


def multihead_attention(qkv, heads, t_actual):
    """qkv: [B, Tp, 3D] bf16 -> attention output [B, Tp, D] bf16 (lane-dense)."""
    B, Tp, threeD = qkv.shape
    D = threeD // 3
    hd = D // heads
    kern = functools.partial(_attention_kernel, heads=heads, head_dim=hd,
                             scale=1.0 / (hd ** 0.5), t_actual=t_actual)
    return pl.pallas_call(
        kern,
        out_shape=jax.ShapeDtypeStruct((B, Tp, D), jnp.bfloat16),
        grid=(B,),
        in_specs=[pl.BlockSpec((1, Tp, threeD), lambda b: (b, 0, 0))],
        out_specs=pl.BlockSpec((1, Tp, D), lambda b: (b, 0, 0)),
        compiler_params=_cparams(1),
    )(qkv)


def head_proj_normalize(cls_tok, g, b, w):
    B, D = cls_tok.shape
    out_dim = w.shape[1]
    return pl.pallas_call(
        _head_kernel,
        out_shape=jax.ShapeDtypeStruct((B, out_dim), jnp.float32),
    )(cls_tok, g.reshape(1, D), b.reshape(1, D), w)


# ----------------------------- parameters -------------------------------------

def init_params(key, *, C, D, T, L, out_dim, patch):
    """Weights stored matmul-ready ([in, out] = nn.Linear weight.T), bf16;
    conv weight flattened as (C*ph*pw, D)."""
    keys = jax.random.split(key, 4 + L)

    def rnd(k, shape, scale=0.02):
        return scale * jax.random.normal(k, shape, dtype=jnp.float32)

    def rnd_w(k, shape, scale=0.02):
        return rnd(k, shape, scale).astype(jnp.bfloat16)

    params = {
        "conv_w": rnd_w(keys[0], (C * patch * patch, D)),
        "cls": rnd(keys[1], (D,)),
        "pos": rnd(keys[2], (T, D)),
        "ln_pre_g": jnp.ones((D,), jnp.float32), "ln_pre_b": jnp.zeros((D,), jnp.float32),
        "ln_post_g": jnp.ones((D,), jnp.float32), "ln_post_b": jnp.zeros((D,), jnp.float32),
        "vproj": rnd_w(keys[3], (D, out_dim)),
        "layers": [],
    }
    for l in range(L):
        lk = jax.random.split(keys[4 + l], 6)
        params["layers"].append({
            "ln1_g": jnp.ones((D,), jnp.float32), "ln1_b": jnp.zeros((D,), jnp.float32),
            "in_w": rnd_w(lk[0], (D, 3 * D)), "in_b": rnd(lk[1], (3 * D,)),
            "out_w": rnd_w(lk[2], (D, D)), "out_b": jnp.zeros((D,), jnp.float32),
            "ln2_g": jnp.ones((D,), jnp.float32), "ln2_b": jnp.zeros((D,), jnp.float32),
            "fc_w": rnd_w(lk[3], (D, 4 * D)), "fc_b": rnd(lk[4], (4 * D,)),
            "cproj_w": rnd_w(lk[5], (4 * D, D)), "cproj_b": jnp.zeros((D,), jnp.float32),
        })
    return params


# ----------------------------- forward -----------------------------------------

def clip_encode_image(params, image, *, patch, heads):
    """Equivalent of CLIPEncoder.forward(image): L2-normalized [B, out_dim]."""
    B, C, H, W = image.shape
    gh, gw = H // patch, W // patch
    N = gh * gw
    T = N + 1
    D = params["cls"].shape[0]
    Tp = _round_up(T, 128)          # lane-dense token count; padded keys masked
    tm = _pick_tm(B * Tp)

    # ---- patch embedding (conv as matmul; patch extraction is glue) ----
    x = image.reshape(B, C, gh, patch, gw, patch)
    x = x.transpose(0, 2, 4, 1, 3, 5).reshape(B * N, C * patch * patch)
    x = tiled_matmul(x, params["conv_w"], _pick_tm(B * N))      # bf16 [B*N, D]
    x = x.reshape(B, N, D)

    # ---- class token + positional embedding + ln_pre ----
    # TODO(synk): fold the concat/pad into add_pos_ln to save two prologue copies.
    cls = jnp.broadcast_to(params["cls"].astype(jnp.bfloat16).reshape(1, 1, D), (B, 1, D))
    x = jnp.concatenate([cls, x], axis=1)                       # [B, T, D]
    x = jnp.pad(x, ((0, 0), (0, Tp - T), (0, 0)))               # [B, Tp, D]
    pos = jnp.pad(params["pos"], ((0, Tp - T), (0, 0)))         # [Tp, D] f32
    x = add_pos_ln(x, pos, params["ln_pre_g"], params["ln_pre_b"])   # bf16
    x = x.reshape(B * Tp, D)
    M = B * Tp

    # ---- transformer resblocks ----
    for lp in params["layers"]:
        # attention sublayer: (ln_1 + QKV) -> per-head attention -> (out_proj + res)
        qkv = fused_ln_linear(x, lp["ln1_g"], lp["ln1_b"], lp["in_w"], lp["in_b"], tm)
        attn = multihead_attention(qkv.reshape(B, Tp, 3 * D), heads, T)
        x = linear_bias_residual(attn.reshape(M, D), lp["out_w"], lp["out_b"], x, tm)
        # MLP sublayer
        x = mlp_block(x, lp, tm)

    # ---- head: ln_post(cls) @ vproj, L2 normalize ----
    cls_tok = x.reshape(B, Tp, D)[:, 0, :]                      # [B, D] bf16
    return head_proj_normalize(cls_tok, params["ln_post_g"], params["ln_post_b"],
                               params["vproj"])


# ----------------------------- main ---------------------------------------------

if __name__ == "__main__":
    _probe_single_buffering()

    # small ViT-style config consistent with the module's default forward
    B, C, H, W = 2, 3, 16, 16
    patch = 8
    D = 32          # transformer width
    heads = 4
    L = 2           # number of resblocks
    out_dim = 16    # visual.output_dim (feature_dim)
    T = (H // patch) * (W // patch) + 1

    key = jax.random.PRNGKey(0)
    pkey, ikey = jax.random.split(key)
    params = init_params(pkey, C=C, D=D, T=T, L=L, out_dim=out_dim, patch=patch)
    image = jax.random.normal(ikey, (B, C, H, W), dtype=jnp.float32)

    encode = jax.jit(functools.partial(clip_encode_image, patch=patch, heads=heads))
    feats = encode(params, image)
    feats = jax.block_until_ready(feats)
    assert feats.shape == (B, out_dim)
    # features are L2 normalized (normalize=True path)
    assert jnp.allclose(jnp.linalg.norm(feats, axis=-1), 1.0, atol=1e-4)
    print("KERNEL_OK")
</pallas_src>

<mosaic_0001>
module attributes {stable_mosaic.version = 11 : i64} {
  func.func @_probe_kernel(%arg0: i32, %arg1: memref<8x128xf32, #tpu.memory_space<vmem>>, %arg2: memref<8x128xf32, #tpu.memory_space<vmem>>) attributes {dimension_semantics = [#tpu.dimension_semantics<arbitrary>], iteration_bounds = array<i64: 2>, scalar_prefetch = 0 : i64, scratch_operands = 0 : i64, tpu.core_type = #tpu.core_type<tc>, window_params = [{pipeline_mode = #tpu.pipeline_mode<synchronous>, transform_indices = @transform_0, window_bounds = array<i64: 8, 128>}, {transform_indices = @transform_1, window_bounds = array<i64: 8, 128>}]} {
    %c0 = arith.constant 0 : index
    %c0_0 = arith.constant 0 : index
    %0 = vector.load %arg1[%c0, %c0_0] : memref<8x128xf32, #tpu.memory_space<vmem>>, vector<8x128xf32>
    %c0_1 = arith.constant 0 : index
    %c0_2 = arith.constant 0 : index
    %1 = vector.load %arg2[%c0_1, %c0_2] : memref<8x128xf32, #tpu.memory_space<vmem>>, vector<8x128xf32>
    tpu.vector_store %arg2[%c0_1, %c0_2], %0 {strides = array<i32>} : memref<8x128xf32, #tpu.memory_space<vmem>>, vector<8x128xf32>,
    return
  }
  func.func @transform_0(%arg0: i32) -> (i32, i32) {
    %c0_i32 = arith.constant 0 : i32
    %c0_i32_0 = arith.constant 0 : i32
    %c0_i32_1 = arith.constant 0 : i32
    return %c0_i32, %c0_i32_0 : i32, i32
  }
  func.func @transform_1(%arg0: i32) -> (i32, i32) {
    %c0_i32 = arith.constant 0 : i32
    %c0_i32_0 = arith.constant 0 : i32
    return %arg0, %c0_i32 : i32, i32
  }
}

module attributes {stable_mosaic.version = 11 : i64} {
  func.func @_pos_ln_kernel(%arg0: i32, %arg1: memref<1x128x32xbf16, #tpu.memory_space<vmem>>, %arg2: memref<128x32xf32, #tpu.memory_space<vmem>>, %arg3: memref<1x32xf32, #tpu.memory_space<vmem>>, %arg4: memref<1x32xf32, #tpu.memory_space<vmem>>, %arg5: memref<1x128x32xbf16, #tpu.memory_space<vmem>>) attributes {dimension_semantics = [#tpu.dimension_semantics<parallel>], iteration_bounds = array<i64: 2>, scalar_prefetch = 0 : i64, scratch_operands = 0 : i64, tpu.core_type = #tpu.core_type<tc>, window_params = [{transform_indices = @transform_0, window_bounds = array<i64: 1, 128, 32>}, {pipeline_mode = #tpu.pipeline_mode<synchronous>, transform_indices = @transform_1, window_bounds = array<i64: 128, 32>}, {pipeline_mode = #tpu.pipeline_mode<synchronous>, transform_indices = @transform_2, window_bounds = array<i64: 1, 32>}, {pipeline_mode = #tpu.pipeline_mode<synchronous>, transform_indices = @transform_3, window_bounds = array<i64: 1, 32>}, {transform_indices = @transform_4, window_bounds = array<i64: 1, 128, 32>}]} {
    %c0 = arith.constant 0 : index
    %c0_0 = arith.constant 0 : index
    %c0_1 = arith.constant 0 : index
    %0 = vector.load %arg1[%c0, %c0_0, %c0_1] : memref<1x128x32xbf16, #tpu.memory_space<vmem>>, vector<1x128x32xbf16>
    %1 = vector.shape_cast %0 : vector<1x128x32xbf16> to vector<128x32xbf16>
    %2 = arith.extf %1 : vector<128x32xbf16> to vector<128x32xf32>
    %c0_2 = arith.constant 0 : index
    %c0_3 = arith.constant 0 : index
    %3 = vector.load %arg2[%c0_2, %c0_3] : memref<128x32xf32, #tpu.memory_space<vmem>>, vector<128x32xf32>
    %4 = arith.addf %2, %3 : vector<128x32xf32>
    %cst = arith.constant dense<0.000000e+00> : vector<128xf32>
    %5 = vector.multi_reduction <add>, %4, %cst [1] : vector<128x32xf32> to vector<128xf32>
    %6 = vector.shape_cast %5 : vector<128xf32> to vector<128x1xf32>
    %cst_4 = arith.constant 3.200000e+01 : f32
    %7 = vector.broadcast %cst_4 : f32 to vector<128x1xf32>
    %8 = arith.divf %6, %7 : vector<128x1xf32>
    %9 = vector.broadcast %8 : vector<128x1xf32> to vector<128x32xf32>
    %10 = arith.subf %4, %9 : vector<128x32xf32>
    %11 = arith.mulf %10, %10 : vector<128x32xf32>
    %cst_5 = arith.constant dense<0.000000e+00> : vector<128xf32>
    %12 = vector.multi_reduction <add>, %11, %cst_5 [1] : vector<128x32xf32> to vector<128xf32>
    %13 = vector.shape_cast %12 : vector<128xf32> to vector<128x1xf32>
    %cst_6 = arith.constant 3.200000e+01 : f32
    %14 = vector.broadcast %cst_6 : f32 to vector<128x1xf32>
    %15 = arith.divf %13, %14 : vector<128x1xf32>
    %16 = vector.broadcast %8 : vector<128x1xf32> to vector<128x32xf32>
    %17 = arith.subf %4, %16 : vector<128x32xf32>
    %cst_7 = arith.constant 9.99999974E-6 : f32
    %18 = vector.broadcast %cst_7 : f32 to vector<128x1xf32>
    %19 = arith.addf %15, %18 : vector<128x1xf32>
    %20 = math.rsqrt %19 : vector<128x1xf32>
    %21 = vector.broadcast %20 : vector<128x1xf32> to vector<128x32xf32>
    %22 = arith.mulf %17, %21 : vector<128x32xf32>
    %c0_8 = arith.constant 0 : index
    %c0_9 = arith.constant 0 : index
    %23 = vector.load %arg3[%c0_8, %c0_9] : memref<1x32xf32, #tpu.memory_space<vmem>>, vector<1x32xf32>
    %24 = vector.broadcast %23 : vector<1x32xf32> to vector<128x32xf32>
    %25 = arith.mulf %22, %24 : vector<128x32xf32>
    %c0_10 = arith.constant 0 : index
    %c0_11 = arith.constant 0 : index
    %26 = vector.load %arg4[%c0_10, %c0_11] : memref<1x32xf32, #tpu.memory_space<vmem>>, vector<1x32xf32>
    %27 = vector.broadcast %26 : vector<1x32xf32> to vector<128x32xf32>
    %28 = arith.addf %25, %27 : vector<128x32xf32>
    %29 = arith.truncf %28 : vector<128x32xf32> to vector<128x32xbf16>
    %c0_12 = arith.constant 0 : index
    %c0_13 = arith.constant 0 : index
    %c0_14 = arith.constant 0 : index
    %30 = vector.load %arg5[%c0_12, %c0_13, %c0_14] : memref<1x128x32xbf16, #tpu.memory_space<vmem>>, vector<1x128x32xbf16>
    %31 = vector.shape_cast %30 : vector<1x128x32xbf16> to vector<128x32xbf16>
    %32 = vector.shape_cast %29 : vector<128x32xbf16> to vector<1x128x32xbf16>
    tpu.vector_store %arg5[%c0_12, %c0_13, %c0_14], %32 {strides = array<i32>} : memref<1x128x32xbf16, #tpu.memory_space<vmem>>, vector<1x128x32xbf16>,
    return
  }
  func.func @transform_0(%arg0: i32) -> (i32, i32, i32) {
    %c0_i32 = arith.constant 0 : i32
    %c0_i32_0 = arith.constant 0 : i32
    %c0_i32_1 = arith.constant 0 : i32
    return %arg0, %c0_i32, %c0_i32_0 : i32, i32, i32
  }
  func.func @transform_1(%arg0: i32) -> (i32, i32) {
    %c0_i32 = arith.constant 0 : i32
    %c0_i32_0 = arith.constant 0 : i32
    %c0_i32_1 = arith.constant 0 : i32
    return %c0_i32, %c0_i32_0 : i32, i32
  }
  func.func @transform_2(%arg0: i32) -> (i32, i32) {
    %c0_i32 = arith.constant 0 : i32
    %c0_i32_0 = arith.constant 0 : i32
    %c0_i32_1 = arith.constant 0 : i32
    return %c0_i32, %c0_i32_0 : i32, i32
  }
  func.func @transform_3(%arg0: i32) -> (i32, i32) {
    %c0_i32 = arith.constant 0 : i32
    %c0_i32_0 = arith.constant 0 : i32
    %c0_i32_1 = arith.constant 0 : i32
    return %c0_i32, %c0_i32_0 : i32, i32
  }
  func.func @transform_4(%arg0: i32) -> (i32, i32, i32) {
    %c0_i32 = arith.constant 0 : i32
    %c0_i32_0 = arith.constant 0 : i32
    %c0_i32_1 = arith.constant 0 : i32
    return %arg0, %c0_i32, %c0_i32_0 : i32, i32, i32
  }
}

module attributes {stable_mosaic.version = 11 : i64} {
  func.func @_matmul_kernel(%arg0: i32, %arg1: memref<128x192xf32, #tpu.memory_space<vmem>>, %arg2: memref<192x32xbf16, #tpu.memory_space<vmem>>, %arg3: memref<128x32xbf16, #tpu.memory_space<vmem>>) attributes {dimension_semantics = [#tpu.dimension_semantics<parallel>], iteration_bounds = array<i64: 1>, scalar_prefetch = 0 : i64, scratch_operands = 0 : i64, tpu.core_type = #tpu.core_type<tc>, window_params = [{transform_indices = @transform_0, window_bounds = array<i64: 128, 192>}, {pipeline_mode = #tpu.pipeline_mode<synchronous>, transform_indices = @transform_1, window_bounds = array<i64: 192, 32>}, {transform_indices = @transform_2, window_bounds = array<i64: 128, 32>}]} {
    %c0 = arith.constant 0 : index
    %c0_0 = arith.constant 0 : index
    %0 = vector.load %arg1[%c0, %c0_0] : memref<128x192xf32, #tpu.memory_space<vmem>>, vector<128x192xf32>
    %1 = arith.truncf %0 : vector<128x192xf32> to vector<128x192xbf16>
    %c0_1 = arith.constant 0 : index
    %c0_2 = arith.constant 0 : index
    %2 = vector.load %arg2[%c0_1, %c0_2] : memref<192x32xbf16, #tpu.memory_space<vmem>>, vector<192x32xbf16>
    %cst = arith.constant dense<0.000000e+00> : vector<128x32xf32>
    %3 = tpu.matmul %1, %2, %cst {dimension_numbers = #tpu.dot_dimension_numbers<[1], [0], [0], [1], [0, 0, 1, 1], [], []>} : vector<128x192xbf16>, vector<192x32xbf16>, vector<128x32xf32> -> vector<128x32xf32>
    %4 = arith.truncf %3 : vector<128x32xf32> to vector<128x32xbf16>
    %c0_3 = arith.constant 0 : index
    %c0_4 = arith.constant 0 : index
    %5 = vector.load %arg3[%c0_3, %c0_4] : memref<128x32xbf16, #tpu.memory_space<vmem>>, vector<128x32xbf16>
    tpu.vector_store %arg3[%c0_3, %c0_4], %4 {strides = array<i32>} : memref<128x32xbf16, #tpu.memory_space<vmem>>, vector<128x32xbf16>,
    return
  }
  func.func @transform_0(%arg0: i32) -> (i32, i32) {
    %c0_i32 = arith.constant 0 : i32
    %c0_i32_0 = arith.constant 0 : i32
    return %arg0, %c0_i32 : i32, i32
  }
  func.func @transform_1(%arg0: i32) -> (i32, i32) {
    %c0_i32 = arith.constant 0 : i32
    %c0_i32_0 = arith.constant 0 : i32
    %c0_i32_1 = arith.constant 0 : i32
    return %c0_i32, %c0_i32_0 : i32, i32
  }
  func.func @transform_2(%arg0: i32) -> (i32, i32) {
    %c0_i32 = arith.constant 0 : i32
    %c0_i32_0 = arith.constant 0 : i32
    return %arg0, %c0_i32 : i32, i32
  }
}

module attributes {stable_mosaic.version = 11 : i64} {
  func.func @_ln_matmul_kernel(%arg0: i32, %arg1: memref<256x32xbf16, #tpu.memory_space<vmem>>, %arg2: memref<1x32xf32, #tpu.memory_space<vmem>>, %arg3: memref<1x32xf32, #tpu.memory_space<vmem>>, %arg4: memref<32x96xbf16, #tpu.memory_space<vmem>>, %arg5: memref<1x96xf32, #tpu.memory_space<vmem>>, %arg6: memref<256x96xbf16, #tpu.memory_space<vmem>>) attributes {dimension_semantics = [#tpu.dimension_semantics<parallel>], iteration_bounds = array<i64: 1>, scalar_prefetch = 0 : i64, scratch_operands = 0 : i64, tpu.core_type = #tpu.core_type<tc>, window_params = [{transform_indices = @transform_0, window_bounds = array<i64: 256, 32>}, {pipeline_mode = #tpu.pipeline_mode<synchronous>, transform_indices = @transform_1, window_bounds = array<i64: 1, 32>}, {pipeline_mode = #tpu.pipeline_mode<synchronous>, transform_indices = @transform_2, window_bounds = array<i64: 1, 32>}, {pipeline_mode = #tpu.pipeline_mode<synchronous>, transform_indices = @transform_3, window_bounds = array<i64: 32, 96>}, {pipeline_mode = #tpu.pipeline_mode<synchronous>, transform_indices = @transform_4, window_bounds = array<i64: 1, 96>}, {transform_indices = @transform_5, window_bounds = array<i64: 256, 96>}]} {
    %c0 = arith.constant 0 : index
    %c0_0 = arith.constant 0 : index
    %0 = vector.load %arg1[%c0, %c0_0] : memref<256x32xbf16, #tpu.memory_space<vmem>>, vector<256x32xbf16>
    %1 = arith.extf %0 : vector<256x32xbf16> to vector<256x32xf32>
    %cst = arith.constant dense<0.000000e+00> : vector<256xf32>
    %2 = vector.multi_reduction <add>, %1, %cst [1] : vector<256x32xf32> to vector<256xf32>
    %3 = vector.shape_cast %2 : vector<256xf32> to vector<256x1xf32>
    %cst_1 = arith.constant 3.200000e+01 : f32
    %4 = vector.broadcast %cst_1 : f32 to vector<256x1xf32>
    %5 = arith.divf %3, %4 : vector<256x1xf32>
    %6 = vector.broadcast %5 : vector<256x1xf32> to vector<256x32xf32>
    %7 = arith.subf %1, %6 : vector<256x32xf32>
    %8 = arith.mulf %7, %7 : vector<256x32xf32>
    %cst_2 = arith.constant dense<0.000000e+00> : vector<256xf32>
    %9 = vector.multi_reduction <add>, %8, %cst_2 [1] : vector<256x32xf32> to vector<256xf32>
    %10 = vector.shape_cast %9 : vector<256xf32> to vector<256x1xf32>
    %cst_3 = arith.constant 3.200000e+01 : f32
    %11 = vector.broadcast %cst_3 : f32 to vector<256x1xf32>
    %12 = arith.divf %10, %11 : vector<256x1xf32>
    %13 = vector.broadcast %5 : vector<256x1xf32> to vector<256x32xf32>
    %14 = arith.subf %1, %13 : vector<256x32xf32>
    %cst_4 = arith.constant 9.99999974E-6 : f32
    %15 = vector.broadcast %cst_4 : f32 to vector<256x1xf32>
    %16 = arith.addf %12, %15 : vector<256x1xf32>
    %17 = math.rsqrt %16 : vector<256x1xf32>
    %18 = vector.broadcast %17 : vector<256x1xf32> to vector<256x32xf32>
    %19 = arith.mulf %14, %18 : vector<256x32xf32>
    %c0_5 = arith.constant 0 : index
    %c0_6 = arith.constant 0 : index
    %20 = vector.load %arg2[%c0_5, %c0_6] : memref<1x32xf32, #tpu.memory_space<vmem>>, vector<1x32xf32>
    %21 = vector.broadcast %20 : vector<1x32xf32> to vector<256x32xf32>
    %22 = arith.mulf %19, %21 : vector<256x32xf32>
    %c0_7 = arith.constant 0 : index
    %c0_8 = arith.constant 0 : index
    %23 = vector.load %arg3[%c0_7, %c0_8] : memref<1x32xf32, #tpu.memory_space<vmem>>, vector<1x32xf32>
    %24 = vector.broadcast %23 : vector<1x32xf32> to vector<256x32xf32>
    %25 = arith.addf %22, %24 : vector<256x32xf32>
    %26 = arith.truncf %25 : vector<256x32xf32> to vector<256x32xbf16>
    %c0_9 = arith.constant 0 : index
    %c0_10 = arith.constant 0 : index
    %27 = vector.load %arg4[%c0_9, %c0_10] : memref<32x96xbf16, #tpu.memory_space<vmem>>, vector<32x96xbf16>
    %cst_11 = arith.constant dense<0.000000e+00> : vector<256x96xf32>
    %28 = tpu.matmul %26, %27, %cst_11 {dimension_numbers = #tpu.dot_dimension_numbers<[1], [0], [0], [1], [0, 0, 1, 1], [], []>} : vector<256x32xbf16>, vector<32x96xbf16>, vector<256x96xf32> -> vector<256x96xf32>
    %c0_12 = arith.constant 0 : index
    %c0_13 = arith.constant 0 : index
    %29 = vector.load %arg5[%c0_12, %c0_13] : memref<1x96xf32, #tpu.memory_space<vmem>>, vector<1x96xf32>
    %30 = vector.broadcast %29 : vector<1x96xf32> to vector<256x96xf32>
    %31 = arith.addf %28, %30 : vector<256x96xf32>
    %32 = arith.truncf %31 : vector<256x96xf32> to vector<256x96xbf16>
    %c0_14 = arith.constant 0 : index
    %c0_15 = arith.constant 0 : index
    %33 = vector.load %arg6[%c0_14, %c0_15] : memref<256x96xbf16, #tpu.memory_space<vmem>>, vector<256x96xbf16>
    tpu.vector_store %arg6[%c0_14, %c0_15], %32 {strides = array<i32>} : memref<256x96xbf16, #tpu.memory_space<vmem>>, vector<256x96xbf16>,
    return
  }
  func.func @transform_0(%arg0: i32) -> (i32, i32) {
    %c0_i32 = arith.constant 0 : i32
    %c0_i32_0 = arith.constant 0 : i32
    return %arg0, %c0_i32 : i32, i32
  }
  func.func @transform_1(%arg0: i32) -> (i32, i32) {
    %c0_i32 = arith.constant 0 : i32
    %c0_i32_0 = arith.constant 0 : i32
    %c0_i32_1 = arith.constant 0 : i32
    return %c0_i32, %c0_i32_0 : i32, i32
  }
  func.func @transform_2(%arg0: i32) -> (i32, i32) {
    %c0_i32 = arith.constant 0 : i32
    %c0_i32_0 = arith.constant 0 : i32
    %c0_i32_1 = arith.constant 0 : i32
    return %c0_i32, %c0_i32_0 : i32, i32
  }
  func.func @transform_3(%arg0: i32) -> (i32, i32) {
    %c0_i32 = arith.constant 0 : i32
    %c0_i32_0 = arith.constant 0 : i32
    %c0_i32_1 = arith.constant 0 : i32
    return %c0_i32, %c0_i32_0 : i32, i32
  }
  func.func @transform_4(%arg0: i32) -> (i32, i32) {
    %c0_i32 = arith.constant 0 : i32
    %c0_i32_0 = arith.constant 0 : i32
    %c0_i32_1 = arith.constant 0 : i32
    return %c0_i32, %c0_i32_0 : i32, i32
  }
  func.func @transform_5(%arg0: i32) -> (i32, i32) {
    %c0_i32 = arith.constant 0 : i32
    %c0_i32_0 = arith.constant 0 : i32
    return %arg0, %c0_i32 : i32, i32
  }
}

module attributes {stable_mosaic.version = 11 : i64} {
  func.func @_attention_kernel(%arg0: i32, %arg1: memref<1x128x96xbf16, #tpu.memory_space<vmem>>, %arg2: memref<1x128x32xbf16, #tpu.memory_space<vmem>>) attributes {dimension_semantics = [#tpu.dimension_semantics<parallel>], iteration_bounds = array<i64: 2>, scalar_prefetch = 0 : i64, scratch_operands = 0 : i64, tpu.core_type = #tpu.core_type<tc>, window_params = [{transform_indices = @transform_0, window_bounds = array<i64: 1, 128, 96>}, {transform_indices = @transform_1, window_bounds = array<i64: 1, 128, 32>}]} {
    %0 = tpu.iota {dimensions = array<i32: 1>} : vector<1x128xi32>
    %c5_i32 = arith.constant 5 : i32
    %1 = vector.broadcast %c5_i32 : i32 to vector<1x128xi32>
    %2 = arith.cmpi slt, %0, %1 : vector<1x128xi32>
    %c0 = arith.constant 0 : index
    %c0_0 = arith.constant 0 : index
    %c0_1 = arith.constant 0 : index
    %3 = vector.load %arg1[%c0, %c0_0, %c0_1] : memref<1x128x96xbf16, #tpu.memory_space<vmem>>, vector<1x128x8xbf16>
    %4 = vector.shape_cast %3 : vector<1x128x8xbf16> to vector<128x8xbf16>
    %cst = arith.constant 3.535160e-01 : bf16
    %5 = vector.broadcast %cst : bf16 to vector<128x8xbf16>
    %6 = arith.mulf %4, %5 : vector<128x8xbf16>
    %c0_2 = arith.constant 0 : index
    %c0_3 = arith.constant 0 : index
    %c32 = arith.constant 32 : index
    %7 = vector.load %arg1[%c0_2, %c0_3, %c32] : memref<1x128x96xbf16, #tpu.memory_space<vmem>>, vector<1x128x8xbf16>
    %8 = vector.shape_cast %7 : vector<1x128x8xbf16> to vector<128x8xbf16>
    %c0_4 = arith.constant 0 : index
    %c0_5 = arith.constant 0 : index
    %c64 = arith.constant 64 : index
    %9 = vector.load %arg1[%c0_4, %c0_5, %c64] : memref<1x128x96xbf16, #tpu.memory_space<vmem>>, vector<1x128x8xbf16>
    %10 = vector.shape_cast %9 : vector<1x128x8xbf16> to vector<128x8xbf16>
    %cst_6 = arith.constant dense<0.000000e+00> : vector<128x128xf32>
    %11 = tpu.matmul %6, %8, %cst_6 {dimension_numbers = #tpu.dot_dimension_numbers<[1], [1], [0], [0], [0, 0, 1, 0], [], []>} : vector<128x8xbf16>, vector<128x8xbf16>, vector<128x128xf32> -> vector<128x128xf32>
    %cst_7 = arith.constant -1.000000e+30 : f32
    %12 = vector.shape_cast %2 : vector<1x128xi1> to vector<1x128xi1>
    %13 = vector.broadcast %12 : vector<1x128xi1> to vector<128x128xi1>
    %14 = vector.broadcast %cst_7 : f32 to vector<128x128xf32>
    %15 = arith.select %13, %11, %14 : vector<128x128xi1>, vector<128x128xf32>
    %cst_8 = arith.constant dense<0xFF800000> : vector<128xf32>
    %16 = vector.multi_reduction <maximumf>, %15, %cst_8 [1] : vector<128x128xf32> to vector<128xf32>
    %17 = vector.shape_cast %16 : vector<128xf32> to vector<128x1xf32>
    %18 = vector.broadcast %17 : vector<128x1xf32> to vector<128x128xf32>
    %19 = arith.subf %15, %18 : vector<128x128xf32>
    %20 = math.exp %19 : vector<128x128xf32>
    %cst_9 = arith.constant dense<0.000000e+00> : vector<128xf32>
    %21 = vector.multi_reduction <add>, %20, %cst_9 [1] : vector<128x128xf32> to vector<128xf32>
    %22 = vector.shape_cast %21 : vector<128xf32> to vector<128x1xf32>
    %23 = tpu.reciprocal %22 {approx = true} : vector<128x1xf32> -> vector<128x1xf32>
    %24 = vector.broadcast %23 : vector<128x1xf32> to vector<128x128xf32>
    %25 = arith.mulf %20, %24 : vector<128x128xf32>
    %26 = arith.truncf %25 : vector<128x128xf32> to vector<128x128xbf16>
    %cst_10 = arith.constant dense<0.000000e+00> : vector<128x8xf32>
    %27 = tpu.matmul %26, %10, %cst_10 {dimension_numbers = #tpu.dot_dimension_numbers<[1], [0], [0], [1], [0, 0, 1, 1], [], []>} : vector<128x128xbf16>, vector<128x8xbf16>, vector<128x8xf32> -> vector<128x8xf32>
    %28 = arith.truncf %27 : vector<128x8xf32> to vector<128x8xbf16>
    %c0_11 = arith.constant 0 : index
    %c0_12 = arith.constant 0 : index
    %c0_13 = arith.constant 0 : index
    %29 = vector.load %arg2[%c0_11, %c0_12, %c0_13] : memref<1x128x32xbf16, #tpu.memory_space<vmem>>, vector<1x128x8xbf16>
    %30 = vector.shape_cast %29 : vector<1x128x8xbf16> to vector<128x8xbf16>
    %31 = vector.shape_cast %28 : vector<128x8xbf16> to vector<1x128x8xbf16>
    tpu.vector_store %arg2[%c0_11, %c0_12, %c0_13], %31 {strides = array<i32>} : memref<1x128x32xbf16, #tpu.memory_space<vmem>>, vector<1x128x8xbf16>,
    %c0_14 = arith.constant 0 : index
    %c0_15 = arith.constant 0 : index
    %c8 = arith.constant 8 : index
    %32 = vector.load %arg1[%c0_14, %c0_15, %c8] : memref<1x128x96xbf16, #tpu.memory_space<vmem>>, vector<1x128x8xbf16>
    %33 = vector.shape_cast %32 : vector<1x128x8xbf16> to vector<128x8xbf16>
    %cst_16 = arith.constant 3.535160e-01 : bf16
    %34 = vector.broadcast %cst_16 : bf16 to vector<128x8xbf16>
    %35 = arith.mulf %33, %34 : vector<128x8xbf16>
    %c0_17 = arith.constant 0 : index
    %c0_18 = arith.constant 0 : index
    %c40 = arith.constant 40 : index
    %36 = vector.load %arg1[%c0_17, %c0_18, %c40] : memref<1x128x96xbf16, #tpu.memory_space<vmem>>, vector<1x128x8xbf16>
    %37 = vector.shape_cast %36 : vector<1x128x8xbf16> to vector<128x8xbf16>
    %c0_19 = arith.constant 0 : index
    %c0_20 = arith.constant 0 : index
    %c72 = arith.constant 72 : index
    %38 = vector.load %arg1[%c0_19, %c0_20, %c72] : memref<1x128x96xbf16, #tpu.memory_space<vmem>>, vector<1x128x8xbf16>
    %39 = vector.shape_cast %38 : vector<1x128x8xbf16> to vector<128x8xbf16>
    %cst_21 = arith.constant dense<0.000000e+00> : vector<128x128xf32>
    %40 = tpu.matmul %35, %37, %cst_21 {dimension_numbers = #tpu.dot_dimension_numbers<[1], [1], [0], [0], [0, 0, 1, 0], [], []>} : vector<128x8xbf16>, vector<128x8xbf16>, vector<128x128xf32> -> vector<128x128xf32>
    %cst_22 = arith.constant -1.000000e+30 : f32
    %41 = vector.shape_cast %2 : vector<1x128xi1> to vector<1x128xi1>
    %42 = vector.broadcast %41 : vector<1x128xi1> to vector<128x128xi1>
    %43 = vector.broadcast %cst_22 : f32 to vector<128x128xf32>
    %44 = arith.select %42, %40, %43 : vector<128x128xi1>, vector<128x128xf32>
    %cst_23 = arith.constant dense<0xFF800000> : vector<128xf32>
    %45 = vector.multi_reduction <maximumf>, %44, %cst_23 [1] : vector<128x128xf32> to vector<128xf32>
    %46 = vector.shape_cast %45 : vector<128xf32> to vector<128x1xf32>
    %47 = vector.broadcast %46 : vector<128x1xf32> to vector<128x128xf32>
    %48 = arith.subf %44, %47 : vector<128x128xf32>
    %49 = math.exp %48 : vector<128x128xf32>
    %cst_24 = arith.constant dense<0.000000e+00> : vector<128xf32>
    %50 = vector.multi_reduction <add>, %49, %cst_24 [1] : vector<128x128xf32> to vector<128xf32>
    %51 = vector.shape_cast %50 : vector<128xf32> to vector<128x1xf32>
    %52 = tpu.reciprocal %51 {approx = true} : vector<128x1xf32> -> vector<128x1xf32>
    %53 = vector.broadcast %52 : vector<128x1xf32> to vector<128x128xf32>
    %54 = arith.mulf %49, %53 : vector<128x128xf32>
    %55 = arith.truncf %54 : vector<128x128xf32> to vector<128x128xbf16>
    %cst_25 = arith.constant dense<0.000000e+00> : vector<128x8xf32>
    %56 = tpu.matmul %55, %39, %cst_25 {dimension_numbers = #tpu.dot_dimension_numbers<[1], [0], [0], [1], [0, 0, 1, 1], [], []>} : vector<128x128xbf16>, vector<128x8xbf16>, vector<128x8xf32> -> vector<128x8xf32>
    %57 = arith.truncf %56 : vector<128x8xf32> to vector<128x8xbf16>
    %c0_26 = arith.constant 0 : index
    %c0_27 = arith.constant 0 : index
    %c8_28 = arith.constant 8 : index
    %58 = vector.load %arg2[%c0_26, %c0_27, %c8_28] : memref<1x128x32xbf16, #tpu.memory_space<vmem>>, vector<1x128x8xbf16>
    %59 = vector.shape_cast %58 : vector<1x128x8xbf16> to vector<128x8xbf16>
    %60 = vector.shape_cast %57 : vector<128x8xbf16> to vector<1x128x8xbf16>
    tpu.vector_store %arg2[%c0_26, %c0_27, %c8_28], %60 {strides = array<i32>} : memref<1x128x32xbf16, #tpu.memory_space<vmem>>, vector<1x128x8xbf16>,
    %c0_29 = arith.constant 0 : index
    %c0_30 = arith.constant 0 : index
    %c16 = arith.constant 16 : index
    %61 = vector.load %arg1[%c0_29, %c0_30, %c16] : memref<1x128x96xbf16, #tpu.memory_space<vmem>>, vector<1x128x8xbf16>
    %62 = vector.shape_cast %61 : vector<1x128x8xbf16> to vector<128x8xbf16>
    %cst_31 = arith.constant 3.535160e-01 : bf16
    %63 = vector.broadcast %cst_31 : bf16 to vector<128x8xbf16>
    %64 = arith.mulf %62, %63 : vector<128x8xbf16>
    %c0_32 = arith.constant 0 : index
    %c0_33 = arith.constant 0 : index
    %c48 = arith.constant 48 : index
    %65 = vector.load %arg1[%c0_32, %c0_33, %c48] : memref<1x128x96xbf16, #tpu.memory_space<vmem>>, vector<1x128x8xbf16>
    %66 = vector.shape_cast %65 : vector<1x128x8xbf16> to vector<128x8xbf16>
    %c0_34 = arith.constant 0 : index
    %c0_35 = arith.constant 0 : index
    %c80 = arith.constant 80 : index
    %67 = vector.load %arg1[%c0_34, %c0_35, %c80] : memref<1x128x96xbf16, #tpu.memory_space<vmem>>, vector<1x128x8xbf16>
    %68 = vector.shape_cast %67 : vector<1x128x8xbf16> to vector<128x8xbf16>
    %cst_36 = arith.constant dense<0.000000e+00> : vector<128x128xf32>
    %69 = tpu.matmul %64, %66, %cst_36 {dimension_numbers = #tpu.dot_dimension_numbers<[1], [1], [0], [0], [0, 0, 1, 0], [], []>} : vector<128x8xbf16>, vector<128x8xbf16>, vector<128x128xf32> -> vector<128x128xf32>
    %cst_37 = arith.constant -1.000000e+30 : f32
    %70 = vector.shape_cast %2 : vector<1x128xi1> to vector<1x128xi1>
    %71 = vector.broadcast %70 : vector<1x128xi1> to vector<128x128xi1>
    %72 = vector.broadcast %cst_37 : f32 to vector<128x128xf32>
    %73 = arith.select %71, %69, %72 : vector<128x128xi1>, vector<128x128xf32>
    %cst_38 = arith.constant dense<0xFF800000> : vector<128xf32>
    %74 = vector.multi_reduction <maximumf>, %73, %cst_38 [1] : vector<128x128xf32> to vector<128xf32>
    %75 = vector.shape_cast %74 : vector<128xf32> to vector<128x1xf32>
    %76 = vector.broadcast %75 : vector<128x1xf32> to vector<128x128xf32>
    %77 = arith.subf %73, %76 : vector<128x128xf32>
    %78 = math.exp %77 : vector<128x128xf32>
    %cst_39 = arith.constant dense<0.000000e+00> : vector<128xf32>
    %79 = vector.multi_reduction <add>, %78, %cst_39 [1] : vector<128x128xf32> to vector<128xf32>
    %80 = vector.shape_cast %79 : vector<128xf32> to vector<128x1xf32>
    %81 = tpu.reciprocal %80 {approx = true} : vector<128x1xf32> -> vector<128x1xf32>
    %82 = vector.broadcast %81 : vector<128x1xf32> to vector<128x128xf32>
    %83 = arith.mulf %78, %82 : vector<128x128xf32>
    %84 = arith.truncf %83 : vector<128x128xf32> to vector<128x128xbf16>
    %cst_40 = arith.constant dense<0.000000e+00> : vector<128x8xf32>
    %85 = tpu.matmul %84, %68, %cst_40 {dimension_numbers = #tpu.dot_dimension_numbers<[1], [0], [0], [1], [0, 0, 1, 1], [], []>} : vector<128x128xbf16>, vector<128x8xbf16>, vector<128x8xf32> -> vector<128x8xf32>
    %86 = arith.truncf %85 : vector<128x8xf32> to vector<128x8xbf16>
    %c0_41 = arith.constant 0 : index
    %c0_42 = arith.constant 0 : index
    %c16_43 = arith.constant 16 : index
    %87 = vector.load %arg2[%c0_41, %c0_42, %c16_43] : memref<1x128x32xbf16, #tpu.memory_space<vmem>>, vector<1x128x8xbf16>
    %88 = vector.shape_cast %87 : vector<1x128x8xbf16> to vector<128x8xbf16>
    %89 = vector.shape_cast %86 : vector<128x8xbf16> to vector<1x128x8xbf16>
    tpu.vector_store %arg2[%c0_41, %c0_42, %c16_43], %89 {strides = array<i32>} : memref<1x128x32xbf16, #tpu.memory_space<vmem>>, vector<1x128x8xbf16>,
    %c0_44 = arith.constant 0 : index
    %c0_45 = arith.constant 0 : index
    %c24 = arith.constant 24 : index
    %90 = vector.load %arg1[%c0_44, %c0_45, %c24] : memref<1x128x96xbf16, #tpu.memory_space<vmem>>, vector<1x128x8xbf16>
    %91 = vector.shape_cast %90 : vector<1x128x8xbf16> to vector<128x8xbf16>
    %cst_46 = arith.constant 3.535160e-01 : bf16
    %92 = vector.broadcast %cst_46 : bf16 to vector<128x8xbf16>
    %93 = arith.mulf %91, %92 : vector<128x8xbf16>
    %c0_47 = arith.constant 0 : index
    %c0_48 = arith.constant 0 : index
    %c56 = arith.constant 56 : index
    %94 = vector.load %arg1[%c0_47, %c0_48, %c56] : memref<1x128x96xbf16, #tpu.memory_space<vmem>>, vector<1x128x8xbf16>
    %95 = vector.shape_cast %94 : vector<1x128x8xbf16> to vector<128x8xbf16>
    %c0_49 = arith.constant 0 : index
    %c0_50 = arith.constant 0 : index
    %c88 = arith.constant 88 : index
    %96 = vector.load %arg1[%c0_49, %c0_50, %c88] : memref<1x128x96xbf16, #tpu.memory_space<vmem>>, vector<1x128x8xbf16>
    %97 = vector.shape_cast %96 : vector<1x128x8xbf16> to vector<128x8xbf16>
    %cst_51 = arith.constant dense<0.000000e+00> : vector<128x128xf32>
    %98 = tpu.matmul %93, %95, %cst_51 {dimension_numbers = #tpu.dot_dimension_numbers<[1], [1], [0], [0], [0, 0, 1, 0], [], []>} : vector<128x8xbf16>, vector<128x8xbf16>, vector<128x128xf32> -> vector<128x128xf32>
    %cst_52 = arith.constant -1.000000e+30 : f32
    %99 = vector.shape_cast %2 : vector<1x128xi1> to vector<1x128xi1>
    %100 = vector.broadcast %99 : vector<1x128xi1> to vector<128x128xi1>
    %101 = vector.broadcast %cst_52 : f32 to vector<128x128xf32>
    %102 = arith.select %100, %98, %101 : vector<128x128xi1>, vector<128x128xf32>
    %cst_53 = arith.constant dense<0xFF800000> : vector<128xf32>
    %103 = vector.multi_reduction <maximumf>, %102, %cst_53 [1] : vector<128x128xf32> to vector<128xf32>
    %104 = vector.shape_cast %103 : vector<128xf32> to vector<128x1xf32>
    %105 = vector.broadcast %104 : vector<128x1xf32> to vector<128x128xf32>
    %106 = arith.subf %102, %105 : vector<128x128xf32>
    %107 = math.exp %106 : vector<128x128xf32>
    %cst_54 = arith.constant dense<0.000000e+00> : vector<128xf32>
    %108 = vector.multi_reduction <add>, %107, %cst_54 [1] : vector<128x128xf32> to vector<128xf32>
    %109 = vector.shape_cast %108 : vector<128xf32> to vector<128x1xf32>
    %110 = tpu.reciprocal %109 {approx = true} : vector<128x1xf32> -> vector<128x1xf32>
    %111 = vector.broadcast %110 : vector<128x1xf32> to vector<128x128xf32>
    %112 = arith.mulf %107, %111 : vector<128x128xf32>
    %113 = arith.truncf %112 : vector<128x128xf32> to vector<128x128xbf16>
    %cst_55 = arith.constant dense<0.000000e+00> : vector<128x8xf32>
    %114 = tpu.matmul %113, %97, %cst_55 {dimension_numbers = #tpu.dot_dimension_numbers<[1], [0], [0], [1], [0, 0, 1, 1], [], []>} : vector<128x128xbf16>, vector<128x8xbf16>, vector<128x8xf32> -> vector<128x8xf32>
    %115 = arith.truncf %114 : vector<128x8xf32> to vector<128x8xbf16>
    %c0_56 = arith.constant 0 : index
    %c0_57 = arith.constant 0 : index
    %c24_58 = arith.constant 24 : index
    %116 = vector.load %arg2[%c0_56, %c0_57, %c24_58] : memref<1x128x32xbf16, #tpu.memory_space<vmem>>, vector<1x128x8xbf16>
    %117 = vector.shape_cast %116 : vector<1x128x8xbf16> to vector<128x8xbf16>
    %118 = vector.shape_cast %115 : vector<128x8xbf16> to vector<1x128x8xbf16>
    tpu.vector_store %arg2[%c0_56, %c0_57, %c24_58], %118 {strides = array<i32>} : memref<1x128x32xbf16, #tpu.memory_space<vmem>>, vector<1x128x8xbf16>,
    return
  }
  func.func @transform_0(%arg0: i32) -> (i32, i32, i32) {
    %c0_i32 = arith.constant 0 : i32
    %c0_i32_0 = arith.constant 0 : i32
    %c0_i32_1 = arith.constant 0 : i32
    return %arg0, %c0_i32, %c0_i32_0 : i32, i32, i32
  }
  func.func @transform_1(%arg0: i32) -> (i32, i32, i32) {
    %c0_i32 = arith.constant 0 : i32
    %c0_i32_0 = arith.constant 0 : i32
    %c0_i32_1 = arith.constant 0 : i32
    return %arg0, %c0_i32, %c0_i32_0 : i32, i32, i32
  }
}

module attributes {stable_mosaic.version = 11 : i64} {
  func.func @_matmul_bias_res_kernel(%arg0: i32, %arg1: memref<256x32xbf16, #tpu.memory_space<vmem>>, %arg2: memref<32x32xbf16, #tpu.memory_space<vmem>>, %arg3: memref<1x32xf32, #tpu.memory_space<vmem>>, %arg4: memref<256x32xbf16, #tpu.memory_space<vmem>>, %arg5: memref<256x32xbf16, #tpu.memory_space<vmem>>) attributes {dimension_semantics = [#tpu.dimension_semantics<parallel>], iteration_bounds = array<i64: 1>, scalar_prefetch = 0 : i64, scratch_operands = 0 : i64, tpu.core_type = #tpu.core_type<tc>, window_params = [{transform_indices = @transform_0, window_bounds = array<i64: 256, 32>}, {pipeline_mode = #tpu.pipeline_mode<synchronous>, transform_indices = @transform_1, window_bounds = array<i64: 32, 32>}, {pipeline_mode = #tpu.pipeline_mode<synchronous>, transform_indices = @transform_2, window_bounds = array<i64: 1, 32>}, {transform_indices = @transform_3, window_bounds = array<i64: 256, 32>}, {transform_indices = @transform_4, window_bounds = array<i64: 256, 32>}]} {
    %c0 = arith.constant 0 : index
    %c0_0 = arith.constant 0 : index
    %0 = vector.load %arg1[%c0, %c0_0] : memref<256x32xbf16, #tpu.memory_space<vmem>>, vector<256x32xbf16>
    %c0_1 = arith.constant 0 : index
    %c0_2 = arith.constant 0 : index
    %1 = vector.load %arg2[%c0_1, %c0_2] : memref<32x32xbf16, #tpu.memory_space<vmem>>, vector<32x32xbf16>
    %cst = arith.constant dense<0.000000e+00> : vector<256x32xf32>
    %2 = tpu.matmul %0, %1, %cst {dimension_numbers = #tpu.dot_dimension_numbers<[1], [0], [0], [1], [0, 0, 1, 1], [], []>} : vector<256x32xbf16>, vector<32x32xbf16>, vector<256x32xf32> -> vector<256x32xf32>
    %c0_3 = arith.constant 0 : index
    %c0_4 = arith.constant 0 : index
    %3 = vector.load %arg3[%c0_3, %c0_4] : memref<1x32xf32, #tpu.memory_space<vmem>>, vector<1x32xf32>
    %4 = vector.broadcast %3 : vector<1x32xf32> to vector<256x32xf32>
    %5 = arith.addf %2, %4 : vector<256x32xf32>
    %c0_5 = arith.constant 0 : index
    %c0_6 = arith.constant 0 : index
    %6 = vector.load %arg4[%c0_5, %c0_6] : memref<256x32xbf16, #tpu.memory_space<vmem>>, vector<256x32xbf16>
    %7 = arith.extf %6 : vector<256x32xbf16> to vector<256x32xf32>
    %8 = arith.addf %5, %7 : vector<256x32xf32>
    %9 = arith.truncf %8 : vector<256x32xf32> to vector<256x32xbf16>
    %c0_7 = arith.constant 0 : index
    %c0_8 = arith.constant 0 : index
    %10 = vector.load %arg5[%c0_7, %c0_8] : memref<256x32xbf16, #tpu.memory_space<vmem>>, vector<256x32xbf16>
    tpu.vector_store %arg5[%c0_7, %c0_8], %9 {strides = array<i32>} : memref<256x32xbf16, #tpu.memory_space<vmem>>, vector<256x32xbf16>,
    return
  }
  func.func @transform_0(%arg0: i32) -> (i32, i32) {
    %c0_i32 = arith.constant 0 : i32
    %c0_i32_0 = arith.constant 0 : i32
    return %arg0, %c0_i32 : i32, i32
  }
  func.func @transform_1(%arg0: i32) -> (i32, i32) {
    %c0_i32 = arith.constant 0 : i32
    %c0_i32_0 = arith.constant 0 : i32
    %c0_i32_1 = arith.constant 0 : i32
    return %c0_i32, %c0_i32_0 : i32, i32
  }
  func.func @transform_2(%arg0: i32) -> (i32, i32) {
    %c0_i32 = arith.constant 0 : i32
    %c0_i32_0 = arith.constant 0 : i32
    %c0_i32_1 = arith.constant 0 : i32
    return %c0_i32, %c0_i32_0 : i32, i32
  }
  func.func @transform_3(%arg0: i32) -> (i32, i32) {
    %c0_i32 = arith.constant 0 : i32
    %c0_i32_0 = arith.constant 0 : i32
    return %arg0, %c0_i32 : i32, i32
  }
  func.func @transform_4(%arg0: i32) -> (i32, i32) {
    %c0_i32 = arith.constant 0 : i32
    %c0_i32_0 = arith.constant 0 : i32
    return %arg0, %c0_i32 : i32, i32
  }
}

module attributes {stable_mosaic.version = 11 : i64} {
  func.func @_mlp_kernel(%arg0: i32, %arg1: memref<256x32xbf16, #tpu.memory_space<vmem>>, %arg2: memref<1x32xf32, #tpu.memory_space<vmem>>, %arg3: memref<1x32xf32, #tpu.memory_space<vmem>>, %arg4: memref<32x128xbf16, #tpu.memory_space<vmem>>, %arg5: memref<1x128xf32, #tpu.memory_space<vmem>>, %arg6: memref<128x32xbf16, #tpu.memory_space<vmem>>, %arg7: memref<1x32xf32, #tpu.memory_space<vmem>>, %arg8: memref<256x32xbf16, #tpu.memory_space<vmem>>) attributes {dimension_semantics = [#tpu.dimension_semantics<parallel>], iteration_bounds = array<i64: 1>, scalar_prefetch = 0 : i64, scratch_operands = 0 : i64, tpu.core_type = #tpu.core_type<tc>, window_params = [{transform_indices = @transform_0, window_bounds = array<i64: 256, 32>}, {pipeline_mode = #tpu.pipeline_mode<synchronous>, transform_indices = @transform_1, window_bounds = array<i64: 1, 32>}, {pipeline_mode = #tpu.pipeline_mode<synchronous>, transform_indices = @transform_2, window_bounds = array<i64: 1, 32>}, {pipeline_mode = #tpu.pipeline_mode<synchronous>, transform_indices = @transform_3, window_bounds = array<i64: 32, 128>}, {pipeline_mode = #tpu.pipeline_mode<synchronous>, transform_indices = @transform_4, window_bounds = array<i64: 1, 128>}, {pipeline_mode = #tpu.pipeline_mode<synchronous>, transform_indices = @transform_5, window_bounds = array<i64: 128, 32>}, {pipeline_mode = #tpu.pipeline_mode<synchronous>, transform_indices = @transform_6, window_bounds = array<i64: 1, 32>}, {transform_indices = @transform_7, window_bounds = array<i64: 256, 32>}]} {
    %c0 = arith.constant 0 : index
    %c0_0 = arith.constant 0 : index
    %0 = vector.load %arg1[%c0, %c0_0] : memref<256x32xbf16, #tpu.memory_space<vmem>>, vector<256x32xbf16>
    %1 = arith.extf %0 : vector<256x32xbf16> to vector<256x32xf32>
    %cst = arith.constant dense<0.000000e+00> : vector<256xf32>
    %2 = vector.multi_reduction <add>, %1, %cst [1] : vector<256x32xf32> to vector<256xf32>
    %3 = vector.shape_cast %2 : vector<256xf32> to vector<256x1xf32>
    %cst_1 = arith.constant 3.200000e+01 : f32
    %4 = vector.broadcast %cst_1 : f32 to vector<256x1xf32>
    %5 = arith.divf %3, %4 : vector<256x1xf32>
    %6 = vector.broadcast %5 : vector<256x1xf32> to vector<256x32xf32>
    %7 = arith.subf %1, %6 : vector<256x32xf32>
    %8 = arith.mulf %7, %7 : vector<256x32xf32>
    %cst_2 = arith.constant dense<0.000000e+00> : vector<256xf32>
    %9 = vector.multi_reduction <add>, %8, %cst_2 [1] : vector<256x32xf32> to vector<256xf32>
    %10 = vector.shape_cast %9 : vector<256xf32> to vector<256x1xf32>
    %cst_3 = arith.constant 3.200000e+01 : f32
    %11 = vector.broadcast %cst_3 : f32 to vector<256x1xf32>
    %12 = arith.divf %10, %11 : vector<256x1xf32>
    %13 = vector.broadcast %5 : vector<256x1xf32> to vector<256x32xf32>
    %14 = arith.subf %1, %13 : vector<256x32xf32>
    %cst_4 = arith.constant 9.99999974E-6 : f32
    %15 = vector.broadcast %cst_4 : f32 to vector<256x1xf32>
    %16 = arith.addf %12, %15 : vector<256x1xf32>
    %17 = math.rsqrt %16 : vector<256x1xf32>
    %18 = vector.broadcast %17 : vector<256x1xf32> to vector<256x32xf32>
    %19 = arith.mulf %14, %18 : vector<256x32xf32>
    %c0_5 = arith.constant 0 : index
    %c0_6 = arith.constant 0 : index
    %20 = vector.load %arg2[%c0_5, %c0_6] : memref<1x32xf32, #tpu.memory_space<vmem>>, vector<1x32xf32>
    %21 = vector.broadcast %20 : vector<1x32xf32> to vector<256x32xf32>
    %22 = arith.mulf %19, %21 : vector<256x32xf32>
    %c0_7 = arith.constant 0 : index
    %c0_8 = arith.constant 0 : index
    %23 = vector.load %arg3[%c0_7, %c0_8] : memref<1x32xf32, #tpu.memory_space<vmem>>, vector<1x32xf32>
    %24 = vector.broadcast %23 : vector<1x32xf32> to vector<256x32xf32>
    %25 = arith.addf %22, %24 : vector<256x32xf32>
    %26 = arith.truncf %25 : vector<256x32xf32> to vector<256x32xbf16>
    %c0_9 = arith.constant 0 : index
    %c0_10 = arith.constant 0 : index
    %27 = vector.load %arg4[%c0_9, %c0_10] : memref<32x128xbf16, #tpu.memory_space<vmem>>, vector<32x128xbf16>
    %cst_11 = arith.constant dense<0.000000e+00> : vector<256x128xf32>
    %28 = tpu.matmul %26, %27, %cst_11 {dimension_numbers = #tpu.dot_dimension_numbers<[1], [0], [0], [1], [0, 0, 1, 1], [], []>} : vector<256x32xbf16>, vector<32x128xbf16>, vector<256x128xf32> -> vector<256x128xf32>
    %c0_12 = arith.constant 0 : index
    %c0_13 = arith.constant 0 : index
    %29 = vector.load %arg5[%c0_12, %c0_13] : memref<1x128xf32, #tpu.memory_space<vmem>>, vector<1x128xf32>
    %30 = vector.broadcast %29 : vector<1x128xf32> to vector<256x128xf32>
    %31 = arith.addf %28, %30 : vector<256x128xf32>
    %cst_14 = arith.constant 1.702000e+00 : f32
    %32 = vector.broadcast %cst_14 : f32 to vector<256x128xf32>
    %33 = arith.mulf %32, %31 : vector<256x128xf32>
    %34 = arith.negf %33 : vector<256x128xf32>
    %35 = math.exp %34 : vector<256x128xf32>
    %cst_15 = arith.constant 1.000000e+00 : f32
    %36 = vector.broadcast %cst_15 : f32 to vector<256x128xf32>
    %37 = arith.addf %36, %35 : vector<256x128xf32>
    %38 = arith.divf %36, %37 : vector<256x128xf32>
    %39 = arith.mulf %31, %38 : vector<256x128xf32>
    %40 = arith.truncf %39 : vector<256x128xf32> to vector<256x128xbf16>
    %c0_16 = arith.constant 0 : index
    %c0_17 = arith.constant 0 : index
    %41 = vector.load %arg6[%c0_16, %c0_17] : memref<128x32xbf16, #tpu.memory_space<vmem>>, vector<128x32xbf16>
    %cst_18 = arith.constant dense<0.000000e+00> : vector<256x32xf32>
    %42 = tpu.matmul %40, %41, %cst_18 {dimension_numbers = #tpu.dot_dimension_numbers<[1], [0], [0], [1], [0, 0, 1, 1], [], []>} : vector<256x128xbf16>, vector<128x32xbf16>, vector<256x32xf32> -> vector<256x32xf32>
    %c0_19 = arith.constant 0 : index
    %c0_20 = arith.constant 0 : index
    %43 = vector.load %arg7[%c0_19, %c0_20] : memref<1x32xf32, #tpu.memory_space<vmem>>, vector<1x32xf32>
    %44 = vector.broadcast %43 : vector<1x32xf32> to vector<256x32xf32>
    %45 = arith.addf %42, %44 : vector<256x32xf32>
    %46 = arith.addf %45, %1 : vector<256x32xf32>
    %47 = arith.truncf %46 : vector<256x32xf32> to vector<256x32xbf16>
    %c0_21 = arith.constant 0 : index
    %c0_22 = arith.constant 0 : index
    %48 = vector.load %arg8[%c0_21, %c0_22] : memref<256x32xbf16, #tpu.memory_space<vmem>>, vector<256x32xbf16>
    tpu.vector_store %arg8[%c0_21, %c0_22], %47 {strides = array<i32>} : memref<256x32xbf16, #tpu.memory_space<vmem>>, vector<256x32xbf16>,
    return
  }
  func.func @transform_0(%arg0: i32) -> (i32, i32) {
    %c0_i32 = arith.constant 0 : i32
    %c0_i32_0 = arith.constant 0 : i32
    return %arg0, %c0_i32 : i32, i32
  }
  func.func @transform_1(%arg0: i32) -> (i32, i32) {
    %c0_i32 = arith.constant 0 : i32
    %c0_i32_0 = arith.constant 0 : i32
    %c0_i32_1 = arith.constant 0 : i32
    return %c0_i32, %c0_i32_0 : i32, i32
  }
  func.func @transform_2(%arg0: i32) -> (i32, i32) {
    %c0_i32 = arith.constant 0 : i32
    %c0_i32_0 = arith.constant 0 : i32
    %c0_i32_1 = arith.constant 0 : i32
    return %c0_i32, %c0_i32_0 : i32, i32
  }
  func.func @transform_3(%arg0: i32) -> (i32, i32) {
    %c0_i32 = arith.constant 0 : i32
    %c0_i32_0 = arith.constant 0 : i32
    %c0_i32_1 = arith.constant 0 : i32
    return %c0_i32, %c0_i32_0 : i32, i32
  }
  func.func @transform_4(%arg0: i32) -> (i32, i32) {
    %c0_i32 = arith.constant 0 : i32
    %c0_i32_0 = arith.constant 0 : i32
    %c0_i32_1 = arith.constant 0 : i32
    return %c0_i32, %c0_i32_0 : i32, i32
  }
  func.func @transform_5(%arg0: i32) -> (i32, i32) {
    %c0_i32 = arith.constant 0 : i32
    %c0_i32_0 = arith.constant 0 : i32
    %c0_i32_1 = arith.constant 0 : i32
    return %c0_i32, %c0_i32_0 : i32, i32
  }
  func.func @transform_6(%arg0: i32) -> (i32, i32) {
    %c0_i32 = arith.constant 0 : i32
    %c0_i32_0 = arith.constant 0 : i32
    %c0_i32_1 = arith.constant 0 : i32
    return %c0_i32, %c0_i32_0 : i32, i32
  }
  func.func @transform_7(%arg0: i32) -> (i32, i32) {
    %c0_i32 = arith.constant 0 : i32
    %c0_i32_0 = arith.constant 0 : i32
    return %arg0, %c0_i32 : i32, i32
  }
}

module attributes {stable_mosaic.version = 11 : i64} {
  func.func @_head_kernel(%arg0: memref<2x32xbf16, #tpu.memory_space<vmem>>, %arg1: memref<1x32xf32, #tpu.memory_space<vmem>>, %arg2: memref<1x32xf32, #tpu.memory_space<vmem>>, %arg3: memref<32x16xbf16, #tpu.memory_space<vmem>>, %arg4: memref<2x16xf32, #tpu.memory_space<vmem>>) attributes {dimension_semantics = [], scalar_prefetch = 0 : i64, scratch_operands = 0 : i64, tpu.core_type = #tpu.core_type<tc>} {
    %c0 = arith.constant 0 : index
    %c0_0 = arith.constant 0 : index
    %0 = vector.load %arg0[%c0, %c0_0] : memref<2x32xbf16, #tpu.memory_space<vmem>>, vector<2x32xbf16>
    %1 = arith.extf %0 : vector<2x32xbf16> to vector<2x32xf32>
    %cst = arith.constant dense<0.000000e+00> : vector<2xf32>
    %2 = vector.multi_reduction <add>, %1, %cst [1] : vector<2x32xf32> to vector<2xf32>
    %3 = vector.shape_cast %2 : vector<2xf32> to vector<2x1xf32>
    %cst_1 = arith.constant 3.200000e+01 : f32
    %4 = vector.broadcast %cst_1 : f32 to vector<2x1xf32>
    %5 = arith.divf %3, %4 : vector<2x1xf32>
    %6 = vector.broadcast %5 : vector<2x1xf32> to vector<2x32xf32>
    %7 = arith.subf %1, %6 : vector<2x32xf32>
    %8 = arith.mulf %7, %7 : vector<2x32xf32>
    %cst_2 = arith.constant dense<0.000000e+00> : vector<2xf32>
    %9 = vector.multi_reduction <add>, %8, %cst_2 [1] : vector<2x32xf32> to vector<2xf32>
    %10 = vector.shape_cast %9 : vector<2xf32> to vector<2x1xf32>
    %cst_3 = arith.constant 3.200000e+01 : f32
    %11 = vector.broadcast %cst_3 : f32 to vector<2x1xf32>
    %12 = arith.divf %10, %11 : vector<2x1xf32>
    %13 = vector.broadcast %5 : vector<2x1xf32> to vector<2x32xf32>
    %14 = arith.subf %1, %13 : vector<2x32xf32>
    %cst_4 = arith.constant 9.99999974E-6 : f32
    %15 = vector.broadcast %cst_4 : f32 to vector<2x1xf32>
    %16 = arith.addf %12, %15 : vector<2x1xf32>
    %17 = math.rsqrt %16 : vector<2x1xf32>
    %18 = vector.broadcast %17 : vector<2x1xf32> to vector<2x32xf32>
    %19 = arith.mulf %14, %18 : vector<2x32xf32>
    %c0_5 = arith.constant 0 : index
    %c0_6 = arith.constant 0 : index
    %20 = vector.load %arg1[%c0_5, %c0_6] : memref<1x32xf32, #tpu.memory_space<vmem>>, vector<1x32xf32>
    %21 = vector.broadcast %20 : vector<1x32xf32> to vector<2x32xf32>
    %22 = arith.mulf %19, %21 : vector<2x32xf32>
    %c0_7 = arith.constant 0 : index
    %c0_8 = arith.constant 0 : index
    %23 = vector.load %arg2[%c0_7, %c0_8] : memref<1x32xf32, #tpu.memory_space<vmem>>, vector<1x32xf32>
    %24 = vector.broadcast %23 : vector<1x32xf32> to vector<2x32xf32>
    %25 = arith.addf %22, %24 : vector<2x32xf32>
    %26 = arith.truncf %25 : vector<2x32xf32> to vector<2x32xbf16>
    %c0_9 = arith.constant 0 : index
    %c0_10 = arith.constant 0 : index
    %27 = vector.load %arg3[%c0_9, %c0_10] : memref<32x16xbf16, #tpu.memory_space<vmem>>, vector<32x16xbf16>
    %cst_11 = arith.constant dense<0.000000e+00> : vector<2x16xf32>
    %28 = tpu.matmul %26, %27, %cst_11 {dimension_numbers = #tpu.dot_dimension_numbers<[1], [0], [0], [1], [0, 0, 1, 1], [], []>} : vector<2x32xbf16>, vector<32x16xbf16>, vector<2x16xf32> -> vector<2x16xf32>
    %29 = arith.mulf %28, %28 : vector<2x16xf32>
    %cst_12 = arith.constant dense<0.000000e+00> : vector<2xf32>
    %30 = vector.multi_reduction <add>, %29, %cst_12 [1] : vector<2x16xf32> to vector<2xf32>
    %31 = vector.shape_cast %30 : vector<2xf32> to vector<2x1xf32>
    %cst_13 = arith.constant 9.99999996E-13 : f32
    %32 = vector.broadcast %cst_13 : f32 to vector<2x1xf32>
    %33 = arith.addf %31, %32 : vector<2x1xf32>
    %34 = math.sqrt %33 : vector<2x1xf32>
    %35 = vector.broadcast %34 : vector<2x1xf32> to vector<2x16xf32>
    %36 = arith.divf %28, %35 : vector<2x16xf32>
    %c0_14 = arith.constant 0 : index
    %c0_15 = arith.constant 0 : index
    %37 = vector.load %arg4[%c0_14, %c0_15] : memref<2x16xf32, #tpu.memory_space<vmem>>, vector<2x16xf32>
    tpu.vector_store %arg4[%c0_14, %c0_15], %36 {strides = array<i32>} : memref<2x16xf32, #tpu.memory_space<vmem>>, vector<2x16xf32>,
    return
  }
}

</mosaic_0001>

<bundles_post_ra>
// kernel: tpu_custom_call.1
= control target key start
LH: loop header
LB: loop body
LE: loop exit
PB: predicated region body
PF: predicated region fallthrough
CT: control target
= control target key end

     0   :  { %6 = vsyncpa [#allocation3], 0  ;;  %s481_s0 = inlined_call_operand.hbm [shape: f32[8,128], index: 0, kind: input, shape index: {}]   ;;  %s482_s1 = inlined_call_operand.hbm [shape: f32[16,128], index: 1, kind: output, shape index: {}]  }
   0x1   :  { %7 = vsyncpa [#allocation4], 0 }
   0x2   :  { %9 = vsyncpa [#allocation4 + $0x1], 0  ;;  %s351_s6 = smov 0   ;;  %s353_s7 = smov 0  }
   0x3   :  { %s355_s8 = smov 0   ;;  %s357_s9 = smov 0  }
   0x4 LB: > { %s372_s10 = sadd.s32 4294967295, %s337_s9   ;;  %s183_s11 = sadd.s32 4294967294, %s337_s9   ;;  %s337_s9 = sphi %s357_s9, %s498_s9   ;;  %s333_s8 = sphi %s355_s8, %s497_s8   ;;  %s329_s7 = sphi %s353_s7, %s496_s7   ;;  %s325_s6 = sphi %s351_s6, %s495_s6  }
   0x5   : > { %s376_s12 = sadd.s32 1, %s337_s9   ;;  %s43_s13 = sadd.s32 1, %s333_s8 }
   0x6   : > { %s40_s14 = ssub.s32 %s337_s9, %s376_s12  ;;  %p53_p0 = scmp.ne.s32.totalorder %s333_s8, %s329_s7 }
   0x7   : > { %p41_p1 = scmp.eq.s32.totalorder %s40_s14, 0  ;;  %p54_p2 = scmp.eq.s32.totalorder %s372_s10, 1 }
   0x8   : > { %p59_p3 = scmp.ne.s32.totalorder %s329_s7, %s325_s6  ;;  %p60_p4 = scmp.eq.s32.totalorder %s183_s11, 1 }
   0x9   : > { %s387_s15 = scalar_select %p41_p1, %s333_s8, %s43_s13  }
   0xa   : > { %p389_p5 = por %p54_p2, %p53_p0  ;;  %p393_p6 = por %p60_p4, %p59_p3 }
   0xb   : > { %p184_p7 = scmp.ge.s32.totalorder %s337_s9, 1  ;;  %p67_p8 = scmp.lt.s32.totalorder %s337_s9, 3 }
   0xc   : > { %s486_s16 = scalar_select %p389_p5, 1, 0 }
   0xd   : > { %s487_s17 = scalar_select %p393_p6, 1, 0 }
   0xe   : > { %p483_p9 = scmp.eq.s32.totalorder %s372_s10, 0  ;;  %p400_p10 = pnand %p184_p7, %p67_p8 }
   0xf   : > { %s339_s19 = smov [#allocation2]   ;;  %s243_s24 = scalar_lea.hbm %s481_s0, 128 }
  0x10   : > { %s488_s18 = scalar_select %p400_p10, 1, 0 }
  0x11   : > { %s80_s20 = sshll.u32 %s339_s19, 4  ;;  %p199_p11 = pneg %p400_p10  ;;  %s81_s20 = int_to_ptr.vmem [resolvable:$true] %s80_s20 }
  0x12   : > { %p244_p13 = scmp.ne.s32.totalorder %s481_s0, %s243_s24  ;;  %p250_p3 = scmp.lt.u32.totalorder %s243_s24, %s481_s0 }
  0x13   : > { %p408_p12 = pnand %p483_p9, %p199_p11 }
  0x15   : > { %p245_p0 = pneg %p408_p12 }
  0x17   : > { %p246_p1 = pnand %p245_p0, %p244_p13 }
  0x19   : > { %p247_p2 = pneg %p246_p1 }
  0x1b   : > { %p252_p4 = pnand %p250_p3, %p247_p2 }
  0x1d   : > { %255 = shalt.err (!%p252_p4)
}
  0x1e   : > { %s256_s29 = scalar_lea.vmem %s81_s20, 128  ;;  %p264_p9 = scmp.lt.s32.totalorder %s81_s20, %s81_s20 }
  0x1f   : > { %p257_p7 = scmp.ne.s32.totalorder %s81_s20, %s256_s29  ;;  %p265_p6 = scmp.lt.s32.totalorder %s256_s29, %s256_s29 }
  0x21   : > { %p259_p8 = pnand %p257_p7, %p245_p0  ;;  %p266_p5 = por %p265_p6, %p264_p9 }
  0x23   : > { %p260_p11 = pneg %p259_p8 }
  0x25   : > { %p267_p10 = pnand %p266_p5, %p260_p11 }
  0x27   : > { %270 = shalt.err (!%p267_p10)
}
  0x28   : > { %202 = dma.hbm_to_vmem [thread:$0]  (!%p408_p12), %s481_s0, 128, %s81_s20, [#allocation3]  }
  0x29   : > { %p490_p13 = scmp.ne.s32.totalorder %s488_s18, 0 }
  0x2a   : > { %p491_p1 = scmp.eq.s32.totalorder (!%p490_p13), %s372_s10, 0 }
  0x2b   : > { %93 = sbr.rel (%p490_p13) target bundleno = 77 (0x4d), region = 24 }
  0x32   : > { %316 = dma.done.wait (%p491_p1), [#allocation3], 128   ;;  %p492_p0 = pmov %p491_p1 }
  0x33   : > { %s105_s3 = sand.u32 1, %s329_s7   ;;  %s190_s13 = sshll.u32 %s372_s10, 7  ;;  %v108_v0 = vld [vmem:[#allocation2] sm:$0xff] }
  0x34   : > { %318 = vsyncadd (%p492_p0), [#allocation3], 4294967168  ;;  %s188_s4 = sshll.u32 %s105_s3, 3  ;;  %s441_s18 = scalar_lea.hbm %s482_s1, %s190_s13 }
  0x35   : > { %s107_s5 = scalar_lea.vmem [#allocation5], %s188_s4  ;;  %s111_s20 = scalar_lea.sflag [#allocation4], %s105_s3 }
  0x36   : > { %s124_s11 = sshll.u32 %s107_s5, 4  ;;  %109 = vst [vmem:[%s107_s5] sm:$0xff] %v108_v0  ;;  %p493_p6 = scmp.ne.s32.totalorder %s486_s16, 0  ;;  %s436_s11 = int_to_ptr.vmem [resolvable:$true] %s124_s11 }
  0x37   : > { %s271_s21 = scalar_lea.vmem %s436_s11, 128  ;;  %s340_s22 = smov [#allocation5]  }
  0x38   : > { %p272_p5 = scmp.ne.s32.totalorder %s436_s11, %s271_s21  ;;  %s275_s10 = sshll.u32 %s340_s22, 4  ;;  %s276_s10 = int_to_ptr.vmem [resolvable:$false] %s275_s10 }
  0x39   : > { %s277_s23 = scalar_lea.vmem %s276_s10, 256  ;;  %p278_p12 = scmp.lt.s32.totalorder %s436_s11, %s276_s10 }
  0x3a   : > { %p273_p9 = pnand %p272_p5, %p493_p6  ;;  %p279_p2 = scmp.lt.s32.totalorder %s277_s23, %s271_s21 }
  0x3c   : > { %p274_p10 = pneg %p273_p9  ;;  %p280_p3 = por %p279_p2, %p278_p12 }
  0x3e   : > { %p281_p4 = pnand %p280_p3, %p274_p10 }
  0x40   : > { %284 = shalt.err (!%p281_p4)
}
  0x41   : > { %s285_s24 = scalar_lea.hbm %s441_s18, 128  ;;  %s289_s27 = scalar_lea.hbm %s482_s1, 256 }
  0x42   : > { %p286_p7 = scmp.ne.s32.totalorder %s441_s18, %s285_s24  ;;  %p290_p13 = scmp.lt.u32.totalorder %s441_s18, %s482_s1 }
  0x43   : > { %p291_p1 = scmp.lt.u32.totalorder %s289_s27, %s285_s24  ;;  %p293_p5 = scmp.lt.u32.totalorder %s285_s24, %s441_s18 }
  0x44   : > { %p287_p8 = pnand %p286_p7, %p493_p6 }
  0x45   : > { %p292_p0 = por %p291_p1, %p290_p13 }
  0x46   : > { %p288_p11 = pneg %p287_p8 }
  0x47   : > { %p294_p9 = por %p293_p5, %p292_p0 }
  0x49   : > { %p295_p10 = pnand %p294_p9, %p288_p11 }
  0x4b   : > { %298 = shalt.err (!%p295_p10)
}
  0x4c   : > { %197 = dma.vmem_to_hbm [thread:$0]  (%p493_p6), %s436_s11, 128, %s441_s18, %s111_s20  }
  0x4d PF: > { %p209_p12 = scmp.ge.s32.totalorder %s337_s9, 2  ;;  %s136_s30 = sand.u32 1, %s325_s6  }
  0x4e   : > { %p494_p2 = scmp.ne.s32.totalorder %s487_s17, 0  ;;  %s137_s2 = scalar_lea.sflag [#allocation4], %s136_s30 }
  0x50   : > { %p204_p3 = pnand %p209_p12, %p494_p2 }
  0x52   : > { %320 = dma.done.wait (!%p204_p3), %s137_s2, 128  }
  0x53   : > { %322 = vsyncadd (!%p204_p3), %s137_s2, 4294967168  ;;  %p12_p4 = scmp.ge.s32.totalorder %s376_s12, 4   ;;  %s495_s6 = smov %s329_s7 }
  0x54   : > { %s496_s7 = smov %s333_s8  ;;  %s497_s8 = smov %s387_s15 }
  0x55   : > { %s498_s9 = smov %s376_s12  ;;  %14 = sbr.rel (!%p12_p4) target bundleno = 4 (0x4), region = 61 }
  0x5c   :  { %142 = vsyncpa [#allocation3], 1 }
  0x5d   :  { %144 = vsyncpa [#allocation3 + $0x1], 1 }
  0x5e   :  { %145 = vsyncpa [#allocation4], 1 }
  0x5f   :  { %147 = vsyncpa [#allocation4 + $0x1], 1 }

// kernel: clip_encode_image.12
= control target key start
LH: loop header
LB: loop body
LE: loop exit
PB: predicated region body
PF: predicated region fallthrough
CT: control target
= control target key end

     0   :  { %9 = vsyncpa [#allocation3], 0  ;;  %s1730_s0 = inlined_call_operand.hbm [shape: bf16[2,128,32], index: 0, kind: input, shape index: {}]   ;;  %s1731_s1 = inlined_call_operand.hbm [shape: f32[128,32], index: 1, kind: input, shape index: {}]   ;;  %s1732_s2 = inlined_call_operand.hbm [shape: f32[1,32], index: 2, kind: input, shape index: {}]   ;;  %s1733_s3 = inlined_call_operand.hbm [shape: f32[1,32], index: 3, kind: input, shape index: {}]   ;;  %s1734_s4 = inlined_call_operand.hbm [shape: bf16[2,128,32], index: 4, kind: output, shape index: {}]  }
   0x1   :  { %11 = vsyncpa [#allocation3 + $0x1], 0 }
   0x2   :  { %12 = vsyncpa [#allocation6], 0 }
   0x3   :  { %13 = vsyncpa [#allocation9], 0 }
   0x4   :  { %14 = vsyncpa [#allocation4], 0 }
   0x5   :  { %16 = vsyncpa [#allocation4 + $0x1], 0  ;;  %s1209_s15 = smov 0   ;;  %s1211_s16 = smov 0  }
   0x6   :  { %s1213_s17 = smov 0   ;;  %s1215_s18 = smov 0  }
   0x7 LB: > { %s1230_s19 = sadd.s32 4294967295, %s1171_s18   ;;  %s773_s20 = sadd.s32 4294967294, %s1171_s18   ;;  %s1171_s18 = sphi %s1215_s18, %s1757_s18   ;;  %s1167_s17 = sphi %s1213_s17, %s1756_s17   ;;  %s1163_s16 = sphi %s1211_s16, %s1755_s16   ;;  %s1159_s15 = sphi %s1209_s15, %s1754_s15  }
   0x8   : > { %p42_p0 = scmp.ne.s32.totalorder %s1163_s16, %s1159_s15  ;;  %p1735_p1 = scmp.eq.s32.totalorder %s1230_s19, 0 }
   0x9   : > { %p135_p3 = scmp.eq.s32.totalorder %s773_s20, 1  ;;  %p774_p5 = scmp.ge.s32.totalorder %s1171_s18, 1 }
   0xa   : > { %p1239_p4 = por %p1735_p1, %p42_p0  ;;  %p142_p7 = scmp.lt.s32.totalorder %s1171_s18, 3 }
   0xb   : > { %p1244_p6 = por %p135_p3, %p42_p0  ;;  %s1173_s24 = smov [#allocation5]  }
   0xc   : > { %s1738_s21 = scalar_select %p1239_p4, 1, 0 }
   0xd   : > { %s1739_s22 = scalar_select %p1244_p6, 1, 0 }
   0xe   : > { %p1249_p8 = pnand %p774_p5, %p142_p7  ;;  %s154_s25 = sshll.u32 %s1173_s24, 4  ;;  %s1253_s25 = int_to_ptr.vmem [resolvable:$true] %s154_s25 }
   0xf   : > { %s1174_s27 = smov [#allocation7]   ;;  %s1175_s29 = smov [#allocation8]  }
  0x10   : > { %s1740_s23 = scalar_select %p1249_p8, 1, 0 }
  0x11   : > { %p884_p9 = pneg %p1249_p8  ;;  %s168_s28 = sshll.u32 %s1174_s27, 4  ;;  %s1264_s28 = int_to_ptr.vmem [resolvable:$true] %s168_s28 }
  0x12   : > { %s1266_s30 = sshll.u32 %s1175_s29, 4  ;;  %s983_s7 = scalar_lea.hbm %s1731_s1, 2048  ;;  %s180_s30 = int_to_ptr.vmem [resolvable:$true] %s1266_s30 }
  0x13   : > { %p1260_p11 = pnand %p884_p9, %p1735_p1  ;;  %p984_p12 = scmp.ne.s32.totalorder %s1731_s1, %s983_s7 }
  0x14   : > { %p990_p5 = scmp.lt.u32.totalorder %s983_s7, %s1731_s1 }
  0x15   : > { %p1276_p13 = pneg %p1260_p11 }
  0x17   : > { %p986_p0 = pnand %p1276_p13, %p984_p12 }
  0x19   : > { %p987_p3 = pneg %p986_p0 }
  0x1b   : > { %p992_p7 = pnand %p990_p5, %p987_p3 }
  0x1d   : > { %995 = shalt.err (!%p992_p7)
}
  0x1e   : > { %s996_s13 = scalar_lea.vmem %s1253_s25, 2048  ;;  %p1004_p2 = scmp.lt.s32.totalorder %s1253_s25, %s1253_s25 }
  0x1f   : > { %p997_p9 = scmp.ne.s32.totalorder %s1253_s25, %s996_s13  ;;  %p1005_p6 = scmp.lt.s32.totalorder %s996_s13, %s996_s13 }
  0x21   : > { %p999_p10 = pnand %p997_p9, %p1276_p13  ;;  %p1006_p12 = por %p1005_p6, %p1004_p2 }
  0x23   : > { %p1000_p1 = pneg %p999_p10 }
  0x25   : > { %p1007_p0 = pnand %p1006_p12, %p1000_p1 }
  0x27   : > { %1010 = shalt.err (!%p1007_p0)
}
  0x28   : > { %s1176_s14 = smov 128   ;;  %s1177_s20 = smov 8  }
  0x29   : > { %887 = dma.hbm_to_vmem [thread:$0]  (!%p1260_p11), %s1731_s1, 2048, %s1253_s25, [#allocation6], %s1176_s14, %s1176_s14, %s1177_s20  }
  0x2a   : > { %s1011_s6 = scalar_lea.hbm %s1732_s2, 16 }
  0x2b   : > { %p1012_p2 = scmp.ne.s32.totalorder %s1732_s2, %s1011_s6  ;;  %p1018_p10 = scmp.lt.u32.totalorder %s1011_s6, %s1732_s2 }
  0x2d   : > { %p1014_p1 = pnand %p1012_p2, %p1276_p13 }
  0x2f   : > { %p1015_p6 = pneg %p1014_p1 }
  0x31   : > { %p1020_p3 = pnand %p1018_p10, %p1015_p6 }
  0x33   : > { %1023 = shalt.err (!%p1020_p3)
}
  0x34   : > { %s1024_s25 = scalar_lea.vmem %s1264_s28, 16  ;;  %s1031_s12 = scalar_lea.vmem %s1264_s28, 32 }
  0x35   : > { %p1025_p5 = scmp.ne.s32.totalorder %s1264_s28, %s1024_s25  ;;  %p1032_p12 = scmp.lt.s32.totalorder %s1264_s28, %s1264_s28 }
  0x36   : > { %p1033_p0 = scmp.lt.s32.totalorder %s1031_s12, %s1024_s25 }
  0x37   : > { %p1027_p7 = pnand %p1025_p5, %p1276_p13 }
  0x38   : > { %p1034_p2 = por %p1033_p0, %p1032_p12 }
  0x39   : > { %p1028_p9 = pneg %p1027_p7 }
  0x3b   : > { %p1035_p1 = pnand %p1034_p2, %p1028_p9 }
  0x3d   : > { %1038 = shalt.err (!%p1035_p1)
}
  0x3e   : > { %890 = dma.hbm_to_vmem [thread:$0]  (!%p1260_p11), %s1732_s2, 16, %s1264_s28, [#allocation6]  }
  0x3f   : > { %s1039_s27 = scalar_lea.hbm %s1733_s3, 16 }
  0x40   : > { %p1040_p6 = scmp.ne.s32.totalorder %s1733_s3, %s1039_s27  ;;  %p1046_p5 = scmp.lt.u32.totalorder %s1039_s27, %s1733_s3 }
  0x42   : > { %p1042_p10 = pnand %p1040_p6, %p1276_p13 }
  0x44   : > { %p1043_p3 = pneg %p1042_p10 }
  0x46   : > { %p1048_p7 = pnand %p1046_p5, %p1043_p3 }
  0x48   : > { %1051 = shalt.err (!%p1048_p7)
}
  0x49   : > { %s1052_s8 = scalar_lea.vmem %s180_s30, 16  ;;  %s1059_s28 = scalar_lea.vmem %s180_s30, 32 }
  0x4a   : > { %p1053_p9 = scmp.ne.s32.totalorder %s180_s30, %s1052_s8  ;;  %p1060_p2 = scmp.lt.s32.totalorder %s180_s30, %s180_s30 }
  0x4b   : > { %p1061_p1 = scmp.lt.s32.totalorder %s1059_s28, %s1052_s8 }
  0x4c   : > { %p1055_p12 = pnand %p1053_p9, %p1276_p13 }
  0x4d   : > { %p1062_p4 = por %p1061_p1, %p1060_p2 }
  0x4e   : > { %p1056_p0 = pneg %p1055_p12 }
  0x50   : > { %p1063_p8 = pnand %p1062_p4, %p1056_p0 }
  0x52   : > { %1066 = shalt.err (!%p1063_p8)
}
  0x53   : > { %893 = dma.hbm_to_vmem [thread:$0]  (!%p1260_p11), %s1733_s3, 16, %s180_s30, [#allocation9]  }
  0x54   : > { %s1341_s10 = sadd.s32 1, %s1171_s18   ;;  %s29_s26 = sadd.s32 1, %s1167_s17 }
  0x55   : > { %s26_s25 = ssub.s32 %s1171_s18, %s1341_s10  ;;  %p36_p8 = scmp.ne.s32.totalorder %s1167_s17, %s1163_s16 }
  0x56   : > { %p27_p4 = scmp.eq.s32.totalorder %s26_s25, 0  ;;  %p37_p13 = scmp.eq.s32.totalorder %s1171_s18, 0 }
  0x57   : > { %p905_p6 = scmp.lt.s32.totalorder %s1171_s18, 2  ;;  %p1743_p3 = scmp.eq.s32.totalorder %s1230_s19, 1 }
  0x58   : > { %s1351_s12 = scalar_select %p27_p4, %s1167_s17, %s29_s26  }
  0x59   : > { %p38_p10 = por %p37_p13, %p36_p8  ;;  %p1355_p5 = por %p1743_p3, %p36_p8 }
  0x5a   : > { %s190_s14 = sand.u32 1, %s1167_s17   ;;  %s811_s20 = sshll.u32 %s1171_s18, 10 }
  0x5b   : > { %s779_s30 = sshll.u32 %s190_s14, 6  ;;  %s1364_s29 = scalar_lea.hbm %s1730_s0, %s811_s20 }
  0x5c   : > { %s194_s5 = scalar_lea.vmem [#allocation2], %s779_s30  ;;  %p1366_p11 = pnand %p905_p6, %p38_p10 }
  0x5d   : > { %s201_s6 = sshll.u32 %s194_s5, 4  ;;  %s1372_s8 = scalar_lea.sflag [#allocation3], %s190_s14  ;;  %s1370_s6 = int_to_ptr.vmem [resolvable:$true] %s201_s6 }
  0x5e   : > { %s1067_s28 = scalar_lea.hbm %s1364_s29, 1024  ;;  %p1069_p9 = pneg %p1366_p11 }
  0x5f   : > { %p1068_p7 = scmp.ne.s32.totalorder %s1364_s29, %s1067_s28  ;;  %s1072_s25 = scalar_lea.hbm %s1730_s0, 2048 }
  0x60   : > { %p1073_p2 = scmp.lt.u32.totalorder %s1364_s29, %s1730_s0  ;;  %p1074_p1 = scmp.lt.u32.totalorder %s1072_s25, %s1067_s28 }
  0x61   : > { %p1070_p12 = pnand %p1069_p9, %p1068_p7  ;;  %p1076_p8 = scmp.lt.u32.totalorder %s1067_s28, %s1364_s29 }
  0x62   : > { %p1075_p4 = por %p1074_p1, %p1073_p2 }
  0x63   : > { %p1071_p0 = pneg %p1070_p12 }
  0x64   : > { %p1077_p13 = por %p1076_p8, %p1075_p4 }
  0x66   : > { %p1078_p6 = pnand %p1077_p13, %p1071_p0 }
  0x68   : > { %1081 = shalt.err (!%p1078_p6)
}
  0x69   : > { %s1082_s14 = scalar_lea.vmem %s1370_s6, 1024  ;;  %s1178_s30 = smov [#allocation2]  }
  0x6a   : > { %p1083_p10 = scmp.ne.s32.totalorder %s1370_s6, %s1082_s14  ;;  %s1087_s24 = sshll.u32 %s1178_s30, 4  ;;  %s1088_s24 = int_to_ptr.vmem [resolvable:$false] %s1087_s24 }
  0x6b   : > { %s1089_s27 = scalar_lea.vmem %s1088_s24, 2048  ;;  %p1090_p12 = scmp.lt.s32.totalorder %s1370_s6, %s1088_s24 }
  0x6c   : > { %p1085_p3 = pnand %p1083_p10, %p1069_p9  ;;  %p1091_p2 = scmp.lt.s32.totalorder %s1089_s27, %s1082_s14 }
  0x6e   : > { %p1086_p7 = pneg %p1085_p3  ;;  %p1092_p1 = por %p1091_p2, %p1090_p12 }
  0x70   : > { %p1093_p4 = pnand %p1092_p1, %p1086_p7 }
  0x72   : > { %1096 = shalt.err (!%p1093_p4)
}
  0x73   : > { %s1179_s5 = smov 64   ;;  %s1180_s28 = smov 4  }
  0x74   : > { %897 = dma.hbm_to_vmem [thread:$0]  (!%p1366_p11), %s1364_s29, 1024, %s1370_s6, %s1372_s8, %s1179_s5, %s1179_s5, %s1180_s28  }
  0x75   : > { %p1746_p9 = scmp.ne.s32.totalorder %s1740_s23, 0 }
  0x76   : > { %s1403_s9 = sand.u32 (!%p1746_p9), 1, %s1163_s16   ;;  %p1747_p0 = scmp.ne.s32.totalorder (!%p1746_p9), %s1738_s21, 0 }
  0x77   : > { %213 = sbr.rel (%p1746_p9) target bundleno = 501 (0x1f5), region = 36  ;;  %s783_s11 = sshll.u32 (!%p1746_p9), %s1403_s9, 6 }
  0x78   : > { %s216_s25 = scalar_lea.sflag (!%p1746_p9), [#allocation3], %s1403_s9  ;;  %s1409_s26 = scalar_lea.vmem (!%p1746_p9), [#allocation2], %s783_s11 }
  0x7e   : > { %1142 = dma.done.wait (%p1747_p0), %s216_s25, 1024  }
  0x7f   : > { %1144 = vsyncadd (%p1747_p0), %s216_s25, 4294966272  ;;  %p1748_p11 = scmp.eq.s32.totalorder %s1230_s19, 0 }
  0x81   : > { %1146 = dma.done.wait (%p1748_p11), [#allocation6], 2064   ;;  %p1749_p8 = pmov %p1748_p11 }
  0x83   : > { %1148 = vsyncadd (%p1749_p8), [#allocation6], 4294965232  ;;  %p1750_p13 = pmov %p1749_p8 }
  0x84   : > { %p1751_p6 = pmov %p1749_p8 }
  0x85   : > { %1150 = dma.done.wait (%p1750_p13), [#allocation9], 16  }
  0x86   : > { %1152 = vsyncadd (%p1751_p6), [#allocation9], 4294967280  ;;  %v830_v0 = vld [vmem:[%s1409_s26] sm:$0xff]   ;;  %v861_v2 = vld [vmem:[%s1409_s26 + $0x8] sm:$0xff]   ;;  %vm320_vm0 = vcmask 261120   ;;  %vm640_vm1 = vcmask 257024  }
  0x87   : > { %v288_v1 = vld [vmem:[#allocation5] sm:$0xff]  ;;  %v831_v3 = vunpack.c.l.bf16 %v830_v0  ;;  %v835_v4 = vunpack.c.l.bf16 %v861_v2  ;;  %v290_v5 = vld [vmem:[#allocation5 + $0x10] sm:$0xff]  ;;  %v832_v6 = vunpack.c.h.bf16 %v830_v0  ;;  %v289_v7 = vld [vmem:[#allocation5 + $0x8] sm:$0xff]  ;;  %v836_v8 = vunpack.c.h.bf16 %v861_v2  ;;  %s1604_s21 = scalar_lea.vmem [#allocation10], %s783_s11  ;;  %s828_s23 = sshll.u32 %s1230_s19, 10 }
  0x88   : > { %v291_v9 = vld [vmem:[#allocation5 + $0x18] sm:$0xff]  ;;  %v862_v10 = vld [vmem:[%s1409_s26 + $0x10] sm:$0xff]   ;;  %v292_v17 = vld [vmem:[#allocation5 + $0x20] sm:$0xff]  ;;  %s671_s29 = sshll.u32 %s1604_s21, 4  ;;  %s1682_s8 = scalar_lea.hbm %s1734_s4, %s828_s23  ;;  %s1684_s29 = int_to_ptr.vmem [resolvable:$true] %s671_s29 }
  0x89   : > { %v1426_v11 = vadd.f32 %v831_v3, %v288_v1  ;;  %v1428_v12 = vadd.f32 %v835_v4, %v290_v5  ;;  %v1430_v13 = vadd.f32 %v832_v6, %v289_v7  ;;  %v1432_v14 = vadd.f32 %v836_v8, %v291_v9  ;;  %v863_v15 = vld [vmem:[%s1409_s26 + $0x18] sm:$0xff]   ;;  %v293_v19 = vld [vmem:[#allocation5 + $0x28] sm:$0xff]  ;;  %v294_v28 = vld [vmem:[#allocation5 + $0x30] sm:$0xff]  ;;  %s658_s19 = scalar_lea.sflag [#allocation4], %s1403_s9  ;;  %s1097_s20 = scalar_lea.vmem %s1684_s29, 1024 }
  0x8a   : > { %v839_v16 = vunpack.c.l.bf16 %v862_v10  ;;  %v840_v18 = vunpack.c.h.bf16 %v862_v10  ;;  %v843_v22 = vunpack.c.l.bf16 %v863_v15  ;;  %v844_v23 = vunpack.c.h.bf16 %v863_v15  ;;  %v864_v29 = vld [vmem:[%s1409_s26 + $0x20] sm:$0xff]   ;;  %v295_v30 = vld [vmem:[#allocation5 + $0x38] sm:$0xff]  ;;  %v865_v37 = vld [vmem:[%s1409_s26 + $0x28] sm:$0xff]   ;;  %p1098_p10 = scmp.ne.s32.totalorder %s1684_s29, %s1097_s20  ;;  %s1181_s14 = smov [#allocation10]  }
  0x8b   : > { %v321_v20 = vsel %vm320_vm0, %v1426_v11, 0.0  ;;  %v327_v21 = vsel %vm320_vm0, %v1428_v12, 0.0  ;;  %v324_v24 = vsel %vm320_vm0, %v1430_v13, 0.0  ;;  %v330_v25 = vsel %vm320_vm0, %v1432_v14, 0.0  ;;  %v296_v38 = vld [vmem:[#allocation5 + $0x40] sm:$0xff]  ;;  %v297_v39 = vld [vmem:[#allocation5 + $0x48] sm:$0xff] }
  0x8c   : > { %322 = vadd.xlane.f32.xlu0 %v321_v20  ;;  %328 = vadd.xlane.f32.xlu1 %v327_v21  ;;  %v1443_v26 = vadd.f32 %v839_v16, %v292_v17  ;;  %v1445_v27 = vadd.f32 %v840_v18, %v293_v19  ;;  %v1448_v31 = vadd.f32 %v843_v22, %v294_v28  ;;  %v847_v32 = vunpack.c.l.bf16 %v864_v29  ;;  %v298_v46 = vld [vmem:[#allocation5 + $0x50] sm:$0xff]  ;;  %v299_v47 = vld [vmem:[#allocation5 + $0x58] sm:$0xff]  ;;  %v300_v56 = vld [vmem:[#allocation5 + $0x60] sm:$0xff]  ;;  %p1099_p3 = pnand %p1098_p10, %p1355_p5  ;;  %s1101_s30 = sshll.u32 %s1181_s14, 4  ;;  %s1102_s30 = int_to_ptr.vmem [resolvable:$false] %s1101_s30 }
  0x8d   : > { %v1454_v35 = vadd.f32 %v844_v23, %v295_v30  ;;  %v848_v36 = vunpack.c.h.bf16 %v864_v29  ;;  %v851_v40 = vunpack.c.l.bf16 %v865_v37  ;;  %v852_v41 = vunpack.c.h.bf16 %v865_v37  ;;  %v866_v48 = vld [vmem:[%s1409_s26 + $0x30] sm:$0xff]   ;;  %v867_v55 = vld [vmem:[%s1409_s26 + $0x38] sm:$0xff]   ;;  %v301_v57 = vld [vmem:[#allocation5 + $0x68] sm:$0xff]  ;;  %s1103_s24 = scalar_lea.vmem %s1102_s30, 2048  ;;  %p1104_p12 = scmp.lt.s32.totalorder %s1684_s29, %s1102_s30 }
  0x8e   : > { %v333_v33 = vsel %vm320_vm0, %v1443_v26, 0.0  ;;  %v336_v34 = vsel %vm320_vm0, %v1445_v27, 0.0  ;;  %v339_v42 = vsel %vm320_vm0, %v1448_v31, 0.0  ;;  %v1461_v44 = vadd.f32 %v847_v32, %v296_v38  ;;  %v302_v0 = vld [vmem:[#allocation5 + $0x70] sm:$0xff]  ;;  %v303_v1 = vld [vmem:[#allocation5 + $0x78] sm:$0xff]  ;;  %p1100_p7 = pneg %p1099_p3  ;;  %p1105_p2 = scmp.lt.s32.totalorder %s1103_s24, %s1097_s20 }
  0x8f   : > { %v342_v43 = vsel %vm320_vm0, %v1454_v35, 0.0  ;;  %v1463_v45 = vadd.f32 %v848_v36, %v297_v39  ;;  %v1466_v49 = vadd.f32 %v851_v40, %v298_v46  ;;  %v1468_v50 = vadd.f32 %v852_v41, %v299_v47 }
  0x90   : > { %325 = vadd.xlane.f32.xlu0 %v324_v24  ;;  %331 = vadd.xlane.f32.xlu1 %v330_v25  ;;  %v345_v51 = vsel %vm320_vm0, %v1461_v44, 0.0  ;;  %v855_v53 = vunpack.c.l.bf16 %v866_v48  ;;  %v856_v54 = vunpack.c.h.bf16 %v866_v48  ;;  %v859_v59 = vunpack.c.l.bf16 %v867_v55  ;;  %p1106_p1 = por %p1105_p2, %p1104_p12 }
  0x91   : > { %v348_v52 = vsel %vm320_vm0, %v1463_v45, 0.0  ;;  %v351_v58 = vsel %vm320_vm0, %v1466_v49, 0.0  ;;  %v354_v60 = vsel %vm320_vm0, %v1468_v50, 0.0  ;;  %v860_v63 = vunpack.c.h.bf16 %v867_v55 }
  0x92   : > { %v1479_v61 = vadd.f32 %v855_v53, %v300_v56  ;;  %v1481_v62 = vadd.f32 %v856_v54, %v301_v57  ;;  %v1487_v4 = vadd.f32 %v859_v59, %v302_v0  ;;  %p1107_p4 = pnand %p1106_p1, %p1100_p7 }
  0x93   : > { %v1489_v5 = vadd.f32 %v860_v63, %v303_v1 }
  0x94   : > { %334 = vadd.xlane.f32.xlu0 %v333_v33  ;;  %337 = vadd.xlane.f32.xlu1 %v336_v34  ;;  %v357_v2 = vsel %vm320_vm0, %v1479_v61, 0.0  ;;  %v360_v3 = vsel %vm320_vm0, %v1481_v62, 0.0  ;;  %v363_v6 = vsel %vm320_vm0, %v1487_v4, 0.0 }
  0x95   : > { %v366_v7 = vsel %vm320_vm0, %v1489_v5, 0.0 }
  0x98   : > { %340 = vadd.xlane.f32.xlu0 %v339_v42  ;;  %343 = vadd.xlane.f32.xlu1 %v342_v43 }
  0x9c   : > { %346 = vadd.xlane.f32.xlu0 %v345_v51  ;;  %349 = vadd.xlane.f32.xlu1 %v348_v52 }
  0xa0   : > { %352 = vadd.xlane.f32.xlu0 %v351_v58  ;;  %355 = vadd.xlane.f32.xlu1 %v354_v60 }
  0xa4   : > { %358 = vadd.xlane.f32.xlu0 %v357_v2  ;;  %361 = vadd.xlane.f32.xlu1 %v360_v3 }
  0xa8   : > { %364 = vadd.xlane.f32.xlu0 %v363_v6  ;;  %367 = vadd.xlane.f32.xlu1 %v366_v7 }
 0x119   : > { %v323_v8 = vpop.xlane.xlu0 %322  ;;  %v329_v9 = vpop.xlane.xlu1 %328 }
 0x11a   : > { %v370_v10 = vmul.f32 0.03125, %v323_v8  ;;  %v372_v15 = vmul.f32 0.03125, %v329_v9 }
 0x11c   : > { %v1496_v16 = vsub.f32 %v1426_v11, %v370_v10  ;;  %v1499_v17 = vsub.f32 %v1428_v12, %v372_v15 }
 0x11d   : > { %v326_v18 = vpop.xlane.xlu0 %325  ;;  %v332_v19 = vpop.xlane.xlu1 %331 }
 0x11e   : > { %v371_v20 = vmul.f32 0.03125, %v326_v18  ;;  %v373_v21 = vmul.f32 0.03125, %v332_v19  ;;  %v402_v22 = vmul.f32 %v1496_v16, %v1496_v16  ;;  %v404_v23 = vmul.f32 %v1499_v17, %v1499_v17 }
 0x120   : > { %v1506_v24 = vsub.f32 %v1430_v13, %v371_v20  ;;  %v1509_v25 = vsub.f32 %v1432_v14, %v373_v21  ;;  %v418_v11 = vsel %vm320_vm0, %v402_v22, 0.0  ;;  %v424_v29 = vsel %vm320_vm0, %v404_v23, 0.0 }
 0x121   : > { %419 = vadd.xlane.f32.xlu0 %v418_v11  ;;  %v335_v12 = vpop.xlane.xlu0 %334  ;;  %v338_v28 = vpop.xlane.xlu1 %337 }
 0x122   : > { %v374_v30 = vmul.f32 0.03125, %v335_v12  ;;  %v375_v32 = vmul.f32 0.03125, %v338_v28  ;;  %v403_v33 = vmul.f32 %v1506_v24, %v1506_v24  ;;  %v405_v34 = vmul.f32 %v1509_v25, %v1509_v25 }
 0x124   : > { %v1518_v13 = vsub.f32 %v1443_v26, %v374_v30  ;;  %v1521_v14 = vsub.f32 %v1445_v27, %v375_v32  ;;  %v421_v36 = vsel %vm320_vm0, %v403_v33, 0.0  ;;  %v427_v39 = vsel %vm320_vm0, %v405_v34, 0.0 }
 0x125   : > { %425 = vadd.xlane.f32.xlu0 %v424_v29  ;;  %422 = vadd.xlane.f32.xlu1 %v421_v36  ;;  %v341_v37 = vpop.xlane.xlu0 %340  ;;  %v344_v38 = vpop.xlane.xlu1 %343 }
 0x126   : > { %v376_v40 = vmul.f32 0.03125, %v341_v37  ;;  %v377_v41 = vmul.f32 0.03125, %v344_v38  ;;  %v406_v42 = vmul.f32 %v1518_v13, %v1518_v13  ;;  %v407_v26 = vmul.f32 %v1521_v14, %v1521_v14 }
 0x128   : > { %v1530_v43 = vsub.f32 %v1448_v31, %v376_v40  ;;  %v1533_v27 = vsub.f32 %v1454_v35, %v377_v41  ;;  %v430_v46 = vsel %vm320_vm0, %v406_v42, 0.0  ;;  %v433_v51 = vsel %vm320_vm0, %v407_v26, 0.0 }
 0x129   : > { %428 = vadd.xlane.f32.xlu1 %v427_v39  ;;  %431 = vadd.xlane.f32.xlu0 %v430_v46  ;;  %v347_v47 = vpop.xlane.xlu0 %346  ;;  %v350_v48 = vpop.xlane.xlu1 %349 }
 0x12a   : > { %v378_v52 = vmul.f32 0.03125, %v347_v47  ;;  %v379_v53 = vmul.f32 0.03125, %v350_v48  ;;  %v408_v54 = vmul.f32 %v1530_v43, %v1530_v43  ;;  %v409_v31 = vmul.f32 %v1533_v27, %v1533_v27 }
 0x12c   : > { %v1542_v55 = vsub.f32 %v1461_v44, %v378_v52  ;;  %v1545_v35 = vsub.f32 %v1463_v45, %v379_v53  ;;  %v436_v56 = vsel %vm320_vm0, %v408_v54, 0.0  ;;  %v439_v59 = vsel %vm320_vm0, %v409_v31, 0.0 }
 0x12d   : > { %434 = vadd.xlane.f32.xlu1 %v433_v51  ;;  %437 = vadd.xlane.f32.xlu0 %v436_v56  ;;  %v353_v57 = vpop.xlane.xlu0 %352  ;;  %v356_v58 = vpop.xlane.xlu1 %355 }
 0x12e   : > { %v380_v60 = vmul.f32 0.03125, %v353_v57  ;;  %v381_v63 = vmul.f32 0.03125, %v356_v58  ;;  %v410_v0 = vmul.f32 %v1542_v55, %v1542_v55  ;;  %v411_v44 = vmul.f32 %v1545_v35, %v1545_v35  ;;  %v1591_v58 = vld [vmem:[#allocation7] ss:$0 sm:$0xff] }
 0x130   : > { %v1554_v1 = vsub.f32 %v1466_v49, %v380_v60  ;;  %v1557_v45 = vsub.f32 %v1468_v50, %v381_v63  ;;  %v442_v2 = vsel %vm320_vm0, %v410_v0, 0.0  ;;  %v445_v7 = vsel %vm320_vm0, %v411_v44, 0.0 }
 0x131   : > { %440 = vadd.xlane.f32.xlu1 %v439_v59  ;;  %443 = vadd.xlane.f32.xlu0 %v442_v2  ;;  %v359_v3 = vpop.xlane.xlu0 %358  ;;  %v362_v6 = vpop.xlane.xlu1 %361  ;;  %v1594_v2 = vld [vmem:[#allocation8] ss:$0 sm:$0xff] }
 0x132   : > { %v382_v8 = vmul.f32 0.03125, %v359_v3  ;;  %v383_v9 = vmul.f32 0.03125, %v362_v6  ;;  %v412_v10 = vmul.f32 %v1554_v1, %v1554_v1  ;;  %v413_v49 = vmul.f32 %v1557_v45, %v1557_v45 }
 0x134   : > { %v1566_v15 = vsub.f32 %v1479_v61, %v382_v8  ;;  %v1569_v50 = vsub.f32 %v1481_v62, %v383_v9  ;;  %v448_v18 = vsel %vm320_vm0, %v412_v10, 0.0  ;;  %v451_v21 = vsel %vm320_vm0, %v413_v49, 0.0 }
 0x135   : > { %446 = vadd.xlane.f32.xlu1 %v445_v7  ;;  %449 = vadd.xlane.f32.xlu0 %v448_v18  ;;  %v365_v19 = vpop.xlane.xlu0 %364  ;;  %v368_v20 = vpop.xlane.xlu1 %367 }
 0x136   : > { %v384_v22 = vmul.f32 0.03125, %v365_v19  ;;  %v385_v23 = vmul.f32 0.03125, %v368_v20  ;;  %v414_v11 = vmul.f32 %v1566_v15, %v1566_v15  ;;  %v415_v61 = vmul.f32 %v1569_v50, %v1569_v50 }
 0x138   : > { %v1578_v12 = vsub.f32 %v1487_v4, %v384_v22  ;;  %v1581_v62 = vsub.f32 %v1489_v5, %v385_v23  ;;  %v454_v28 = vsel %vm320_vm0, %v414_v11, 0.0  ;;  %v457_v29 = vsel %vm320_vm0, %v415_v61, 0.0 }
 0x139   : > { %452 = vadd.xlane.f32.xlu1 %v451_v21  ;;  %455 = vadd.xlane.f32.xlu0 %v454_v28 }
 0x13a   : > { %v416_v30 = vmul.f32 %v1578_v12, %v1578_v12  ;;  %v417_v32 = vmul.f32 %v1581_v62, %v1581_v62 }
 0x13c   : > { %v460_v33 = vsel %vm320_vm0, %v416_v30, 0.0  ;;  %v463_v4 = vsel %vm320_vm0, %v417_v32, 0.0 }
 0x13d   : > { %458 = vadd.xlane.f32.xlu1 %v457_v29  ;;  %461 = vadd.xlane.f32.xlu0 %v460_v33 }
 0x141   : > { %464 = vadd.xlane.f32.xlu1 %v463_v4 }
 0x1ae   : > { %v420_v5 = vpop.xlane.xlu0 %419 }
 0x1af   : > { %v466_v34 = vmul.f32 0.03125, %v420_v5 }
 0x1b1   : > { %v482_v36 = vadd.f32 1e-05, %v466_v34 }
 0x1b2   : > { %v423_v37 = vpop.xlane.xlu1 %422  ;;  %v426_v38 = vpop.xlane.xlu0 %425 }
 0x1b3   : > { %951 = vrsqrt.f32 %v482_v36  ;;  %v467_v39 = vmul.f32 0.03125, %v423_v37  ;;  %v468_v40 = vmul.f32 0.03125, %v426_v38 }
 0x1b5   : > { %v483_v41 = vadd.f32 1e-05, %v467_v39  ;;  %v484_v42 = vadd.f32 1e-05, %v468_v40 }
 0x1b6   : > { %v429_v26 = vpop.xlane.xlu1 %428  ;;  %v432_v46 = vpop.xlane.xlu0 %431 }
 0x1b7   : > { %953 = vrsqrt.f32 %v483_v41  ;;  %v469_v47 = vmul.f32 0.03125, %v429_v26  ;;  %v470_v48 = vmul.f32 0.03125, %v432_v46 }
 0x1b8   : > { %955 = vrsqrt.f32 %v484_v42 }
 0x1b9   : > { %v485_v51 = vadd.f32 1e-05, %v469_v47  ;;  %v486_v52 = vadd.f32 1e-05, %v470_v48 }
 0x1ba   : > { %v435_v53 = vpop.xlane.xlu1 %434  ;;  %v438_v54 = vpop.xlane.xlu0 %437 }
 0x1bb   : > { %957 = vrsqrt.f32 %v485_v51  ;;  %v471_v31 = vmul.f32 0.03125, %v435_v53  ;;  %v472_v56 = vmul.f32 0.03125, %v438_v54 }
 0x1bc   : > { %959 = vrsqrt.f32 %v486_v52 }
 0x1bd   : > { %v952_v57 = vpop.eup %951  ;;  %v487_v59 = vadd.f32 1e-05, %v471_v31  ;;  %v488_v60 = vadd.f32 1e-05, %v472_v56 }
 0x1be   : > { %v514_v63 = vmul.f32 %v952_v57, %v1496_v16  ;;  %v441_v0 = vpop.xlane.xlu1 %440  ;;  %v444_v44 = vpop.xlane.xlu0 %443 }
 0x1bf   : > { %961 = vrsqrt.f32 %v487_v59  ;;  %v473_v3 = vmul.f32 0.03125, %v441_v0  ;;  %v474_v6 = vmul.f32 0.03125, %v444_v44 }
 0x1c0   : > { %v537_v7 = vmul.f32 %v1591_v58, %v514_v63  ;;  %963 = vrsqrt.f32 %v488_v60 }
 0x1c1   : > { %v954_v8 = vpop.eup %953  ;;  %v489_v9 = vadd.f32 1e-05, %v473_v3  ;;  %v490_v10 = vadd.f32 1e-05, %v474_v6 }
 0x1c2   : > { %v956_v49 = vpop.eup %955  ;;  %v560_v18 = vadd.f32 %v1594_v2, %v537_v7  ;;  %v515_v16 = vmul.f32 %v954_v8, %v1506_v24  ;;  %v447_v19 = vpop.xlane.xlu1 %446 }
 0x1c3   : > { %v450_v20 = vpop.xlane.xlu0 %449  ;;  %v516_v21 = vmul.f32 %v956_v49, %v1499_v17  ;;  %965 = vrsqrt.f32 %v489_v9  ;;  %v475_v22 = vmul.f32 0.03125, %v447_v19 }
 0x1c4   : > { %v476_v23 = vmul.f32 0.03125, %v450_v20  ;;  %v812_v11 = vpack.c.bf16 %v560_v18, %v560_v18  ;;  %v538_v61 = vmul.f32 %v1591_v58, %v515_v16  ;;  %967 = vrsqrt.f32 %v490_v10 }
 0x1c5   : > { %v958_v28 = vpop.eup %957  ;;  %v539_v29 = vmul.f32 %v1591_v58, %v516_v21  ;;  %v491_v30 = vadd.f32 1e-05, %v475_v22 }
 0x1c6   : > { %v492_v32 = vadd.f32 1e-05, %v476_v23  ;;  %v960_v33 = vpop.eup %959  ;;  %641 = vst.msk [vmem:[%s1604_s21] sm:$0xf] %vm640_vm1, %v812_v11  ;;  %v561_v17 = vadd.f32 %v1594_v2, %v538_v61  ;;  %v517_v24 = vmul.f32 %v958_v28, %v1509_v25  ;;  %v453_v4 = vpop.xlane.xlu1 %452 }
 0x1c7   : > { %v456_v5 = vpop.xlane.xlu0 %455  ;;  %v562_v34 = vadd.f32 %v1594_v2, %v539_v29  ;;  %v518_v36 = vmul.f32 %v960_v33, %v1518_v13  ;;  %969 = vrsqrt.f32 %v491_v30  ;;  %v477_v37 = vmul.f32 0.03125, %v453_v4 }
 0x1c8   : > { %v813_v38 = vpack.c.bf16 %v561_v17, %v561_v17  ;;  %v540_v39 = vmul.f32 %v1591_v58, %v517_v24  ;;  %971 = vrsqrt.f32 %v492_v32  ;;  %v478_v40 = vmul.f32 0.03125, %v456_v5 }
 0x1c9   : > { %v962_v41 = vpop.eup %961  ;;  %v814_v42 = vpack.c.bf16 %v562_v34, %v562_v34  ;;  %v541_v26 = vmul.f32 %v1591_v58, %v518_v36  ;;  %v493_v25 = vadd.f32 1e-05, %v477_v37 }
 0x1ca   : > { %v964_v46 = vpop.eup %963  ;;  %642 = vst.msk [vmem:[%s1604_s21 + $0x4] sm:$0xf] %vm640_vm1, %v813_v38  ;;  %v563_v47 = vadd.f32 %v1594_v2, %v540_v39  ;;  %v519_v13 = vmul.f32 %v962_v41, %v1521_v14  ;;  %v494_v48 = vadd.f32 1e-05, %v478_v40  ;;  %v459_v51 = vpop.xlane.xlu1 %458 }
 0x1cb   : > { %v462_v52 = vpop.xlane.xlu0 %461  ;;  %643 = vst.msk [vmem:[%s1604_s21 + $0x8] sm:$0xf] %vm640_vm1, %v814_v42  ;;  %v564_v53 = vadd.f32 %v1594_v2, %v541_v26  ;;  %v520_v54 = vmul.f32 %v964_v46, %v1530_v43  ;;  %973 = vrsqrt.f32 %v493_v25  ;;  %v479_v31 = vmul.f32 0.03125, %v459_v51 }
 0x1cc   : > { %v815_v56 = vpack.c.bf16 %v563_v47, %v563_v47  ;;  %v542_v57 = vmul.f32 %v1591_v58, %v519_v13  ;;  %975 = vrsqrt.f32 %v494_v48  ;;  %v480_v59 = vmul.f32 0.03125, %v462_v52 }
 0x1cd   : > { %v966_v60 = vpop.eup %965  ;;  %v816_v14 = vpack.c.bf16 %v564_v53, %v564_v53  ;;  %v543_v63 = vmul.f32 %v1591_v58, %v520_v54  ;;  %v495_v0 = vadd.f32 1e-05, %v479_v31 }
 0x1ce   : > { %v968_v44 = vpop.eup %967  ;;  %644 = vst.msk [vmem:[%s1604_s21 + $0xc] sm:$0xf] %vm640_vm1, %v815_v56  ;;  %v565_v3 = vadd.f32 %v1594_v2, %v542_v57  ;;  %v521_v43 = vmul.f32 %v966_v60, %v1533_v27  ;;  %v496_v6 = vadd.f32 1e-05, %v480_v59  ;;  %v465_v7 = vpop.xlane.xlu1 %464 }
 0x1cf   : > { %645 = vst.msk [vmem:[%s1604_s21 + $0x10] sm:$0xf] %vm640_vm1, %v816_v14  ;;  %v566_v8 = vadd.f32 %v1594_v2, %v543_v63  ;;  %v522_v9 = vmul.f32 %v968_v44, %v1542_v55  ;;  %977 = vrsqrt.f32 %v495_v0  ;;  %v481_v10 = vmul.f32 0.03125, %v465_v7 }
 0x1d0   : > { %v817_v49 = vpack.c.bf16 %v565_v3, %v565_v3  ;;  %v544_v18 = vmul.f32 %v1591_v58, %v521_v43  ;;  %979 = vrsqrt.f32 %v496_v6 }
 0x1d1   : > { %v970_v16 = vpop.eup %969  ;;  %v818_v19 = vpack.c.bf16 %v566_v8, %v566_v8  ;;  %v545_v27 = vmul.f32 %v1591_v58, %v522_v9  ;;  %v497_v20 = vadd.f32 1e-05, %v481_v10 }
 0x1d2   : > { %v972_v21 = vpop.eup %971  ;;  %646 = vst.msk [vmem:[%s1604_s21 + $0x14] sm:$0xf] %vm640_vm1, %v817_v49  ;;  %v567_v22 = vadd.f32 %v1594_v2, %v544_v18  ;;  %v523_v55 = vmul.f32 %v970_v16, %v1545_v35 }
 0x1d3   : > { %647 = vst.msk [vmem:[%s1604_s21 + $0x18] sm:$0xf] %vm640_vm1, %v818_v19  ;;  %v568_v23 = vadd.f32 %v1594_v2, %v545_v27  ;;  %v524_v11 = vmul.f32 %v972_v21, %v1554_v1  ;;  %981 = vrsqrt.f32 %v497_v20 }
 0x1d4   : > { %v819_v61 = vpack.c.bf16 %v567_v22, %v567_v22  ;;  %v546_v28 = vmul.f32 %v1591_v58, %v523_v55 }
 0x1d5   : > { %v974_v29 = vpop.eup %973  ;;  %v820_v30 = vpack.c.bf16 %v568_v23, %v568_v23  ;;  %v547_v32 = vmul.f32 %v1591_v58, %v524_v11 }
 0x1d6   : > { %v976_v33 = vpop.eup %975  ;;  %648 = vst.msk [vmem:[%s1604_s21 + $0x1c] sm:$0xf] %vm640_vm1, %v819_v61  ;;  %v569_v35 = vadd.f32 %v1594_v2, %v546_v28  ;;  %v525_v17 = vmul.f32 %v974_v29, %v1557_v45 }
 0x1d7   : > { %649 = vst.msk [vmem:[%s1604_s21 + $0x20] sm:$0xf] %vm640_vm1, %v820_v30  ;;  %v570_v1 = vadd.f32 %v1594_v2, %v547_v32  ;;  %v526_v24 = vmul.f32 %v976_v33, %v1566_v15 }
 0x1d8   : > { %v821_v4 = vpack.c.bf16 %v569_v35, %v569_v35  ;;  %v548_v5 = vmul.f32 %v1591_v58, %v525_v17 }
 0x1d9   : > { %v978_v34 = vpop.eup %977  ;;  %v822_v36 = vpack.c.bf16 %v570_v1, %v570_v1  ;;  %v549_v37 = vmul.f32 %v1591_v58, %v526_v24 }
 0x1da   : > { %v980_v38 = vpop.eup %979  ;;  %650 = vst.msk [vmem:[%s1604_s21 + $0x24] sm:$0xf] %vm640_vm1, %v821_v4  ;;  %v571_v45 = vadd.f32 %v1594_v2, %v548_v5  ;;  %v527_v39 = vmul.f32 %v978_v34, %v1569_v50 }
 0x1db   : > { %651 = vst.msk [vmem:[%s1604_s21 + $0x28] sm:$0xf] %vm640_vm1, %v822_v36  ;;  %v572_v15 = vadd.f32 %v1594_v2, %v549_v37  ;;  %v528_v40 = vmul.f32 %v980_v38, %v1578_v12 }
 0x1dc   : > { %v823_v41 = vpack.c.bf16 %v571_v45, %v571_v45  ;;  %v550_v42 = vmul.f32 %v1591_v58, %v527_v39 }
 0x1dd   : > { %v982_v26 = vpop.eup %981  ;;  %v824_v25 = vpack.c.bf16 %v572_v15, %v572_v15  ;;  %v551_v46 = vmul.f32 %v1591_v58, %v528_v40 }
 0x1de   : > { %652 = vst.msk [vmem:[%s1604_s21 + $0x2c] sm:$0xf] %vm640_vm1, %v823_v41  ;;  %v573_v50 = vadd.f32 %v1594_v2, %v550_v42  ;;  %v529_v47 = vmul.f32 %v982_v26, %v1581_v62 }
 0x1df   : > { %653 = vst.msk [vmem:[%s1604_s21 + $0x30] sm:$0xf] %vm640_vm1, %v824_v25  ;;  %v574_v12 = vadd.f32 %v1594_v2, %v551_v46 }
 0x1e0   : > { %v825_v13 = vpack.c.bf16 %v573_v50, %v573_v50  ;;  %v552_v48 = vmul.f32 %v1591_v58, %v529_v47 }
 0x1e1   : > { %v826_v51 = vpack.c.bf16 %v574_v12, %v574_v12 }
 0x1e2   : > { %654 = vst.msk [vmem:[%s1604_s21 + $0x34] sm:$0xf] %vm640_vm1, %v825_v13  ;;  %v575_v52 = vadd.f32 %v1594_v2, %v552_v48 }
 0x1e3   : > { %655 = vst.msk [vmem:[%s1604_s21 + $0x38] sm:$0xf] %vm640_vm1, %v826_v51 }
 0x1e4   : > { %v827_v62 = vpack.c.bf16 %v575_v52, %v575_v52 }
 0x1e6   : > { %656 = vst.msk [vmem:[%s1604_s21 + $0x3c] sm:$0xf] %vm640_vm1, %v827_v62 }
 0x1e7   : > { %1110 = shalt.err (!%p1107_p4)
}
 0x1e8   : > { %s1111_s27 = scalar_lea.hbm %s1682_s8, 1024  ;;  %s1115_s11 = scalar_lea.hbm %s1734_s4, 2048 }
 0x1e9   : > { %p1112_p9 = scmp.ne.s32.totalorder %s1682_s8, %s1111_s27  ;;  %p1116_p8 = scmp.lt.u32.totalorder %s1682_s8, %s1734_s4 }
 0x1ea   : > { %p1117_p13 = scmp.lt.u32.totalorder %s1115_s11, %s1111_s27  ;;  %p1119_p10 = scmp.lt.u32.totalorder %s1111_s27, %s1682_s8 }
 0x1eb   : > { %p1113_p0 = pnand %p1112_p9, %p1355_p5 }
 0x1ec   : > { %p1118_p6 = por %p1117_p13, %p1116_p8 }
 0x1ed   : > { %p1114_p11 = pneg %p1113_p0 }
 0x1ee   : > { %p1120_p3 = por %p1119_p10, %p1118_p6 }
 0x1f0   : > { %p1121_p7 = pnand %p1120_p3, %p1114_p11 }
 0x1f2   : > { %1124 = shalt.err (!%p1121_p7)
}
 0x1f3   : > { %s1182_s21 = smov 64   ;;  %s1183_s23 = smov 4  }
 0x1f4   : > { %882 = dma.vmem_to_hbm [thread:$0]  (%p1355_p5), %s1684_s29, 1024, %s1682_s8, %s658_s19, %s1182_s21, %s1182_s21, %s1183_s23  }
 0x1f5 PF: > { %s686_s6 = sand.u32 1, %s1159_s15   ;;  %p1752_p12 = scmp.ne.s32.totalorder %s1739_s22, 0 }
 0x1f6   : > { %p1753_p2 = scmp.ge.s32.totalorder %s1171_s18, 2  ;;  %s687_s7 = scalar_lea.sflag [#allocation4], %s686_s6 }
 0x1f8   : > { %p899_p1 = pnand %p1753_p2, %p1752_p12 }
 0x1fa   : > { %1154 = dma.done.wait (!%p899_p1), %s687_s7, 1024  }
 0x1fb   : > { %1156 = vsyncadd (!%p899_p1), %s687_s7, 4294966272  ;;  %p19_p4 = scmp.ge.s32.totalorder %s1341_s10, 4   ;;  %s1754_s15 = smov %s1163_s16 }
 0x1fc   : > { %s1755_s16 = smov %s1167_s17  ;;  %s1756_s17 = smov %s1351_s12 }
 0x1fd   : > { %s1757_s18 = smov %s1341_s10  ;;  %21 = sbr.rel (!%p19_p4) target bundleno = 7 (0x7), region = 93 }
 0x204   :  { %692 = vsyncpa [#allocation3], 1 }
 0x205   :  { %694 = vsyncpa [#allocation3 + $0x1], 1 }
 0x206   :  { %695 = vsyncpa [#allocation6], 1 }
 0x207   :  { %696 = vsyncpa [#allocation9], 1 }
 0x208   :  { %697 = vsyncpa [#allocation4], 1 }
 0x209   :  { %699 = vsyncpa [#allocation4 + $0x1], 1 }

// kernel: clip_encode_image.11
= control target key start
LH: loop header
LB: loop body
LE: loop exit
PB: predicated region body
PF: predicated region fallthrough
CT: control target
= control target key end

     0   :  { %7 = vsyncpa [#allocation3], 0  ;;  %s687_s0 = inlined_call_operand.hbm [shape: f32[128,192], index: 0, kind: input, shape index: {}]   ;;  %s688_s1 = inlined_call_operand.hbm [shape: bf16[192,32], index: 1, kind: input, shape index: {}]   ;;  %s689_s2 = inlined_call_operand.hbm [shape: bf16[128,32], index: 2, kind: output, shape index: {}]  }
   0x1   :  { %8 = vsyncpa [#allocation6], 0 }
   0x2   :  { %9 = vsyncpa [#allocation4], 0  ;;  %s574_s9 = smov [#allocation2]   ;;  %s502_s13 = scalar_lea.hbm %s687_s0, 4096 }
   0x3   :  { %s15_s10 = sshll.u32 %s574_s9, 4  ;;  %p503_p0 = scmp.ne.s32.totalorder %s687_s0, %s502_s13  ;;  %s16_s10 = int_to_ptr.vmem [resolvable:$true] %s15_s10 }
   0x4   :  { %p506_p1 = scmp.lt.u32.totalorder %s502_s13, %s687_s0 }
   0x6   :  { %p508_p2 = pnand %p506_p1, %p503_p0 }
   0x8   :  { %511 = shalt.err (!%p508_p2)
}
   0x9   :  { %s512_s18 = scalar_lea.vmem %s16_s10, 4096  ;;  %p517_p4 = scmp.lt.s32.totalorder %s16_s10, %s16_s10 }
   0xa   :  { %p513_p3 = scmp.ne.s32.totalorder %s16_s10, %s512_s18  ;;  %p518_p5 = scmp.lt.s32.totalorder %s512_s18, %s512_s18 }
   0xc   :  { %p519_p6 = por %p518_p5, %p517_p4 }
   0xe   :  { %p520_p7 = pnand %p519_p6, %p513_p3 }
  0x10   :  { %523 = shalt.err (!%p520_p7)
}
  0x11   :  { %s575_s19 = smov 256   ;;  %s576_s20 = smov 16  }
  0x12   :  { %21 = dma.hbm_to_vmem [thread:$0]  %s687_s0, 4096, %s16_s10, [#allocation3], %s575_s19, %s575_s19, %s576_s20  }
  0x13   :  { %s577_s23 = smov [#allocation5]   ;;  %s524_s27 = scalar_lea.hbm %s688_s1, 1536 }
  0x14   :  { %s27_s24 = sshll.u32 %s577_s23, 4  ;;  %p525_p8 = scmp.ne.s32.totalorder %s688_s1, %s524_s27  ;;  %s28_s24 = int_to_ptr.vmem [resolvable:$true] %s27_s24 }
  0x15   :  { %p528_p9 = scmp.lt.u32.totalorder %s524_s27, %s688_s1 }
  0x17   :  { %p530_p10 = pnand %p528_p9, %p525_p8 }
  0x19   :  { %533 = shalt.err (!%p530_p10)
}
  0x1a   :  { %s534_s4 = scalar_lea.vmem %s28_s24, 1536  ;;  %p539_p12 = scmp.lt.s32.totalorder %s28_s24, %s28_s24 }
  0x1b   :  { %p535_p11 = scmp.ne.s32.totalorder %s28_s24, %s534_s4  ;;  %p540_p13 = scmp.lt.s32.totalorder %s534_s4, %s534_s4 }
  0x1d   :  { %p541_p0 = por %p540_p13, %p539_p12 }
  0x1f   :  { %p542_p1 = pnand %p541_p0, %p535_p11 }
  0x21   :  { %545 = shalt.err (!%p542_p1)
}
  0x22   :  { %s578_s0 = smov 64   ;;  %s579_s5 = smov 4  }
  0x23   :  { %33 = dma.hbm_to_vmem [thread:$0]  %s688_s1, 1536, %s28_s24, [#allocation6], %s578_s0, %s578_s0, %s579_s5  }
  0x24   :  { %568 = dma.done.wait [#allocation3], 4096  }
  0x25   :  { %569 = vsyncadd [#allocation3], 4294963200 }
  0x26   :  { %570 = dma.done.wait [#allocation6], 1536  }
  0x27   :  { %571 = vsyncadd [#allocation6], 4294965760  ;;  %v580_v0 = vmov 0   ;;  %v490_v1 = vld [vmem:[#allocation5] sm:$0xff]   ;;  %v491_v2 = vld [vmem:[#allocation5 + $0x8] sm:$0xff]   ;;  %vm185_vm0 = vcmask 523264  }
  0x28   :  { %210 = vmatprep.subr.bf16.mxu0 %v580_v0  ;;  %458 = vmatprep.subr.bf16.mxu1 %v580_v0  ;;  %v492_v3 = vld [vmem:[#allocation5 + $0x10] sm:$0xff]   ;;  %v493_v4 = vld [vmem:[#allocation5 + $0x18] sm:$0xff]   ;;  %v42_v5 = vld [vmem:[#allocation2 + $0x8] sm:$0xff]  ;;  %vm371_vm1 = vcmask 257024   ;;  %s581_s1 = smov [#allocation7]  }
  0x29   :  { %211 = vmatpush1.bf16.msra.mxu0 %v490_v1  ;;  %470 = vmatpush1.bf16.msra.mxu1 %v490_v1  ;;  %v44_v6 = vld [vmem:[#allocation2 + $0x18] sm:$0xff]  ;;  %v58_v7 = vld [vmem:[#allocation2 + $0x88] sm:$0xff]  ;;  %v494_v10 = vld [vmem:[#allocation5 + $0x20] sm:$0xff]   ;;  %s393_s8 = sshll.u32 %s581_s1, 4  ;;  %s394_s8 = int_to_ptr.vmem [resolvable:$true] %s393_s8 }
  0x2a   :  { %212 = vmatprep.subr.bf16.mxu0 %v580_v0  ;;  %459 = vmatprep.subr.bf16.mxu1 %v580_v0  ;;  %v74_v8 = vpack.c.bf16 %v44_v6, %v42_v5  ;;  %v60_v9 = vld [vmem:[#allocation2 + $0x98] sm:$0xff]  ;;  %v495_v12 = vld [vmem:[#allocation5 + $0x28] sm:$0xff]   ;;  %v496_v13 = vld [vmem:[#allocation5 + $0x30] sm:$0xff]   ;;  %s546_s9 = scalar_lea.vmem %s394_s8, 1024  ;;  %p551_p3 = scmp.lt.s32.totalorder %s394_s8, %s394_s8 }
  0x2b   :  { %v82_v11 = vpack.c.bf16 %v60_v9, %v58_v7  ;;  %v497_v14 = vld [vmem:[#allocation5 + $0x38] sm:$0xff]   ;;  %v498_v15 = vld [vmem:[#allocation5 + $0x40] sm:$0xff]   ;;  %v499_v16 = vld [vmem:[#allocation5 + $0x48] sm:$0xff]   ;;  %p547_p2 = scmp.ne.s32.totalorder %s394_s8, %s546_s9  ;;  %p552_p4 = scmp.lt.s32.totalorder %s546_s9, %s546_s9 }
  0x2c   :  { %418 = vmatprep.mubr.msk.bf16.mxu0 %vm185_vm0, %v74_v8  ;;  %v500_v17 = vld [vmem:[#allocation5 + $0x50] sm:$0xff]   ;;  %v501_v18 = vld [vmem:[#allocation5 + $0x58] sm:$0xff]   ;;  %v41_v19 = vld [vmem:[#allocation2] sm:$0xff] }
  0x2d   :  { %213 = vmatpush1.bf16.msra.mxu0 %v491_v2  ;;  %471 = vmatpush1.bf16.msra.mxu1 %v491_v2  ;;  %v43_v20 = vld [vmem:[#allocation2 + $0x10] sm:$0xff]  ;;  %v57_v21 = vld [vmem:[#allocation2 + $0x80] sm:$0xff]  ;;  %v46_v23 = vld [vmem:[#allocation2 + $0x28] sm:$0xff]  ;;  %p553_p5 = por %p552_p4, %p551_p3 }
  0x2e   :  { %214 = vmatprep.subr.bf16.mxu0 %v580_v0  ;;  %460 = vmatprep.subr.bf16.mxu1 %v580_v0  ;;  %v59_v22 = vld [vmem:[#allocation2 + $0x90] sm:$0xff]  ;;  %v48_v24 = vld [vmem:[#allocation2 + $0x38] sm:$0xff]  ;;  %v62_v25 = vld [vmem:[#allocation2 + $0xa8] sm:$0xff]  ;;  %v73_v27 = vpack.c.bf16 %v43_v20, %v41_v19 }
  0x2f   :  { %422 = vmatprep.mubr.msk.bf16.mxu1 %vm185_vm0, %v82_v11  ;;  %v64_v26 = vld [vmem:[#allocation2 + $0xb8] sm:$0xff]  ;;  %v81_v28 = vpack.c.bf16 %v59_v22, %v57_v21  ;;  %v76_v29 = vpack.c.bf16 %v48_v24, %v46_v23  ;;  %v45_v31 = vld [vmem:[#allocation2 + $0x20] sm:$0xff]  ;;  %v47_v32 = vld [vmem:[#allocation2 + $0x30] sm:$0xff]  ;;  %p554_p6 = pnand %p553_p5, %p547_p2 }
  0x30   :  { %v84_v30 = vpack.c.bf16 %v64_v26, %v62_v25  ;;  %v61_v33 = vld [vmem:[#allocation2 + $0xa0] sm:$0xff]  ;;  %v63_v34 = vld [vmem:[#allocation2 + $0xb0] sm:$0xff]  ;;  %v50_v35 = vld [vmem:[#allocation2 + $0x48] sm:$0xff]  ;;  %v75_v39 = vpack.c.bf16 %v47_v32, %v45_v31 }
  0x31   :  { %215 = vmatpush1.bf16.msra.mxu0 %v492_v3  ;;  %472 = vmatpush1.bf16.msra.mxu1 %v492_v3  ;;  %v52_v36 = vld [vmem:[#allocation2 + $0x58] sm:$0xff]  ;;  %v66_v37 = vld [vmem:[#allocation2 + $0xc8] sm:$0xff]  ;;  %v83_v40 = vpack.c.bf16 %v63_v34, %v61_v33  ;;  %v49_v43 = vld [vmem:[#allocation2 + $0x40] sm:$0xff] }
  0x32   :  { %216 = vmatprep.subr.bf16.mxu0 %v580_v0  ;;  %461 = vmatprep.subr.bf16.mxu1 %v580_v0  ;;  %v68_v38 = vld [vmem:[#allocation2 + $0xd8] sm:$0xff]  ;;  %v78_v41 = vpack.c.bf16 %v52_v36, %v50_v35  ;;  %v51_v44 = vld [vmem:[#allocation2 + $0x50] sm:$0xff]  ;;  %v65_v45 = vld [vmem:[#allocation2 + $0xc0] sm:$0xff] }
  0x33   :  { %v86_v42 = vpack.c.bf16 %v68_v38, %v66_v37  ;;  %v67_v46 = vld [vmem:[#allocation2 + $0xd0] sm:$0xff]  ;;  %v54_v47 = vld [vmem:[#allocation2 + $0x68] sm:$0xff]  ;;  %v56_v48 = vld [vmem:[#allocation2 + $0x78] sm:$0xff]  ;;  %v77_v51 = vpack.c.bf16 %v51_v44, %v49_v43 }
  0x34   :  { %v70_v49 = vld [vmem:[#allocation2 + $0xe8] sm:$0xff]  ;;  %v72_v50 = vld [vmem:[#allocation2 + $0xf8] sm:$0xff]  ;;  %v85_v52 = vpack.c.bf16 %v67_v46, %v65_v45  ;;  %v80_v53 = vpack.c.bf16 %v56_v48, %v54_v47  ;;  %v53_v55 = vld [vmem:[#allocation2 + $0x60] sm:$0xff] }
  0x35   :  { %217 = vmatpush1.bf16.msra.mxu0 %v493_v4  ;;  %473 = vmatpush1.bf16.msra.mxu1 %v493_v4  ;;  %v88_v54 = vpack.c.bf16 %v72_v50, %v70_v49  ;;  %v55_v56 = vld [vmem:[#allocation2 + $0x70] sm:$0xff]  ;;  %v69_v57 = vld [vmem:[#allocation2 + $0xe0] sm:$0xff] }
  0x36   :  { %218 = vmatprep.subr.bf16.mxu0 %v580_v0  ;;  %462 = vmatprep.subr.bf16.mxu1 %v580_v0  ;;  %v71_v58 = vld [vmem:[#allocation2 + $0xf0] sm:$0xff]  ;;  %v79_v59 = vpack.c.bf16 %v55_v56, %v53_v55 }
  0x37   :  { %v87_v60 = vpack.c.bf16 %v71_v58, %v69_v57 }
  0x39   :  { %219 = vmatpush1.bf16.msra.mxu0 %v494_v10  ;;  %474 = vmatpush1.bf16.msra.mxu1 %v494_v10 }
  0x3a   :  { %220 = vmatprep.subr.bf16.mxu0 %v580_v0  ;;  %463 = vmatprep.subr.bf16.mxu1 %v580_v0 }
  0x3d   :  { %221 = vmatpush1.bf16.msra.mxu0 %v495_v12  ;;  %475 = vmatpush1.bf16.msra.mxu1 %v495_v12 }
  0x3e   :  { %222 = vmatprep.subr.bf16.mxu0 %v580_v0  ;;  %464 = vmatprep.subr.bf16.mxu1 %v580_v0 }
  0x41   :  { %223 = vmatpush1.bf16.msra.mxu0 %v496_v13  ;;  %476 = vmatpush1.bf16.msra.mxu1 %v496_v13 }
  0x42   :  { %224 = vmatprep.subr.bf16.mxu0 %v580_v0  ;;  %465 = vmatprep.subr.bf16.mxu1 %v580_v0 }
  0x45   :  { %225 = vmatpush1.bf16.msra.mxu0 %v497_v14  ;;  %477 = vmatpush1.bf16.msra.mxu1 %v497_v14 }
  0x46   :  { %226 = vmatprep.subr.bf16.mxu0 %v580_v0  ;;  %466 = vmatprep.subr.bf16.mxu1 %v580_v0 }
  0x49   :  { %227 = vmatpush1.bf16.msra.mxu0 %v498_v15  ;;  %478 = vmatpush1.bf16.msra.mxu1 %v498_v15 }
  0x4a   :  { %228 = vmatprep.subr.bf16.mxu0 %v580_v0  ;;  %467 = vmatprep.subr.bf16.mxu1 %v580_v0 }
  0x4d   :  { %229 = vmatpush1.bf16.msra.mxu0 %v499_v16  ;;  %479 = vmatpush1.bf16.msra.mxu1 %v499_v16 }
  0x4e   :  { %230 = vmatprep.subr.bf16.mxu0 %v580_v0  ;;  %468 = vmatprep.subr.bf16.mxu1 %v580_v0 }
  0x51   :  { %231 = vmatpush1.bf16.msra.mxu0 %v500_v17  ;;  %480 = vmatpush1.bf16.msra.mxu1 %v500_v17 }
  0x52   :  { %232 = vmatprep.subr.bf16.mxu0 %v580_v0  ;;  %469 = vmatprep.subr.bf16.mxu1 %v580_v0 }
  0x55   :  { %233 = vmatpush1.bf16.msra.mxu0 %v501_v18  ;;  %481 = vmatpush1.bf16.msra.mxu1 %v501_v18 }
  0x58   :  { %243 = vmatmul.mubr.bf16.vlgmr.msra.gmra.mrb[0].mxu0 %v73_v27  ;;  %275 = vmatmul.mubr.bf16.vlgmr.msra.gmra.mrb[0].mxu1 %v81_v28 }
  0x59   :  { %419 = vmatprep.mubr.msk.bf16.mxu0 %vm185_vm0, %v76_v29  ;;  %423 = vmatprep.mubr.msk.bf16.mxu1 %vm185_vm0, %v84_v30 }
  0x60   :  { %251 = vmatmul.mubr.bf16.gmra.mrb[4].mxu0 %v75_v39  ;;  %283 = vmatmul.mubr.bf16.gmra.mrb[4].mxu1 %v83_v40 }
  0x61   :  { %420 = vmatprep.mubr.msk.bf16.mxu0 %vm185_vm0, %v78_v41  ;;  %424 = vmatprep.mubr.msk.bf16.mxu1 %vm185_vm0, %v86_v42 }
  0x68   :  { %259 = vmatmul.mubr.bf16.gmra.mrb[8].mxu0 %v77_v51  ;;  %291 = vmatmul.mubr.bf16.gmra.mrb[8].mxu1 %v85_v52 }
  0x69   :  { %421 = vmatprep.mubr.msk.bf16.mxu0 %vm185_vm0, %v80_v53  ;;  %425 = vmatprep.mubr.msk.bf16.mxu1 %vm185_vm0, %v88_v54 }
  0x70   :  { %267 = vmatmul.mubr.bf16.gmra.mrb[12].mxu0 %v79_v59  ;;  %299 = vmatmul.mubr.bf16.gmra.mrb[12].mxu1 %v87_v60 }
 0x12b   :  { %v244_v61 = vpop.f32.mrb[0].mxu0  ;;  %v276_v62 = vpop.f32.mrb[0].mxu1 }
 0x12c   :  { %v442_v63 = vpack.c.bf16 %v244_v61, %v244_v61  ;;  %v450_v0 = vpack.c.bf16 %v276_v62, %v276_v62  ;;  %v246_v1 = vpop.f32.mrb[1].mxu0  ;;  %v278_v2 = vpop.f32.mrb[1].mxu1 }
 0x12d   :  { %v247_v3 = vpop.f32.mrb[2].mxu0  ;;  %v279_v4 = vpop.f32.mrb[2].mxu1 }
 0x12e   :  { %372 = vst.msk [vmem:[#allocation7] sm:$0xf] %vm371_vm1, %v442_v63  ;;  %380 = vst.msk [vmem:[#allocation7 + $0x20] sm:$0xf] %vm371_vm1, %v450_v0  ;;  %v443_v5 = vpack.c.bf16 %v247_v3, %v247_v3  ;;  %v451_v6 = vpack.c.bf16 %v279_v4, %v279_v4  ;;  %v249_v7 = vpop.f32.mrb[3].mxu0  ;;  %v281_v8 = vpop.f32.mrb[3].mxu1 }
 0x130   :  { %373 = vst.msk [vmem:[#allocation7 + $0x4] sm:$0xf] %vm371_vm1, %v443_v5  ;;  %381 = vst.msk [vmem:[#allocation7 + $0x24] sm:$0xf] %vm371_vm1, %v451_v6 }
 0x133   :  { %v252_v9 = vpop.f32.mrb[4].mxu0  ;;  %v284_v10 = vpop.f32.mrb[4].mxu1 }
 0x134   :  { %v444_v11 = vpack.c.bf16 %v252_v9, %v252_v9  ;;  %v452_v12 = vpack.c.bf16 %v284_v10, %v284_v10  ;;  %v254_v13 = vpop.f32.mrb[5].mxu0  ;;  %v286_v14 = vpop.f32.mrb[5].mxu1 }
 0x135   :  { %v255_v15 = vpop.f32.mrb[6].mxu0  ;;  %v287_v16 = vpop.f32.mrb[6].mxu1 }
 0x136   :  { %374 = vst.msk [vmem:[#allocation7 + $0x8] sm:$0xf] %vm371_vm1, %v444_v11  ;;  %382 = vst.msk [vmem:[#allocation7 + $0x28] sm:$0xf] %vm371_vm1, %v452_v12  ;;  %v445_v17 = vpack.c.bf16 %v255_v15, %v255_v15  ;;  %v453_v18 = vpack.c.bf16 %v287_v16, %v287_v16  ;;  %v257_v19 = vpop.f32.mrb[7].mxu0  ;;  %v289_v20 = vpop.f32.mrb[7].mxu1 }
 0x138   :  { %375 = vst.msk [vmem:[#allocation7 + $0xc] sm:$0xf] %vm371_vm1, %v445_v17  ;;  %383 = vst.msk [vmem:[#allocation7 + $0x2c] sm:$0xf] %vm371_vm1, %v453_v18 }
 0x13b   :  { %v260_v21 = vpop.f32.mrb[8].mxu0  ;;  %v292_v22 = vpop.f32.mrb[8].mxu1 }
 0x13c   :  { %v446_v23 = vpack.c.bf16 %v260_v21, %v260_v21  ;;  %v454_v24 = vpack.c.bf16 %v292_v22, %v292_v22  ;;  %v262_v25 = vpop.f32.mrb[9].mxu0  ;;  %v294_v26 = vpop.f32.mrb[9].mxu1 }
 0x13d   :  { %v263_v27 = vpop.f32.mrb[10].mxu0  ;;  %v295_v28 = vpop.f32.mrb[10].mxu1 }
 0x13e   :  { %376 = vst.msk [vmem:[#allocation7 + $0x10] sm:$0xf] %vm371_vm1, %v446_v23  ;;  %384 = vst.msk [vmem:[#allocation7 + $0x30] sm:$0xf] %vm371_vm1, %v454_v24  ;;  %v447_v29 = vpack.c.bf16 %v263_v27, %v263_v27  ;;  %v455_v30 = vpack.c.bf16 %v295_v28, %v295_v28  ;;  %v265_v31 = vpop.f32.mrb[11].mxu0  ;;  %v297_v32 = vpop.f32.mrb[11].mxu1 }
 0x140   :  { %377 = vst.msk [vmem:[#allocation7 + $0x14] sm:$0xf] %vm371_vm1, %v447_v29  ;;  %385 = vst.msk [vmem:[#allocation7 + $0x34] sm:$0xf] %vm371_vm1, %v455_v30 }
 0x143   :  { %v268_v33 = vpop.f32.mrb[12].mxu0  ;;  %v300_v34 = vpop.f32.mrb[12].mxu1 }
 0x144   :  { %v448_v35 = vpack.c.bf16 %v268_v33, %v268_v33  ;;  %v456_v36 = vpack.c.bf16 %v300_v34, %v300_v34  ;;  %v270_v37 = vpop.f32.mrb[13].mxu0  ;;  %v302_v38 = vpop.f32.mrb[13].mxu1 }
 0x145   :  { %v271_v39 = vpop.f32.mrb[14].mxu0  ;;  %v303_v40 = vpop.f32.mrb[14].mxu1 }
 0x146   :  { %378 = vst.msk [vmem:[#allocation7 + $0x18] sm:$0xf] %vm371_vm1, %v448_v35  ;;  %386 = vst.msk [vmem:[#allocation7 + $0x38] sm:$0xf] %vm371_vm1, %v456_v36  ;;  %v449_v41 = vpack.c.bf16 %v271_v39, %v271_v39  ;;  %v457_v42 = vpack.c.bf16 %v303_v40, %v303_v40  ;;  %v273_v43 = vpop.f32.mrb[15].mxu0  ;;  %v305_v44 = vpop.f32.mrb[15].mxu1 }
 0x148   :  { %379 = vst.msk [vmem:[#allocation7 + $0x1c] sm:$0xf] %vm371_vm1, %v449_v41  ;;  %387 = vst.msk [vmem:[#allocation7 + $0x3c] sm:$0xf] %vm371_vm1, %v457_v42 }
 0x149   :  { %557 = shalt.err (!%p554_p6)
}
 0x14a   :  { %s558_s12 = scalar_lea.hbm %s689_s2, 1024 }
 0x14b   :  { %p559_p7 = scmp.ne.s32.totalorder %s689_s2, %s558_s12  ;;  %p562_p8 = scmp.lt.u32.totalorder %s558_s12, %s689_s2 }
 0x14d   :  { %p564_p9 = pnand %p562_p8, %p559_p7 }
 0x14f   :  { %567 = shalt.err (!%p564_p9)
}
 0x150   :  { %399 = dma.vmem_to_hbm [thread:$0]  %s394_s8, 1024, %s689_s2, [#allocation4], %s578_s0, %s578_s0, %s579_s5  }
 0x151   :  { %572 = dma.done.wait [#allocation4], 1024  }
 0x152   :  { %573 = vsyncadd [#allocation4], 4294966272 }
 0x153   :  { %403 = vsyncpa [#allocation3], 1 }
 0x154   :  { %404 = vsyncpa [#allocation6], 1 }
 0x155   :  { %405 = vsyncpa [#allocation4], 1 }

// kernel: clip_encode_image.13
= control target key start
LH: loop header
LB: loop body
LE: loop exit
PB: predicated region body
PF: predicated region fallthrough
CT: control target
= control target key end

     0   :  { %10 = vsyncpa [#allocation3], 0  ;;  %s2193_s0 = inlined_call_operand.hbm [shape: bf16[256,32], index: 0, kind: input, shape index: {}]   ;;  %s2194_s1 = inlined_call_operand.hbm [shape: f32[1,32], index: 1, kind: input, shape index: {}]   ;;  %s2195_s2 = inlined_call_operand.hbm [shape: f32[1,32], index: 2, kind: input, shape index: {}]   ;;  %s2196_s3 = inlined_call_operand.hbm [shape: bf16[32,96], index: 3, kind: input, shape index: {}]   ;;  %s2197_s4 = inlined_call_operand.hbm [shape: f32[1,96], index: 4, kind: input, shape index: {}]   ;;  %s2198_s5 = inlined_call_operand.hbm [shape: bf16[256,96], index: 5, kind: output, shape index: {}]  }
   0x1   :  { %11 = vsyncpa [#allocation6], 0 }
   0x2   :  { %12 = vsyncpa [#allocation9], 0 }
   0x3   :  { %13 = vsyncpa [#allocation4], 0  ;;  %s1508_s18 = smov [#allocation5]   ;;  %s1368_s22 = scalar_lea.hbm %s2194_s1, 16 }
   0x4   :  { %s32_s19 = sshll.u32 %s1508_s18, 4  ;;  %p1369_p0 = scmp.ne.s32.totalorder %s2194_s1, %s1368_s22  ;;  %s33_s19 = int_to_ptr.vmem [resolvable:$true] %s32_s19 }
   0x5   :  { %p1372_p1 = scmp.lt.u32.totalorder %s1368_s22, %s2194_s1 }
   0x7   :  { %p1374_p2 = pnand %p1372_p1, %p1369_p0 }
   0x9   :  { %1377 = shalt.err (!%p1374_p2)
}
   0xa   :  { %s1378_s27 = scalar_lea.vmem %s33_s19, 16  ;;  %s1382_s28 = scalar_lea.vmem %s33_s19, 32 }
   0xb   :  { %p1379_p3 = scmp.ne.s32.totalorder %s33_s19, %s1378_s27  ;;  %p1383_p4 = scmp.lt.s32.totalorder %s33_s19, %s33_s19 }
   0xc   :  { %p1384_p5 = scmp.lt.s32.totalorder %s1382_s28, %s1378_s27 }
   0xe   :  { %p1385_p6 = por %p1384_p5, %p1383_p4 }
  0x10   :  { %p1386_p7 = pnand %p1385_p6, %p1379_p3 }
  0x12   :  { %1389 = shalt.err (!%p1386_p7)
}
  0x13   :  { %35 = dma.hbm_to_vmem [thread:$0]  %s2194_s1, 16, %s33_s19, [#allocation6]  }
  0x14   :  { %s1509_s6 = smov [#allocation8]   ;;  %s1510_s8 = smov [#allocation2]  }
  0x15   :  { %s51_s7 = sshll.u32 %s1509_s6, 4  ;;  %s19_s9 = sshll.u32 %s1510_s8, 4  ;;  %s52_s7 = int_to_ptr.vmem [resolvable:$true] %s51_s7  ;;  %s20_s9 = int_to_ptr.vmem [resolvable:$true] %s19_s9 }
  0x16   :  { %s1390_s12 = scalar_lea.hbm %s2196_s3, 256 }
  0x17   :  { %p1391_p8 = scmp.ne.s32.totalorder %s2196_s3, %s1390_s12  ;;  %p1394_p9 = scmp.lt.u32.totalorder %s1390_s12, %s2196_s3 }
  0x19   :  { %p1396_p10 = pnand %p1394_p9, %p1391_p8 }
  0x1b   :  { %1399 = shalt.err (!%p1396_p10)
}
  0x1c   :  { %s1400_s1 = scalar_lea.vmem %s52_s7, 256  ;;  %p1405_p12 = scmp.lt.s32.totalorder %s52_s7, %s52_s7 }
  0x1d   :  { %p1401_p11 = scmp.ne.s32.totalorder %s52_s7, %s1400_s1  ;;  %p1406_p13 = scmp.lt.s32.totalorder %s1400_s1, %s1400_s1 }
  0x1f   :  { %p1407_p0 = por %p1406_p13, %p1405_p12 }
  0x21   :  { %p1408_p1 = pnand %p1407_p0, %p1401_p11 }
  0x23   :  { %1411 = shalt.err (!%p1408_p1)
}
  0x24   :  { %s1511_s17 = smov 64   ;;  %s1512_s18 = smov 4  }
  0x25   :  { %57 = dma.hbm_to_vmem [thread:$0]  %s2196_s3, 256, %s52_s7, [#allocation9], %s1511_s17, %s1511_s17, %s1512_s18  }
  0x26   :  { %s1412_s23 = scalar_lea.hbm %s2193_s0, 2048 }
  0x27   :  { %p1413_p2 = scmp.ne.s32.totalorder %s2193_s0, %s1412_s23  ;;  %p1416_p3 = scmp.lt.u32.totalorder %s1412_s23, %s2193_s0 }
  0x29   :  { %p1418_p4 = pnand %p1416_p3, %p1413_p2 }
  0x2b   :  { %1421 = shalt.err (!%p1418_p4)
}
  0x2c   :  { %s1422_s28 = scalar_lea.vmem %s20_s9, 2048  ;;  %p1427_p6 = scmp.lt.s32.totalorder %s20_s9, %s20_s9 }
  0x2d   :  { %p1423_p5 = scmp.ne.s32.totalorder %s20_s9, %s1422_s28  ;;  %p1428_p7 = scmp.lt.s32.totalorder %s1422_s28, %s1422_s28 }
  0x2f   :  { %p1429_p8 = por %p1428_p7, %p1427_p6 }
  0x31   :  { %p1430_p9 = pnand %p1429_p8, %p1423_p5 }
  0x33   :  { %1433 = shalt.err (!%p1430_p9)
}
  0x34   :  { %25 = dma.hbm_to_vmem [thread:$0]  %s2193_s0, 2048, %s20_s9, [#allocation3], %s1511_s17, %s1511_s17, %s1512_s18  }
  0x35   :  { %s1513_s30 = smov [#allocation7]   ;;  %s1514_s7 = smov [#allocation10]  }
  0x36   :  { %s42_s6 = sshll.u32 %s1513_s30, 4  ;;  %s64_s8 = sshll.u32 %s1514_s7, 4  ;;  %s43_s6 = int_to_ptr.vmem [resolvable:$true] %s42_s6  ;;  %s65_s8 = int_to_ptr.vmem [resolvable:$true] %s64_s8 }
  0x37   :  { %s1434_s12 = scalar_lea.hbm %s2195_s2, 16 }
  0x38   :  { %p1435_p10 = scmp.ne.s32.totalorder %s2195_s2, %s1434_s12  ;;  %p1438_p11 = scmp.lt.u32.totalorder %s1434_s12, %s2195_s2 }
  0x3a   :  { %p1440_p12 = pnand %p1438_p11, %p1435_p10 }
  0x3c   :  { %1443 = shalt.err (!%p1440_p12)
}
  0x3d   :  { %s1444_s0 = scalar_lea.vmem %s43_s6, 16  ;;  %s1448_s9 = scalar_lea.vmem %s43_s6, 32 }
  0x3e   :  { %p1445_p13 = scmp.ne.s32.totalorder %s43_s6, %s1444_s0  ;;  %p1449_p0 = scmp.lt.s32.totalorder %s43_s6, %s43_s6 }
  0x3f   :  { %p1450_p1 = scmp.lt.s32.totalorder %s1448_s9, %s1444_s0 }
  0x41   :  { %p1451_p2 = por %p1450_p1, %p1449_p0 }
  0x43   :  { %p1452_p3 = pnand %p1451_p2, %p1445_p13 }
  0x45   :  { %1455 = shalt.err (!%p1452_p3)
}
  0x46   :  { %45 = dma.hbm_to_vmem [thread:$0]  %s2195_s2, 16, %s43_s6, [#allocation6]  }
  0x47   :  { %s1456_s22 = scalar_lea.hbm %s2197_s4, 16 }
  0x48   :  { %p1457_p4 = scmp.ne.s32.totalorder %s2197_s4, %s1456_s22  ;;  %p1460_p5 = scmp.lt.u32.totalorder %s1456_s22, %s2197_s4 }
  0x4a   :  { %p1462_p6 = pnand %p1460_p5, %p1457_p4 }
  0x4c   :  { %1465 = shalt.err (!%p1462_p6)
}
  0x4d   :  { %s1466_s27 = scalar_lea.vmem %s65_s8, 16  ;;  %s1470_s28 = scalar_lea.vmem %s65_s8, 32 }
  0x4e   :  { %p1467_p7 = scmp.ne.s32.totalorder %s65_s8, %s1466_s27  ;;  %p1471_p8 = scmp.lt.s32.totalorder %s65_s8, %s65_s8 }
  0x4f   :  { %p1472_p9 = scmp.lt.s32.totalorder %s1470_s28, %s1466_s27 }
  0x51   :  { %p1473_p10 = por %p1472_p9, %p1471_p8 }
  0x53   :  { %p1474_p11 = pnand %p1473_p10, %p1467_p7 }
  0x55   :  { %1477 = shalt.err (!%p1474_p11)
}
  0x56   :  { %67 = dma.hbm_to_vmem [thread:$0]  %s2197_s4, 16, %s65_s8, [#allocation9]  }
  0x57   :  { %1500 = dma.done.wait [#allocation3], 2048  }
  0x58   :  { %1501 = vsyncadd [#allocation3], 4294965248 }
  0x59   :  { %1502 = dma.done.wait [#allocation6], 32  }
  0x5a   :  { %1503 = vsyncadd [#allocation6], 4294967264 }
  0x5b   :  { %1504 = dma.done.wait [#allocation9], 272  }
  0x5c   :  { %1505 = vsyncadd [#allocation9], 4294967024  ;;  %v1612_v0 = vld [vmem:[#allocation2] sm:$0xff]   ;;  %vm148_vm0 = vcmask 261120   ;;  %v1620_v6 = vld [vmem:[#allocation2 + $0x8] sm:$0xff]   ;;  %vm1020_vm1 = vcmask 781312  }
  0x5d   :  { %v1614_v1 = vld [vmem:[#allocation2 + $0x40] sm:$0xff]   ;;  %v1159_v2 = vunpack.c.l.bf16 %v1612_v0  ;;  %v1160_v4 = vunpack.c.h.bf16 %v1612_v0  ;;  %v1163_v11 = vunpack.c.l.bf16 %v1620_v6  ;;  %v1164_v12 = vunpack.c.h.bf16 %v1620_v6  ;;  %v1636_v13 = vld [vmem:[#allocation2 + $0x48] sm:$0xff]   ;;  %v1646_v18 = vld [vmem:[#allocation2 + $0x10] sm:$0xff]   ;;  %s1515_s4 = smov [#allocation11]  }
  0x5e   :  { %v1191_v3 = vunpack.c.l.bf16 %v1614_v1  ;;  %v1192_v5 = vunpack.c.h.bf16 %v1614_v1  ;;  %v1195_v16 = vunpack.c.l.bf16 %v1636_v13  ;;  %v1196_v17 = vunpack.c.h.bf16 %v1636_v13  ;;  %v1656_v23 = vld [vmem:[#allocation2 + $0x50] sm:$0xff]   ;;  %v1666_v28 = vld [vmem:[#allocation2 + $0x18] sm:$0xff]   ;;  %v1686_v38 = vld [vmem:[#allocation2 + $0x20] sm:$0xff]   ;;  %s1058_s29 = sshll.u32 %s1515_s4, 4  ;;  %s1059_s29 = int_to_ptr.vmem [resolvable:$true] %s1058_s29 }
  0x5f   :  { %v149_v7 = vsel %vm148_vm0, %v1159_v2, 0.0  ;;  %v152_v9 = vsel %vm148_vm0, %v1160_v4, 0.0  ;;  %v155_v14 = vsel %vm148_vm0, %v1163_v11, 0.0  ;;  %v158_v15 = vsel %vm148_vm0, %v1164_v12, 0.0  ;;  %v1676_v33 = vld [vmem:[#allocation2 + $0x58] sm:$0xff]   ;;  %v1696_v43 = vld [vmem:[#allocation2 + $0x60] sm:$0xff]   ;;  %p1483_p13 = scmp.lt.s32.totalorder %s1059_s29, %s1059_s29 }
  0x60   :  { %v197_v8 = vsel %vm148_vm0, %v1191_v3, 0.0  ;;  %150 = vadd.xlane.f32.xlu0 %v149_v7  ;;  %v200_v10 = vsel %vm148_vm0, %v1192_v5, 0.0  ;;  %v203_v19 = vsel %vm148_vm0, %v1195_v16, 0.0  ;;  %v206_v20 = vsel %vm148_vm0, %v1196_v17, 0.0  ;;  %v1706_v48 = vld [vmem:[#allocation2 + $0x28] sm:$0xff]   ;;  %v1726_v58 = vld [vmem:[#allocation2 + $0x30] sm:$0xff]  }
  0x61   :  { %198 = vadd.xlane.f32.xlu1 %v197_v8  ;;  %v1167_v21 = vunpack.c.l.bf16 %v1646_v18  ;;  %v1168_v22 = vunpack.c.h.bf16 %v1646_v18  ;;  %v1199_v26 = vunpack.c.l.bf16 %v1656_v23  ;;  %v1200_v27 = vunpack.c.h.bf16 %v1656_v23  ;;  %v1716_v53 = vld [vmem:[#allocation2 + $0x68] sm:$0xff]   ;;  %v1736_v63 = vld [vmem:[#allocation2 + $0x70] sm:$0xff]   ;;  %s1478_s30 = scalar_lea.vmem %s1059_s29, 2048 }
  0x62   :  { %v1171_v31 = vunpack.c.l.bf16 %v1666_v28  ;;  %v1172_v32 = vunpack.c.h.bf16 %v1666_v28  ;;  %v1203_v36 = vunpack.c.l.bf16 %v1676_v33  ;;  %v1204_v37 = vunpack.c.h.bf16 %v1676_v33  ;;  %p1479_p12 = scmp.ne.s32.totalorder %s1059_s29, %s1478_s30  ;;  %p1484_p0 = scmp.lt.s32.totalorder %s1478_s30, %s1478_s30 }
  0x63   :  { %v161_v24 = vsel %vm148_vm0, %v1167_v21, 0.0  ;;  %v164_v25 = vsel %vm148_vm0, %v1168_v22, 0.0  ;;  %v209_v29 = vsel %vm148_vm0, %v1199_v26, 0.0  ;;  %v212_v30 = vsel %vm148_vm0, %v1200_v27, 0.0 }
  0x64   :  { %153 = vadd.xlane.f32.xlu0 %v152_v9  ;;  %v167_v34 = vsel %vm148_vm0, %v1171_v31, 0.0  ;;  %v170_v35 = vsel %vm148_vm0, %v1172_v32, 0.0  ;;  %v215_v39 = vsel %vm148_vm0, %v1203_v36, 0.0  ;;  %v218_v40 = vsel %vm148_vm0, %v1204_v37, 0.0  ;;  %p1485_p1 = por %p1484_p0, %p1483_p13 }
  0x65   :  { %201 = vadd.xlane.f32.xlu1 %v200_v10  ;;  %v1175_v41 = vunpack.c.l.bf16 %v1686_v38  ;;  %v1176_v42 = vunpack.c.h.bf16 %v1686_v38  ;;  %v1207_v46 = vunpack.c.l.bf16 %v1696_v43  ;;  %v1208_v47 = vunpack.c.h.bf16 %v1696_v43 }
  0x66   :  { %v1179_v51 = vunpack.c.l.bf16 %v1706_v48  ;;  %v1180_v52 = vunpack.c.h.bf16 %v1706_v48  ;;  %v1211_v56 = vunpack.c.l.bf16 %v1716_v53  ;;  %v1212_v57 = vunpack.c.h.bf16 %v1716_v53  ;;  %p1486_p2 = pnand %p1485_p1, %p1479_p12 }
  0x67   :  { %v173_v44 = vsel %vm148_vm0, %v1175_v41, 0.0  ;;  %v176_v45 = vsel %vm148_vm0, %v1176_v42, 0.0  ;;  %v221_v49 = vsel %vm148_vm0, %v1207_v46, 0.0  ;;  %v224_v50 = vsel %vm148_vm0, %v1208_v47, 0.0 }
  0x68   :  { %156 = vadd.xlane.f32.xlu0 %v155_v14  ;;  %v179_v54 = vsel %vm148_vm0, %v1179_v51, 0.0  ;;  %v182_v55 = vsel %vm148_vm0, %v1180_v52, 0.0  ;;  %v227_v59 = vsel %vm148_vm0, %v1211_v56, 0.0  ;;  %v230_v60 = vsel %vm148_vm0, %v1212_v57, 0.0  ;;  %v1746_v14 = vld [vmem:[#allocation2 + $0x38] sm:$0xff]  }
  0x69   :  { %159 = vadd.xlane.f32.xlu1 %v158_v15  ;;  %v1183_v61 = vunpack.c.l.bf16 %v1726_v58  ;;  %v1184_v62 = vunpack.c.h.bf16 %v1726_v58  ;;  %v1215_v9 = vunpack.c.l.bf16 %v1736_v63  ;;  %v1216_v10 = vunpack.c.h.bf16 %v1736_v63 }
  0x6b   :  { %v185_v7 = vsel %vm148_vm0, %v1183_v61, 0.0  ;;  %v188_v8 = vsel %vm148_vm0, %v1184_v62, 0.0  ;;  %v233_v15 = vsel %vm148_vm0, %v1215_v9, 0.0 }
  0x6c   :  { %204 = vadd.xlane.f32.xlu0 %v203_v19  ;;  %v236_v19 = vsel %vm148_vm0, %v1216_v10, 0.0 }
  0x6d   :  { %207 = vadd.xlane.f32.xlu1 %v206_v20  ;;  %v1187_v20 = vunpack.c.l.bf16 %v1746_v14 }
  0x70   :  { %162 = vadd.xlane.f32.xlu0 %v161_v24  ;;  %v1188_v24 = vunpack.c.h.bf16 %v1746_v14 }
  0x71   :  { %165 = vadd.xlane.f32.xlu1 %v164_v25  ;;  %v1756_v25 = vld [vmem:[#allocation2 + $0x78] sm:$0xff]  }
  0x74   :  { %210 = vadd.xlane.f32.xlu0 %v209_v29  ;;  %v191_v29 = vsel %vm148_vm0, %v1187_v20, 0.0 }
  0x75   :  { %213 = vadd.xlane.f32.xlu1 %v212_v30  ;;  %v194_v30 = vsel %vm148_vm0, %v1188_v24, 0.0 }
  0x78   :  { %168 = vadd.xlane.f32.xlu0 %v167_v34  ;;  %v1219_v34 = vunpack.c.l.bf16 %v1756_v25 }
  0x79   :  { %171 = vadd.xlane.f32.xlu1 %v170_v35  ;;  %v1220_v35 = vunpack.c.h.bf16 %v1756_v25 }
  0x7c   :  { %216 = vadd.xlane.f32.xlu0 %v215_v39  ;;  %v239_v39 = vsel %vm148_vm0, %v1219_v34, 0.0 }
  0x7d   :  { %219 = vadd.xlane.f32.xlu1 %v218_v40  ;;  %v242_v40 = vsel %vm148_vm0, %v1220_v35, 0.0 }
  0x80   :  { %174 = vadd.xlane.f32.xlu0 %v173_v44 }
  0x81   :  { %177 = vadd.xlane.f32.xlu1 %v176_v45 }
  0x84   :  { %222 = vadd.xlane.f32.xlu0 %v221_v49 }
  0x85   :  { %225 = vadd.xlane.f32.xlu1 %v224_v50 }
  0x88   :  { %180 = vadd.xlane.f32.xlu0 %v179_v54 }
  0x89   :  { %183 = vadd.xlane.f32.xlu1 %v182_v55 }
  0x8c   :  { %228 = vadd.xlane.f32.xlu0 %v227_v59 }
  0x8d   :  { %231 = vadd.xlane.f32.xlu1 %v230_v60 }
  0x90   :  { %186 = vadd.xlane.f32.xlu0 %v185_v7 }
  0x91   :  { %189 = vadd.xlane.f32.xlu1 %v188_v8 }
  0x94   :  { %234 = vadd.xlane.f32.xlu0 %v233_v15 }
  0x95   :  { %237 = vadd.xlane.f32.xlu1 %v236_v19 }
  0x98   :  { %192 = vadd.xlane.f32.xlu0 %v191_v29 }
  0x99   :  { %195 = vadd.xlane.f32.xlu1 %v194_v30 }
  0x9c   :  { %240 = vadd.xlane.f32.xlu0 %v239_v39 }
  0x9d   :  { %243 = vadd.xlane.f32.xlu1 %v242_v40 }
  0xed   :  { %v151_v44 = vpop.xlane.xlu0 %150 }
  0xee   :  { %v199_v45 = vpop.xlane.xlu1 %198  ;;  %v246_v49 = vmul.f32 0.03125, %v151_v44 }
  0xef   :  { %v262_v50 = vmul.f32 0.03125, %v199_v45 }
  0xf0   :  { %v1774_v54 = vsub.f32 %v1159_v2, %v246_v49 }
  0xf1   :  { %v1778_v55 = vsub.f32 %v1191_v3, %v262_v50  ;;  %v154_v59 = vpop.xlane.xlu0 %153 }
  0xf2   :  { %v202_v60 = vpop.xlane.xlu1 %201  ;;  %v247_v7 = vmul.f32 0.03125, %v154_v59  ;;  %v310_v15 = vmul.f32 %v1774_v54, %v1774_v54 }
  0xf3   :  { %v263_v8 = vmul.f32 0.03125, %v202_v60  ;;  %v326_v19 = vmul.f32 %v1778_v55, %v1778_v55 }
  0xf4   :  { %v1786_v29 = vsub.f32 %v1160_v4, %v247_v7  ;;  %v342_v3 = vsel %vm148_vm0, %v310_v15, 0.0 }
  0xf5   :  { %v1790_v2 = vsub.f32 %v1192_v5, %v263_v8  ;;  %343 = vadd.xlane.f32.xlu0 %v342_v3  ;;  %v157_v30 = vpop.xlane.xlu0 %156  ;;  %v390_v40 = vsel %vm148_vm0, %v326_v19, 0.0 }
  0xf6   :  { %v160_v39 = vpop.xlane.xlu1 %159  ;;  %v248_v44 = vmul.f32 0.03125, %v157_v30  ;;  %v311_v49 = vmul.f32 %v1786_v29, %v1786_v29 }
  0xf7   :  { %v249_v45 = vmul.f32 0.03125, %v160_v39  ;;  %v327_v0 = vmul.f32 %v1790_v2, %v1790_v2 }
  0xf8   :  { %v1800_v1 = vsub.f32 %v1163_v11, %v248_v44  ;;  %v345_v5 = vsel %vm148_vm0, %v311_v49, 0.0 }
  0xf9   :  { %v1804_v4 = vsub.f32 %v1164_v12, %v249_v45  ;;  %391 = vadd.xlane.f32.xlu0 %v390_v40  ;;  %346 = vadd.xlane.f32.xlu1 %v345_v5  ;;  %v205_v50 = vpop.xlane.xlu0 %204  ;;  %v393_v60 = vsel %vm148_vm0, %v327_v0, 0.0 }
  0xfa   :  { %v208_v59 = vpop.xlane.xlu1 %207  ;;  %v264_v7 = vmul.f32 0.03125, %v205_v50  ;;  %v312_v15 = vmul.f32 %v1800_v1, %v1800_v1 }
  0xfb   :  { %v265_v8 = vmul.f32 0.03125, %v208_v59  ;;  %v313_v11 = vmul.f32 %v1804_v4, %v1804_v4 }
  0xfc   :  { %v1814_v6 = vsub.f32 %v1195_v16, %v264_v7  ;;  %v348_v19 = vsel %vm148_vm0, %v312_v15, 0.0 }
  0xfd   :  { %v1818_v12 = vsub.f32 %v1196_v17, %v265_v8  ;;  %394 = vadd.xlane.f32.xlu1 %v393_v60  ;;  %349 = vadd.xlane.f32.xlu0 %v348_v19  ;;  %v163_v3 = vpop.xlane.xlu0 %162  ;;  %v351_v39 = vsel %vm148_vm0, %v313_v11, 0.0 }
  0xfe   :  { %v166_v30 = vpop.xlane.xlu1 %165  ;;  %v250_v40 = vmul.f32 0.03125, %v163_v3  ;;  %v328_v45 = vmul.f32 %v1814_v6, %v1814_v6 }
  0xff   :  { %v251_v44 = vmul.f32 0.03125, %v166_v30  ;;  %v329_v16 = vmul.f32 %v1818_v12, %v1818_v12 }
 0x100   :  { %v1828_v13 = vsub.f32 %v1167_v21, %v250_v40  ;;  %v396_v49 = vsel %vm148_vm0, %v328_v45, 0.0 }
 0x101   :  { %v1832_v17 = vsub.f32 %v1168_v22, %v251_v44  ;;  %352 = vadd.xlane.f32.xlu1 %v351_v39  ;;  %397 = vadd.xlane.f32.xlu0 %v396_v49  ;;  %v211_v0 = vpop.xlane.xlu0 %210  ;;  %v399_v50 = vsel %vm148_vm0, %v329_v16, 0.0 }
 0x102   :  { %v214_v5 = vpop.xlane.xlu1 %213  ;;  %v266_v59 = vmul.f32 0.03125, %v211_v0  ;;  %v314_v7 = vmul.f32 %v1828_v13, %v1828_v13 }
 0x103   :  { %v267_v60 = vmul.f32 0.03125, %v214_v5  ;;  %v315_v21 = vmul.f32 %v1832_v17, %v1832_v17 }
 0x104   :  { %v1842_v18 = vsub.f32 %v1199_v26, %v266_v59  ;;  %v354_v8 = vsel %vm148_vm0, %v314_v7, 0.0 }
 0x105   :  { %v1846_v22 = vsub.f32 %v1200_v27, %v267_v60  ;;  %400 = vadd.xlane.f32.xlu1 %v399_v50  ;;  %355 = vadd.xlane.f32.xlu0 %v354_v8  ;;  %v169_v15 = vpop.xlane.xlu0 %168  ;;  %v357_v19 = vsel %vm148_vm0, %v315_v21, 0.0 }
 0x106   :  { %v172_v11 = vpop.xlane.xlu1 %171  ;;  %v252_v3 = vmul.f32 0.03125, %v169_v15  ;;  %v330_v39 = vmul.f32 %v1842_v18, %v1842_v18 }
 0x107   :  { %v253_v30 = vmul.f32 0.03125, %v172_v11  ;;  %v331_v26 = vmul.f32 %v1846_v22, %v1846_v22 }
 0x108   :  { %v1856_v23 = vsub.f32 %v1171_v31, %v252_v3  ;;  %v402_v40 = vsel %vm148_vm0, %v330_v39, 0.0 }
 0x109   :  { %v1860_v27 = vsub.f32 %v1172_v32, %v253_v30  ;;  %358 = vadd.xlane.f32.xlu1 %v357_v19  ;;  %403 = vadd.xlane.f32.xlu0 %v402_v40  ;;  %v217_v44 = vpop.xlane.xlu0 %216  ;;  %v405_v16 = vsel %vm148_vm0, %v331_v26, 0.0 }
 0x10a   :  { %v220_v45 = vpop.xlane.xlu1 %219  ;;  %v268_v49 = vmul.f32 0.03125, %v217_v44  ;;  %v316_v5 = vmul.f32 %v1856_v23, %v1856_v23 }
 0x10b   :  { %v269_v0 = vmul.f32 0.03125, %v220_v45  ;;  %v317_v31 = vmul.f32 %v1860_v27, %v1860_v27 }
 0x10c   :  { %v1870_v28 = vsub.f32 %v1203_v36, %v268_v49  ;;  %v360_v50 = vsel %vm148_vm0, %v316_v5, 0.0 }
 0x10d   :  { %v1874_v32 = vsub.f32 %v1204_v37, %v269_v0  ;;  %406 = vadd.xlane.f32.xlu1 %v405_v16  ;;  %361 = vadd.xlane.f32.xlu0 %v360_v50  ;;  %v175_v59 = vpop.xlane.xlu0 %174  ;;  %v363_v7 = vsel %vm148_vm0, %v317_v31, 0.0 }
 0x10e   :  { %v178_v60 = vpop.xlane.xlu1 %177  ;;  %v254_v21 = vmul.f32 0.03125, %v175_v59  ;;  %v332_v15 = vmul.f32 %v1870_v28, %v1870_v28 }
 0x10f   :  { %v255_v8 = vmul.f32 0.03125, %v178_v60  ;;  %v333_v36 = vmul.f32 %v1874_v32, %v1874_v32 }
 0x110   :  { %v1884_v33 = vsub.f32 %v1175_v41, %v254_v21  ;;  %v408_v11 = vsel %vm148_vm0, %v332_v15, 0.0 }
 0x111   :  { %v1888_v37 = vsub.f32 %v1176_v42, %v255_v8  ;;  %364 = vadd.xlane.f32.xlu1 %v363_v7  ;;  %409 = vadd.xlane.f32.xlu0 %v408_v11  ;;  %v223_v19 = vpop.xlane.xlu0 %222  ;;  %v411_v30 = vsel %vm148_vm0, %v333_v36, 0.0 }
 0x112   :  { %v226_v3 = vpop.xlane.xlu1 %225  ;;  %v270_v39 = vmul.f32 0.03125, %v223_v19  ;;  %v318_v40 = vmul.f32 %v1884_v33, %v1884_v33 }
 0x113   :  { %v271_v26 = vmul.f32 0.03125, %v226_v3  ;;  %v319_v41 = vmul.f32 %v1888_v37, %v1888_v37 }
 0x114   :  { %v1898_v38 = vsub.f32 %v1207_v46, %v270_v39  ;;  %v366_v44 = vsel %vm148_vm0, %v318_v40, 0.0 }
 0x115   :  { %v1902_v42 = vsub.f32 %v1208_v47, %v271_v26  ;;  %412 = vadd.xlane.f32.xlu1 %v411_v30  ;;  %367 = vadd.xlane.f32.xlu0 %v366_v44  ;;  %v181_v45 = vpop.xlane.xlu0 %180  ;;  %v369_v49 = vsel %vm148_vm0, %v319_v41, 0.0  ;;  %v1302_v30 = vld [vmem:[#allocation8] sm:$0xff]  }
 0x116   :  { %v184_v16 = vpop.xlane.xlu1 %183  ;;  %v256_v0 = vmul.f32 0.03125, %v181_v45  ;;  %v334_v31 = vmul.f32 %v1898_v38, %v1898_v38  ;;  %1254 = vmatprep.subr.bf16.mxu0 %v1302_v30  ;;  %1290 = vmatprep.subr.bf16.mxu1 %v1302_v30 }
 0x117   :  { %v257_v5 = vmul.f32 0.03125, %v184_v16  ;;  %v335_v46 = vmul.f32 %v1902_v42, %v1902_v42  ;;  %1255 = vmatpush3.bf16.msra.mxu0 %v1302_v30  ;;  %1292 = vmatpush3.bf16.msra.mxu1 %v1302_v30 }
 0x118   :  { %v1912_v43 = vsub.f32 %v1179_v51, %v256_v0  ;;  %v414_v50 = vsel %vm148_vm0, %v334_v31, 0.0 }
 0x119   :  { %v1916_v47 = vsub.f32 %v1180_v52, %v257_v5  ;;  %370 = vadd.xlane.f32.xlu1 %v369_v49  ;;  %415 = vadd.xlane.f32.xlu0 %v414_v50  ;;  %v229_v59 = vpop.xlane.xlu0 %228  ;;  %v417_v7 = vsel %vm148_vm0, %v335_v46, 0.0  ;;  %v1303_v49 = vld [vmem:[#allocation8 + $0x8] sm:$0xff]  }
 0x11a   :  { %v232_v60 = vpop.xlane.xlu1 %231  ;;  %v272_v21 = vmul.f32 0.03125, %v229_v59  ;;  %v320_v15 = vmul.f32 %v1912_v43, %v1912_v43  ;;  %1256 = vmatprep.subr.bf16.mxu0 %v1303_v49  ;;  %1291 = vmatprep.subr.bf16.mxu1 %v1303_v49 }
 0x11b   :  { %v273_v8 = vmul.f32 0.03125, %v232_v60  ;;  %v321_v51 = vmul.f32 %v1916_v47, %v1916_v47  ;;  %1257 = vmatpush3.bf16.msra.mxu0 %v1303_v49  ;;  %1293 = vmatpush3.bf16.msra.mxu1 %v1303_v49 }
 0x11c   :  { %v1926_v48 = vsub.f32 %v1211_v56, %v272_v21  ;;  %v372_v36 = vsel %vm148_vm0, %v320_v15, 0.0 }
 0x11d   :  { %v1930_v52 = vsub.f32 %v1212_v57, %v273_v8  ;;  %418 = vadd.xlane.f32.xlu1 %v417_v7  ;;  %373 = vadd.xlane.f32.xlu0 %v372_v36  ;;  %v187_v11 = vpop.xlane.xlu0 %186  ;;  %v375_v3 = vsel %vm148_vm0, %v321_v51, 0.0 }
 0x11e   :  { %v190_v19 = vpop.xlane.xlu1 %189  ;;  %v258_v39 = vmul.f32 0.03125, %v187_v11  ;;  %v336_v40 = vmul.f32 %v1926_v48, %v1926_v48 }
 0x11f   :  { %v259_v26 = vmul.f32 0.03125, %v190_v19  ;;  %v337_v56 = vmul.f32 %v1930_v52, %v1930_v52 }
 0x120   :  { %v1940_v53 = vsub.f32 %v1183_v61, %v258_v39  ;;  %v420_v41 = vsel %vm148_vm0, %v336_v40, 0.0 }
 0x121   :  { %v1944_v57 = vsub.f32 %v1184_v62, %v259_v26  ;;  %376 = vadd.xlane.f32.xlu1 %v375_v3  ;;  %421 = vadd.xlane.f32.xlu0 %v420_v41  ;;  %v235_v44 = vpop.xlane.xlu0 %234  ;;  %v423_v16 = vsel %vm148_vm0, %v337_v56, 0.0 }
 0x122   :  { %v238_v45 = vpop.xlane.xlu1 %237  ;;  %v274_v0 = vmul.f32 0.03125, %v235_v44  ;;  %v322_v61 = vmul.f32 %v1940_v53, %v1940_v53 }
 0x123   :  { %v275_v5 = vmul.f32 0.03125, %v238_v45  ;;  %v323_v58 = vmul.f32 %v1944_v57, %v1944_v57 }
 0x124   :  { %v1954_v62 = vsub.f32 %v1215_v9, %v274_v0  ;;  %v378_v46 = vsel %vm148_vm0, %v322_v61, 0.0 }
 0x125   :  { %v1958_v31 = vsub.f32 %v1216_v10, %v275_v5  ;;  %424 = vadd.xlane.f32.xlu1 %v423_v16  ;;  %379 = vadd.xlane.f32.xlu0 %v378_v46  ;;  %v193_v50 = vpop.xlane.xlu0 %192  ;;  %v381_v60 = vsel %vm148_vm0, %v323_v58, 0.0 }
 0x126   :  { %v196_v59 = vpop.xlane.xlu1 %195  ;;  %v260_v7 = vmul.f32 0.03125, %v193_v50  ;;  %v338_v9 = vmul.f32 %v1954_v62, %v1954_v62 }
 0x127   :  { %v261_v21 = vmul.f32 0.03125, %v196_v59  ;;  %v339_v63 = vmul.f32 %v1958_v31, %v1958_v31 }
 0x128   :  { %v1968_v10 = vsub.f32 %v1187_v20, %v260_v7  ;;  %v426_v15 = vsel %vm148_vm0, %v338_v9, 0.0 }
 0x129   :  { %v1972_v8 = vsub.f32 %v1188_v24, %v261_v21  ;;  %382 = vadd.xlane.f32.xlu1 %v381_v60  ;;  %427 = vadd.xlane.f32.xlu0 %v426_v15  ;;  %v241_v51 = vpop.xlane.xlu0 %240  ;;  %v429_v11 = vsel %vm148_vm0, %v339_v63, 0.0 }
 0x12a   :  { %v244_v36 = vpop.xlane.xlu1 %243  ;;  %v276_v19 = vmul.f32 0.03125, %v241_v51  ;;  %v324_v30 = vmul.f32 %v1968_v10, %v1968_v10 }
 0x12b   :  { %v277_v3 = vmul.f32 0.03125, %v244_v36  ;;  %v325_v20 = vmul.f32 %v1972_v8, %v1972_v8 }
 0x12c   :  { %v1982_v14 = vsub.f32 %v1219_v34, %v276_v19  ;;  %v384_v39 = vsel %vm148_vm0, %v324_v30, 0.0 }
 0x12d   :  { %v1986_v24 = vsub.f32 %v1220_v35, %v277_v3  ;;  %430 = vadd.xlane.f32.xlu1 %v429_v11  ;;  %385 = vadd.xlane.f32.xlu0 %v384_v39  ;;  %v387_v26 = vsel %vm148_vm0, %v325_v20, 0.0 }
 0x12e   :  { %v340_v40 = vmul.f32 %v1982_v14, %v1982_v14 }
 0x12f   :  { %v341_v56 = vmul.f32 %v1986_v24, %v1986_v24 }
 0x130   :  { %v432_v41 = vsel %vm148_vm0, %v340_v40, 0.0 }
 0x131   :  { %388 = vadd.xlane.f32.xlu1 %v387_v26  ;;  %433 = vadd.xlane.f32.xlu0 %v432_v41  ;;  %v435_v25 = vsel %vm148_vm0, %v341_v56, 0.0  ;;  %v1997_v26 = vld [vmem:[#allocation5] ss:$0 sm:$0xff] }
 0x135   :  { %436 = vadd.xlane.f32.xlu1 %v435_v25 }
 0x182   :  { %v344_v34 = vpop.xlane.xlu0 %343 }
 0x183   :  { %v438_v35 = vmul.f32 0.03125, %v344_v34 }
 0x185   :  { %v470_v44 = vadd.f32 1e-05, %v438_v35 }
 0x186   :  { %v347_v45 = vpop.xlane.xlu1 %346  ;;  %v392_v16 = vpop.xlane.xlu0 %391 }
 0x187   :  { %1304 = vrsqrt.f32 %v470_v44  ;;  %v439_v49 = vmul.f32 0.03125, %v347_v45  ;;  %v454_v0 = vmul.f32 0.03125, %v392_v16 }
 0x189   :  { %v471_v5 = vadd.f32 1e-05, %v439_v49  ;;  %v486_v61 = vadd.f32 1e-05, %v454_v0 }
 0x18a   :  { %v395_v58 = vpop.xlane.xlu1 %394  ;;  %v350_v46 = vpop.xlane.xlu0 %349 }
 0x18b   :  { %1306 = vrsqrt.f32 %v471_v5  ;;  %v455_v50 = vmul.f32 0.03125, %v395_v58  ;;  %v440_v59 = vmul.f32 0.03125, %v350_v46 }
 0x18c   :  { %1308 = vrsqrt.f32 %v486_v61 }
 0x18d   :  { %v487_v60 = vadd.f32 1e-05, %v455_v50  ;;  %v472_v7 = vadd.f32 1e-05, %v440_v59 }
 0x18e   :  { %v353_v21 = vpop.xlane.xlu1 %352  ;;  %v398_v9 = vpop.xlane.xlu0 %397 }
 0x18f   :  { %1310 = vrsqrt.f32 %v487_v60  ;;  %v441_v63 = vmul.f32 0.03125, %v353_v21  ;;  %v456_v15 = vmul.f32 0.03125, %v398_v9 }
 0x190   :  { %1312 = vrsqrt.f32 %v472_v7 }
 0x191   :  { %v1305_v51 = vpop.eup %1304  ;;  %v473_v36 = vadd.f32 1e-05, %v441_v63  ;;  %v488_v11 = vadd.f32 1e-05, %v456_v15 }
 0x192   :  { %v401_v19 = vpop.xlane.xlu1 %400  ;;  %v356_v3 = vpop.xlane.xlu0 %355  ;;  %v534_v30 = vmul.f32 %v1305_v51, %v1774_v54  ;;  %v2001_v54 = vld [vmem:[#allocation7] ss:$0 sm:$0xff] }
 0x193   :  { %1314 = vrsqrt.f32 %v473_v36  ;;  %v457_v20 = vmul.f32 0.03125, %v401_v19  ;;  %v442_v39 = vmul.f32 0.03125, %v356_v3 }
 0x194   :  { %1316 = vrsqrt.f32 %v488_v11  ;;  %v573_v45 = vmul.f32 %v1997_v26, %v534_v30 }
 0x195   :  { %v1307_v40 = vpop.eup %1306  ;;  %v489_v56 = vadd.f32 1e-05, %v457_v20  ;;  %v474_v41 = vadd.f32 1e-05, %v442_v39 }
 0x196   :  { %v1309_v25 = vpop.eup %1308  ;;  %v359_v34 = vpop.xlane.xlu1 %358  ;;  %v535_v44 = vmul.f32 %v1307_v40, %v1786_v29  ;;  %v612_v29 = vadd.f32 %v2001_v54, %v573_v45 }
 0x197   :  { %v404_v35 = vpop.xlane.xlu0 %403  ;;  %1318 = vrsqrt.f32 %v489_v56  ;;  %v443_v16 = vmul.f32 0.03125, %v359_v34  ;;  %v550_v0 = vmul.f32 %v1309_v25, %v1778_v55 }
 0x198   :  { %v458_v49 = vmul.f32 0.03125, %v404_v35  ;;  %1320 = vrsqrt.f32 %v474_v41  ;;  %v574_v5 = vmul.f32 %v1997_v26, %v535_v44 }
 0x199   :  { %v1311_v61 = vpop.eup %1310  ;;  %v475_v58 = vadd.f32 1e-05, %v443_v16  ;;  %v589_v9 = vmul.f32 %v1997_v26, %v550_v0 }
 0x19a   :  { %v490_v46 = vadd.f32 1e-05, %v458_v49  ;;  %v1313_v50 = vpop.eup %1312  ;;  %v407_v59 = vpop.xlane.xlu1 %406  ;;  %v613_v7 = vadd.f32 %v2001_v54, %v574_v5  ;;  %v551_v21 = vmul.f32 %v1311_v61, %v1790_v2 }
 0x19b   :  { %v362_v60 = vpop.xlane.xlu0 %361  ;;  %v536_v63 = vmul.f32 %v1313_v50, %v1800_v1  ;;  %1322 = vrsqrt.f32 %v475_v58  ;;  %v459_v55 = vmul.f32 0.03125, %v407_v59  ;;  %v628_v40 = vadd.f32 %v2001_v54, %v589_v9 }
 0x19c   :  { %v444_v15 = vmul.f32 0.03125, %v362_v60  ;;  %1324 = vrsqrt.f32 %v490_v46  ;;  %v644_v51 = vpack.c.bf16 %v613_v7, %v612_v29  ;;  %v590_v36 = vmul.f32 %v1997_v26, %v551_v21 }
 0x19d   :  { %v1315_v11 = vpop.eup %1314  ;;  %v491_v19 = vadd.f32 1e-05, %v459_v55  ;;  %v575_v56 = vmul.f32 %v1997_v26, %v536_v63 }
 0x19e   :  { %v476_v3 = vadd.f32 1e-05, %v444_v15  ;;  %v1317_v30 = vpop.eup %1316  ;;  %v537_v20 = vmul.f32 %v1315_v11, %v1804_v4  ;;  %v365_v39 = vpop.xlane.xlu1 %364  ;;  %1258 = vmatprep.mubr.msk.bf16.mxu0 %vm148_vm0, %v644_v51  ;;  %v629_v1 = vadd.f32 %v2001_v54, %v590_v36 }
 0x19f   :  { %v410_v2 = vpop.xlane.xlu0 %409  ;;  %v552_v41 = vmul.f32 %v1317_v30, %v1814_v6  ;;  %1326 = vrsqrt.f32 %v491_v19  ;;  %v445_v25 = vmul.f32 0.03125, %v365_v39  ;;  %v614_v58 = vadd.f32 %v2001_v54, %v575_v56 }
 0x1a0   :  { %v460_v34 = vmul.f32 0.03125, %v410_v2  ;;  %1328 = vrsqrt.f32 %v476_v3  ;;  %v652_v35 = vpack.c.bf16 %v629_v1, %v628_v40  ;;  %v576_v44 = vmul.f32 %v1997_v26, %v537_v20 }
 0x1a1   :  { %v1319_v4 = vpop.eup %1318  ;;  %v477_v45 = vadd.f32 1e-05, %v445_v25  ;;  %v591_v46 = vmul.f32 %v1997_v26, %v552_v41 }
 0x1a2   :  { %v492_v16 = vadd.f32 1e-05, %v460_v34  ;;  %v1321_v49 = vpop.eup %1320  ;;  %v553_v0 = vmul.f32 %v1319_v4, %v1818_v12  ;;  %v413_v5 = vpop.xlane.xlu1 %412  ;;  %1274 = vmatprep.mubr.msk.bf16.mxu1 %vm148_vm0, %v652_v35  ;;  %v615_v6 = vadd.f32 %v2001_v54, %v576_v44 }
 0x1a3   :  { %v368_v61 = vpop.xlane.xlu0 %367  ;;  %v538_v50 = vmul.f32 %v1321_v49, %v1828_v13  ;;  %1330 = vrsqrt.f32 %v477_v45  ;;  %v461_v59 = vmul.f32 0.03125, %v413_v5  ;;  %v630_v36 = vadd.f32 %v2001_v54, %v591_v46 }
 0x1a4   :  { %v446_v60 = vmul.f32 0.03125, %v368_v61  ;;  %1332 = vrsqrt.f32 %v492_v16  ;;  %v645_v29 = vpack.c.bf16 %v615_v6, %v614_v58  ;;  %v592_v7 = vmul.f32 %v1997_v26, %v553_v0 }
 0x1a5   :  { %v1323_v12 = vpop.eup %1322  ;;  %v493_v21 = vadd.f32 1e-05, %v461_v59  ;;  %v577_v11 = vmul.f32 %v1997_v26, %v538_v50 }
 0x1a6   :  { %v478_v9 = vadd.f32 1e-05, %v446_v60  ;;  %v1325_v63 = vpop.eup %1324  ;;  %v539_v55 = vmul.f32 %v1323_v12, %v1832_v17  ;;  %v371_v15 = vpop.xlane.xlu1 %370  ;;  %1259 = vmatmul.mubr.msk.bf16.vlgmr.msra.gmra.mrb[0].mxu0 %vm148_vm0, %v645_v29  ;;  %v631_v13 = vadd.f32 %v2001_v54, %v592_v7 }
 0x1a7   :  { %v416_v51 = vpop.xlane.xlu0 %415  ;;  %v554_v19 = vmul.f32 %v1325_v63, %v1842_v18  ;;  %1334 = vrsqrt.f32 %v493_v21  ;;  %v447_v3 = vmul.f32 0.03125, %v371_v15  ;;  %v616_v34 = vadd.f32 %v2001_v54, %v577_v11 }
 0x1a8   :  { %v462_v30 = vmul.f32 0.03125, %v416_v51  ;;  %1336 = vrsqrt.f32 %v478_v9  ;;  %v653_v20 = vpack.c.bf16 %v631_v13, %v630_v36  ;;  %v578_v39 = vmul.f32 %v1997_v26, %v539_v55 }
 0x1a9   :  { %v1327_v17 = vpop.eup %1326  ;;  %v479_v2 = vadd.f32 1e-05, %v447_v3  ;;  %v593_v35 = vmul.f32 %v1997_v26, %v554_v19 }
 0x1aa   :  { %v494_v40 = vadd.f32 1e-05, %v462_v30  ;;  %v1329_v1 = vpop.eup %1328  ;;  %v555_v56 = vmul.f32 %v1327_v17, %v1846_v22  ;;  %v419_v41 = vpop.xlane.xlu1 %418  ;;  %1275 = vmatmul.mubr.msk.bf16.vlgmr.msra.gmra.mrb[0].mxu1 %vm148_vm0, %v653_v20  ;;  %v617_v18 = vadd.f32 %v2001_v54, %v578_v39 }
 0x1ab   :  { %v374_v25 = vpop.xlane.xlu0 %373  ;;  %v540_v44 = vmul.f32 %v1329_v1, %v1856_v23  ;;  %1338 = vrsqrt.f32 %v479_v2  ;;  %v463_v4 = vmul.f32 0.03125, %v419_v41  ;;  %v632_v50 = vadd.f32 %v2001_v54, %v593_v35 }
 0x1ac   :  { %v448_v45 = vmul.f32 0.03125, %v374_v25  ;;  %1340 = vrsqrt.f32 %v494_v40  ;;  %v646_v16 = vpack.c.bf16 %v617_v18, %v616_v34  ;;  %v594_v49 = vmul.f32 %v1997_v26, %v555_v56 }
 0x1ad   :  { %v1331_v22 = vpop.eup %1330  ;;  %v495_v0 = vadd.f32 1e-05, %v463_v4  ;;  %v579_v59 = vmul.f32 %v1997_v26, %v540_v44 }
 0x1ae   :  { %v480_v5 = vadd.f32 1e-05, %v448_v45  ;;  %v1333_v61 = vpop.eup %1332  ;;  %v541_v58 = vmul.f32 %v1331_v22, %v1860_v27  ;;  %v377_v6 = vpop.xlane.xlu1 %376  ;;  %1262 = vmatprep.mubr.msk.bf16.mxu0 %vm148_vm0, %v646_v16  ;;  %v633_v23 = vadd.f32 %v2001_v54, %v594_v49 }
 0x1af   :  { %v422_v46 = vpop.xlane.xlu0 %421  ;;  %v556_v60 = vmul.f32 %v1333_v61, %v1870_v28  ;;  %1342 = vrsqrt.f32 %v495_v0  ;;  %v449_v29 = vmul.f32 0.03125, %v377_v6  ;;  %v618_v13 = vadd.f32 %v2001_v54, %v579_v59 }
 0x1b0   :  { %v464_v7 = vmul.f32 0.03125, %v422_v46  ;;  %1344 = vrsqrt.f32 %v480_v5  ;;  %v654_v12 = vpack.c.bf16 %v633_v23, %v632_v50  ;;  %v580_v21 = vmul.f32 %v1997_v26, %v541_v58 }
 0x1b1   :  { %v1335_v27 = vpop.eup %1334  ;;  %v481_v9 = vadd.f32 1e-05, %v449_v29  ;;  %v595_v11 = vmul.f32 %v1997_v26, %v556_v60 }
 0x1b2   :  { %v496_v63 = vadd.f32 1e-05, %v464_v7  ;;  %v1337_v55 = vpop.eup %1336  ;;  %v557_v15 = vmul.f32 %v1335_v27, %v1874_v32  ;;  %v425_v51 = vpop.xlane.xlu1 %424  ;;  %1278 = vmatprep.mubr.msk.bf16.mxu1 %vm148_vm0, %v654_v12  ;;  %v619_v28 = vadd.f32 %v2001_v54, %v580_v21 }
 0x1b3   :  { %v380_v36 = vpop.xlane.xlu0 %379  ;;  %v542_v19 = vmul.f32 %v1337_v55, %v1884_v33  ;;  %1346 = vrsqrt.f32 %v481_v9  ;;  %v465_v3 = vmul.f32 0.03125, %v425_v51  ;;  %v634_v25 = vadd.f32 %v2001_v54, %v595_v11 }
 0x1b4   :  { %v450_v30 = vmul.f32 0.03125, %v380_v36  ;;  %1348 = vrsqrt.f32 %v496_v63  ;;  %v647_v20 = vpack.c.bf16 %v619_v28, %v618_v13  ;;  %v596_v39 = vmul.f32 %v1997_v26, %v557_v15 }
 0x1b5   :  { %v1339_v32 = vpop.eup %1338  ;;  %v497_v17 = vadd.f32 1e-05, %v465_v3  ;;  %v581_v34 = vmul.f32 %v1997_v26, %v542_v19 }
 0x1b6   :  { %v482_v2 = vadd.f32 1e-05, %v450_v30  ;;  %v1341_v40 = vpop.eup %1340  ;;  %v543_v1 = vmul.f32 %v1339_v32, %v1888_v37  ;;  %v383_v56 = vpop.xlane.xlu1 %382  ;;  %1263 = vmatmul.mubr.msk.bf16.gmra.mrb[4].mxu0 %vm148_vm0, %v647_v20  ;;  %v635_v33 = vadd.f32 %v2001_v54, %v596_v39 }
 0x1b7   :  { %v428_v41 = vpop.xlane.xlu0 %427  ;;  %v558_v18 = vmul.f32 %v1341_v40, %v1898_v38  ;;  %1350 = vrsqrt.f32 %v497_v17  ;;  %v451_v35 = vmul.f32 0.03125, %v383_v56  ;;  %v620_v58 = vadd.f32 %v2001_v54, %v581_v34 }
 0x1b8   :  { %v466_v44 = vmul.f32 0.03125, %v428_v41  ;;  %1352 = vrsqrt.f32 %v482_v2  ;;  %v655_v4 = vpack.c.bf16 %v635_v33, %v634_v25  ;;  %v582_v45 = vmul.f32 %v1997_v26, %v543_v1 }
 0x1b9   :  { %v1343_v37 = vpop.eup %1342  ;;  %v483_v16 = vadd.f32 1e-05, %v451_v35  ;;  %v597_v6 = vmul.f32 %v1997_v26, %v558_v18 }
 0x1ba   :  { %v498_v49 = vadd.f32 1e-05, %v466_v44  ;;  %v1345_v22 = vpop.eup %1344  ;;  %v559_v0 = vmul.f32 %v1343_v37, %v1902_v42  ;;  %v431_v5 = vpop.xlane.xlu1 %430  ;;  %1279 = vmatmul.mubr.msk.bf16.gmra.mrb[4].mxu1 %vm148_vm0, %v655_v4  ;;  %v621_v38 = vadd.f32 %v2001_v54, %v582_v45 }
 0x1bb   :  { %v386_v61 = vpop.xlane.xlu0 %385  ;;  %v544_v46 = vmul.f32 %v1345_v22, %v1912_v43  ;;  %1354 = vrsqrt.f32 %v483_v16  ;;  %v467_v50 = vmul.f32 0.03125, %v431_v5  ;;  %v636_v63 = vadd.f32 %v2001_v54, %v597_v6 }
 0x1bc   :  { %v452_v23 = vmul.f32 0.03125, %v386_v61  ;;  %1356 = vrsqrt.f32 %v498_v49  ;;  %v648_v59 = vpack.c.bf16 %v621_v38, %v620_v58  ;;  %v598_v60 = vmul.f32 %v1997_v26, %v559_v0 }
 0x1bd   :  { %v1347_v42 = vpop.eup %1346  ;;  %v499_v29 = vadd.f32 1e-05, %v467_v50  ;;  %v583_v55 = vmul.f32 %v1997_v26, %v544_v46 }
 0x1be   :  { %v484_v7 = vadd.f32 1e-05, %v452_v23  ;;  %v1349_v12 = vpop.eup %1348  ;;  %v545_v21 = vmul.f32 %v1347_v42, %v1916_v47  ;;  %v389_v27 = vpop.xlane.xlu1 %388  ;;  %1266 = vmatprep.mubr.msk.bf16.mxu0 %vm148_vm0, %v648_v59  ;;  %v637_v43 = vadd.f32 %v2001_v54, %v598_v60 }
 0x1bf   :  { %v434_v9 = vpop.xlane.xlu0 %433  ;;  %v560_v15 = vmul.f32 %v1349_v12, %v1926_v48  ;;  %1358 = vrsqrt.f32 %v499_v29  ;;  %v453_v51 = vmul.f32 0.03125, %v389_v27  ;;  %v622_v39 = vadd.f32 %v2001_v54, %v583_v55 }
 0x1c0   :  { %v468_v36 = vmul.f32 0.03125, %v434_v9  ;;  %1360 = vrsqrt.f32 %v484_v7  ;;  %v656_v13 = vpack.c.bf16 %v637_v43, %v636_v63  ;;  %v584_v28 = vmul.f32 %v1997_v26, %v545_v21 }
 0x1c1   :  { %v1351_v47 = vpop.eup %1350  ;;  %v485_v11 = vadd.f32 1e-05, %v453_v51  ;;  %v599_v32 = vmul.f32 %v1997_v26, %v560_v15 }
 0x1c2   :  { %v500_v19 = vadd.f32 1e-05, %v468_v36  ;;  %v1353_v3 = vpop.eup %1352  ;;  %v561_v30 = vmul.f32 %v1351_v47, %v1930_v52  ;;  %v437_v20 = vpop.xlane.xlu1 %436  ;;  %1282 = vmatprep.mubr.msk.bf16.mxu1 %vm148_vm0, %v656_v13  ;;  %v623_v48 = vadd.f32 %v2001_v54, %v584_v28 }
 0x1c3   :  { %v546_v17 = vmul.f32 %v1353_v3, %v1940_v53  ;;  %1362 = vrsqrt.f32 %v485_v11  ;;  %v469_v2 = vmul.f32 0.03125, %v437_v20  ;;  %v638_v33 = vadd.f32 %v2001_v54, %v599_v32 }
 0x1c4   :  { %1364 = vrsqrt.f32 %v500_v19  ;;  %v649_v40 = vpack.c.bf16 %v623_v48, %v622_v39  ;;  %v600_v1 = vmul.f32 %v1997_v26, %v561_v30 }
 0x1c5   :  { %v1355_v56 = vpop.eup %1354  ;;  %v501_v41 = vadd.f32 1e-05, %v469_v2  ;;  %v585_v18 = vmul.f32 %v1997_v26, %v546_v17 }
 0x1c6   :  { %v1357_v52 = vpop.eup %1356  ;;  %v547_v25 = vmul.f32 %v1355_v56, %v1944_v57  ;;  %1267 = vmatmul.mubr.msk.bf16.gmra.mrb[8].mxu0 %vm148_vm0, %v649_v40  ;;  %v639_v34 = vadd.f32 %v2001_v54, %v600_v1 }
 0x1c7   :  { %v562_v53 = vmul.f32 %v1357_v52, %v1954_v62  ;;  %1366 = vrsqrt.f32 %v501_v41  ;;  %v624_v57 = vadd.f32 %v2001_v54, %v585_v18 }
 0x1c8   :  { %v657_v35 = vpack.c.bf16 %v639_v34, %v638_v33  ;;  %v586_v44 = vmul.f32 %v1997_v26, %v547_v25 }
 0x1c9   :  { %v1359_v4 = vpop.eup %1358  ;;  %v601_v49 = vmul.f32 %v1997_v26, %v562_v53 }
 0x1ca   :  { %v1361_v45 = vpop.eup %1360  ;;  %v563_v37 = vmul.f32 %v1359_v4, %v1958_v31  ;;  %1283 = vmatmul.mubr.msk.bf16.gmra.mrb[8].mxu1 %vm148_vm0, %v657_v35  ;;  %v625_v16 = vadd.f32 %v2001_v54, %v586_v44 }
 0x1cb   :  { %v548_v22 = vmul.f32 %v1361_v45, %v1968_v10  ;;  %v640_v31 = vadd.f32 %v2001_v54, %v601_v49 }
 0x1cc   :  { %v650_v0 = vpack.c.bf16 %v625_v16, %v624_v57  ;;  %v602_v62 = vmul.f32 %v1997_v26, %v563_v37 }
 0x1cd   :  { %v1363_v5 = vpop.eup %1362  ;;  %v587_v6 = vmul.f32 %v1997_v26, %v548_v22 }
 0x1ce   :  { %v1365_v61 = vpop.eup %1364  ;;  %v549_v58 = vmul.f32 %v1363_v5, %v1972_v8  ;;  %1270 = vmatprep.mubr.msk.bf16.mxu0 %vm148_vm0, %v650_v0  ;;  %v641_v38 = vadd.f32 %v2001_v54, %v602_v62 }
 0x1cf   :  { %v564_v46 = vmul.f32 %v1365_v61, %v1982_v14  ;;  %v626_v8 = vadd.f32 %v2001_v54, %v587_v6 }
 0x1d0   :  { %v658_v50 = vpack.c.bf16 %v641_v38, %v640_v31  ;;  %v588_v10 = vmul.f32 %v1997_v26, %v549_v58 }
 0x1d1   :  { %v1367_v23 = vpop.eup %1366  ;;  %v603_v42 = vmul.f32 %v1997_v26, %v564_v46 }
 0x1d2   :  { %v565_v59 = vmul.f32 %v1367_v23, %v1986_v24  ;;  %1286 = vmatprep.mubr.msk.bf16.mxu1 %vm148_vm0, %v658_v50  ;;  %v627_v60 = vadd.f32 %v2001_v54, %v588_v10  ;;  %v2112_v24 = vld [vmem:[#allocation10] ss:$0 sm:$0xff] }
 0x1d3   :  { %v642_v14 = vadd.f32 %v2001_v54, %v603_v42 }
 0x1d4   :  { %v651_v29 = vpack.c.bf16 %v627_v60, %v626_v8  ;;  %v604_v7 = vmul.f32 %v1997_v26, %v565_v59 }
 0x1d6   :  { %1271 = vmatmul.mubr.msk.bf16.gmra.mrb[12].mxu0 %vm148_vm0, %v651_v29  ;;  %v643_v12 = vadd.f32 %v2001_v54, %v604_v7 }
 0x1d8   :  { %v659_v21 = vpack.c.bf16 %v643_v12, %v642_v14 }
 0x1da   :  { %1287 = vmatmul.mubr.msk.bf16.gmra.mrb[12].mxu1 %vm148_vm0, %v659_v21 }
 0x279   :  { %v1260_v27 = vpop.f32.mrb[0].mxu0 }
 0x27a   :  { %v774_v9 = vadd.f32 %v1260_v27, %v2112_v24  ;;  %v765_v63 = vpop.f32.mrb[1].mxu0 }
 0x27b   :  { %v766_v43 = vadd.f32 %v2112_v24, %v765_v63  ;;  %v1261_v55 = vpop.f32.mrb[2].mxu0 }
 0x27c   :  { %v1127_v26 = vpack.c.bf16 %v774_v9, %v774_v9  ;;  %v777_v15 = vadd.f32 %v1261_v55, %v2112_v24  ;;  %v768_v51 = vpop.f32.mrb[3].mxu0 }
 0x27d   :  { %v1125_v36 = vpack.c.bf16 %v766_v43, %v766_v43  ;;  %v769_v54 = vadd.f32 %v2112_v24, %v768_v51  ;;  %v1276_v13 = vpop.f32.mrb[0].mxu1 }
 0x27e   :  { %1023 = vst.msk [vmem:[#allocation11 + $0x8] sm:$0xf] %vm1020_vm1, %v1127_v26  ;;  %v1128_v28 = vpack.c.bf16 %v777_v15, %v777_v15  ;;  %v838_v47 = vadd.f32 %v1276_v13, %v2112_v24  ;;  %v829_v11 = vpop.f32.mrb[1].mxu1 }
 0x27f   :  { %1021 = vst.msk [vmem:[#allocation11] sm:$0xf] %vm1020_vm1, %v1125_v36  ;;  %v1126_v19 = vpack.c.bf16 %v769_v54, %v769_v54  ;;  %v830_v3 = vadd.f32 %v2112_v24, %v829_v11  ;;  %v1277_v30 = vpop.f32.mrb[2].mxu1 }
 0x280   :  { %1024 = vst.msk [vmem:[#allocation11 + $0xc] sm:$0xf] %vm1020_vm1, %v1128_v28  ;;  %v1143_v20 = vpack.c.bf16 %v838_v47, %v838_v47  ;;  %v841_v39 = vadd.f32 %v1277_v30, %v2112_v24  ;;  %v832_v48 = vpop.f32.mrb[3].mxu1 }
 0x281   :  { %1022 = vst.msk [vmem:[#allocation11 + $0x4] sm:$0xf] %vm1020_vm1, %v1126_v19  ;;  %v1141_v32 = vpack.c.bf16 %v830_v3, %v830_v3  ;;  %v833_v17 = vadd.f32 %v2112_v24, %v832_v48 }
 0x282   :  { %1039 = vst.msk [vmem:[#allocation11 + $0x48] sm:$0xf] %vm1020_vm1, %v1143_v20  ;;  %v1144_v2 = vpack.c.bf16 %v841_v39, %v841_v39 }
 0x283   :  { %1037 = vst.msk [vmem:[#allocation11 + $0x40] sm:$0xf] %vm1020_vm1, %v1141_v32  ;;  %v1142_v40 = vpack.c.bf16 %v833_v17, %v833_v17 }
 0x284   :  { %1040 = vst.msk [vmem:[#allocation11 + $0x4c] sm:$0xf] %vm1020_vm1, %v1144_v2 }
 0x285   :  { %1038 = vst.msk [vmem:[#allocation11 + $0x44] sm:$0xf] %vm1020_vm1, %v1142_v40 }
 0x289   :  { %v1264_v1 = vpop.f32.mrb[4].mxu0 }
 0x28a   :  { %v790_v56 = vadd.f32 %v1264_v1, %v2112_v24  ;;  %v781_v41 = vpop.f32.mrb[5].mxu0 }
 0x28b   :  { %v782_v52 = vadd.f32 %v2112_v24, %v781_v41  ;;  %v1265_v25 = vpop.f32.mrb[6].mxu0 }
 0x28c   :  { %v1131_v33 = vpack.c.bf16 %v790_v56, %v790_v56  ;;  %v793_v34 = vadd.f32 %v1265_v25, %v2112_v24  ;;  %v784_v18 = vpop.f32.mrb[7].mxu0 }
 0x28d   :  { %v1129_v53 = vpack.c.bf16 %v782_v52, %v782_v52  ;;  %v785_v35 = vadd.f32 %v2112_v24, %v784_v18  ;;  %v1280_v44 = vpop.f32.mrb[4].mxu1 }
 0x28e   :  { %1027 = vst.msk [vmem:[#allocation11 + $0x18] sm:$0xf] %vm1020_vm1, %v1131_v33  ;;  %v1132_v4 = vpack.c.bf16 %v793_v34, %v793_v34  ;;  %v854_v45 = vadd.f32 %v1280_v44, %v2112_v24  ;;  %v845_v37 = vpop.f32.mrb[5].mxu1 }
 0x28f   :  { %1025 = vst.msk [vmem:[#allocation11 + $0x10] sm:$0xf] %vm1020_vm1, %v1129_v53  ;;  %v1130_v57 = vpack.c.bf16 %v785_v35, %v785_v35  ;;  %v846_v16 = vadd.f32 %v2112_v24, %v845_v37  ;;  %v1281_v49 = vpop.f32.mrb[6].mxu1 }
 0x290   :  { %1028 = vst.msk [vmem:[#allocation11 + $0x1c] sm:$0xf] %vm1020_vm1, %v1132_v4  ;;  %v1147_v22 = vpack.c.bf16 %v854_v45, %v854_v45  ;;  %v857_v0 = vadd.f32 %v1281_v49, %v2112_v24  ;;  %v848_v62 = vpop.f32.mrb[7].mxu1 }
 0x291   :  { %1026 = vst.msk [vmem:[#allocation11 + $0x14] sm:$0xf] %vm1020_vm1, %v1130_v57  ;;  %v1145_v5 = vpack.c.bf16 %v846_v16, %v846_v16  ;;  %v849_v61 = vadd.f32 %v2112_v24, %v848_v62 }
 0x292   :  { %1043 = vst.msk [vmem:[#allocation11 + $0x58] sm:$0xf] %vm1020_vm1, %v1147_v22  ;;  %v1148_v58 = vpack.c.bf16 %v857_v0, %v857_v0 }
 0x293   :  { %1041 = vst.msk [vmem:[#allocation11 + $0x50] sm:$0xf] %vm1020_vm1, %v1145_v5  ;;  %v1146_v31 = vpack.c.bf16 %v849_v61, %v849_v61 }
 0x294   :  { %1044 = vst.msk [vmem:[#allocation11 + $0x5c] sm:$0xf] %vm1020_vm1, %v1148_v58 }
 0x295   :  { %1042 = vst.msk [vmem:[#allocation11 + $0x54] sm:$0xf] %vm1020_vm1, %v1146_v31 }
 0x299   :  { %v1268_v38 = vpop.f32.mrb[8].mxu0 }
 0x29a   :  { %v806_v6 = vadd.f32 %v1268_v38, %v2112_v24  ;;  %v797_v46 = vpop.f32.mrb[9].mxu0 }
 0x29b   :  { %v798_v50 = vadd.f32 %v2112_v24, %v797_v46  ;;  %v1269_v10 = vpop.f32.mrb[10].mxu0 }
 0x29c   :  { %v1135_v23 = vpack.c.bf16 %v806_v6, %v806_v6  ;;  %v809_v59 = vadd.f32 %v1269_v10, %v2112_v24  ;;  %v800_v8 = vpop.f32.mrb[11].mxu0 }
 0x29d   :  { %v1133_v60 = vpack.c.bf16 %v798_v50, %v798_v50  ;;  %v801_v42 = vadd.f32 %v2112_v24, %v800_v8  ;;  %v1284_v29 = vpop.f32.mrb[8].mxu1 }
 0x29e   :  { %1031 = vst.msk [vmem:[#allocation11 + $0x28] sm:$0xf] %vm1020_vm1, %v1135_v23  ;;  %v1136_v7 = vpack.c.bf16 %v809_v59, %v809_v59  ;;  %v870_v14 = vadd.f32 %v1284_v29, %v2112_v24  ;;  %v861_v12 = vpop.f32.mrb[9].mxu1 }
 0x29f   :  { %1029 = vst.msk [vmem:[#allocation11 + $0x20] sm:$0xf] %vm1020_vm1, %v1133_v60  ;;  %v1134_v21 = vpack.c.bf16 %v801_v42, %v801_v42  ;;  %v862_v27 = vadd.f32 %v2112_v24, %v861_v12  ;;  %v1285_v9 = vpop.f32.mrb[10].mxu1 }
 0x2a0   :  { %1032 = vst.msk [vmem:[#allocation11 + $0x2c] sm:$0xf] %vm1020_vm1, %v1136_v7  ;;  %v1151_v63 = vpack.c.bf16 %v870_v14, %v870_v14  ;;  %v873_v43 = vadd.f32 %v1285_v9, %v2112_v24  ;;  %v864_v55 = vpop.f32.mrb[11].mxu1 }
 0x2a1   :  { %1030 = vst.msk [vmem:[#allocation11 + $0x24] sm:$0xf] %vm1020_vm1, %v1134_v21  ;;  %v1149_v26 = vpack.c.bf16 %v862_v27, %v862_v27  ;;  %v865_v15 = vadd.f32 %v2112_v24, %v864_v55 }
 0x2a2   :  { %1047 = vst.msk [vmem:[#allocation11 + $0x68] sm:$0xf] %vm1020_vm1, %v1151_v63  ;;  %v1152_v51 = vpack.c.bf16 %v873_v43, %v873_v43 }
 0x2a3   :  { %1045 = vst.msk [vmem:[#allocation11 + $0x60] sm:$0xf] %vm1020_vm1, %v1149_v26  ;;  %v1150_v36 = vpack.c.bf16 %v865_v15, %v865_v15 }
 0x2a4   :  { %1048 = vst.msk [vmem:[#allocation11 + $0x6c] sm:$0xf] %vm1020_vm1, %v1152_v51 }
 0x2a5   :  { %1046 = vst.msk [vmem:[#allocation11 + $0x64] sm:$0xf] %vm1020_vm1, %v1150_v36 }
 0x2a9   :  { %v1272_v54 = vpop.f32.mrb[12].mxu0 }
 0x2aa   :  { %v822_v13 = vadd.f32 %v1272_v54, %v2112_v24  ;;  %v813_v28 = vpop.f32.mrb[13].mxu0 }
 0x2ab   :  { %v814_v47 = vadd.f32 %v2112_v24, %v813_v28  ;;  %v1273_v11 = vpop.f32.mrb[14].mxu0 }
 0x2ac   :  { %v1139_v19 = vpack.c.bf16 %v822_v13, %v822_v13  ;;  %v825_v3 = vadd.f32 %v1273_v11, %v2112_v24  ;;  %v816_v30 = vpop.f32.mrb[15].mxu0 }
 0x2ad   :  { %v1137_v20 = vpack.c.bf16 %v814_v47, %v814_v47  ;;  %v817_v39 = vadd.f32 %v2112_v24, %v816_v30  ;;  %v1288_v48 = vpop.f32.mrb[12].mxu1 }
 0x2ae   :  { %1035 = vst.msk [vmem:[#allocation11 + $0x38] sm:$0xf] %vm1020_vm1, %v1139_v19  ;;  %v1140_v32 = vpack.c.bf16 %v825_v3, %v825_v3  ;;  %v886_v17 = vadd.f32 %v1288_v48, %v2112_v24  ;;  %v877_v2 = vpop.f32.mrb[13].mxu1 }
 0x2af   :  { %1033 = vst.msk [vmem:[#allocation11 + $0x30] sm:$0xf] %vm1020_vm1, %v1137_v20  ;;  %v1138_v40 = vpack.c.bf16 %v817_v39, %v817_v39  ;;  %v878_v1 = vadd.f32 %v2112_v24, %v877_v2  ;;  %v1289_v56 = vpop.f32.mrb[14].mxu1 }
 0x2b0   :  { %1036 = vst.msk [vmem:[#allocation11 + $0x3c] sm:$0xf] %vm1020_vm1, %v1140_v32  ;;  %v1155_v41 = vpack.c.bf16 %v886_v17, %v886_v17  ;;  %v889_v52 = vadd.f32 %v1289_v56, %v2112_v24  ;;  %v880_v25 = vpop.f32.mrb[15].mxu1 }
 0x2b1   :  { %1034 = vst.msk [vmem:[#allocation11 + $0x34] sm:$0xf] %vm1020_vm1, %v1138_v40  ;;  %v1153_v33 = vpack.c.bf16 %v878_v1, %v878_v1  ;;  %v881_v34 = vadd.f32 %v2112_v24, %v880_v25 }
 0x2b2   :  { %1051 = vst.msk [vmem:[#allocation11 + $0x78] sm:$0xf] %vm1020_vm1, %v1155_v41  ;;  %v1156_v18 = vpack.c.bf16 %v889_v52, %v889_v52 }
 0x2b3   :  { %1049 = vst.msk [vmem:[#allocation11 + $0x70] sm:$0xf] %vm1020_vm1, %v1153_v33  ;;  %v1154_v53 = vpack.c.bf16 %v881_v34, %v881_v34 }
 0x2b4   :  { %1052 = vst.msk [vmem:[#allocation11 + $0x7c] sm:$0xf] %vm1020_vm1, %v1156_v18 }
 0x2b5   :  { %1050 = vst.msk [vmem:[#allocation11 + $0x74] sm:$0xf] %vm1020_vm1, %v1154_v53 }
 0x2b6   :  { %1489 = shalt.err (!%p1486_p2)
}
 0x2b7   :  { %s1490_s8 = scalar_lea.hbm %s2198_s5, 2048 }
 0x2b8   :  { %p1491_p3 = scmp.ne.s32.totalorder %s2198_s5, %s1490_s8  ;;  %p1494_p4 = scmp.lt.u32.totalorder %s1490_s8, %s2198_s5 }
 0x2ba   :  { %p1496_p5 = pnand %p1494_p4, %p1491_p3 }
 0x2bc   :  { %1499 = shalt.err (!%p1496_p5)
}
 0x2bd   :  { %1064 = dma.vmem_to_hbm [thread:$0]  %s1059_s29, 2048, %s2198_s5, [#allocation4], %s1511_s17, %s1511_s17, %s1512_s18  }
 0x2be   :  { %1506 = dma.done.wait [#allocation4], 2048  }
 0x2bf   :  { %1507 = vsyncadd [#allocation4], 4294965248 }
 0x2c0   :  { %1068 = vsyncpa [#allocation3], 1 }
 0x2c1   :  { %1069 = vsyncpa [#allocation6], 1 }
 0x2c2   :  { %1070 = vsyncpa [#allocation9], 1 }
 0x2c3   :  { %1071 = vsyncpa [#allocation4], 1 }

// kernel: clip_encode_image.15
= control target key start
LH: loop header
LB: loop body
LE: loop exit
PB: predicated region body
PF: predicated region fallthrough
CT: control target
= control target key end

     0   :  { %9 = vsyncpa [#allocation3], 0  ;;  %s1272_s0 = inlined_call_operand.hbm [shape: bf16[256,32], index: 0, kind: input, shape index: {}]   ;;  %s1273_s1 = inlined_call_operand.hbm [shape: bf16[32,32], index: 1, kind: input, shape index: {}]   ;;  %s1274_s2 = inlined_call_operand.hbm [shape: f32[1,32], index: 2, kind: input, shape index: {}]   ;;  %s1275_s3 = inlined_call_operand.hbm [shape: bf16[256,32], index: 3, kind: input, shape index: {}]   ;;  %s1276_s4 = inlined_call_operand.hbm [shape: bf16[256,32], index: 4, kind: output, shape index: {}]  }
   0x1   :  { %10 = vsyncpa [#allocation6], 0 }
   0x2   :  { %11 = vsyncpa [#allocation9], 0 }
   0x3   :  { %12 = vsyncpa [#allocation4], 0  ;;  %s1072_s15 = smov [#allocation5]   ;;  %s1073_s17 = smov [#allocation2]  }
   0x4   :  { %s30_s16 = sshll.u32 %s1072_s15, 4  ;;  %s18_s18 = sshll.u32 %s1073_s17, 4  ;;  %s31_s16 = int_to_ptr.vmem [resolvable:$true] %s30_s16  ;;  %s1104_s18 = int_to_ptr.vmem [resolvable:$true] %s18_s18 }
   0x5   :  { %s954_s21 = scalar_lea.hbm %s1273_s1, 256 }
   0x6   :  { %p955_p0 = scmp.ne.s32.totalorder %s1273_s1, %s954_s21  ;;  %p958_p1 = scmp.lt.u32.totalorder %s954_s21, %s1273_s1 }
   0x8   :  { %p960_p2 = pnand %p958_p1, %p955_p0 }
   0xa   :  { %963 = shalt.err (!%p960_p2)
}
   0xb   :  { %s964_s26 = scalar_lea.vmem %s31_s16, 256  ;;  %p969_p4 = scmp.lt.s32.totalorder %s31_s16, %s31_s16 }
   0xc   :  { %p965_p3 = scmp.ne.s32.totalorder %s31_s16, %s964_s26  ;;  %p970_p5 = scmp.lt.s32.totalorder %s964_s26, %s964_s26 }
   0xe   :  { %p971_p6 = por %p970_p5, %p969_p4 }
  0x10   :  { %p972_p7 = pnand %p971_p6, %p965_p3 }
  0x12   :  { %975 = shalt.err (!%p972_p7)
}
  0x13   :  { %s1074_s27 = smov 64   ;;  %s1075_s28 = smov 4  }
  0x14   :  { %36 = dma.hbm_to_vmem [thread:$0]  %s1273_s1, 256, %s31_s16, [#allocation6], %s1074_s27, %s1074_s27, %s1075_s28  }
  0x15   :  { %s976_s7 = scalar_lea.hbm %s1272_s0, 2048 }
  0x16   :  { %p977_p8 = scmp.ne.s32.totalorder %s1272_s0, %s976_s7  ;;  %p980_p9 = scmp.lt.u32.totalorder %s976_s7, %s1272_s0 }
  0x18   :  { %p982_p10 = pnand %p980_p9, %p977_p8 }
  0x1a   :  { %985 = shalt.err (!%p982_p10)
}
  0x1b   :  { %s986_s12 = scalar_lea.vmem %s1104_s18, 2048  ;;  %p991_p12 = scmp.lt.s32.totalorder %s1104_s18, %s1104_s18 }
  0x1c   :  { %p987_p11 = scmp.ne.s32.totalorder %s1104_s18, %s986_s12  ;;  %p992_p13 = scmp.lt.s32.totalorder %s986_s12, %s986_s12 }
  0x1e   :  { %p993_p0 = por %p992_p13, %p991_p12 }
  0x20   :  { %p994_p1 = pnand %p993_p0, %p987_p11 }
  0x22   :  { %997 = shalt.err (!%p994_p1)
}
  0x23   :  { %24 = dma.hbm_to_vmem [thread:$0]  %s1272_s0, 2048, %s1104_s18, [#allocation3], %s1074_s27, %s1074_s27, %s1075_s28  }
  0x24   :  { %s1076_s14 = smov [#allocation7]   ;;  %s1077_s16 = smov [#allocation8]  }
  0x25   :  { %s43_s15 = sshll.u32 %s1076_s14, 4  ;;  %s52_s17 = sshll.u32 %s1077_s16, 4  ;;  %s44_s15 = int_to_ptr.vmem [resolvable:$true] %s43_s15  ;;  %s1141_s17 = int_to_ptr.vmem [resolvable:$true] %s52_s17 }
  0x26   :  { %s998_s21 = scalar_lea.hbm %s1274_s2, 16 }
  0x27   :  { %p999_p2 = scmp.ne.s32.totalorder %s1274_s2, %s998_s21  ;;  %p1002_p3 = scmp.lt.u32.totalorder %s998_s21, %s1274_s2 }
  0x29   :  { %p1004_p4 = pnand %p1002_p3, %p999_p2 }
  0x2b   :  { %1007 = shalt.err (!%p1004_p4)
}
  0x2c   :  { %s1008_s0 = scalar_lea.vmem %s44_s15, 16  ;;  %s1012_s18 = scalar_lea.vmem %s44_s15, 32 }
  0x2d   :  { %p1009_p5 = scmp.ne.s32.totalorder %s44_s15, %s1008_s0  ;;  %p1013_p6 = scmp.lt.s32.totalorder %s44_s15, %s44_s15 }
  0x2e   :  { %p1014_p7 = scmp.lt.s32.totalorder %s1012_s18, %s1008_s0 }
  0x30   :  { %p1015_p8 = por %p1014_p7, %p1013_p6 }
  0x32   :  { %p1016_p9 = pnand %p1015_p8, %p1009_p5 }
  0x34   :  { %1019 = shalt.err (!%p1016_p9)
}
  0x35   :  { %46 = dma.hbm_to_vmem [thread:$0]  %s1274_s2, 16, %s44_s15, [#allocation6]  }
  0x36   :  { %s1020_s6 = scalar_lea.hbm %s1275_s3, 2048 }
  0x37   :  { %p1021_p10 = scmp.ne.s32.totalorder %s1275_s3, %s1020_s6  ;;  %p1024_p11 = scmp.lt.u32.totalorder %s1020_s6, %s1275_s3 }
  0x39   :  { %p1026_p12 = pnand %p1024_p11, %p1021_p10 }
  0x3b   :  { %1029 = shalt.err (!%p1026_p12)
}
  0x3c   :  { %s1030_s11 = scalar_lea.vmem %s1141_s17, 2048  ;;  %p1035_p0 = scmp.lt.s32.totalorder %s1141_s17, %s1141_s17 }
  0x3d   :  { %p1031_p13 = scmp.ne.s32.totalorder %s1141_s17, %s1030_s11  ;;  %p1036_p1 = scmp.lt.s32.totalorder %s1030_s11, %s1030_s11 }
  0x3f   :  { %p1037_p2 = por %p1036_p1, %p1035_p0 }
  0x41   :  { %p1038_p3 = pnand %p1037_p2, %p1031_p13 }
  0x43   :  { %1041 = shalt.err (!%p1038_p3)
}
  0x44   :  { %58 = dma.hbm_to_vmem [thread:$0]  %s1275_s3, 2048, %s1141_s17, [#allocation9], %s1074_s27, %s1074_s27, %s1075_s28  }
  0x45   :  { %1064 = dma.done.wait [#allocation3], 2048  }
  0x46   :  { %1065 = vsyncadd [#allocation3], 4294965248 }
  0x47   :  { %1066 = dma.done.wait [#allocation6], 272  }
  0x48   :  { %1067 = vsyncadd [#allocation6], 4294967024 }
  0x49   :  { %1068 = dma.done.wait [#allocation9], 2048  }
  0x4a   :  { %1069 = vsyncadd [#allocation9], 4294965248  ;;  %v936_v0 = vld [vmem:[#allocation5] sm:$0xff]   ;;  %v937_v1 = vld [vmem:[#allocation5 + $0x8] sm:$0xff]   ;;  %vm207_vm0 = vcmask 261120   ;;  %vm641_vm1 = vcmask 257024  }
  0x4b   :  { %889 = vmatprep.subr.bf16.mxu0 %v936_v0  ;;  %925 = vmatprep.subr.bf16.mxu1 %v936_v0  ;;  %v938_v2 = vld [vmem:[#allocation2] sm:$0xff]   ;;  %v940_v4 = vld [vmem:[#allocation2 + $0x8] sm:$0xff]   ;;  %v942_v6 = vld [vmem:[#allocation2 + $0x10] sm:$0xff]   ;;  %s1078_s3 = smov [#allocation10]  }
  0x4c   :  { %890 = vmatpush3.bf16.msra.mxu0 %v936_v0  ;;  %927 = vmatpush3.bf16.msra.mxu1 %v936_v0  ;;  %v939_v3 = vld [vmem:[#allocation2 + $0x40] sm:$0xff]   ;;  %v941_v5 = vld [vmem:[#allocation2 + $0x48] sm:$0xff]   ;;  %v943_v7 = vld [vmem:[#allocation2 + $0x50] sm:$0xff]   ;;  %s679_s1 = sshll.u32 %s1078_s3, 4  ;;  %s680_s1 = int_to_ptr.vmem [resolvable:$true] %s679_s1 }
  0x4d   :  { %891 = vmatprep.subr.bf16.mxu0 %v937_v1  ;;  %926 = vmatprep.subr.bf16.mxu1 %v937_v1  ;;  %v944_v8 = vld [vmem:[#allocation2 + $0x18] sm:$0xff]   ;;  %v946_v10 = vld [vmem:[#allocation2 + $0x20] sm:$0xff]   ;;  %v948_v12 = vld [vmem:[#allocation2 + $0x28] sm:$0xff]   ;;  %s1042_s13 = scalar_lea.vmem %s680_s1, 2048  ;;  %p1047_p5 = scmp.lt.s32.totalorder %s680_s1, %s680_s1 }
  0x4e   :  { %893 = vmatprep.mubr.msk.bf16.mxu0 %vm207_vm0, %v938_v2  ;;  %909 = vmatprep.mubr.msk.bf16.mxu1 %vm207_vm0, %v939_v3  ;;  %v945_v9 = vld [vmem:[#allocation2 + $0x58] sm:$0xff]   ;;  %v947_v11 = vld [vmem:[#allocation2 + $0x60] sm:$0xff]   ;;  %v949_v13 = vld [vmem:[#allocation2 + $0x68] sm:$0xff]   ;;  %p1043_p4 = scmp.ne.s32.totalorder %s680_s1, %s1042_s13  ;;  %p1048_p6 = scmp.lt.s32.totalorder %s1042_s13, %s1042_s13 }
  0x4f   :  { %v950_v14 = vld [vmem:[#allocation2 + $0x30] sm:$0xff]   ;;  %v952_v16 = vld [vmem:[#allocation2 + $0x38] sm:$0xff]   ;;  %v857_v57 = vld [vmem:[#allocation8 + $0x10] sm:$0xff]  }
  0x50   :  { %892 = vmatpush3.bf16.msra.mxu0 %v937_v1  ;;  %928 = vmatpush3.bf16.msra.mxu1 %v937_v1  ;;  %v951_v15 = vld [vmem:[#allocation2 + $0x70] sm:$0xff]   ;;  %v953_v17 = vld [vmem:[#allocation2 + $0x78] sm:$0xff]   ;;  %v865_v58 = vld [vmem:[#allocation8 + $0x50] sm:$0xff]   ;;  %p1049_p7 = por %p1048_p6, %p1047_p5 }
  0x51   :  { %v856_v18 = vld [vmem:[#allocation8 + $0x8] sm:$0xff]   ;;  %v793_v20 = vld [vmem:[#allocation8] sm:$0xff]   ;;  %v1191_v22 = vld [vmem:[#allocation7] ss:$0 sm:$0xff] }
  0x52   :  { %v864_v19 = vld [vmem:[#allocation8 + $0x48] sm:$0xff]   ;;  %v863_v21 = vld [vmem:[#allocation8 + $0x40] sm:$0xff]   ;;  %v798_v23 = vunpack.c.l.bf16 %v856_v18  ;;  %v794_v27 = vunpack.c.l.bf16 %v793_v20  ;;  %v799_v29 = vunpack.c.h.bf16 %v856_v18  ;;  %v795_v35 = vunpack.c.h.bf16 %v793_v20  ;;  %v858_v51 = vld [vmem:[#allocation8 + $0x18] sm:$0xff]   ;;  %p1050_p8 = pnand %p1049_p7, %p1043_p4 }
  0x53   :  { %894 = vmatmul.mubr.msk.bf16.vlgmr.msra.gmra.mrb[0].mxu0 %vm207_vm0, %v940_v4  ;;  %910 = vmatmul.mubr.msk.bf16.vlgmr.msra.gmra.mrb[0].mxu1 %vm207_vm0, %v941_v5  ;;  %v830_v24 = vunpack.c.l.bf16 %v864_v19  ;;  %v826_v28 = vunpack.c.l.bf16 %v863_v21  ;;  %v831_v34 = vunpack.c.h.bf16 %v864_v19  ;;  %v827_v40 = vunpack.c.h.bf16 %v863_v21  ;;  %v866_v52 = vld [vmem:[#allocation8 + $0x58] sm:$0xff]  }
  0x54   :  { %897 = vmatprep.mubr.msk.bf16.mxu0 %vm207_vm0, %v942_v6  ;;  %913 = vmatprep.mubr.msk.bf16.mxu1 %vm207_vm0, %v943_v7  ;;  %v806_v1 = vunpack.c.l.bf16 %v858_v51  ;;  %v838_v2 = vunpack.c.l.bf16 %v866_v52  ;;  %v802_v7 = vunpack.c.l.bf16 %v857_v57  ;;  %v803_v19 = vunpack.c.h.bf16 %v857_v57 }
  0x55   :  { %v835_v20 = vunpack.c.h.bf16 %v865_v58 }
  0x5b   :  { %898 = vmatmul.mubr.msk.bf16.gmra.mrb[4].mxu0 %vm207_vm0, %v944_v8  ;;  %914 = vmatmul.mubr.msk.bf16.gmra.mrb[4].mxu1 %vm207_vm0, %v945_v9  ;;  %v834_v8 = vunpack.c.l.bf16 %v865_v58 }
  0x5c   :  { %901 = vmatprep.mubr.msk.bf16.mxu0 %vm207_vm0, %v946_v10  ;;  %917 = vmatprep.mubr.msk.bf16.mxu1 %vm207_vm0, %v947_v11 }
  0x63   :  { %902 = vmatmul.mubr.msk.bf16.gmra.mrb[8].mxu0 %vm207_vm0, %v948_v12  ;;  %918 = vmatmul.mubr.msk.bf16.gmra.mrb[8].mxu1 %vm207_vm0, %v949_v13  ;;  %v807_v13 = vunpack.c.h.bf16 %v858_v51 }
  0x64   :  { %905 = vmatprep.mubr.msk.bf16.mxu0 %vm207_vm0, %v950_v14  ;;  %921 = vmatprep.mubr.msk.bf16.mxu1 %vm207_vm0, %v951_v15  ;;  %v839_v14 = vunpack.c.h.bf16 %v866_v52 }
  0x6b   :  { %906 = vmatmul.mubr.msk.bf16.gmra.mrb[12].mxu0 %vm207_vm0, %v952_v16  ;;  %922 = vmatmul.mubr.msk.bf16.gmra.mrb[12].mxu1 %vm207_vm0, %v953_v17 }
 0x126   :  { %v895_v25 = vpop.f32.mrb[0].mxu0  ;;  %v911_v26 = vpop.f32.mrb[0].mxu1 }
 0x127   :  { %v299_v30 = vadd.f32 %v895_v25, %v1191_v22  ;;  %v363_v31 = vadd.f32 %v911_v26, %v1191_v22  ;;  %v290_v32 = vpop.f32.mrb[1].mxu0  ;;  %v354_v33 = vpop.f32.mrb[1].mxu1 }
 0x128   :  { %v291_v36 = vadd.f32 %v1191_v22, %v290_v32  ;;  %v355_v37 = vadd.f32 %v1191_v22, %v354_v33  ;;  %v896_v38 = vpop.f32.mrb[2].mxu0  ;;  %v912_v39 = vpop.f32.mrb[2].mxu1  ;;  %v860_v32 = vld [vmem:[#allocation8 + $0x28] sm:$0xff]  }
 0x129   :  { %v483_v41 = vadd.f32 %v798_v23, %v299_v30  ;;  %v499_v42 = vadd.f32 %v830_v24, %v363_v31  ;;  %v302_v43 = vadd.f32 %v896_v38, %v1191_v22  ;;  %v366_v44 = vadd.f32 %v912_v39, %v1191_v22  ;;  %v293_v45 = vpop.f32.mrb[3].mxu0  ;;  %v357_v46 = vpop.f32.mrb[3].mxu1  ;;  %v868_v33 = vld [vmem:[#allocation8 + $0x68] sm:$0xff]   ;;  %v859_v38 = vld [vmem:[#allocation8 + $0x20] sm:$0xff]  }
 0x12a   :  { %v481_v47 = vadd.f32 %v794_v27, %v291_v36  ;;  %v497_v48 = vadd.f32 %v826_v28, %v355_v37  ;;  %v294_v49 = vadd.f32 %v1191_v22, %v293_v45  ;;  %v358_v50 = vadd.f32 %v1191_v22, %v357_v46  ;;  %v867_v39 = vld [vmem:[#allocation8 + $0x60] sm:$0xff]  }
 0x12b   :  { %v762_v53 = vpack.c.bf16 %v483_v41, %v483_v41  ;;  %v778_v54 = vpack.c.bf16 %v499_v42, %v499_v42  ;;  %v484_v55 = vadd.f32 %v799_v29, %v302_v43  ;;  %v500_v56 = vadd.f32 %v831_v34, %v366_v44 }
 0x12c   :  { %v760_v59 = vpack.c.bf16 %v481_v47, %v481_v47  ;;  %v776_v60 = vpack.c.bf16 %v497_v48, %v497_v48  ;;  %v482_v61 = vadd.f32 %v795_v35, %v294_v49  ;;  %v498_v62 = vadd.f32 %v827_v40, %v358_v50 }
 0x12d   :  { %644 = vst.msk [vmem:[#allocation10 + $0x8] sm:$0xf] %vm641_vm1, %v762_v53  ;;  %660 = vst.msk [vmem:[#allocation10 + $0x48] sm:$0xf] %vm641_vm1, %v778_v54  ;;  %v763_v63 = vpack.c.bf16 %v484_v55, %v484_v55  ;;  %v779_v0 = vpack.c.bf16 %v500_v56, %v500_v56  ;;  %v814_v46 = vunpack.c.l.bf16 %v860_v32  ;;  %v846_v47 = vunpack.c.l.bf16 %v868_v33 }
 0x12e   :  { %642 = vst.msk [vmem:[#allocation10] sm:$0xf] %vm641_vm1, %v760_v59  ;;  %658 = vst.msk [vmem:[#allocation10 + $0x40] sm:$0xf] %vm641_vm1, %v776_v60  ;;  %v761_v3 = vpack.c.bf16 %v482_v61, %v482_v61  ;;  %v777_v4 = vpack.c.bf16 %v498_v62, %v498_v62  ;;  %v899_v5 = vpop.f32.mrb[4].mxu0  ;;  %v915_v6 = vpop.f32.mrb[4].mxu1  ;;  %v810_v52 = vunpack.c.l.bf16 %v859_v38  ;;  %v842_v53 = vunpack.c.l.bf16 %v867_v39 }
 0x12f   :  { %645 = vst.msk [vmem:[#allocation10 + $0xc] sm:$0xf] %vm641_vm1, %v763_v63  ;;  %661 = vst.msk [vmem:[#allocation10 + $0x4c] sm:$0xf] %vm641_vm1, %v779_v0  ;;  %v315_v9 = vadd.f32 %v899_v5, %v1191_v22  ;;  %v379_v10 = vadd.f32 %v915_v6, %v1191_v22  ;;  %v306_v11 = vpop.f32.mrb[5].mxu0  ;;  %v370_v12 = vpop.f32.mrb[5].mxu1  ;;  %v815_v58 = vunpack.c.h.bf16 %v860_v32  ;;  %v847_v59 = vunpack.c.h.bf16 %v868_v33 }
 0x130   :  { %643 = vst.msk [vmem:[#allocation10 + $0x4] sm:$0xf] %vm641_vm1, %v761_v3  ;;  %659 = vst.msk [vmem:[#allocation10 + $0x44] sm:$0xf] %vm641_vm1, %v777_v4  ;;  %v307_v15 = vadd.f32 %v1191_v22, %v306_v11  ;;  %v371_v16 = vadd.f32 %v1191_v22, %v370_v12  ;;  %v900_v17 = vpop.f32.mrb[6].mxu0  ;;  %v916_v18 = vpop.f32.mrb[6].mxu1  ;;  %v811_v0 = vunpack.c.h.bf16 %v859_v38 }
 0x131   :  { %v487_v21 = vadd.f32 %v806_v1, %v315_v9  ;;  %v503_v23 = vadd.f32 %v838_v2, %v379_v10  ;;  %v318_v24 = vadd.f32 %v900_v17, %v1191_v22  ;;  %v382_v25 = vadd.f32 %v916_v18, %v1191_v22  ;;  %v309_v26 = vpop.f32.mrb[7].mxu0  ;;  %v373_v27 = vpop.f32.mrb[7].mxu1  ;;  %v862_v12 = vld [vmem:[#allocation8 + $0x38] sm:$0xff]   ;;  %v861_v18 = vld [vmem:[#allocation8 + $0x30] sm:$0xff]  }
 0x132   :  { %v485_v28 = vadd.f32 %v802_v7, %v307_v15  ;;  %v501_v29 = vadd.f32 %v834_v8, %v371_v16  ;;  %v310_v30 = vadd.f32 %v1191_v22, %v309_v26  ;;  %v374_v31 = vadd.f32 %v1191_v22, %v373_v27 }
 0x133   :  { %v766_v34 = vpack.c.bf16 %v487_v21, %v487_v21  ;;  %v782_v35 = vpack.c.bf16 %v503_v23, %v503_v23  ;;  %v488_v36 = vadd.f32 %v807_v13, %v318_v24  ;;  %v504_v37 = vadd.f32 %v839_v14, %v382_v25  ;;  %v870_v13 = vld [vmem:[#allocation8 + $0x78] sm:$0xff]  }
 0x134   :  { %v764_v40 = vpack.c.bf16 %v485_v28, %v485_v28  ;;  %v780_v41 = vpack.c.bf16 %v501_v29, %v501_v29  ;;  %v486_v42 = vadd.f32 %v803_v19, %v310_v30  ;;  %v502_v43 = vadd.f32 %v835_v20, %v374_v31  ;;  %v869_v19 = vld [vmem:[#allocation8 + $0x70] sm:$0xff]  }
 0x135   :  { %648 = vst.msk [vmem:[#allocation10 + $0x18] sm:$0xf] %vm641_vm1, %v766_v34  ;;  %664 = vst.msk [vmem:[#allocation10 + $0x58] sm:$0xf] %vm641_vm1, %v782_v35  ;;  %v767_v44 = vpack.c.bf16 %v488_v36, %v488_v36  ;;  %v783_v45 = vpack.c.bf16 %v504_v37, %v504_v37  ;;  %v843_v1 = vunpack.c.h.bf16 %v867_v39  ;;  %v822_v27 = vunpack.c.l.bf16 %v862_v12 }
 0x136   :  { %646 = vst.msk [vmem:[#allocation10 + $0x10] sm:$0xf] %vm641_vm1, %v764_v40  ;;  %662 = vst.msk [vmem:[#allocation10 + $0x50] sm:$0xf] %vm641_vm1, %v780_v41  ;;  %v765_v48 = vpack.c.bf16 %v486_v42, %v486_v42  ;;  %v781_v49 = vpack.c.bf16 %v502_v43, %v502_v43  ;;  %v903_v50 = vpop.f32.mrb[8].mxu0  ;;  %v919_v51 = vpop.f32.mrb[8].mxu1  ;;  %v854_v28 = vunpack.c.l.bf16 %v870_v13  ;;  %v818_v33 = vunpack.c.l.bf16 %v861_v18 }
 0x137   :  { %649 = vst.msk [vmem:[#allocation10 + $0x1c] sm:$0xf] %vm641_vm1, %v767_v44  ;;  %665 = vst.msk [vmem:[#allocation10 + $0x5c] sm:$0xf] %vm641_vm1, %v783_v45  ;;  %v331_v54 = vadd.f32 %v903_v50, %v1191_v22  ;;  %v395_v55 = vadd.f32 %v919_v51, %v1191_v22  ;;  %v322_v56 = vpop.f32.mrb[9].mxu0  ;;  %v386_v57 = vpop.f32.mrb[9].mxu1  ;;  %v850_v34 = vunpack.c.l.bf16 %v869_v19  ;;  %v823_v39 = vunpack.c.h.bf16 %v862_v12 }
 0x138   :  { %647 = vst.msk [vmem:[#allocation10 + $0x14] sm:$0xf] %vm641_vm1, %v765_v48  ;;  %663 = vst.msk [vmem:[#allocation10 + $0x54] sm:$0xf] %vm641_vm1, %v781_v49  ;;  %v323_v60 = vadd.f32 %v1191_v22, %v322_v56  ;;  %v387_v61 = vadd.f32 %v1191_v22, %v386_v57  ;;  %v904_v62 = vpop.f32.mrb[10].mxu0  ;;  %v920_v63 = vpop.f32.mrb[10].mxu1  ;;  %v855_v40 = vunpack.c.h.bf16 %v870_v13  ;;  %v819_v45 = vunpack.c.h.bf16 %v861_v18 }
 0x139   :  { %v491_v2 = vadd.f32 %v814_v46, %v331_v54  ;;  %v507_v3 = vadd.f32 %v846_v47, %v395_v55  ;;  %v334_v4 = vadd.f32 %v904_v62, %v1191_v22  ;;  %v398_v5 = vadd.f32 %v920_v63, %v1191_v22  ;;  %v325_v6 = vpop.f32.mrb[11].mxu0  ;;  %v389_v7 = vpop.f32.mrb[11].mxu1 }
 0x13a   :  { %v489_v8 = vadd.f32 %v810_v52, %v323_v60  ;;  %v505_v9 = vadd.f32 %v842_v53, %v387_v61  ;;  %v326_v10 = vadd.f32 %v1191_v22, %v325_v6  ;;  %v390_v11 = vadd.f32 %v1191_v22, %v389_v7 }
 0x13b   :  { %v770_v14 = vpack.c.bf16 %v491_v2, %v491_v2  ;;  %v786_v15 = vpack.c.bf16 %v507_v3, %v507_v3  ;;  %v492_v16 = vadd.f32 %v815_v58, %v334_v4  ;;  %v508_v17 = vadd.f32 %v847_v59, %v398_v5 }
 0x13c   :  { %v768_v20 = vpack.c.bf16 %v489_v8, %v489_v8  ;;  %v784_v21 = vpack.c.bf16 %v505_v9, %v505_v9  ;;  %v490_v23 = vadd.f32 %v811_v0, %v326_v10  ;;  %v506_v24 = vadd.f32 %v843_v1, %v390_v11 }
 0x13d   :  { %652 = vst.msk [vmem:[#allocation10 + $0x28] sm:$0xf] %vm641_vm1, %v770_v14  ;;  %668 = vst.msk [vmem:[#allocation10 + $0x68] sm:$0xf] %vm641_vm1, %v786_v15  ;;  %v771_v25 = vpack.c.bf16 %v492_v16, %v492_v16  ;;  %v787_v26 = vpack.c.bf16 %v508_v17, %v508_v17  ;;  %v851_v46 = vunpack.c.h.bf16 %v869_v19 }
 0x13e   :  { %650 = vst.msk [vmem:[#allocation10 + $0x20] sm:$0xf] %vm641_vm1, %v768_v20  ;;  %666 = vst.msk [vmem:[#allocation10 + $0x60] sm:$0xf] %vm641_vm1, %v784_v21  ;;  %v769_v29 = vpack.c.bf16 %v490_v23, %v490_v23  ;;  %v785_v30 = vpack.c.bf16 %v506_v24, %v506_v24  ;;  %v907_v31 = vpop.f32.mrb[12].mxu0  ;;  %v923_v32 = vpop.f32.mrb[12].mxu1 }
 0x13f   :  { %653 = vst.msk [vmem:[#allocation10 + $0x2c] sm:$0xf] %vm641_vm1, %v771_v25  ;;  %669 = vst.msk [vmem:[#allocation10 + $0x6c] sm:$0xf] %vm641_vm1, %v787_v26  ;;  %v347_v35 = vadd.f32 %v907_v31, %v1191_v22  ;;  %v411_v36 = vadd.f32 %v923_v32, %v1191_v22  ;;  %v338_v37 = vpop.f32.mrb[13].mxu0  ;;  %v402_v38 = vpop.f32.mrb[13].mxu1 }
 0x140   :  { %651 = vst.msk [vmem:[#allocation10 + $0x24] sm:$0xf] %vm641_vm1, %v769_v29  ;;  %667 = vst.msk [vmem:[#allocation10 + $0x64] sm:$0xf] %vm641_vm1, %v785_v30  ;;  %v339_v41 = vadd.f32 %v1191_v22, %v338_v37  ;;  %v403_v42 = vadd.f32 %v1191_v22, %v402_v38  ;;  %v908_v43 = vpop.f32.mrb[14].mxu0  ;;  %v924_v44 = vpop.f32.mrb[14].mxu1 }
 0x141   :  { %v495_v47 = vadd.f32 %v822_v27, %v347_v35  ;;  %v511_v48 = vadd.f32 %v854_v28, %v411_v36  ;;  %v350_v49 = vadd.f32 %v908_v43, %v1191_v22  ;;  %v414_v50 = vadd.f32 %v924_v44, %v1191_v22  ;;  %v341_v51 = vpop.f32.mrb[15].mxu0  ;;  %v405_v52 = vpop.f32.mrb[15].mxu1 }
 0x142   :  { %v493_v53 = vadd.f32 %v818_v33, %v339_v41  ;;  %v509_v54 = vadd.f32 %v850_v34, %v403_v42  ;;  %v342_v55 = vadd.f32 %v1191_v22, %v341_v51  ;;  %v406_v56 = vadd.f32 %v1191_v22, %v405_v52 }
 0x143   :  { %v774_v57 = vpack.c.bf16 %v495_v47, %v495_v47  ;;  %v790_v58 = vpack.c.bf16 %v511_v48, %v511_v48  ;;  %v496_v59 = vadd.f32 %v823_v39, %v350_v49  ;;  %v512_v60 = vadd.f32 %v855_v40, %v414_v50 }
 0x144   :  { %v772_v61 = vpack.c.bf16 %v493_v53, %v493_v53  ;;  %v788_v62 = vpack.c.bf16 %v509_v54, %v509_v54  ;;  %v494_v63 = vadd.f32 %v819_v45, %v342_v55  ;;  %v510_v0 = vadd.f32 %v851_v46, %v406_v56 }
 0x145   :  { %656 = vst.msk [vmem:[#allocation10 + $0x38] sm:$0xf] %vm641_vm1, %v774_v57  ;;  %672 = vst.msk [vmem:[#allocation10 + $0x78] sm:$0xf] %vm641_vm1, %v790_v58  ;;  %v775_v1 = vpack.c.bf16 %v496_v59, %v496_v59  ;;  %v791_v2 = vpack.c.bf16 %v512_v60, %v512_v60 }
 0x146   :  { %654 = vst.msk [vmem:[#allocation10 + $0x30] sm:$0xf] %vm641_vm1, %v772_v61  ;;  %670 = vst.msk [vmem:[#allocation10 + $0x70] sm:$0xf] %vm641_vm1, %v788_v62  ;;  %v773_v22 = vpack.c.bf16 %v494_v63, %v494_v63  ;;  %v789_v3 = vpack.c.bf16 %v510_v0, %v510_v0 }
 0x147   :  { %657 = vst.msk [vmem:[#allocation10 + $0x3c] sm:$0xf] %vm641_vm1, %v775_v1  ;;  %673 = vst.msk [vmem:[#allocation10 + $0x7c] sm:$0xf] %vm641_vm1, %v791_v2 }
 0x148   :  { %655 = vst.msk [vmem:[#allocation10 + $0x34] sm:$0xf] %vm641_vm1, %v773_v22  ;;  %671 = vst.msk [vmem:[#allocation10 + $0x74] sm:$0xf] %vm641_vm1, %v789_v3 }
 0x149   :  { %1053 = shalt.err (!%p1050_p8)
}
 0x14a   :  { %s1054_s16 = scalar_lea.hbm %s1276_s4, 2048 }
 0x14b   :  { %p1055_p9 = scmp.ne.s32.totalorder %s1276_s4, %s1054_s16  ;;  %p1058_p10 = scmp.lt.u32.totalorder %s1054_s16, %s1276_s4 }
 0x14d   :  { %p1060_p11 = pnand %p1058_p10, %p1055_p9 }
 0x14f   :  { %1063 = shalt.err (!%p1060_p11)
}
 0x150   :  { %685 = dma.vmem_to_hbm [thread:$0]  %s680_s1, 2048, %s1276_s4, [#allocation4], %s1074_s27, %s1074_s27, %s1075_s28  }
 0x151   :  { %1070 = dma.done.wait [#allocation4], 2048  }
 0x152   :  { %1071 = vsyncadd [#allocation4], 4294965248 }
 0x153   :  { %689 = vsyncpa [#allocation3], 1 }
 0x154   :  { %690 = vsyncpa [#allocation6], 1 }
 0x155   :  { %691 = vsyncpa [#allocation9], 1 }
 0x156   :  { %692 = vsyncpa [#allocation4], 1 }

// kernel: clip_encode_image.21
= control target key start
LH: loop header
LB: loop body
LE: loop exit
PB: predicated region body
PF: predicated region fallthrough
CT: control target
= control target key end

     0   :  { %vm21_vm0 = vcmask 254976   ;;  %s251_s0 = inlined_call_operand.vmem [shape: bf16[2,32], index: 0, kind: input, shape index: {}]   ;;  %s252_s1 = inlined_call_operand.vmem [shape: f32[1,32], index: 1, kind: input, shape index: {}]   ;;  %s253_s2 = inlined_call_operand.vmem [shape: f32[1,32], index: 2, kind: input, shape index: {}]   ;;  %s254_s3 = inlined_call_operand.vmem [shape: bf16[32,16], index: 3, kind: input, shape index: {}]   ;;  %s255_s4 = inlined_call_operand.hbm [shape: f32[2,16], index: 4, kind: output, shape index: {}]  }
   0x1   :  { %v19_v0 = vld [vmem:[%s251_s0] sm:$0x1] }
   0x2   :  { %v20_v1 = vunpack.c.l.bf16 %v19_v0 }
   0x3   :  { %9 = vsyncpa [#allocation3], 0  ;;  %v162_v8 = vld [vmem:[%s254_s3] sm:$0xff]   ;;  %v194_v9 = vmov 0.0   ;;  %v163_v10 = vld [vmem:[%s254_s3 + $0x8] sm:$0xff]   ;;  %vm195_vm1 = vmmov 0  }
   0x4   :  { %v22_v2 = vsel %vm21_vm0, %v20_v1, 0.0  ;;  %151 = vmatprep.subr.bf16.mxu0 %v194_v9  ;;  %155 = vmatprep.mubr.msk.bf16.mxu0 %vm195_vm1, %v194_v9  ;;  %v143_v15 = vld [vmem:[%s252_s1] ss:$0 sm:$0xff]  ;;  %vm69_vm2 = vcmask 261120   ;;  %vm114_vm3 = vcmask 123904   ;;  %s196_s1 = smov [#allocation2]  }
   0x5   :  { %23 = vadd.xlane.f32.xlu0 %v22_v2  ;;  %152 = vmatpush3.bf16.msra.mxu0 %v162_v8  ;;  %v144_v17 = vld [vmem:[%s253_s2] ss:$0 sm:$0xff]  ;;  %s135_s2 = sshll.u32 %s196_s1, 4  ;;  %s136_s2 = int_to_ptr.vmem [resolvable:$true] %s135_s2 }
   0x6   :  { %153 = vmatprep.subr.bf16.mxu0 %v194_v9  ;;  %s170_s3 = scalar_lea.vmem %s136_s2, 32  ;;  %p175_p1 = scmp.lt.s32.totalorder %s136_s2, %s136_s2 }
   0x7   :  { %p171_p0 = scmp.ne.s32.totalorder %s136_s2, %s170_s3  ;;  %p176_p2 = scmp.lt.s32.totalorder %s170_s3, %s170_s3 }
   0x9   :  { %154 = vmatpush3.bf16.msra.mxu0 %v163_v10  ;;  %p177_p3 = por %p176_p2, %p175_p1 }
   0xb   :  { %p178_p4 = pnand %p177_p3, %p171_p0 }
  0x92   :  { %v24_v3 = vpop.xlane.xlu0 %23 }
  0x93   :  { %v26_v4 = vmul.f32 0.03125, %v24_v3 }
  0x95   :  { %v27_v5 = vsub.f32 %v20_v1, %v26_v4 }
  0x97   :  { %v28_v6 = vmul.f32 %v27_v5, %v27_v5 }
  0x99   :  { %v29_v7 = vsel %vm21_vm0, %v28_v6, 0.0 }
  0x9a   :  { %30 = vadd.xlane.f32.xlu0 %v29_v7 }
 0x127   :  { %v31_v11 = vpop.xlane.xlu0 %30 }
 0x128   :  { %v32_v12 = vmul.f32 0.03125, %v31_v11 }
 0x12a   :  { %v33_v13 = vadd.f32 1e-05, %v32_v12 }
 0x12c   :  { %164 = vrsqrt.f32 %v33_v13 }
 0x136   :  { %v165_v14 = vpop.eup %164 }
 0x137   :  { %v35_v16 = vmul.f32 %v165_v14, %v27_v5 }
 0x139   :  { %v43_v18 = vmul.f32 %v143_v15, %v35_v16 }
 0x13b   :  { %v51_v19 = vadd.f32 %v144_v17, %v43_v18 }
 0x13d   :  { %v52_v20 = vpack.c.bf16 %v51_v19, %v51_v19 }
 0x13f   :  { %156 = vmatmul.mubr.msk.bf16.vlgmr.msra.gmra.mrb[0].mxu0 %vm69_vm2, %v52_v20 }
 0x212   :  { %v107_v21 = vpop.f32.mrb[0].mxu0 }
 0x213   :  { %v157_v22 = vpop.f32.mrb[1].mxu0  ;;  %v113_v23 = vmul.f32 %v107_v21, %v107_v21 }
 0x214   :  { %v110_v24 = vpop.f32.mrb[2].mxu0 }
 0x215   :  { %v158_v25 = vpop.f32.mrb[3].mxu0  ;;  %v115_v26 = vsel %vm114_vm3, %v113_v23, 0.0 }
 0x216   :  { %116 = vadd.xlane.f32.xlu1 %v115_v26 }
 0x2a3   :  { %v117_v27 = vpop.xlane.xlu1 %116 }
 0x2a4   :  { %v118_v28 = vadd.f32 1e-12, %v117_v27 }
 0x2a6   :  { %166 = vrsqrt.f32 %v118_v28  ;;  %vm121_vm4 = vcmp.eq.f32.partialorder %v118_v28, inf  ;;  %v124_v31 = vand.u32 2147483648, %v118_v28  ;;  %vm123_vm5 = vcmp.eq.f32.partialorder %v118_v28, 0.0 }
 0x2b0   :  { %v167_v29 = vpop.eup %166 }
 0x2b1   :  { %v120_v30 = vmul.f32 %v167_v29, %v118_v28 }
 0x2b3   :  { %v122_v32 = vsel %vm121_vm4, %v118_v28, %v120_v30 }
 0x2b4   :  { %v125_v33 = vsel %vm123_vm5, %v124_v31, %v122_v32 }
 0x2b5   :  { %168 = vrcp.f32 %v125_v33 }
 0x2bf   :  { %v169_v34 = vpop.eup %168 }
 0x2c0   :  { %v127_v35 = vmul.f32 %v169_v34, %v107_v21 }
 0x2c2   :  { %128 = vst.msk [vmem:[#allocation2] sm:$0x3] %vm114_vm3, %v127_v35 }
 0x2c3   :  { %181 = shalt.err (!%p178_p4)
}
 0x2c4   :  { %s182_s26 = scalar_lea.hbm %s255_s4, 32 }
 0x2c5   :  { %p183_p5 = scmp.ne.s32.totalorder %s255_s4, %s182_s26  ;;  %p186_p6 = scmp.lt.u32.totalorder %s182_s26, %s255_s4 }
 0x2c7   :  { %p188_p7 = pnand %p186_p6, %p183_p5 }
 0x2c9   :  { %191 = shalt.err (!%p188_p7)
}
 0x2ca   :  { %138 = dma.vmem_to_hbm [thread:$0]  %s136_s2, 32, %s255_s4, [#allocation3]  }
 0x2cb   :  { %192 = dma.done.wait [#allocation3], 32  }
 0x2cc   :  { %193 = vsyncadd [#allocation3], 4294967264 }
 0x2cd   :  { %142 = vsyncpa [#allocation3], 1 }

// kernel: clip_encode_image.14
= control target key start
LH: loop header
LB: loop body
LE: loop exit
PB: predicated region body
PF: predicated region fallthrough
CT: control target
= control target key end

     0   :  { %6 = vsyncpa [#allocation3], 0  ;;  %s5604_s0 = inlined_call_operand.hbm [shape: bf16[2,128,96], index: 0, kind: input, shape index: {}]   ;;  %s5605_s1 = inlined_call_operand.hbm [shape: bf16[2,128,32], index: 1, kind: output, shape index: {}]  }
   0x1   :  { %8 = vsyncpa [#allocation3 + $0x1], 0 }
   0x2   :  { %9 = vsyncpa [#allocation4], 0 }
   0x3   :  { %11 = vsyncpa [#allocation4 + $0x1], 0  ;;  %s4080_s6 = smov 0   ;;  %s4082_s7 = smov 0  }
   0x4   :  { %s4084_s8 = smov 0   ;;  %s4086_s9 = smov 0  }
   0x5 LB: > { %s4101_s10 = sadd.s32 4294967295, %s4049_s9   ;;  %s2946_s11 = sadd.s32 4294967294, %s4049_s9   ;;  %s4049_s9 = sphi %s4086_s9, %s5622_s9   ;;  %s4045_s8 = sphi %s4084_s8, %s5621_s8   ;;  %s4041_s7 = sphi %s4082_s7, %s5620_s7   ;;  %s4037_s6 = sphi %s4080_s6, %s5619_s6  }
   0x6   : > { %s4105_s12 = sadd.s32 1, %s4049_s9   ;;  %s24_s13 = sadd.s32 1, %s4045_s8 }
   0x7   : > { %s21_s14 = ssub.s32 %s4049_s9, %s4105_s12  ;;  %p31_p0 = scmp.ne.s32.totalorder %s4045_s8, %s4041_s7 }
   0x8   : > { %p22_p1 = scmp.eq.s32.totalorder %s21_s14, 0  ;;  %p32_p2 = scmp.eq.s32.totalorder %s4049_s9, 0 }
   0x9   : > { %p37_p3 = scmp.ne.s32.totalorder %s4041_s7, %s4037_s6  ;;  %p38_p4 = scmp.eq.s32.totalorder %s4101_s10, 0 }
   0xa   : > { %s4117_s15 = scalar_select %p22_p1, %s4045_s8, %s24_s13  }
   0xb   : > { %p4119_p5 = por %p32_p2, %p31_p0  ;;  %p4123_p6 = por %p38_p4, %p37_p3 }
   0xc   : > { %p61_p7 = scmp.eq.s32.totalorder %s4101_s10, 1  ;;  %p67_p8 = scmp.eq.s32.totalorder %s2946_s11, 1 }
   0xd   : > { %p3614_p10 = scmp.lt.s32.totalorder %s4049_s9, 2  ;;  %s87_s20 = sand.u32 1, %s4045_s8  }
   0xe   : > { %p4130_p11 = por %p61_p7, %p31_p0  ;;  %p4134_p12 = por %p67_p8, %p37_p3 }
   0xf   : > { %s3120_s21 = sshll.u32 %s4049_s9, 10  ;;  %s2949_s22 = sshll.u32 %s87_s20, 6 }
  0x10   : > { %s5609_s18 = scalar_select %p4130_p11, 1, 0 }
  0x11   : > { %s5610_s19 = scalar_select %p4134_p12, 1, 0 }
  0x12   : > { %s4143_s25 = scalar_lea.hbm %s5604_s0, %s3120_s21  ;;  %s91_s26 = scalar_lea.vmem [#allocation2], %s2949_s22 }
  0x13   : > { %s98_s27 = sshll.u32 %s91_s26, 4  ;;  %p4147_p13 = pnand %p3614_p10, %p4119_p5  ;;  %s4151_s27 = int_to_ptr.vmem [resolvable:$true] %s98_s27 }
  0x14   : > { %s4153_s29 = scalar_lea.sflag [#allocation3], %s87_s20  ;;  %s3953_s30 = scalar_lea.hbm %s4143_s25, 1024 }
  0x15   : > { %p3954_p0 = scmp.ne.s32.totalorder %s4143_s25, %s3953_s30  ;;  %p3955_p1 = pneg %p4147_p13 }
  0x16   : > { %s3958_s4 = scalar_lea.hbm %s5604_s0, 2048  ;;  %p3959_p4 = scmp.lt.u32.totalorder %s4143_s25, %s5604_s0 }
  0x17   : > { %p3956_p2 = pnand %p3955_p1, %p3954_p0  ;;  %p3960_p5 = scmp.lt.u32.totalorder %s3958_s4, %s3953_s30 }
  0x18   : > { %p3962_p8 = scmp.lt.u32.totalorder %s3953_s30, %s4143_s25 }
  0x19   : > { %p3957_p3 = pneg %p3956_p2  ;;  %p3961_p7 = por %p3960_p5, %p3959_p4 }
  0x1b   : > { %p3963_p10 = por %p3962_p8, %p3961_p7 }
  0x1d   : > { %p3964_p9 = pnand %p3963_p10, %p3957_p3 }
  0x1f   : > { %3967 = shalt.err (!%p3964_p9)
}
  0x20   : > { %s3968_s13 = scalar_lea.vmem %s4151_s27, 1024  ;;  %s4051_s14 = smov [#allocation2]  }
  0x21   : > { %p3969_p0 = scmp.ne.s32.totalorder %s4151_s27, %s3968_s13  ;;  %s3973_s16 = sshll.u32 %s4051_s14, 4  ;;  %s3974_s16 = int_to_ptr.vmem [resolvable:$false] %s3973_s16 }
  0x22   : > { %s3975_s20 = scalar_lea.vmem %s3974_s16, 2048  ;;  %p3976_p11 = scmp.lt.s32.totalorder %s4151_s27, %s3974_s16 }
  0x23   : > { %p3971_p2 = pnand %p3969_p0, %p3955_p1  ;;  %p3977_p4 = scmp.lt.s32.totalorder %s3975_s20, %s3968_s13 }
  0x25   : > { %p3972_p12 = pneg %p3971_p2  ;;  %p3978_p5 = por %p3977_p4, %p3976_p11 }
  0x27   : > { %p3979_p7 = pnand %p3978_p5, %p3972_p12 }
  0x29   : > { %3982 = shalt.err (!%p3979_p7)
}
  0x2a   : > { %s4052_s21 = smov 64   ;;  %s4053_s22 = smov 4  }
  0x2b   : > { %3609 = dma.hbm_to_vmem [thread:$0]  (!%p4147_p13), %s4143_s25, 1024, %s4151_s27, %s4153_s29, %s4052_s21, %s4052_s21, %s4053_s22  }
  0x2c   : > { %p2952_p9 = scmp.ge.s32.totalorder %s4049_s9, 1  ;;  %p106_p1 = scmp.lt.s32.totalorder %s4049_s9, 3 }
  0x2e   : > { %p107_p3 = pnand %p2952_p9, %p106_p1 }
  0x30   : > { %110 = sbr.rel (%p107_p3) target bundleno = 3206 (0xc86), region = 24 }
  0x37   : > { %s4184_s23 = sand.u32 1, %s4041_s7  }
  0x38   : > { %s2953_s24 = sshll.u32 %s4184_s23, 6  ;;  %s113_s26 = scalar_lea.sflag [#allocation3], %s4184_s23 }
  0x39   : > { %s4190_s30 = scalar_lea.vmem [#allocation2], %s2953_s24 }
  0x3a   : > { %4028 = dma.done.wait (%p4123_p6), %s113_s26, 1024  }
  0x3b   : > { %4030 = vsyncadd (%p4123_p6), %s113_s26, 4294966272  ;;  %v140_v0 = vld [vmem:[%s4190_s30] sm:$0xf]  ;;  %v141_v1 = vld [vmem:[%s4190_s30 + $0x4] sm:$0xf]  ;;  %s4054_s17 = smov 96  }
  0x3c   : > { %v142_v2 = vld [vmem:[%s4190_s30 + $0x8] sm:$0xf]  ;;  %v2963_v3 = vcombine.low %v140_v0, %v141_v1  ;;  %v143_v4 = vld [vmem:[%s4190_s30 + $0xc] sm:$0xf]  ;;  %v144_v5 = vld [vmem:[%s4190_s30 + $0x10] sm:$0xf] }
  0x3d   : > { %v145_v6 = vld [vmem:[%s4190_s30 + $0x14] sm:$0xf]  ;;  %v160_v7 = vmul.bf16 1052065461, %v144_v5  ;;  %v2964_v8 = vcombine.low %v142_v2, %v143_v4  ;;  %v146_v11 = vld [vmem:[%s4190_s30 + $0x18] sm:$0xf] }
  0x3e   : > { %252 = vrot.lane.b32.xlu0 %v2963_v3, %s4054_s17  ;;  %v161_v9 = vmul.bf16 1052065461, %v145_v6  ;;  %v2965_v10 = vcombine.low %v144_v5, %v145_v6  ;;  %v147_v12 = vld [vmem:[%s4190_s30 + $0x1c] sm:$0xf]  ;;  %v148_v13 = vld [vmem:[%s4190_s30 + $0x20] sm:$0xf] }
  0x3f   : > { %v2966_v15 = vcombine.low %v146_v11, %v147_v12  ;;  %v149_v16 = vld [vmem:[%s4190_s30 + $0x24] sm:$0xf]  ;;  %v150_v17 = vld [vmem:[%s4190_s30 + $0x28] sm:$0xf]  ;;  %v151_v18 = vld [vmem:[%s4190_s30 + $0x2c] sm:$0xf] }
  0x40   : > { %256 = vrot.lane.b32.xlu1 %v2965_v10, %s4054_s17  ;;  %v4205_v14 = vcombine.low %v160_v7, %v161_v9  ;;  %v2967_v19 = vcombine.low %v148_v13, %v149_v16  ;;  %v152_v20 = vld [vmem:[%s4190_s30 + $0x30] sm:$0xf]  ;;  %v153_v21 = vld [vmem:[%s4190_s30 + $0x34] sm:$0xf]  ;;  %v2968_v22 = vcombine.low %v150_v17, %v151_v18  ;;  %v154_v23 = vld [vmem:[%s4190_s30 + $0x38] sm:$0xf] }
  0x41   : > { %v155_v24 = vld [vmem:[%s4190_s30 + $0x3c] sm:$0xf]  ;;  %v2969_v25 = vcombine.low %v152_v20, %v153_v21  ;;  %v158_v27 = vmul.bf16 1052065461, %v142_v2  ;;  %v159_v28 = vmul.bf16 1052065461, %v143_v4 }
  0x42   : > { %254 = vrot.lane.b32.xlu0 %v2964_v8, %s4054_s17  ;;  %v2970_v26 = vcombine.low %v154_v23, %v155_v24  ;;  %v156_v29 = vmul.bf16 1052065461, %v140_v0  ;;  %v157_v30 = vmul.bf16 1052065461, %v141_v1  ;;  %vm268_vm0 = vcmask 64512   ;;  %s4055_s25 = smov 64  }
  0x43   : > { %v2956_v31 = vcombine.low %v158_v27, %v159_v28  ;;  %v162_v33 = vmul.bf16 1052065461, %v146_v11  ;;  %v163_v34 = vmul.bf16 1052065461, %v147_v12  ;;  %v164_v36 = vmul.bf16 1052065461, %v148_v13 }
  0x44   : > { %258 = vrot.lane.b32.xlu1 %v2966_v15, %s4054_s17  ;;  %v2955_v32 = vcombine.low %v156_v29, %v157_v30  ;;  %v165_v37 = vmul.bf16 1052065461, %v149_v16  ;;  %v166_v38 = vmul.bf16 1052065461, %v150_v17  ;;  %v167_v39 = vmul.bf16 1052065461, %v151_v18 }
  0x45   : > { %v2958_v35 = vcombine.low %v162_v33, %v163_v34  ;;  %v168_v42 = vmul.bf16 1052065461, %v152_v20  ;;  %v169_v43 = vmul.bf16 1052065461, %v153_v21  ;;  %v170_v44 = vmul.bf16 1052065461, %v154_v23 }
  0x46   : > { %260 = vrot.lane.b32.xlu0 %v2967_v19, %s4054_s17  ;;  %3330 = vmatprep.mubr.msk.bf16.mxu0 %vm268_vm0, %v2955_v32  ;;  %v2959_v40 = vcombine.low %v164_v36, %v165_v37  ;;  %v2960_v41 = vcombine.low %v166_v38, %v167_v39  ;;  %v171_v45 = vmul.bf16 1052065461, %v155_v24  ;;  %v4265_v23 = vld [vmem:[%s4190_s30 + $0xc] sm:$0xf]  ;;  %s4056_s27 = smov 88   ;;  %s4057_s28 = smov 120  }
  0x47   : > { %v2961_v46 = vcombine.low %v168_v42, %v169_v43  ;;  %v4274_v30 = vld [vmem:[%s4190_s30] sm:$0xf]  ;;  %s4058_s29 = smov 56   ;;  %vm769_vm2 = vcmask 60416   ;;  %s4528_s2 = scalar_lea.vmem [#allocation5], %s2953_s24  ;;  %vm1460_vm3 = vcmask 126016  }
  0x48   : > { %262 = vrot.lane.b32.xlu1 %v2968_v22, %s4054_s17  ;;  %v2962_v47 = vcombine.low %v170_v44, %v171_v45  ;;  %s4059_s3 = smov 80   ;;  %s4060_s4 = smov 112   ;;  %vm2151_vm4 = vcmask 191616   ;;  %vm2842_vm5 = vcmask 257216  }
  0x49   : > { %s4061_s5 = smov 48   ;;  %s4062_s11 = smov 72  }
  0x4a   : > { %264 = vrot.lane.b32.xlu0 %v2969_v25, %s4054_s17  ;;  %s4063_s13 = smov 104   ;;  %s4064_s14 = smov 40  }
  0x4b   : > { %s4065_s16 = smov 8   ;;  %s4066_s20 = smov 16  }
  0x4c   : > { %266 = vrot.lane.b32.xlu1 %v2970_v26, %s4054_s17  ;;  %s4067_s21 = smov 24   ;;  %s3185_s22 = sshll.u32 %s4101_s10, 10 }
  0x4d   : > { %s2873_s24 = sshll.u32 %s4528_s2, 4  ;;  %s5552_s17 = scalar_lea.hbm %s5605_s1, %s3185_s22  ;;  %s5556_s24 = int_to_ptr.vmem [resolvable:$true] %s2873_s24 }
  0x4e   : > { %586 = vrot.lane.b32.xlu0 %v2964_v8, %s4055_s25  ;;  %v137_v8 = vlaneseq  ;;  %s2860_s10 = scalar_lea.sflag [#allocation4], %s4184_s23  ;;  %p5616_p11 = scmp.ne.s32.totalorder %s5609_s18, 0 }
  0x50   : > { %584 = vrot.lane.b32.xlu1 %v2963_v3, %s4055_s25  ;;  %v4247_v9 = vand.u32 127, %v137_v8 }
  0x52   : > { %590 = vrot.lane.b32.xlu0 %v2966_v15, %s4055_s25  ;;  %vm139_vm1 = vcmp.lt.s32.totalorder %v4247_v9, 5 }
  0x54   : > { %588 = vrot.lane.b32.xlu1 %v2965_v10, %s4055_s25 }
  0x58   : > { %592 = vrot.lane.b32.xlu1 %v2967_v19, %s4055_s25 }
  0x5c   : > { %594 = vrot.lane.b32.xlu1 %v2968_v22, %s4055_s25  ;;  %v4262_v22 = vld [vmem:[%s4190_s30 + $0x8] sm:$0xf] }
  0x60   : > { %596 = vrot.lane.b32.xlu1 %v2969_v25, %s4055_s25 }
  0x64   : > { %598 = vrot.lane.b32.xlu1 %v2970_v26, %s4055_s25  ;;  %v4269_v26 = vcombine.low %v4262_v22, %v4265_v23 }
  0xb0   : > { %v253_v48 = vpop.permute.xlu0 %252 }
  0xb1   : > { %3570 = vmatprep.subr.msk.bf16.mxu0 %vm268_vm0, %v253_v48  ;;  %v294_v49 = vsel %vm268_vm0, %v253_v48, 0  ;;  %v4334_v48 = vld [vmem:[%s4190_s30 + $0x10] sm:$0xf] }
  0xb2   : > { %3315 = vmatpush3.bf16.xpose.msra.mxu0 %v294_v49  ;;  %v257_v52 = vpop.permute.xlu1 %256  ;;  %v4337_v49 = vld [vmem:[%s4190_s30 + $0x14] sm:$0xf] }
  0xb3   : > { %v300_v53 = vsel %vm268_vm0, %v257_v52, 0 }
  0xb4   : > { %v255_v50 = vpop.permute.xlu0 %254 }
  0xb5   : > { %3571 = vmatprep.subr.msk.bf16.mxu0 %vm268_vm0, %v255_v50  ;;  %v297_v51 = vsel %vm268_vm0, %v255_v50, 0  ;;  %v4341_v50 = vcombine.low %v4334_v48, %v4337_v49 }
  0xb6   : > { %v259_v54 = vpop.permute.xlu1 %258 }
  0xb7   : > { %v303_v55 = vsel %vm268_vm0, %v259_v54, 0 }
  0xb8   : > { %v261_v56 = vpop.permute.xlu0 %260 }
  0xb9   : > { %v306_v57 = vsel %vm268_vm0, %v261_v56, 0 }
  0xba   : > { %3317 = vmatpush3.bf16.xpose.msra.mxu0 %v297_v51  ;;  %v263_v58 = vpop.permute.xlu1 %262 }
  0xbb   : > { %3572 = vmatprep.subr.msk.bf16.mxu0 %vm268_vm0, %v257_v52  ;;  %v309_v59 = vsel %vm268_vm0, %v263_v58, 0 }
  0xbc   : > { %v265_v60 = vpop.permute.xlu0 %264 }
  0xbd   : > { %v312_v61 = vsel %vm268_vm0, %v265_v60, 0 }
  0xbe   : > { %v267_v62 = vpop.permute.xlu1 %266 }
  0xbf   : > { %v315_v63 = vsel %vm268_vm0, %v267_v62, 0 }
  0xc0   : > { %v587_v1 = vpop.permute.xlu0 %586 }
  0xc2   : > { %3319 = vmatpush3.bf16.xpose.msra.mxu0 %v300_v53  ;;  %v585_v0 = vpop.permute.xlu1 %584 }
  0xc3   : > { %3573 = vmatprep.subr.msk.bf16.mxu0 %vm268_vm0, %v259_v54  ;;  %3346 = vmatprep.subr.bf16.mxu1 %v585_v0 }
  0xc4   : > { %3347 = vmatpush3.bf16.msra.mxu1 %v585_v0  ;;  %v591_v3 = vpop.permute.xlu0 %590 }
  0xc5   : > { %3348 = vmatprep.subr.bf16.mxu1 %v587_v1 }
  0xc6   : > { %v589_v2 = vpop.permute.xlu1 %588 }
  0xc8   : > { %3349 = vmatpush3.bf16.msra.mxu1 %v587_v1 }
  0xc9   : > { %3350 = vmatprep.subr.bf16.mxu1 %v589_v2 }
  0xca   : > { %3321 = vmatpush3.bf16.xpose.msra.mxu0 %v303_v55  ;;  %v593_v4 = vpop.permute.xlu1 %592 }
  0xcb   : > { %3574 = vmatprep.subr.msk.bf16.mxu0 %vm268_vm0, %v261_v56 }
  0xcc   : > { %3351 = vmatpush3.bf16.msra.mxu1 %v589_v2 }
  0xcd   : > { %3352 = vmatprep.subr.bf16.mxu1 %v591_v3 }
  0xce   : > { %v595_v5 = vpop.permute.xlu1 %594 }
  0xd0   : > { %3353 = vmatpush3.bf16.msra.mxu1 %v591_v3 }
  0xd1   : > { %3354 = vmatprep.subr.bf16.mxu1 %v593_v4 }
  0xd2   : > { %3323 = vmatpush3.bf16.xpose.msra.mxu0 %v306_v57  ;;  %v597_v6 = vpop.permute.xlu1 %596 }
  0xd3   : > { %3575 = vmatprep.subr.msk.bf16.mxu0 %vm268_vm0, %v263_v58 }
  0xd4   : > { %3355 = vmatpush3.bf16.msra.mxu1 %v593_v4 }
  0xd5   : > { %3356 = vmatprep.subr.bf16.mxu1 %v595_v5 }
  0xd6   : > { %v599_v7 = vpop.permute.xlu1 %598 }
  0xd8   : > { %3357 = vmatpush3.bf16.msra.mxu1 %v595_v5 }
  0xd9   : > { %3358 = vmatprep.subr.bf16.mxu1 %v597_v6 }
  0xda   : > { %3325 = vmatpush3.bf16.xpose.msra.mxu0 %v309_v59 }
  0xdb   : > { %3576 = vmatprep.subr.msk.bf16.mxu0 %vm268_vm0, %v265_v60 }
  0xdc   : > { %3359 = vmatpush3.bf16.msra.mxu1 %v597_v6 }
  0xdd   : > { %3360 = vmatprep.subr.bf16.mxu1 %v599_v7 }
  0xe0   : > { %3361 = vmatpush3.bf16.msra.mxu1 %v599_v7 }
  0xe2   : > { %3327 = vmatpush3.bf16.xpose.msra.mxu0 %v312_v61 }
  0xe3   : > { %3577 = vmatprep.subr.msk.bf16.mxu0 %vm268_vm0, %v267_v62 }
  0xea   : > { %3329 = vmatpush3.bf16.xpose.msra.mxu0 %v315_v63 }
  0xf1   : > { %3331 = vmatmul.mubr.msk.bf16.vlgmr.msra.gmra.mrb[0].mxu0 %vm268_vm0, %v2956_v31  ;;  %v4277_v31 = vld [vmem:[%s4190_s30 + $0x4] sm:$0xf] }
  0xf2   : > { %3334 = vmatprep.mubr.msk.bf16.mxu0 %vm268_vm0, %v4205_v14 }
  0xf9   : > { %3335 = vmatmul.mubr.msk.bf16.gmra.mrb[4].mxu0 %vm268_vm0, %v2958_v35  ;;  %v4281_v35 = vcombine.low %v4274_v30, %v4277_v31 }
  0xfa   : > { %3338 = vmatprep.mubr.msk.bf16.mxu0 %vm268_vm0, %v2959_v40 }
 0x101   : > { %3339 = vmatmul.mubr.msk.bf16.gmra.mrb[8].mxu0 %vm268_vm0, %v2960_v41 }
 0x102   : > { %3342 = vmatprep.mubr.msk.bf16.mxu0 %vm268_vm0, %v2961_v46 }
 0x109   : > { %3343 = vmatmul.mubr.msk.bf16.gmra.mrb[12].mxu0 %vm268_vm0, %v2962_v47 }
 0x1c4   : > { %v3332_v10 = vpop.f32.mrb[0].mxu0 }
 0x1c5   : > { %v351_v11 = vpop.f32.mrb[1].mxu0  ;;  %v418_v12 = vsel %vm139_vm1, %v3332_v10, -1e+30 }
 0x1c6   : > { %436 = vmax.xlane.f32.xlu0 %v418_v12  ;;  %v3333_v13 = vpop.f32.mrb[2].mxu0  ;;  %v416_v16 = vsel %vm139_vm1, %v351_v11, -1e+30 }
 0x1c7   : > { %v354_v14 = vpop.f32.mrb[3].mxu0  ;;  %v419_v18 = vsel %vm139_vm1, %v3333_v13, -1e+30 }
 0x1c8   : > { %v4254_v15 = vsel %vm139_vm1, %v354_v14, -1e+30 }
 0x1c9   : > { %434 = vmax.xlane.f32.xlu1 %v4254_v15 }
 0x1ca   : > { %432 = vmax.xlane.f32.xlu0 %v416_v16 }
 0x1cc   : > { %v3336_v17 = vpop.f32.mrb[4].mxu0 }
 0x1cd   : > { %v367_v19 = vpop.f32.mrb[5].mxu0  ;;  %v422_v36 = vsel %vm139_vm1, %v3336_v17, -1e+30 }
 0x1ce   : > { %438 = vmax.xlane.f32.xlu0 %v419_v18  ;;  %v3337_v20 = vpop.f32.mrb[6].mxu0  ;;  %v420_v37 = vsel %vm139_vm1, %v367_v19, -1e+30 }
 0x1cf   : > { %v370_v21 = vpop.f32.mrb[7].mxu0  ;;  %v423_v38 = vsel %vm139_vm1, %v3337_v20, -1e+30 }
 0x1d0   : > { %v421_v40 = vsel %vm139_vm1, %v370_v21, -1e+30 }
 0x1d4   : > { %v3340_v24 = vpop.f32.mrb[8].mxu0 }
 0x1d5   : > { %v383_v25 = vpop.f32.mrb[9].mxu0  ;;  %v4293_v39 = vsel %vm139_vm1, %v3340_v24, -1e+30  ;;  %v4377_v24 = vld [vmem:[%s4190_s30 + $0x18] sm:$0xf] }
 0x1d6   : > { %v3341_v27 = vpop.f32.mrb[10].mxu0  ;;  %v4300_v41 = vsel %vm139_vm1, %v383_v25, -1e+30  ;;  %v4380_v25 = vld [vmem:[%s4190_s30 + $0x1c] sm:$0xf] }
 0x1d7   : > { %v386_v28 = vpop.f32.mrb[11].mxu0  ;;  %v4304_v42 = vsel %vm139_vm1, %v3341_v27, -1e+30 }
 0x1d8   : > { %v4314_v44 = vsel %vm139_vm1, %v386_v28, -1e+30  ;;  %v4384_v28 = vcombine.low %v4377_v24, %v4380_v25 }
 0x1da   : > { %916 = vrot.lane.b32.xlu1 %v4269_v26, %s4056_s27 }
 0x1dc   : > { %v3344_v29 = vpop.f32.mrb[12].mxu0 }
 0x1dd   : > { %v399_v32 = vpop.f32.mrb[13].mxu0  ;;  %v4310_v43 = vsel %vm139_vm1, %v3344_v29, -1e+30  ;;  %v794_v29 = vld [vmem:[%s4190_s30 + $0x20] sm:$0xf] }
 0x1de   : > { %v3345_v33 = vpop.f32.mrb[14].mxu0  ;;  %v4320_v45 = vsel %vm139_vm1, %v399_v32, -1e+30  ;;  %v795_v32 = vld [vmem:[%s4190_s30 + $0x24] sm:$0xf] }
 0x1df   : > { %v402_v34 = vpop.f32.mrb[15].mxu0  ;;  %v4324_v46 = vsel %vm139_vm1, %v3345_v33, -1e+30  ;;  %v4390_v33 = vcombine.low %v794_v29, %v795_v32 }
 0x1e0   : > { %v4330_v47 = vsel %vm139_vm1, %v402_v34, -1e+30  ;;  %v4393_v34 = vld [vmem:[%s4190_s30 + $0x28] sm:$0xf] }
 0x1e4   : > { %914 = vrot.lane.b32.xlu0 %v4281_v35, %s4056_s27 }
 0x1fe   : > { %444 = vmax.xlane.f32.xlu1 %v422_v36 }
 0x202   : > { %440 = vmax.xlane.f32.xlu1 %v420_v37 }
 0x203   : > { %446 = vmax.xlane.f32.xlu0 %v423_v38 }
 0x206   : > { %452 = vmax.xlane.f32.xlu1 %v4293_v39 }
 0x207   : > { %442 = vmax.xlane.f32.xlu0 %v421_v40 }
 0x20a   : > { %448 = vmax.xlane.f32.xlu1 %v4300_v41 }
 0x20b   : > { %454 = vmax.xlane.f32.xlu0 %v4304_v42 }
 0x20e   : > { %460 = vmax.xlane.f32.xlu1 %v4310_v43 }
 0x20f   : > { %450 = vmax.xlane.f32.xlu0 %v4314_v44 }
 0x212   : > { %456 = vmax.xlane.f32.xlu1 %v4320_v45 }
 0x213   : > { %462 = vmax.xlane.f32.xlu0 %v4324_v46 }
 0x217   : > { %458 = vmax.xlane.f32.xlu0 %v4330_v47 }
 0x223   : > { %918 = vrot.lane.b32.xlu1 %v4341_v50, %s4056_s27 }
 0x253   : > { %v437_v51 = vpop.xlane.xlu0 %436 }
 0x254   : > { %v466_v52 = vsub.f32 %v418_v12, %v437_v51 }
 0x256   : > { %v484_v53 = vmul.f32 1.442695, %v466_v52  ;;  %v435_v56 = vpop.xlane.xlu1 %434 }
 0x257   : > { %v433_v54 = vpop.xlane.xlu0 %432  ;;  %v465_v59 = vsub.f32 %v4254_v15, %v435_v56 }
 0x258   : > { %3697 = vpow2.f32 %v484_v53  ;;  %v464_v55 = vsub.f32 %v416_v16, %v433_v54 }
 0x259   : > { %v482_v63 = vmul.f32 1.442695, %v465_v59 }
 0x25a   : > { %v480_v57 = vmul.f32 1.442695, %v464_v55  ;;  %v4362_v4 = vpop.permute.xlu1 %916 }
 0x25b   : > { %v439_v58 = vpop.xlane.xlu0 %438 }
 0x25c   : > { %3699 = vpow2.f32 %v480_v57  ;;  %v467_v60 = vsub.f32 %v419_v18, %v439_v58 }
 0x25e   : > { %v486_v61 = vmul.f32 1.442695, %v467_v60 }
 0x25f   : > { %v4346_v62 = vpop.permute.xlu0 %914 }
 0x260   : > { %3701 = vpow2.f32 %v486_v61  ;;  %3578 = vmatprep.subr.msk.bf16.mxu1 %vm268_vm0, %v4346_v62 }
 0x261   : > { %3703 = vpow2.f32 %v482_v63 }
 0x262   : > { %v4350_v0 = vpop.eup %3697 }
 0x263   : > { %516 = vadd.xlane.f32.xlu0 %v4350_v0 }
 0x266   : > { %v4353_v1 = vpop.eup %3699 }
 0x267   : > { %512 = vadd.xlane.f32.xlu1 %v4353_v1 }
 0x26a   : > { %v4356_v2 = vpop.eup %3701 }
 0x26b   : > { %518 = vadd.xlane.f32.xlu0 %v4356_v2  ;;  %v4359_v3 = vpop.eup %3703 }
 0x26f   : > { %514 = vadd.xlane.f32.xlu0 %v4359_v3 }
 0x28b   : > { %v445_v5 = vpop.xlane.xlu1 %444 }
 0x28c   : > { %v470_v6 = vsub.f32 %v422_v36, %v445_v5  ;;  %v4396_v36 = vld [vmem:[%s4190_s30 + $0x2c] sm:$0xf] }
 0x28e   : > { %v492_v7 = vmul.f32 1.442695, %v470_v6 }
 0x28f   : > { %v441_v8 = vpop.xlane.xlu1 %440 }
 0x290   : > { %3705 = vpow2.f32 %v492_v7  ;;  %v468_v10 = vsub.f32 %v420_v37, %v441_v8  ;;  %v447_v11 = vpop.xlane.xlu0 %446 }
 0x291   : > { %v471_v12 = vsub.f32 %v423_v38, %v447_v11  ;;  %v4402_v38 = vcombine.low %v4393_v34, %v4396_v36 }
 0x292   : > { %v488_v13 = vmul.f32 1.442695, %v468_v10 }
 0x293   : > { %v494_v14 = vmul.f32 1.442695, %v471_v12  ;;  %v453_v52 = vpop.xlane.xlu1 %452  ;;  %v4426_v12 = vld [vmem:[%s4190_s30 + $0x38] sm:$0xf] }
 0x294   : > { %3707 = vpow2.f32 %v488_v13  ;;  %v443_v15 = vpop.xlane.xlu0 %442  ;;  %v474_v54 = vsub.f32 %v4293_v39, %v453_v52  ;;  %v4429_v13 = vld [vmem:[%s4190_s30 + $0x3c] sm:$0xf] }
 0x295   : > { %v469_v16 = vsub.f32 %v421_v40, %v443_v15  ;;  %3709 = vpow2.f32 %v494_v14  ;;  %v4434_v14 = vcombine.low %v4426_v12, %v4429_v13  ;;  %v810_v15 = vmul.bf16 1052065461, %v794_v29 }
 0x296   : > { %v500_v57 = vmul.f32 1.442695, %v474_v54 }
 0x297   : > { %v490_v17 = vmul.f32 1.442695, %v469_v16  ;;  %v449_v55 = vpop.xlane.xlu1 %448  ;;  %v811_v16 = vmul.bf16 1052065461, %v795_v32 }
 0x298   : > { %v455_v27 = vpop.xlane.xlu0 %454  ;;  %v472_v58 = vsub.f32 %v4300_v41, %v449_v55 }
 0x299   : > { %3711 = vpow2.f32 %v490_v17  ;;  %v475_v60 = vsub.f32 %v4304_v42, %v455_v27  ;;  %v799_v27 = vld [vmem:[%s4190_s30 + $0x34] sm:$0xf] }
 0x29a   : > { %v4364_v18 = vpop.eup %3705  ;;  %v496_v59 = vmul.f32 1.442695, %v472_v58 }
 0x29b   : > { %524 = vadd.xlane.f32.xlu0 %v4364_v18  ;;  %v461_v61 = vpop.xlane.xlu1 %460  ;;  %v502_v63 = vmul.f32 1.442695, %v475_v60 }
 0x29c   : > { %v451_v37 = vpop.xlane.xlu0 %450  ;;  %v478_v39 = vsub.f32 %v4310_v43, %v461_v61 }
 0x29d   : > { %v473_v5 = vsub.f32 %v4314_v44, %v451_v37  ;;  %v2999_v37 = vcombine.low %v810_v15, %v811_v16  ;;  %v804_v15 = vmul.bf16 1052065461, %v4262_v22 }
 0x29e   : > { %v4367_v19 = vpop.eup %3707  ;;  %v508_v42 = vmul.f32 1.442695, %v478_v39  ;;  %v803_v39 = vmul.bf16 1052065461, %v4277_v31  ;;  %v955_v31 = vsel %vm268_vm0, %v4346_v62, 0  ;;  %v958_v62 = vsel %vm268_vm0, %v4362_v4, 0 }
 0x29f   : > { %520 = vadd.xlane.f32.xlu0 %v4367_v19  ;;  %v4370_v20 = vpop.eup %3709  ;;  %v457_v41 = vpop.xlane.xlu1 %456 }
 0x2a0   : > { %v463_v40 = vpop.xlane.xlu0 %462  ;;  %v476_v8 = vsub.f32 %v4320_v45, %v457_v41 }
 0x2a1   : > { %v479_v10 = vsub.f32 %v4324_v46, %v463_v40  ;;  %v798_v46 = vld [vmem:[%s4190_s30 + $0x30] sm:$0xf] }
 0x2a2   : > { %v504_v43 = vmul.f32 1.442695, %v476_v8  ;;  %v814_v40 = vmul.bf16 1052065461, %v798_v46 }
 0x2a3   : > { %v4372_v21 = vpop.eup %3711  ;;  %526 = vadd.xlane.f32.xlu0 %v4370_v20  ;;  %v510_v45 = vmul.f32 1.442695, %v479_v10 }
 0x2a4   : > { %522 = vadd.xlane.f32.xlu1 %v4372_v21  ;;  %v459_v51 = vpop.xlane.xlu0 %458 }
 0x2a5   : > { %v477_v53 = vsub.f32 %v4330_v47, %v459_v51  ;;  %v498_v47 = vmul.f32 1.442695, %v473_v5  ;;  %v815_v51 = vmul.bf16 1052065461, %v799_v27  ;;  %v802_v5 = vmul.bf16 1052065461, %v4274_v30 }
 0x2a6   : > { %v805_v30 = vmul.bf16 1052065461, %v4265_v23  ;;  %v808_v23 = vmul.bf16 1052065461, %v4377_v24  ;;  %v816_v24 = vmul.bf16 1052065461, %v4426_v12 }
 0x2a7   : > { %v506_v56 = vmul.f32 1.442695, %v477_v53  ;;  %v3001_v29 = vcombine.low %v814_v40, %v815_v51  ;;  %v919_v53 = vpop.permute.xlu1 %918 }
 0x2a9   : > { %3713 = vpow2.f32 %v506_v56 }
 0x2aa   : > { %3715 = vpow2.f32 %v500_v57 }
 0x2ab   : > { %3717 = vpow2.f32 %v496_v59 }
 0x2ac   : > { %3719 = vpow2.f32 %v502_v63  ;;  %v4454_v63 = vcombine.low %v798_v46, %v799_v27 }
 0x2ad   : > { %3721 = vpow2.f32 %v498_v47 }
 0x2ae   : > { %3723 = vpow2.f32 %v508_v42 }
 0x2af   : > { %3725 = vpow2.f32 %v504_v43 }
 0x2b0   : > { %3727 = vpow2.f32 %v510_v45  ;;  %v2995_v45 = vcombine.low %v802_v5, %v803_v39 }
 0x2b3   : > { %v4411_v6 = vpop.eup %3713 }
 0x2b4   : > { %v4415_v7 = vpop.eup %3715 }
 0x2b5   : > { %920 = vrot.lane.b32.xlu1 %v4384_v28, %s4056_s27  ;;  %v4419_v44 = vpop.eup %3717 }
 0x2b6   : > { %v4423_v11 = vpop.eup %3719 }
 0x2b7   : > { %v4436_v17 = vpop.eup %3721 }
 0x2b8   : > { %v4443_v52 = vpop.eup %3723 }
 0x2b9   : > { %922 = vrot.lane.b32.xlu0 %v4390_v33, %s4056_s27  ;;  %v4447_v32 = vpop.eup %3725 }
 0x2ba   : > { %v4451_v54 = vpop.eup %3727 }
 0x2bd   : > { %924 = vrot.lane.b32.xlu0 %v4402_v38, %s4056_s27 }
 0x2d9   : > { %538 = vadd.xlane.f32.xlu1 %v4411_v6 }
 0x2dc   : > { %532 = vadd.xlane.f32.xlu0 %v4415_v7 }
 0x2e0   : > { %528 = vadd.xlane.f32.xlu0 %v4419_v44 }
 0x2e4   : > { %534 = vadd.xlane.f32.xlu0 %v4423_v11 }
 0x2e8   : > { %530 = vadd.xlane.f32.xlu0 %v4436_v17 }
 0x2ea   : > { %928 = vrot.lane.b32.xlu1 %v4434_v14, %s4056_s27 }
 0x2ec   : > { %540 = vadd.xlane.f32.xlu0 %v4443_v52 }
 0x2ee   : > { %866 = vrot.lane.b32.xlu1 %v2999_v37, %s4057_s28  ;;  %v961_v37 = vsel %vm268_vm0, %v919_v53, 0 }
 0x2f0   : > { %536 = vadd.xlane.f32.xlu0 %v4447_v32  ;;  %v517_v55 = vpop.xlane.xlu0 %516 }
 0x2f2   : > { %870 = vrot.lane.b32.xlu1 %v3001_v29, %s4057_s28 }
 0x2f4   : > { %542 = vadd.xlane.f32.xlu0 %v4451_v54  ;;  %v513_v56 = vpop.xlane.xlu1 %512 }
 0x2f6   : > { %1245 = vrot.lane.b32.xlu1 %v4269_v26, %s4058_s29 }
 0x2f8   : > { %v519_v57 = vpop.xlane.xlu0 %518 }
 0x2f9   : > { %3729 = vrcp.f32 %v519_v57 }
 0x2fa   : > { %3731 = vrcp.f32 %v513_v56  ;;  %1249 = vrot.lane.b32.xlu1 %v4384_v28, %s4058_s29 }
 0x2fb   : > { %3733 = vrcp.f32 %v517_v55 }
 0x2fc   : > { %v515_v58 = vpop.xlane.xlu0 %514 }
 0x2fd   : > { %3735 = vrcp.f32 %v515_v58 }
 0x2fe   : > { %1255 = vrot.lane.b32.xlu1 %v4454_v63, %s4058_s29 }
 0x303   : > { %v3730_v59 = vpop.eup %3729 }
 0x304   : > { %v3732_v60 = vpop.eup %3731  ;;  %v563_v41 = vmul.f32 %v3730_v59, %v4356_v2  ;;  %v807_v2 = vmul.bf16 1052065461, %v4337_v49  ;;  %v813_v49 = vmul.bf16 1052065461, %v4396_v36 }
 0x305   : > { %v3734_v61 = vpop.eup %3733  ;;  %v560_v42 = vmul.f32 %v3732_v60, %v4353_v1  ;;  %v2996_v1 = vcombine.low %v804_v15, %v805_v30 }
 0x306   : > { %v562_v43 = vmul.f32 %v3734_v61, %v4350_v0  ;;  %v806_v0 = vmul.bf16 1052065461, %v4334_v48  ;;  %v812_v48 = vmul.bf16 1052065461, %v4393_v34 }
 0x307   : > { %v3736_v47 = vpop.eup %3735 }
 0x308   : > { %v561_v8 = vmul.f32 %v3736_v47, %v4359_v3  ;;  %v577_v16 = vpack.c.bf16 %v563_v41, %v562_v43  ;;  %v2997_v22 = vcombine.low %v806_v0, %v807_v2  ;;  %v809_v3 = vmul.bf16 1052065461, %v4380_v25 }
 0x309   : > { %v3000_v27 = vcombine.low %v812_v48, %v813_v49  ;;  %v817_v25 = vmul.bf16 1052065461, %v4429_v13 }
 0x30a   : > { %v576_v10 = vpack.c.bf16 %v561_v8, %v560_v42  ;;  %926 = vrot.lane.b32.xlu0 %v4454_v63, %s4056_s27  ;;  %v2998_v46 = vcombine.low %v808_v23, %v809_v3  ;;  %s3983_s27 = scalar_lea.vmem %s5556_s24, 1024 }
 0x30b   : > { %p3984_p6 = scmp.ne.s32.totalorder %s5556_s24, %s3983_s27 }
 0x30c   : > { %3362 = vmatprep.mubr.bf16.mxu1 %v576_v10 }
 0x30d   : > { %3363 = vmatmul.mubr.bf16.vlgmr.msra.gmra.mrb[0].mxu1 %v577_v16  ;;  %p3985_p12 = pnand %p3984_p6, %p5616_p11 }
 0x30e   : > { %3379 = vmatpush3.bf16.xpose.msra.mxu1 %v955_v31  ;;  %858 = vrot.lane.b32.xlu0 %v2995_v45, %s4057_s28 }
 0x30f   : > { %3579 = vmatprep.subr.msk.bf16.mxu1 %vm268_vm0, %v4362_v4  ;;  %v3002_v4 = vcombine.low %v816_v24, %v817_v25  ;;  %p3986_p13 = pneg %p3985_p12 }
 0x312   : > { %860 = vrot.lane.b32.xlu0 %v2996_v1, %s4057_s28 }
 0x316   : > { %3381 = vmatpush3.bf16.xpose.msra.mxu1 %v958_v62  ;;  %862 = vrot.lane.b32.xlu0 %v2997_v22, %s4057_s28 }
 0x317   : > { %3580 = vmatprep.subr.msk.bf16.mxu1 %vm268_vm0, %v919_v53 }
 0x31a   : > { %864 = vrot.lane.b32.xlu0 %v2998_v46, %s4057_s28 }
 0x31e   : > { %3383 = vmatpush3.bf16.xpose.msra.mxu1 %v961_v37  ;;  %868 = vrot.lane.b32.xlu0 %v3000_v27, %s4057_s28 }
 0x322   : > { %872 = vrot.lane.b32.xlu0 %v3002_v4, %s4057_s28  ;;  %s4068_s28 = smov [#allocation5]  }
 0x326   : > { %1243 = vrot.lane.b32.xlu0 %v4281_v35, %s4058_s29 }
 0x328   : > { %v525_v34 = vpop.xlane.xlu0 %524 }
 0x329   : > { %3737 = vrcp.f32 %v525_v34 }
 0x32a   : > { %1247 = vrot.lane.b32.xlu0 %v4341_v50, %s4058_s29 }
 0x32c   : > { %v521_v40 = vpop.xlane.xlu0 %520 }
 0x32d   : > { %3739 = vrcp.f32 %v521_v40 }
 0x32e   : > { %1251 = vrot.lane.b32.xlu0 %v4390_v33, %s4058_s29 }
 0x330   : > { %v527_v36 = vpop.xlane.xlu0 %526 }
 0x331   : > { %3741 = vrcp.f32 %v527_v36  ;;  %v523_v51 = vpop.xlane.xlu1 %522 }
 0x332   : > { %3743 = vrcp.f32 %v523_v51  ;;  %1253 = vrot.lane.b32.xlu0 %v4402_v38, %s4058_s29 }
 0x333   : > { %v3738_v53 = vpop.eup %3737 }
 0x334   : > { %v923_v13 = vpop.permute.xlu0 %922  ;;  %v566_v5 = vmul.f32 %v3738_v53, %v4364_v18 }
 0x335   : > { %v921_v29 = vpop.permute.xlu1 %920  ;;  %v967_v61 = vsel %vm268_vm0, %v923_v13, 0 }
 0x336   : > { %3581 = vmatprep.subr.msk.bf16.mxu1 %vm268_vm0, %v921_v29  ;;  %v964_v12 = vsel %vm268_vm0, %v921_v29, 0  ;;  %1257 = vrot.lane.b32.xlu0 %v4434_v14, %s4058_s29  ;;  %s3987_s29 = sshll.u32 %s4068_s28, 4  ;;  %s3988_s29 = int_to_ptr.vmem [resolvable:$false] %s3987_s29 }
 0x337   : > { %3385 = vmatpush3.bf16.xpose.msra.mxu1 %v964_v12  ;;  %v3740_v55 = vpop.eup %3739  ;;  %p3990_p8 = scmp.lt.s32.totalorder %s5556_s24, %s3988_s29 }
 0x338   : > { %3582 = vmatprep.subr.msk.bf16.mxu1 %vm268_vm0, %v923_v13  ;;  %v564_v59 = vmul.f32 %v3740_v55, %v4367_v19  ;;  %v925_v39 = vpop.permute.xlu0 %924 }
 0x339   : > { %v970_v42 = vsel %vm268_vm0, %v925_v39, 0 }
 0x33b   : > { %v3742_v56 = vpop.eup %3741 }
 0x33c   : > { %v3744_v57 = vpop.eup %3743  ;;  %v567_v58 = vmul.f32 %v3742_v56, %v4370_v20 }
 0x33d   : > { %v565_v60 = vmul.f32 %v3744_v57, %v4372_v21 }
 0x33e   : > { %v579_v41 = vpack.c.bf16 %v567_v58, %v566_v5 }
 0x33f   : > { %3387 = vmatpush3.bf16.xpose.msra.mxu1 %v967_v61  ;;  %v578_v47 = vpack.c.bf16 %v565_v60, %v564_v59 }
 0x340   : > { %3583 = vmatprep.subr.msk.bf16.mxu1 %vm268_vm0, %v925_v39 }
 0x341   : > { %3366 = vmatprep.mubr.bf16.mxu1 %v578_v47 }
 0x342   : > { %3367 = vmatmul.mubr.bf16.gmra.mrb[4].mxu1 %v579_v41 }
 0x347   : > { %3389 = vmatpush3.bf16.xpose.msra.mxu1 %v970_v42 }
 0x366   : > { %v539_v18 = vpop.xlane.xlu1 %538 }
 0x369   : > { %v533_v20 = vpop.xlane.xlu0 %532 }
 0x36a   : > { %v929_v46 = vpop.permute.xlu1 %928 }
 0x36b   : > { %v976_v25 = vsel %vm268_vm0, %v929_v46, 0 }
 0x36d   : > { %v529_v8 = vpop.xlane.xlu0 %528 }
 0x371   : > { %v535_v19 = vpop.xlane.xlu0 %534 }
 0x372   : > { %3745 = vrcp.f32 %v535_v19 }
 0x373   : > { %3747 = vrcp.f32 %v529_v8 }
 0x374   : > { %3749 = vrcp.f32 %v533_v20 }
 0x375   : > { %v531_v21 = vpop.xlane.xlu0 %530 }
 0x376   : > { %3751 = vrcp.f32 %v531_v21 }
 0x377   : > { %3753 = vrcp.f32 %v539_v18 }
 0x379   : > { %v541_v43 = vpop.xlane.xlu0 %540 }
 0x37c   : > { %v3746_v10 = vpop.eup %3745 }
 0x37d   : > { %v537_v45 = vpop.xlane.xlu0 %536  ;;  %v3748_v15 = vpop.eup %3747  ;;  %v571_v31 = vmul.f32 %v3746_v10, %v4423_v11 }
 0x37e   : > { %3755 = vrcp.f32 %v537_v45  ;;  %v3750_v30 = vpop.eup %3749  ;;  %v568_v0 = vmul.f32 %v3748_v15, %v4419_v44 }
 0x37f   : > { %3757 = vrcp.f32 %v541_v43  ;;  %v570_v22 = vmul.f32 %v3750_v30, %v4415_v7 }
 0x380   : > { %v3752_v16 = vpop.eup %3751 }
 0x381   : > { %v543_v1 = vpop.xlane.xlu0 %542  ;;  %v569_v2 = vmul.f32 %v3752_v16, %v4436_v17  ;;  %v581_v3 = vpack.c.bf16 %v571_v31, %v570_v22  ;;  %v3754_v48 = vpop.eup %3753 }
 0x382   : > { %3759 = vrcp.f32 %v543_v1  ;;  %v573_v17 = vmul.f32 %v3754_v48, %v4411_v6 }
 0x383   : > { %v580_v23 = vpack.c.bf16 %v569_v2, %v568_v0 }
 0x385   : > { %3370 = vmatprep.mubr.bf16.mxu1 %v580_v23  ;;  %v927_v62 = vpop.permute.xlu0 %926 }
 0x386   : > { %3371 = vmatmul.mubr.bf16.gmra.mrb[8].mxu1 %v581_v3  ;;  %3584 = vmatprep.subr.msk.bf16.mxu1 %vm268_vm0, %v927_v62  ;;  %v973_v49 = vsel %vm268_vm0, %v927_v62, 0 }
 0x387   : > { %3391 = vmatpush3.bf16.xpose.msra.mxu1 %v973_v49 }
 0x388   : > { %v3756_v11 = vpop.eup %3755  ;;  %3585 = vmatprep.subr.msk.bf16.mxu1 %vm268_vm0, %v929_v46 }
 0x389   : > { %v572_v44 = vmul.f32 %v3756_v11, %v4447_v32  ;;  %v3758_v7 = vpop.eup %3757  ;;  %v859_v34 = vpop.permute.xlu0 %858 }
 0x38a   : > { %v574_v37 = vmul.f32 %v3758_v7, %v4443_v52  ;;  %v867_v52 = vpop.permute.xlu1 %866 }
 0x38b   : > { %v582_v27 = vpack.c.bf16 %v573_v17, %v572_v44 }
 0x38c   : > { %v3760_v24 = vpop.eup %3759 }
 0x38d   : > { %3374 = vmatprep.mubr.bf16.mxu1 %v582_v27  ;;  %v575_v4 = vmul.f32 %v3760_v24, %v4451_v54  ;;  %v861_v36 = vpop.permute.xlu0 %860 }
 0x38e   : > { %v871_v51 = vpop.permute.xlu1 %870 }
 0x38f   : > { %v583_v40 = vpack.c.bf16 %v575_v4, %v574_v37  ;;  %3393 = vmatpush3.bf16.xpose.msra.mxu1 %v976_v25  ;;  %v4575_v25 = vld [vmem:[%s4190_s30 + $0x8] sm:$0xf]  ;;  %v4578_v37 = vld [vmem:[%s4190_s30 + $0xc] sm:$0xf] }
 0x391   : > { %3375 = vmatmul.mubr.bf16.gmra.mrb[12].mxu1 %v583_v40  ;;  %v863_v32 = vpop.permute.xlu0 %862  ;;  %v4584_v40 = vld [vmem:[%s4190_s30 + $0x4] sm:$0xf] }
 0x392   : > { %3394 = vmatprep.mubr.msk.bf16.mxu1 %vm268_vm0, %v859_v34  ;;  %v1246_v61 = vpop.permute.xlu1 %1245  ;;  %v4581_v34 = vld [vmem:[%s4190_s30] sm:$0xf] }
 0x395   : > { %v865_v6 = vpop.permute.xlu0 %864 }
 0x396   : > { %v1250_v39 = vpop.permute.xlu1 %1249 }
 0x399   : > { %3395 = vmatmul.mubr.msk.bf16.vlgmr.msra.gmra.mrb[16].mxu1 %vm268_vm0, %v861_v36  ;;  %v869_v54 = vpop.permute.xlu0 %868 }
 0x39a   : > { %3398 = vmatprep.mubr.msk.bf16.mxu1 %vm268_vm0, %v863_v32  ;;  %v1256_v42 = vpop.permute.xlu1 %1255 }
 0x39d   : > { %v873_v26 = vpop.permute.xlu0 %872 }
 0x3a1   : > { %3399 = vmatmul.mubr.msk.bf16.gmra.mrb[20].mxu1 %vm268_vm0, %v865_v6  ;;  %v1244_v60 = vpop.permute.xlu0 %1243 }
 0x3a2   : > { %3402 = vmatprep.mubr.msk.bf16.mxu1 %vm268_vm0, %v867_v52  ;;  %3410 = vmatprep.subr.bf16.mxu0 %v1244_v60  ;;  %v4588_v52 = vcombine.low %v4575_v25, %v4578_v37 }
 0x3a3   : > { %3411 = vmatpush3.bf16.msra.mxu0 %v1244_v60  ;;  %v4667_v60 = vld [vmem:[%s4190_s30 + $0x14] sm:$0xf] }
 0x3a4   : > { %3412 = vmatprep.subr.bf16.mxu0 %v1246_v61 }
 0x3a5   : > { %v1248_v5 = vpop.permute.xlu0 %1247 }
 0x3a7   : > { %3413 = vmatpush3.bf16.msra.mxu0 %v1246_v61 }
 0x3a8   : > { %3414 = vmatprep.subr.bf16.mxu0 %v1248_v5 }
 0x3a9   : > { %3403 = vmatmul.mubr.msk.bf16.gmra.mrb[24].mxu1 %vm268_vm0, %v869_v54  ;;  %v1252_v47 = vpop.permute.xlu0 %1251  ;;  %v4592_v54 = vcombine.low %v4581_v34, %v4584_v40 }
 0x3aa   : > { %3406 = vmatprep.mubr.msk.bf16.mxu1 %vm268_vm0, %v871_v51 }
 0x3ab   : > { %3415 = vmatpush3.bf16.msra.mxu0 %v1248_v5 }
 0x3ac   : > { %3416 = vmatprep.subr.bf16.mxu0 %v1250_v39 }
 0x3ad   : > { %v1254_v41 = vpop.permute.xlu0 %1253 }
 0x3af   : > { %3417 = vmatpush3.bf16.msra.mxu0 %v1250_v39 }
 0x3b0   : > { %3418 = vmatprep.subr.bf16.mxu0 %v1252_v47 }
 0x3b1   : > { %3407 = vmatmul.mubr.msk.bf16.gmra.mrb[28].mxu1 %vm268_vm0, %v873_v26  ;;  %v1258_v20 = vpop.permute.xlu0 %1257 }
 0x3b3   : > { %3419 = vmatpush3.bf16.msra.mxu0 %v1252_v47 }
 0x3b4   : > { %3420 = vmatprep.subr.bf16.mxu0 %v1254_v41 }
 0x3b7   : > { %3421 = vmatpush3.bf16.msra.mxu0 %v1254_v41 }
 0x3b8   : > { %3422 = vmatprep.subr.bf16.mxu0 %v1256_v42 }
 0x3bb   : > { %3423 = vmatpush3.bf16.msra.mxu0 %v1256_v42 }
 0x3bc   : > { %3424 = vmatprep.subr.bf16.mxu0 %v1258_v20 }
 0x3bf   : > { %3425 = vmatpush3.bf16.msra.mxu0 %v1258_v20 }
 0x3e0   : > { %v3364_v35 = vpop.f32.mrb[0].mxu1 }
 0x3e1   : > { %v3123_v50 = vpack.c.bf16 %v3364_v35, %v3364_v35  ;;  %v642_v28 = vpop.f32.mrb[1].mxu1 }
 0x3e2   : > { %v3121_v33 = vpack.c.bf16 %v642_v28, %v642_v28  ;;  %v3365_v29 = vpop.f32.mrb[2].mxu1 }
 0x3e3   : > { %772 = vst.msk [vmem:[%s4528_s2 + $0x8] sm:$0xf] %vm769_vm2, %v3123_v50  ;;  %v3124_v38 = vpack.c.bf16 %v3365_v29, %v3365_v29  ;;  %v645_v14 = vpop.f32.mrb[3].mxu1 }
 0x3e4   : > { %770 = vst.msk [vmem:[%s4528_s2] sm:$0xf] %vm769_vm2, %v3121_v33  ;;  %v3122_v63 = vpack.c.bf16 %v645_v14, %v645_v14 }
 0x3e5   : > { %773 = vst.msk [vmem:[%s4528_s2 + $0xc] sm:$0xf] %vm769_vm2, %v3124_v38 }
 0x3e6   : > { %771 = vst.msk [vmem:[%s4528_s2 + $0x4] sm:$0xf] %vm769_vm2, %v3122_v63 }
 0x415   : > { %v3368_v12 = vpop.f32.mrb[4].mxu1 }
 0x416   : > { %v3127_v13 = vpack.c.bf16 %v3368_v12, %v3368_v12  ;;  %v658_v53 = vpop.f32.mrb[5].mxu1 }
 0x417   : > { %v3125_v55 = vpack.c.bf16 %v658_v53, %v658_v53  ;;  %v3369_v56 = vpop.f32.mrb[6].mxu1 }
 0x418   : > { %776 = vst.msk [vmem:[%s4528_s2 + $0x18] sm:$0xf] %vm769_vm2, %v3127_v13  ;;  %v3128_v57 = vpack.c.bf16 %v3369_v56, %v3369_v56  ;;  %v661_v58 = vpop.f32.mrb[7].mxu1 }
 0x419   : > { %774 = vst.msk [vmem:[%s4528_s2 + $0x10] sm:$0xf] %vm769_vm2, %v3125_v55  ;;  %v3126_v59 = vpack.c.bf16 %v661_v58, %v661_v58 }
 0x41a   : > { %777 = vst.msk [vmem:[%s4528_s2 + $0x1c] sm:$0xf] %vm769_vm2, %v3128_v57 }
 0x41b   : > { %775 = vst.msk [vmem:[%s4528_s2 + $0x14] sm:$0xf] %vm769_vm2, %v3126_v59  ;;  %v4664_v59 = vld [vmem:[%s4190_s30 + $0x10] sm:$0xf] }
 0x41c   : > { %v4671_v61 = vcombine.low %v4664_v59, %v4667_v60 }
 0x459   : > { %v3372_v8 = vpop.f32.mrb[8].mxu1 }
 0x45a   : > { %v3131_v19 = vpack.c.bf16 %v3372_v8, %v3372_v8  ;;  %v674_v21 = vpop.f32.mrb[9].mxu1 }
 0x45b   : > { %v3129_v18 = vpack.c.bf16 %v674_v21, %v674_v21  ;;  %v3373_v43 = vpop.f32.mrb[10].mxu1 }
 0x45c   : > { %780 = vst.msk [vmem:[%s4528_s2 + $0x28] sm:$0xf] %vm769_vm2, %v3131_v19  ;;  %v3132_v10 = vpack.c.bf16 %v3373_v43, %v3373_v43  ;;  %v677_v45 = vpop.f32.mrb[11].mxu1 }
 0x45d   : > { %778 = vst.msk [vmem:[%s4528_s2 + $0x20] sm:$0xf] %vm769_vm2, %v3129_v18  ;;  %v3130_v15 = vpack.c.bf16 %v677_v45, %v677_v45 }
 0x45e   : > { %781 = vst.msk [vmem:[%s4528_s2 + $0x2c] sm:$0xf] %vm769_vm2, %v3132_v10 }
 0x45f   : > { %779 = vst.msk [vmem:[%s4528_s2 + $0x24] sm:$0xf] %vm769_vm2, %v3130_v15  ;;  %v4691_v15 = vld [vmem:[%s4190_s30 + $0x18] sm:$0xf] }
 0x464   : > { %v3376_v30 = vpop.f32.mrb[12].mxu1 }
 0x465   : > { %v3135_v16 = vpack.c.bf16 %v3376_v30, %v3376_v30  ;;  %v690_v31 = vpop.f32.mrb[13].mxu1  ;;  %v4694_v30 = vld [vmem:[%s4190_s30 + $0x1c] sm:$0xf] }
 0x466   : > { %v3133_v1 = vpack.c.bf16 %v690_v31, %v690_v31  ;;  %v3377_v0 = vpop.f32.mrb[14].mxu1  ;;  %v1495_v31 = vmul.bf16 1052065461, %v4575_v25 }
 0x467   : > { %784 = vst.msk [vmem:[%s4528_s2 + $0x38] sm:$0xf] %vm769_vm2, %v3135_v16  ;;  %v3136_v2 = vpack.c.bf16 %v3377_v0, %v3377_v0  ;;  %v693_v22 = vpop.f32.mrb[15].mxu1  ;;  %v4698_v16 = vcombine.low %v4691_v15, %v4694_v30  ;;  %v1493_v0 = vmul.bf16 1052065461, %v4581_v34 }
 0x468   : > { %782 = vst.msk [vmem:[%s4528_s2 + $0x30] sm:$0xf] %vm769_vm2, %v3133_v1  ;;  %v3134_v23 = vpack.c.bf16 %v693_v22, %v693_v22  ;;  %v1496_v1 = vmul.bf16 1052065461, %v4578_v37 }
 0x469   : > { %785 = vst.msk [vmem:[%s4528_s2 + $0x3c] sm:$0xf] %vm769_vm2, %v3136_v2  ;;  %v1494_v2 = vmul.bf16 1052065461, %v4584_v40 }
 0x46a   : > { %783 = vst.msk [vmem:[%s4528_s2 + $0x34] sm:$0xf] %vm769_vm2, %v3134_v23 }
 0x46b   : > { %v4708_v23 = vcombine.low %v1493_v0, %v1494_v2 }
 0x46c   : > { %v3396_v3 = vpop.f32.mrb[16].mxu1 }
 0x46d   : > { %v1012_v62 = vpop.f32.mrb[17].mxu1  ;;  %v4564_v46 = vsel %vm139_vm1, %v3396_v3, -1e+30  ;;  %v4710_v3 = vcombine.low %v1495_v31, %v1496_v1 }
 0x46e   : > { %1095 = vmax.xlane.f32.xlu0 %v4564_v46  ;;  %v3397_v48 = vpop.f32.mrb[18].mxu1  ;;  %v1075_v49 = vsel %vm139_vm1, %v1012_v62, -1e+30 }
 0x46f   : > { %1091 = vmax.xlane.f32.xlu1 %v1075_v49  ;;  %v1015_v11 = vpop.f32.mrb[19].mxu1  ;;  %v4571_v44 = vsel %vm139_vm1, %v3397_v48, -1e+30 }
 0x470   : > { %v4600_v28 = vsel %vm139_vm1, %v1015_v11, -1e+30 }
 0x473   : > { %1097 = vmax.xlane.f32.xlu1 %v4571_v44 }
 0x474   : > { %v3400_v17 = vpop.f32.mrb[20].mxu1 }
 0x475   : > { %v1028_v7 = vpop.f32.mrb[21].mxu1  ;;  %v4605_v33 = vsel %vm139_vm1, %v3400_v17, -1e+30 }
 0x476   : > { %v3401_v27 = vpop.f32.mrb[22].mxu1  ;;  %v4615_v38 = vsel %vm139_vm1, %v1028_v7, -1e+30 }
 0x477   : > { %v1031_v24 = vpop.f32.mrb[23].mxu1  ;;  %v4609_v29 = vsel %vm139_vm1, %v3401_v27, -1e+30 }
 0x478   : > { %v4619_v14 = vsel %vm139_vm1, %v1031_v24, -1e+30 }
 0x47c   : > { %v3404_v4 = vpop.f32.mrb[24].mxu1 }
 0x47d   : > { %v1044_v36 = vpop.f32.mrb[25].mxu1  ;;  %v4625_v63 = vsel %vm139_vm1, %v3404_v4, -1e+30 }
 0x47e   : > { %v3405_v32 = vpop.f32.mrb[26].mxu1  ;;  %v4634_v13 = vsel %vm139_vm1, %v1044_v36, -1e+30 }
 0x47f   : > { %v1047_v6 = vpop.f32.mrb[27].mxu1  ;;  %v4629_v12 = vsel %vm139_vm1, %v3405_v32, -1e+30 }
 0x480   : > { %v4639_v53 = vsel %vm139_vm1, %v1047_v6, -1e+30 }
 0x484   : > { %1607 = vrot.lane.b32.xlu0 %v4588_v52, %s4059_s3  ;;  %1605 = vrot.lane.b32.xlu1 %v4592_v54, %s4059_s3  ;;  %v3408_v51 = vpop.f32.mrb[28].mxu1 }
 0x485   : > { %v1060_v26 = vpop.f32.mrb[29].mxu1  ;;  %v4645_v55 = vsel %vm139_vm1, %v3408_v51, -1e+30 }
 0x486   : > { %v3409_v35 = vpop.f32.mrb[30].mxu1  ;;  %v4654_v57 = vsel %vm139_vm1, %v1060_v26, -1e+30 }
 0x487   : > { %v1063_v50 = vpop.f32.mrb[31].mxu1  ;;  %v4649_v56 = vsel %vm139_vm1, %v3409_v35, -1e+30 }
 0x488   : > { %v4659_v58 = vsel %vm139_vm1, %v1063_v50, -1e+30 }
 0x4a3   : > { %1093 = vmax.xlane.f32.xlu0 %v4600_v28 }
 0x4a7   : > { %1103 = vmax.xlane.f32.xlu0 %v4605_v33 }
 0x4a8   : > { %1105 = vmax.xlane.f32.xlu1 %v4609_v29 }
 0x4ab   : > { %1099 = vmax.xlane.f32.xlu0 %v4615_v38 }
 0x4ac   : > { %1101 = vmax.xlane.f32.xlu1 %v4619_v14 }
 0x4af   : > { %1111 = vmax.xlane.f32.xlu0 %v4625_v63 }
 0x4b0   : > { %1113 = vmax.xlane.f32.xlu1 %v4629_v12 }
 0x4b3   : > { %1107 = vmax.xlane.f32.xlu0 %v4634_v13 }
 0x4b4   : > { %1109 = vmax.xlane.f32.xlu1 %v4639_v53 }
 0x4b7   : > { %1119 = vmax.xlane.f32.xlu0 %v4645_v55 }
 0x4b8   : > { %1121 = vmax.xlane.f32.xlu1 %v4649_v56 }
 0x4bb   : > { %1115 = vmax.xlane.f32.xlu0 %v4654_v57 }
 0x4bc   : > { %1117 = vmax.xlane.f32.xlu1 %v4659_v58 }
 0x4d1   : > { %1609 = vrot.lane.b32.xlu0 %v4671_v61, %s4059_s3 }
 0x4fb   : > { %v1096_v5 = vpop.xlane.xlu0 %1095 }
 0x4fc   : > { %v1125_v39 = vsub.f32 %v4564_v46, %v1096_v5  ;;  %v1092_v47 = vpop.xlane.xlu1 %1091 }
 0x4fd   : > { %v1123_v41 = vsub.f32 %v1075_v49, %v1092_v47  ;;  %v1485_v47 = vld [vmem:[%s4190_s30 + $0x20] sm:$0xf] }
 0x4fe   : > { %v1143_v42 = vmul.f32 1.442695, %v1125_v39 }
 0x4ff   : > { %v1139_v20 = vmul.f32 1.442695, %v1123_v41  ;;  %v4706_v22 = vpop.permute.xlu0 %1607  ;;  %v1486_v41 = vld [vmem:[%s4190_s30 + $0x24] sm:$0xf] }
 0x500   : > { %3761 = vpow2.f32 %v1143_v42  ;;  %v1098_v8 = vpop.xlane.xlu1 %1097 }
 0x501   : > { %v1126_v19 = vsub.f32 %v4571_v44, %v1098_v8  ;;  %3763 = vpow2.f32 %v1139_v20  ;;  %v4734_v20 = vcombine.low %v1485_v47, %v1486_v41 }
 0x503   : > { %v1145_v21 = vmul.f32 1.442695, %v1126_v19 }
 0x504   : > { %v4677_v18 = vpop.permute.xlu1 %1605 }
 0x505   : > { %3586 = vmatprep.subr.msk.bf16.mxu0 %vm268_vm0, %v4677_v18  ;;  %3765 = vpow2.f32 %v1145_v21 }
 0x50a   : > { %v4681_v43 = vpop.eup %3761 }
 0x50b   : > { %1175 = vadd.xlane.f32.xlu1 %v4681_v43  ;;  %v4684_v10 = vpop.eup %3763 }
 0x50f   : > { %1171 = vadd.xlane.f32.xlu1 %v4684_v10  ;;  %v4687_v45 = vpop.eup %3765 }
 0x513   : > { %1177 = vadd.xlane.f32.xlu1 %v4687_v45 }
 0x524   : > { %1611 = vrot.lane.b32.xlu1 %v4698_v16, %s4059_s3 }
 0x530   : > { %v1094_v62 = vpop.xlane.xlu0 %1093 }
 0x531   : > { %v1124_v46 = vsub.f32 %v4600_v28, %v1094_v62 }
 0x533   : > { %v1141_v48 = vmul.f32 1.442695, %v1124_v46  ;;  %v1487_v46 = vld [vmem:[%s4190_s30 + $0x28] sm:$0xf] }
 0x534   : > { %v1104_v49 = vpop.xlane.xlu0 %1103 }
 0x535   : > { %3767 = vpow2.f32 %v1141_v48  ;;  %v1106_v11 = vpop.xlane.xlu1 %1105  ;;  %v1129_v21 = vsub.f32 %v4605_v33, %v1104_v49  ;;  %v1488_v48 = vld [vmem:[%s4190_s30 + $0x2c] sm:$0xf] }
 0x536   : > { %v1130_v17 = vsub.f32 %v4609_v29, %v1106_v11 }
 0x537   : > { %v1151_v1 = vmul.f32 1.442695, %v1129_v21 }
 0x538   : > { %v1100_v44 = vpop.xlane.xlu0 %1099  ;;  %v1153_v37 = vmul.f32 1.442695, %v1130_v17  ;;  %v1500_v17 = vmul.bf16 1052065461, %v4694_v30 }
 0x539   : > { %v1127_v7 = vsub.f32 %v4615_v38, %v1100_v44  ;;  %v1102_v27 = vpop.xlane.xlu1 %1101  ;;  %v1499_v44 = vmul.bf16 1052065461, %v4691_v15 }
 0x53a   : > { %v1128_v0 = vsub.f32 %v4619_v14, %v1102_v27  ;;  %v1497_v14 = vmul.bf16 1052065461, %v4664_v59 }
 0x53b   : > { %v1147_v24 = vmul.f32 1.442695, %v1127_v7  ;;  %v4757_v7 = vcombine.low %v1487_v46, %v1488_v48  ;;  %v3038_v49 = vcombine.low %v1499_v44, %v1500_v17 }
 0x53c   : > { %v1112_v25 = vpop.xlane.xlu0 %1111  ;;  %v1149_v2 = vmul.f32 1.442695, %v1128_v0 }
 0x53d   : > { %3769 = vpow2.f32 %v1147_v24  ;;  %v1133_v4 = vsub.f32 %v4625_v63, %v1112_v25  ;;  %v1114_v34 = vpop.xlane.xlu1 %1113 }
 0x53e   : > { %3771 = vpow2.f32 %v1153_v37  ;;  %v1134_v26 = vsub.f32 %v4629_v12, %v1114_v34  ;;  %v1502_v37 = vmul.bf16 1052065461, %v1486_v41  ;;  %v1490_v34 = vld [vmem:[%s4190_s30 + $0x34] sm:$0xf] }
 0x53f   : > { %v4716_v40 = vpop.eup %3767  ;;  %v1159_v32 = vmul.f32 1.442695, %v1133_v4 }
 0x540   : > { %1173 = vadd.xlane.f32.xlu0 %v4716_v40  ;;  %v1108_v36 = vpop.xlane.xlu0 %1107  ;;  %v1161_v29 = vmul.f32 1.442695, %v1134_v26 }
 0x541   : > { %v1131_v6 = vsub.f32 %v4634_v13, %v1108_v36  ;;  %v1110_v51 = vpop.xlane.xlu1 %1109  ;;  %3773 = vpow2.f32 %v1159_v32 }
 0x542   : > { %v1132_v38 = vsub.f32 %v4639_v53, %v1110_v51 }
 0x543   : > { %v1155_v35 = vmul.f32 1.442695, %v1131_v6  ;;  %v1506_v6 = vmul.bf16 1052065461, %v1490_v34 }
 0x544   : > { %v1157_v13 = vmul.f32 1.442695, %v1132_v38  ;;  %v1120_v31 = vpop.xlane.xlu0 %1119 }
 0x545   : > { %v1122_v50 = vpop.xlane.xlu1 %1121  ;;  %3775 = vpow2.f32 %v1155_v35  ;;  %v1137_v62 = vsub.f32 %v4645_v55, %v1120_v31  ;;  %v1498_v55 = vmul.bf16 1052065461, %v4667_v60  ;;  %v1501_v60 = vmul.bf16 1052065461, %v1485_v47 }
 0x546   : > { %3777 = vpow2.f32 %v1161_v29  ;;  %v1138_v27 = vsub.f32 %v4649_v56, %v1122_v50  ;;  %v1491_v50 = vld [vmem:[%s4190_s30 + $0x38] sm:$0xf]  ;;  %v1492_v29 = vld [vmem:[%s4190_s30 + $0x3c] sm:$0xf] }
 0x547   : > { %v4721_v28 = vpop.eup %3769  ;;  %3779 = vpow2.f32 %v1157_v13  ;;  %v1167_v24 = vmul.f32 1.442695, %v1137_v62  ;;  %v3039_v56 = vcombine.low %v1501_v60, %v1502_v37  ;;  %v4793_v38 = vcombine.low %v1491_v50, %v1492_v29 }
 0x548   : > { %1179 = vadd.xlane.f32.xlu1 %v4721_v28  ;;  %v4725_v5 = vpop.eup %3771  ;;  %v1116_v11 = vpop.xlane.xlu0 %1115  ;;  %v1169_v30 = vmul.f32 1.442695, %v1138_v27  ;;  %v1504_v13 = vmul.bf16 1052065461, %v1488_v48  ;;  %v1507_v47 = vmul.bf16 1052065461, %v1491_v50 }
 0x549   : > { %v1118_v63 = vpop.xlane.xlu1 %1117  ;;  %v1135_v33 = vsub.f32 %v4654_v57, %v1116_v11  ;;  %v3037_v57 = vcombine.low %v1497_v14, %v1498_v55  ;;  %v1508_v41 = vmul.bf16 1052065461, %v1492_v29 }
 0x54a   : > { %v1136_v12 = vsub.f32 %v4659_v58, %v1118_v63  ;;  %v1503_v63 = vmul.bf16 1052065461, %v1487_v46 }
 0x54b   : > { %v4729_v39 = vpop.eup %3773  ;;  %v1163_v15 = vmul.f32 1.442695, %v1135_v33 }
 0x54c   : > { %1185 = vadd.xlane.f32.xlu1 %v4725_v5  ;;  %v1165_v42 = vmul.f32 1.442695, %v1136_v12  ;;  %v3040_v12 = vcombine.low %v1503_v63, %v1504_v13  ;;  %v1610_v0 = vpop.permute.xlu0 %1609 }
 0x54e   : > { %3781 = vpow2.f32 %v1165_v42  ;;  %v3042_v42 = vcombine.low %v1507_v47, %v1508_v41 }
 0x54f   : > { %v4736_v53 = vpop.eup %3775  ;;  %3783 = vpow2.f32 %v1151_v1 }
 0x550   : > { %1191 = vadd.xlane.f32.xlu1 %v4729_v39  ;;  %v4741_v58 = vpop.eup %3777  ;;  %3785 = vpow2.f32 %v1149_v2 }
 0x551   : > { %v4744_v8 = vpop.eup %3779  ;;  %3787 = vpow2.f32 %v1167_v24 }
 0x552   : > { %3789 = vpow2.f32 %v1163_v15  ;;  %v1646_v15 = vsel %vm268_vm0, %v4677_v18, 0 }
 0x553   : > { %3791 = vpow2.f32 %v1169_v30 }
 0x554   : > { %1187 = vadd.xlane.f32.xlu1 %v4736_v53 }
 0x556   : > { %1613 = vrot.lane.b32.xlu0 %v4734_v20, %s4059_s3 }
 0x558   : > { %1193 = vadd.xlane.f32.xlu1 %v4741_v58  ;;  %v4747_v19 = vpop.eup %3781 }
 0x559   : > { %v4765_v25 = vpop.eup %3783 }
 0x55a   : > { %v4770_v59 = vpop.eup %3785 }
 0x55b   : > { %v4774_v4 = vpop.eup %3787 }
 0x55c   : > { %1189 = vadd.xlane.f32.xlu1 %v4744_v8  ;;  %v4780_v36 = vpop.eup %3789 }
 0x55d   : > { %v4783_v26 = vpop.eup %3791 }
 0x560   : > { %1197 = vadd.xlane.f32.xlu1 %v4747_v19 }
 0x571   : > { %1615 = vrot.lane.b32.xlu1 %v4757_v7, %s4059_s3 }
 0x575   : > { %1183 = vadd.xlane.f32.xlu0 %v4765_v25  ;;  %1549 = vrot.lane.b32.xlu1 %v4708_v23, %s4060_s4  ;;  %v1489_v23 = vld [vmem:[%s4190_s30 + $0x30] sm:$0xf] }
 0x576   : > { %v1505_v32 = vmul.bf16 1052065461, %v1489_v23  ;;  %v4787_v35 = vcombine.low %v1489_v23, %v1490_v34 }
 0x578   : > { %v3041_v51 = vcombine.low %v1505_v32, %v1506_v6 }
 0x579   : > { %1181 = vadd.xlane.f32.xlu0 %v4770_v59  ;;  %1553 = vrot.lane.b32.xlu1 %v3037_v57, %s4060_s4 }
 0x57d   : > { %1199 = vadd.xlane.f32.xlu0 %v4774_v4  ;;  %1557 = vrot.lane.b32.xlu1 %v3039_v56, %s4060_s4 }
 0x581   : > { %1195 = vadd.xlane.f32.xlu0 %v4780_v36  ;;  %1561 = vrot.lane.b32.xlu1 %v3041_v51, %s4060_s4 }
 0x585   : > { %1201 = vadd.xlane.f32.xlu0 %v4783_v26  ;;  %1936 = vrot.lane.b32.xlu1 %v4588_v52, %s4061_s5 }
 0x589   : > { %1940 = vrot.lane.b32.xlu1 %v4698_v16, %s4061_s5 }
 0x58d   : > { %1946 = vrot.lane.b32.xlu1 %v4787_v35, %s4061_s5 }
 0x598   : > { %v1176_v21 = vpop.xlane.xlu1 %1175 }
 0x59b   : > { %1617 = vrot.lane.b32.xlu0 %v4787_v35, %s4059_s3 }
 0x59c   : > { %v1172_v31 = vpop.xlane.xlu1 %1171 }
 0x59f   : > { %1619 = vrot.lane.b32.xlu0 %v4793_v38, %s4059_s3  ;;  %s3989_s3 = scalar_lea.vmem %s3988_s29, 2048 }
 0x5a0   : > { %v1178_v1 = vpop.xlane.xlu1 %1177  ;;  %p3991_p10 = scmp.lt.s32.totalorder %s3989_s3, %s3983_s27 }
 0x5a1   : > { %3793 = vrcp.f32 %v1178_v1 }
 0x5a2   : > { %3795 = vrcp.f32 %v1172_v31  ;;  %p3992_p0 = por %p3991_p10, %p3990_p8 }
 0x5a3   : > { %1551 = vrot.lane.b32.xlu0 %v4710_v3, %s4060_s4  ;;  %3797 = vrcp.f32 %v1176_v21 }
 0x5a4   : > { %v1612_v2 = vpop.permute.xlu1 %1611  ;;  %p3993_p2 = pnand %p3992_p0, %p3986_p13 }
 0x5a5   : > { %v1655_v18 = vsel %vm268_vm0, %v1612_v2, 0 }
 0x5a7   : > { %1555 = vrot.lane.b32.xlu0 %v3038_v49, %s4060_s4 }
 0x5ab   : > { %1559 = vrot.lane.b32.xlu0 %v3040_v12, %s4060_s4  ;;  %v3794_v62 = vpop.eup %3793 }
 0x5ac   : > { %v3796_v48 = vpop.eup %3795  ;;  %v1222_v17 = vmul.f32 %v3794_v62, %v4687_v45 }
 0x5ad   : > { %v3798_v11 = vpop.eup %3797  ;;  %v1219_v24 = vmul.f32 %v3796_v48, %v4684_v10  ;;  %v1649_v10 = vsel %vm268_vm0, %v4706_v22, 0 }
 0x5ae   : > { %v1221_v49 = vmul.f32 %v3798_v11, %v4681_v43 }
 0x5af   : > { %1563 = vrot.lane.b32.xlu0 %v3042_v42, %s4060_s4 }
 0x5b0   : > { %v1236_v27 = vpack.c.bf16 %v1222_v17, %v1221_v49 }
 0x5b3   : > { %1934 = vrot.lane.b32.xlu0 %v4592_v54, %s4061_s5 }
 0x5b7   : > { %1938 = vrot.lane.b32.xlu0 %v4671_v61, %s4061_s5 }
 0x5bb   : > { %1942 = vrot.lane.b32.xlu0 %v4734_v20, %s4061_s5 }
 0x5bf   : > { %1944 = vrot.lane.b32.xlu0 %v4757_v7, %s4061_s5 }
 0x5c3   : > { %1948 = vrot.lane.b32.xlu0 %v4793_v38, %s4061_s5 }
 0x5cd   : > { %v1174_v3 = vpop.xlane.xlu0 %1173 }
 0x5ce   : > { %3799 = vrcp.f32 %v1174_v3 }
 0x5d1   : > { %v1614_v60 = vpop.permute.xlu0 %1613 }
 0x5d5   : > { %v1180_v46 = vpop.xlane.xlu1 %1179 }
 0x5d6   : > { %3801 = vrcp.f32 %v1180_v46 }
 0x5d8   : > { %v3800_v44 = vpop.eup %3799 }
 0x5d9   : > { %v1220_v33 = vmul.f32 %v3800_v44, %v4716_v40  ;;  %v1186_v14 = vpop.xlane.xlu1 %1185  ;;  %v1652_v40 = vsel %vm268_vm0, %v1610_v0, 0 }
 0x5da   : > { %3803 = vrcp.f32 %v1186_v14 }
 0x5db   : > { %v1235_v55 = vpack.c.bf16 %v1220_v33, %v1219_v24 }
 0x5dd   : > { %3426 = vmatprep.mubr.bf16.mxu0 %v1235_v55  ;;  %v1192_v57 = vpop.xlane.xlu1 %1191 }
 0x5de   : > { %3427 = vmatmul.mubr.bf16.vlgmr.msra.gmra.mrb[16].mxu0 %v1236_v27 }
 0x5df   : > { %3443 = vmatpush3.bf16.xpose.msra.mxu0 %v1646_v15 }
 0x5e0   : > { %3587 = vmatprep.subr.msk.bf16.mxu0 %vm268_vm0, %v4706_v22  ;;  %v1658_v22 = vsel %vm268_vm0, %v1614_v60, 0  ;;  %v3802_v51 = vpop.eup %3801 }
 0x5e1   : > { %v1188_v45 = vpop.xlane.xlu1 %1187  ;;  %v1223_v21 = vmul.f32 %v3802_v51, %v4721_v28 }
 0x5e4   : > { %v3804_v50 = vpop.eup %3803 }
 0x5e5   : > { %v1194_v43 = vpop.xlane.xlu1 %1193 }
 0x5e7   : > { %3445 = vmatpush3.bf16.xpose.msra.mxu0 %v1649_v10 }
 0x5e8   : > { %3588 = vmatprep.subr.msk.bf16.mxu0 %vm268_vm0, %v1610_v0  ;;  %v1226_v0 = vmul.f32 %v3804_v50, %v4725_v5 }
 0x5e9   : > { %v1190_v30 = vpop.xlane.xlu1 %1189 }
 0x5ed   : > { %v1198_v37 = vpop.xlane.xlu1 %1197 }
 0x5ef   : > { %3447 = vmatpush3.bf16.xpose.msra.mxu0 %v1652_v40 }
 0x5f0   : > { %3589 = vmatprep.subr.msk.bf16.mxu0 %vm268_vm0, %v1612_v2 }
 0x5f1   : > { %v1616_v56 = vpop.permute.xlu1 %1615 }
 0x5f2   : > { %v1661_v34 = vsel %vm268_vm0, %v1616_v56, 0 }
 0x5f7   : > { %3449 = vmatpush3.bf16.xpose.msra.mxu0 %v1655_v18 }
 0x5f8   : > { %3590 = vmatprep.subr.msk.bf16.mxu0 %vm268_vm0, %v1614_v60 }
 0x5ff   : > { %3451 = vmatpush3.bf16.xpose.msra.mxu0 %v1658_v22 }
 0x600   : > { %3591 = vmatprep.subr.msk.bf16.mxu0 %vm268_vm0, %v1616_v56 }
 0x602   : > { %v1184_v23 = vpop.xlane.xlu0 %1183 }
 0x603   : > { %3805 = vrcp.f32 %v1184_v23 }
 0x604   : > { %3807 = vrcp.f32 %v1190_v30 }
 0x605   : > { %3809 = vrcp.f32 %v1188_v45 }
 0x606   : > { %v1182_v32 = vpop.xlane.xlu0 %1181 }
 0x607   : > { %3811 = vrcp.f32 %v1182_v32  ;;  %3453 = vmatpush3.bf16.xpose.msra.mxu0 %v1661_v34 }
 0x608   : > { %3813 = vrcp.f32 %v1194_v43 }
 0x609   : > { %3815 = vrcp.f32 %v1192_v57  ;;  %v1550_v57 = vpop.permute.xlu1 %1549 }
 0x60a   : > { %v1200_v6 = vpop.xlane.xlu0 %1199  ;;  %3817 = vrcp.f32 %v1198_v37 }
 0x60d   : > { %v3806_v29 = vpop.eup %3805 }
 0x60e   : > { %v1196_v63 = vpop.xlane.xlu0 %1195  ;;  %v3808_v13 = vpop.eup %3807  ;;  %v1225_v41 = vmul.f32 %v3806_v29, %v4765_v25 }
 0x60f   : > { %3819 = vrcp.f32 %v1196_v63  ;;  %v3810_v12 = vpop.eup %3809  ;;  %v1228_v1 = vmul.f32 %v3808_v13, %v4744_v8 }
 0x610   : > { %v1227_v2 = vmul.f32 %v3810_v12, %v4736_v53  ;;  %v1238_v62 = vpack.c.bf16 %v1226_v0, %v1225_v41 }
 0x611   : > { %v3812_v47 = vpop.eup %3811 }
 0x612   : > { %v1202_v42 = vpop.xlane.xlu0 %1201  ;;  %v1224_v31 = vmul.f32 %v3812_v47, %v4770_v59  ;;  %v3814_v46 = vpop.eup %3813  ;;  %v1239_v48 = vpack.c.bf16 %v1228_v1, %v1227_v2 }
 0x613   : > { %3821 = vrcp.f32 %v1202_v42  ;;  %v3816_v25 = vpop.eup %3815  ;;  %v1230_v8 = vmul.f32 %v3814_v46, %v4741_v58  ;;  %v4900_v46 = vld [vmem:[%s4190_s30 + $0x8] sm:$0xf] }
 0x614   : > { %v1237_v3 = vpack.c.bf16 %v1224_v31, %v1223_v21  ;;  %3823 = vrcp.f32 %v1200_v6  ;;  %v3818_v59 = vpop.eup %3817  ;;  %v1229_v17 = vmul.f32 %v3816_v25, %v4729_v39  ;;  %v4906_v25 = vld [vmem:[%s4190_s30] sm:$0xf] }
 0x615   : > { %v1232_v24 = vmul.f32 %v3818_v59, %v4747_v19  ;;  %v1554_v19 = vpop.permute.xlu1 %1553 }
 0x616   : > { %3430 = vmatprep.mubr.bf16.mxu0 %v1237_v3  ;;  %v1618_v11 = vpop.permute.xlu0 %1617  ;;  %v1240_v33 = vpack.c.bf16 %v1230_v8, %v1229_v17 }
 0x617   : > { %3431 = vmatmul.mubr.bf16.gmra.mrb[20].mxu0 %v1238_v62  ;;  %3592 = vmatprep.subr.msk.bf16.mxu0 %vm268_vm0, %v1618_v11  ;;  %v1664_v28 = vsel %vm268_vm0, %v1618_v11, 0 }
 0x618   : > { %3434 = vmatprep.mubr.bf16.mxu0 %v1239_v48  ;;  %3455 = vmatpush3.bf16.xpose.msra.mxu0 %v1664_v28  ;;  %v4903_v48 = vld [vmem:[%s4190_s30 + $0xc] sm:$0xf]  ;;  %v4909_v28 = vld [vmem:[%s4190_s30 + $0x4] sm:$0xf] }
 0x619   : > { %v3820_v5 = vpop.eup %3819  ;;  %v1558_v45 = vpop.permute.xlu1 %1557 }
 0x61a   : > { %v1231_v53 = vmul.f32 %v3820_v5, %v4780_v36  ;;  %v1620_v44 = vpop.permute.xlu0 %1619 }
 0x61b   : > { %3593 = vmatprep.subr.msk.bf16.mxu0 %vm268_vm0, %v1620_v44  ;;  %v1667_v49 = vsel %vm268_vm0, %v1620_v44, 0  ;;  %v4917_v44 = vcombine.low %v4906_v25, %v4909_v28 }
 0x61c   : > { %v1241_v55 = vpack.c.bf16 %v1232_v24, %v1231_v53  ;;  %v4913_v53 = vcombine.low %v4900_v46, %v4903_v48 }
 0x61d   : > { %v3822_v14 = vpop.eup %3821 }
 0x61e   : > { %v3824_v27 = vpop.eup %3823  ;;  %v1234_v58 = vmul.f32 %v3822_v14, %v4783_v26  ;;  %v1552_v39 = vpop.permute.xlu0 %1551 }
 0x61f   : > { %3435 = vmatmul.mubr.bf16.gmra.mrb[24].mxu0 %v1240_v33  ;;  %v1233_v36 = vmul.f32 %v3824_v27, %v4774_v4  ;;  %v1562_v26 = vpop.permute.xlu1 %1561 }
 0x620   : > { %3438 = vmatprep.mubr.bf16.mxu0 %v1241_v55  ;;  %3457 = vmatpush3.bf16.xpose.msra.mxu0 %v1667_v49 }
 0x621   : > { %v1242_v15 = vpack.c.bf16 %v1234_v58, %v1233_v36 }
 0x622   : > { %v1556_v10 = vpop.permute.xlu0 %1555 }
 0x623   : > { %v1937_v43 = vpop.permute.xlu1 %1936 }
 0x626   : > { %v1560_v4 = vpop.permute.xlu0 %1559 }
 0x627   : > { %3439 = vmatmul.mubr.bf16.gmra.mrb[28].mxu0 %v1242_v15  ;;  %v1941_v38 = vpop.permute.xlu1 %1940 }
 0x628   : > { %3458 = vmatprep.mubr.msk.bf16.mxu0 %vm268_vm0, %v1550_v57 }
 0x62a   : > { %v1564_v52 = vpop.permute.xlu0 %1563 }
 0x62b   : > { %v1947_v18 = vpop.permute.xlu1 %1946 }
 0x62e   : > { %v1935_v35 = vpop.permute.xlu0 %1934 }
 0x62f   : > { %3459 = vmatmul.mubr.msk.bf16.vlgmr.msra.gmra.mrb[32].mxu0 %vm268_vm0, %v1552_v39  ;;  %3474 = vmatprep.subr.bf16.mxu1 %v1935_v35 }
 0x630   : > { %3462 = vmatprep.mubr.msk.bf16.mxu0 %vm268_vm0, %v1554_v19  ;;  %3475 = vmatpush3.bf16.msra.mxu1 %v1935_v35  ;;  %v4986_v35 = vld [vmem:[%s4190_s30 + $0x14] sm:$0xf] }
 0x631   : > { %3476 = vmatprep.subr.bf16.mxu1 %v1937_v43 }
 0x632   : > { %v1939_v7 = vpop.permute.xlu0 %1938 }
 0x634   : > { %3477 = vmatpush3.bf16.msra.mxu1 %v1937_v43 }
 0x635   : > { %3478 = vmatprep.subr.bf16.mxu1 %v1939_v7 }
 0x636   : > { %v1943_v40 = vpop.permute.xlu0 %1942 }
 0x637   : > { %3463 = vmatmul.mubr.msk.bf16.gmra.mrb[36].mxu0 %vm268_vm0, %v1556_v10 }
 0x638   : > { %3466 = vmatprep.mubr.msk.bf16.mxu0 %vm268_vm0, %v1558_v45  ;;  %3479 = vmatpush3.bf16.msra.mxu1 %v1939_v7 }
 0x639   : > { %3480 = vmatprep.subr.bf16.mxu1 %v1941_v38 }
 0x63a   : > { %v1945_v30 = vpop.permute.xlu0 %1944 }
 0x63c   : > { %3481 = vmatpush3.bf16.msra.mxu1 %v1941_v38 }
 0x63d   : > { %3482 = vmatprep.subr.bf16.mxu1 %v1943_v40 }
 0x63e   : > { %v1949_v60 = vpop.permute.xlu0 %1948 }
 0x63f   : > { %3467 = vmatmul.mubr.msk.bf16.gmra.mrb[40].mxu0 %vm268_vm0, %v1560_v4 }
 0x640   : > { %3470 = vmatprep.mubr.msk.bf16.mxu0 %vm268_vm0, %v1562_v26  ;;  %3483 = vmatpush3.bf16.msra.mxu1 %v1943_v40 }
 0x641   : > { %3484 = vmatprep.subr.bf16.mxu1 %v1945_v30 }
 0x644   : > { %3485 = vmatpush3.bf16.msra.mxu1 %v1945_v30 }
 0x645   : > { %3486 = vmatprep.subr.bf16.mxu1 %v1947_v18 }
 0x647   : > { %3471 = vmatmul.mubr.msk.bf16.gmra.mrb[44].mxu0 %vm268_vm0, %v1564_v52  ;;  %v4983_v52 = vld [vmem:[%s4190_s30 + $0x10] sm:$0xf] }
 0x648   : > { %3487 = vmatpush3.bf16.msra.mxu1 %v1947_v18  ;;  %v4990_v43 = vcombine.low %v4983_v52, %v4986_v35 }
 0x649   : > { %3488 = vmatprep.subr.bf16.mxu1 %v1949_v60 }
 0x64c   : > { %3489 = vmatpush3.bf16.msra.mxu1 %v1949_v60 }
 0x6b1   : > { %v4852_v54 = vpop.f32.mrb[16].mxu0 }
 0x6b2   : > { %v4854_v61 = vpop.f32.mrb[17].mxu0 }
 0x6b3   : > { %v4856_v16 = vpop.f32.mrb[18].mxu0 }
 0x6b4   : > { %v4858_v20 = vpop.f32.mrb[19].mxu0 }
 0x6ea   : > { %v4860_v37 = vpop.f32.mrb[20].mxu0 }
 0x6eb   : > { %v4862_v56 = vpop.f32.mrb[21].mxu0 }
 0x6ec   : > { %v4864_v22 = vpop.f32.mrb[22].mxu0 }
 0x6ed   : > { %v4866_v23 = vpop.f32.mrb[23].mxu0 }
 0x6f2   : > { %v4868_v34 = vpop.f32.mrb[24].mxu0 }
 0x6f3   : > { %v4870_v32 = vpop.f32.mrb[25].mxu0 }
 0x6f4   : > { %v4872_v6 = vpop.f32.mrb[26].mxu0 }
 0x6f5   : > { %v4874_v51 = vpop.f32.mrb[27].mxu0 }
 0x6fa   : > { %v4876_v50 = vpop.f32.mrb[28].mxu0 }
 0x6fb   : > { %v4878_v29 = vpop.f32.mrb[29].mxu0 }
 0x6fc   : > { %v4880_v63 = vpop.f32.mrb[30].mxu0 }
 0x6fd   : > { %5612 = vst [vmem:[#allocation8_spill] sm:$0xff] %v4880_v63  ;;  %v4882_v13 = vpop.f32.mrb[31].mxu0  ;;  %v2185_v63 = vmul.bf16 1052065461, %v4909_v28 }
 0x6fe   : > { %5613 = vst [vmem:[#allocation9_spill] sm:$0xff] %v4882_v13 }
 0x702   : > { %v3460_v12 = vpop.f32.mrb[32].mxu0 }
 0x703   : > { %v4886_v47 = vsel %vm139_vm1, %v3460_v12, -1e+30  ;;  %v1703_v41 = vpop.f32.mrb[33].mxu0 }
 0x704   : > { %v4890_v42 = vsel %vm139_vm1, %v1703_v41, -1e+30  ;;  %1786 = vmax.xlane.f32.xlu0 %v4886_v47  ;;  %v3461_v21 = vpop.f32.mrb[34].mxu0 }
 0x705   : > { %1782 = vmax.xlane.f32.xlu1 %v4890_v42  ;;  %v1706_v31 = vpop.f32.mrb[35].mxu0  ;;  %v4896_v1 = vsel %vm139_vm1, %v3461_v21, -1e+30 }
 0x706   : > { %v1767_v14 = vsel %vm139_vm1, %v1706_v31, -1e+30 }
 0x709   : > { %1788 = vmax.xlane.f32.xlu1 %v4896_v1 }
 0x70a   : > { %v3464_v0 = vpop.f32.mrb[36].mxu0 }
 0x70b   : > { %v1719_v3 = vpop.f32.mrb[37].mxu0  ;;  %v4927_v55 = vsel %vm139_vm1, %v3464_v0, -1e+30 }
 0x70c   : > { %v3465_v2 = vpop.f32.mrb[38].mxu0  ;;  %v1770_v58 = vsel %vm139_vm1, %v1719_v3, -1e+30  ;;  %v5014_v3 = vld [vmem:[%s4190_s30 + $0x1c] sm:$0xf] }
 0x70d   : > { %v1722_v62 = vpop.f32.mrb[39].mxu0  ;;  %v4931_v27 = vsel %vm139_vm1, %v3465_v2, -1e+30 }
 0x70e   : > { %v4939_v36 = vsel %vm139_vm1, %v1722_v62, -1e+30 }
 0x712   : > { %v3468_v11 = vpop.f32.mrb[40].mxu0 }
 0x713   : > { %v1735_v59 = vpop.f32.mrb[41].mxu0  ;;  %v4944_v15 = vsel %vm139_vm1, %v3468_v11, -1e+30 }
 0x714   : > { %v3469_v5 = vpop.f32.mrb[42].mxu0  ;;  %v4953_v39 = vsel %vm139_vm1, %v1735_v59, -1e+30 }
 0x715   : > { %v1738_v8 = vpop.f32.mrb[43].mxu0  ;;  %v4948_v57 = vsel %vm139_vm1, %v3469_v5, -1e+30 }
 0x716   : > { %v4958_v19 = vsel %vm139_vm1, %v1738_v8, -1e+30 }
 0x71a   : > { %2298 = vrot.lane.b32.xlu0 %v4913_v53, %s4062_s11  ;;  %2296 = vrot.lane.b32.xlu1 %v4917_v44, %s4062_s11  ;;  %v3472_v17 = vpop.f32.mrb[44].mxu0 }
 0x71b   : > { %v1751_v24 = vpop.f32.mrb[45].mxu0  ;;  %v4964_v10 = vsel %vm139_vm1, %v3472_v17, -1e+30 }
 0x71c   : > { %v3473_v33 = vpop.f32.mrb[46].mxu0  ;;  %v4973_v4 = vsel %vm139_vm1, %v1751_v24, -1e+30 }
 0x71d   : > { %v1754_v49 = vpop.f32.mrb[47].mxu0  ;;  %v4968_v45 = vsel %vm139_vm1, %v3473_v33, -1e+30 }
 0x71e   : > { %v4978_v26 = vsel %vm139_vm1, %v1754_v49, -1e+30 }
 0x739   : > { %1784 = vmax.xlane.f32.xlu0 %v1767_v14 }
 0x73d   : > { %1794 = vmax.xlane.f32.xlu0 %v4927_v55 }
 0x73e   : > { %1796 = vmax.xlane.f32.xlu1 %v4931_v27 }
 0x741   : > { %1790 = vmax.xlane.f32.xlu0 %v1770_v58 }
 0x742   : > { %1792 = vmax.xlane.f32.xlu1 %v4939_v36 }
 0x745   : > { %1802 = vmax.xlane.f32.xlu0 %v4944_v15 }
 0x746   : > { %1804 = vmax.xlane.f32.xlu1 %v4948_v57 }
 0x749   : > { %1798 = vmax.xlane.f32.xlu0 %v4953_v39 }
 0x74a   : > { %1800 = vmax.xlane.f32.xlu1 %v4958_v19 }
 0x74d   : > { %1810 = vmax.xlane.f32.xlu0 %v4964_v10 }
 0x74e   : > { %1812 = vmax.xlane.f32.xlu1 %v4968_v45 }
 0x751   : > { %1806 = vmax.xlane.f32.xlu0 %v4973_v4 }
 0x752   : > { %1808 = vmax.xlane.f32.xlu1 %v4978_v26 }
 0x767   : > { %2300 = vrot.lane.b32.xlu0 %v4990_v43, %s4062_s11 }
 0x791   : > { %v1787_v7 = vpop.xlane.xlu0 %1786 }
 0x792   : > { %v1816_v38 = vsub.f32 %v4886_v47, %v1787_v7  ;;  %v1783_v40 = vpop.xlane.xlu1 %1782 }
 0x793   : > { %v1814_v30 = vsub.f32 %v4890_v42, %v1783_v40 }
 0x794   : > { %v1834_v18 = vmul.f32 1.442695, %v1816_v38 }
 0x795   : > { %v1830_v60 = vmul.f32 1.442695, %v1814_v30  ;;  %v5022_v62 = vpop.permute.xlu0 %2298 }
 0x796   : > { %3825 = vpow2.f32 %v1834_v18  ;;  %v1789_v12 = vpop.xlane.xlu1 %1788 }
 0x797   : > { %v1817_v41 = vsub.f32 %v4896_v1, %v1789_v12  ;;  %3827 = vpow2.f32 %v1830_v60  ;;  %v5011_v1 = vld [vmem:[%s4190_s30 + $0x18] sm:$0xf] }
 0x798   : > { %v5018_v2 = vcombine.low %v5011_v1, %v5014_v3 }
 0x799   : > { %v1836_v21 = vmul.f32 1.442695, %v1817_v41 }
 0x79a   : > { %v4997_v31 = vpop.permute.xlu1 %2296 }
 0x79b   : > { %3594 = vmatprep.subr.msk.bf16.mxu1 %vm268_vm0, %v4997_v31  ;;  %3829 = vpow2.f32 %v1836_v21 }
 0x7a0   : > { %v5001_v47 = vpop.eup %3825 }
 0x7a1   : > { %1866 = vadd.xlane.f32.xlu1 %v5001_v47  ;;  %v5004_v42 = vpop.eup %3827 }
 0x7a5   : > { %1862 = vadd.xlane.f32.xlu1 %v5004_v42  ;;  %v5007_v0 = vpop.eup %3829 }
 0x7a9   : > { %1868 = vadd.xlane.f32.xlu1 %v5007_v0 }
 0x7ba   : > { %2302 = vrot.lane.b32.xlu1 %v5018_v2, %s4062_s11 }
 0x7c6   : > { %v1785_v11 = vpop.xlane.xlu0 %1784 }
 0x7c7   : > { %v1815_v59 = vsub.f32 %v1767_v14, %v1785_v11 }
 0x7c9   : > { %v1832_v5 = vmul.f32 1.442695, %v1815_v59 }
 0x7ca   : > { %v1795_v8 = vpop.xlane.xlu0 %1794 }
 0x7cb   : > { %3831 = vpow2.f32 %v1832_v5  ;;  %v1797_v17 = vpop.xlane.xlu1 %1796 }
 0x7cc   : > { %v1821_v33 = vsub.f32 %v4931_v27, %v1797_v17 }
 0x7ce   : > { %v1791_v24 = vpop.xlane.xlu0 %1790  ;;  %v1844_v30 = vmul.f32 1.442695, %v1821_v33 }
 0x7cf   : > { %v1818_v49 = vsub.f32 %v1770_v58, %v1791_v24  ;;  %v1793_v7 = vpop.xlane.xlu1 %1792 }
 0x7d1   : > { %v1838_v38 = vmul.f32 1.442695, %v1818_v49 }
 0x7d2   : > { %v1803_v40 = vpop.xlane.xlu0 %1802 }
 0x7d3   : > { %3833 = vpow2.f32 %v1838_v38  ;;  %v1824_v18 = vsub.f32 %v4944_v15, %v1803_v40  ;;  %v1805_v60 = vpop.xlane.xlu1 %1804  ;;  %v2176_v38 = vld [vmem:[%s4190_s30 + $0x20] sm:$0xf]  ;;  %v2177_v40 = vld [vmem:[%s4190_s30 + $0x24] sm:$0xf] }
 0x7d4   : > { %3835 = vpow2.f32 %v1844_v30  ;;  %v1825_v27 = vsub.f32 %v4948_v57, %v1805_v60 }
 0x7d5   : > { %v5026_v12 = vpop.eup %3831  ;;  %v1850_v41 = vmul.f32 1.442695, %v1824_v18  ;;  %v5044_v18 = vcombine.low %v2176_v38, %v2177_v40 }
 0x7d6   : > { %1864 = vadd.xlane.f32.xlu0 %v5026_v12  ;;  %v1799_v14 = vpop.xlane.xlu0 %1798  ;;  %v1852_v15 = vmul.f32 1.442695, %v1825_v27  ;;  %v1819_v27 = vsub.f32 %v4939_v36, %v1793_v7 }
 0x7d7   : > { %v1822_v21 = vsub.f32 %v4953_v39, %v1799_v14  ;;  %v1801_v11 = vpop.xlane.xlu1 %1800  ;;  %3837 = vpow2.f32 %v1850_v41  ;;  %v1820_v41 = vsub.f32 %v4927_v55, %v1795_v8  ;;  %v2189_v8 = vmul.bf16 1052065461, %v4986_v35  ;;  %v2181_v35 = vld [vmem:[%s4190_s30 + $0x34] sm:$0xf] }
 0x7d8   : > { %v1823_v17 = vsub.f32 %v4958_v19, %v1801_v11 }
 0x7d9   : > { %v1846_v58 = vmul.f32 1.442695, %v1822_v21  ;;  %v1842_v11 = vmul.f32 1.442695, %v1820_v41 }
 0x7da   : > { %v1848_v39 = vmul.f32 1.442695, %v1823_v17  ;;  %v1811_v21 = vpop.xlane.xlu0 %1810  ;;  %v2178_v17 = vld [vmem:[%s4190_s30 + $0x28] sm:$0xf] }
 0x7db   : > { %v1813_v59 = vpop.xlane.xlu1 %1812  ;;  %3839 = vpow2.f32 %v1846_v58  ;;  %v1840_v58 = vmul.f32 1.442695, %v1819_v27 }
 0x7dc   : > { %3841 = vpow2.f32 %v1852_v15  ;;  %v1828_v15 = vsub.f32 %v4964_v10, %v1811_v21  ;;  %v2188_v10 = vmul.bf16 1052065461, %v4983_v52  ;;  %v1829_v7 = vsub.f32 %v4968_v45, %v1813_v59 }
 0x7dd   : > { %v5031_v5 = vpop.eup %3833  ;;  %3843 = vpow2.f32 %v1848_v39  ;;  %v2197_v59 = vmul.bf16 1052065461, %v2181_v35 }
 0x7de   : > { %1870 = vadd.xlane.f32.xlu1 %v5031_v5  ;;  %v5035_v33 = vpop.eup %3835  ;;  %v1807_v39 = vpop.xlane.xlu0 %1806  ;;  %v1858_v13 = vmul.f32 1.442695, %v1828_v15  ;;  %v3077_v28 = vcombine.low %v2188_v10, %v2189_v8  ;;  %v1860_v21 = vmul.f32 1.442695, %v1829_v7  ;;  %v2187_v10 = vmul.bf16 1052065461, %v4903_v48 }
 0x7df   : > { %v1809_v24 = vpop.xlane.xlu1 %1808  ;;  %v1826_v55 = vsub.f32 %v4973_v4, %v1807_v39  ;;  %v2192_v4 = vmul.bf16 1052065461, %v2176_v38  ;;  %v2182_v39 = vld [vmem:[%s4190_s30 + $0x38] sm:$0xf]  ;;  %v2190_v7 = vmul.bf16 1052065461, %v5011_v1 }
 0x7e0   : > { %v1827_v57 = vsub.f32 %v4978_v26, %v1809_v24  ;;  %v2179_v24 = vld [vmem:[%s4190_s30 + $0x2c] sm:$0xf] }
 0x7e1   : > { %v5039_v49 = vpop.eup %3837 }
 0x7e2   : > { %1876 = vadd.xlane.f32.xlu1 %v5035_v33  ;;  %v1856_v30 = vmul.f32 1.442695, %v1827_v57  ;;  %v5065_v57 = vcombine.low %v2178_v17, %v2179_v24 }
 0x7e4   : > { %3845 = vpow2.f32 %v1856_v30  ;;  %v2184_v30 = vmul.bf16 1052065461, %v4906_v25  ;;  %v1854_v25 = vmul.f32 1.442695, %v1826_v55 }
 0x7e5   : > { %v5046_v19 = vpop.eup %3839  ;;  %3847 = vpow2.f32 %v1842_v11  ;;  %v2180_v11 = vld [vmem:[%s4190_s30 + $0x30] sm:$0xf] }
 0x7e6   : > { %1882 = vadd.xlane.f32.xlu1 %v5039_v49  ;;  %v5051_v26 = vpop.eup %3841  ;;  %3849 = vpow2.f32 %v1840_v58  ;;  %v3075_v36 = vcombine.low %v2184_v30, %v2185_v63  ;;  %v2193_v63 = vmul.bf16 1052065461, %v2177_v40  ;;  %v2196_v45 = vmul.bf16 1052065461, %v2180_v11  ;;  %v2183_v30 = vld [vmem:[%s4190_s30 + $0x3c] sm:$0xf] }
 0x7e7   : > { %v5054_v60 = vpop.eup %3843  ;;  %3851 = vpow2.f32 %v1858_v13  ;;  %v5096_v15 = vcombine.low %v2180_v11, %v2181_v35  ;;  %v5102_v55 = vcombine.low %v2182_v39, %v2183_v30  ;;  %v2198_v11 = vmul.bf16 1052065461, %v2182_v39 }
 0x7e8   : > { %3853 = vpow2.f32 %v1854_v25  ;;  %v3079_v13 = vcombine.low %v2192_v4, %v2193_v63  ;;  %v3081_v38 = vcombine.low %v2196_v45, %v2197_v59  ;;  %v2191_v25 = vmul.bf16 1052065461, %v5014_v3  ;;  %v2301_v45 = vpop.permute.xlu0 %2300 }
 0x7e9   : > { %3855 = vpow2.f32 %v1860_v21  ;;  %v2194_v4 = vmul.bf16 1052065461, %v2178_v17  ;;  %v2195_v63 = vmul.bf16 1052065461, %v2179_v24 }
 0x7ea   : > { %1878 = vadd.xlane.f32.xlu1 %v5046_v19 }
 0x7eb   : > { %v3080_v21 = vcombine.low %v2194_v4, %v2195_v63  ;;  %v2337_v63 = vsel %vm268_vm0, %v4997_v31, 0 }
 0x7ec   : > { %2304 = vrot.lane.b32.xlu0 %v5044_v18, %s4062_s11 }
 0x7ee   : > { %1884 = vadd.xlane.f32.xlu1 %v5051_v26  ;;  %v5057_v14 = vpop.eup %3845 }
 0x7ef   : > { %v5075_v41 = vpop.eup %3847 }
 0x7f0   : > { %v5079_v52 = vpop.eup %3849 }
 0x7f1   : > { %v5085_v27 = vpop.eup %3851 }
 0x7f2   : > { %1880 = vadd.xlane.f32.xlu1 %v5054_v60  ;;  %v5089_v40 = vpop.eup %3853 }
 0x7f3   : > { %v5093_v58 = vpop.eup %3855 }
 0x7f6   : > { %1888 = vadd.xlane.f32.xlu1 %v5057_v14 }
 0x807   : > { %2306 = vrot.lane.b32.xlu1 %v5065_v57, %s4062_s11 }
 0x80b   : > { %1874 = vadd.xlane.f32.xlu0 %v5075_v41  ;;  %2240 = vrot.lane.b32.xlu1 %v3075_v36, %s4063_s13  ;;  %v2186_v36 = vmul.bf16 1052065461, %v4900_v46  ;;  %v2199_v46 = vmul.bf16 1052065461, %v2183_v30 }
 0x80d   : > { %v3076_v8 = vcombine.low %v2186_v36, %v2187_v10  ;;  %v3082_v48 = vcombine.low %v2198_v11, %v2199_v46 }
 0x80f   : > { %1872 = vadd.xlane.f32.xlu0 %v5079_v52  ;;  %2244 = vrot.lane.b32.xlu1 %v3077_v28, %s4063_s13  ;;  %v3078_v28 = vcombine.low %v2190_v7, %v2191_v25 }
 0x813   : > { %1890 = vadd.xlane.f32.xlu0 %v5085_v27  ;;  %2248 = vrot.lane.b32.xlu1 %v3079_v13, %s4063_s13 }
 0x817   : > { %1886 = vadd.xlane.f32.xlu0 %v5089_v40  ;;  %2252 = vrot.lane.b32.xlu1 %v3081_v38, %s4063_s13 }
 0x81b   : > { %1892 = vadd.xlane.f32.xlu0 %v5093_v58  ;;  %2627 = vrot.lane.b32.xlu1 %v4913_v53, %s4064_s14 }
 0x82e   : > { %v1867_v35 = vpop.xlane.xlu1 %1866 }
 0x831   : > { %2308 = vrot.lane.b32.xlu0 %v5096_v15, %s4062_s11 }
 0x832   : > { %v1863_v13 = vpop.xlane.xlu1 %1862 }
 0x835   : > { %2310 = vrot.lane.b32.xlu0 %v5102_v55, %s4062_s11 }
 0x836   : > { %v1869_v1 = vpop.xlane.xlu1 %1868 }
 0x837   : > { %3857 = vrcp.f32 %v1869_v1 }
 0x838   : > { %3859 = vrcp.f32 %v1863_v13 }
 0x839   : > { %2242 = vrot.lane.b32.xlu0 %v3076_v8, %s4063_s13  ;;  %3861 = vrcp.f32 %v1867_v35 }
 0x83a   : > { %v2303_v17 = vpop.permute.xlu1 %2302 }
 0x83b   : > { %v2346_v31 = vsel %vm268_vm0, %v2303_v17, 0 }
 0x83d   : > { %2246 = vrot.lane.b32.xlu0 %v3078_v28, %s4063_s13 }
 0x841   : > { %2250 = vrot.lane.b32.xlu0 %v3080_v21, %s4063_s13  ;;  %v3858_v24 = vpop.eup %3857 }
 0x842   : > { %v3860_v38 = vpop.eup %3859  ;;  %v1913_v36 = vmul.f32 %v3858_v24, %v5007_v0 }
 0x843   : > { %v3862_v39 = vpop.eup %3861  ;;  %v1910_v10 = vmul.f32 %v3860_v38, %v5004_v42  ;;  %v2340_v42 = vsel %vm268_vm0, %v5022_v62, 0 }
 0x844   : > { %v1912_v7 = vmul.f32 %v3862_v39, %v5001_v47 }
 0x845   : > { %2254 = vrot.lane.b32.xlu0 %v3082_v48, %s4063_s13 }
 0x846   : > { %v1927_v4 = vpack.c.bf16 %v1913_v36, %v1912_v7 }
 0x849   : > { %2625 = vrot.lane.b32.xlu0 %v4917_v44, %s4064_s14 }
 0x863   : > { %v1865_v3 = vpop.xlane.xlu0 %1864 }
 0x864   : > { %3863 = vrcp.f32 %v1865_v3 }
 0x867   : > { %v2305_v46 = vpop.permute.xlu0 %2304 }
 0x86b   : > { %v1871_v59 = vpop.xlane.xlu1 %1870 }
 0x86c   : > { %3865 = vrcp.f32 %v1871_v59 }
 0x86e   : > { %v3864_v30 = vpop.eup %3863 }
 0x86f   : > { %v1911_v8 = vmul.f32 %v3864_v30, %v5026_v12  ;;  %v1877_v25 = vpop.xlane.xlu1 %1876  ;;  %v2343_v12 = vsel %vm268_vm0, %v2301_v45, 0 }
 0x870   : > { %3867 = vrcp.f32 %v1877_v25 }
 0x871   : > { %v1926_v28 = vpack.c.bf16 %v1911_v8, %v1910_v10 }
 0x873   : > { %3490 = vmatprep.mubr.bf16.mxu1 %v1926_v28  ;;  %v1883_v21 = vpop.xlane.xlu1 %1882 }
 0x874   : > { %3491 = vmatmul.mubr.bf16.vlgmr.msra.gmra.mrb[32].mxu1 %v1927_v4 }
 0x875   : > { %3507 = vmatpush3.bf16.xpose.msra.mxu1 %v2337_v63 }
 0x876   : > { %3595 = vmatprep.subr.msk.bf16.mxu1 %vm268_vm0, %v5022_v62  ;;  %v2349_v62 = vsel %vm268_vm0, %v2305_v46, 0 }
 0x877   : > { %v1879_v0 = vpop.xlane.xlu1 %1878 }
 0x87b   : > { %v1885_v47 = vpop.xlane.xlu1 %1884 }
 0x87d   : > { %3509 = vmatpush3.bf16.xpose.msra.mxu1 %v2340_v42 }
 0x87e   : > { %3596 = vmatprep.subr.msk.bf16.mxu1 %vm268_vm0, %v2301_v45 }
 0x87f   : > { %v1881_v11 = vpop.xlane.xlu1 %1880 }
 0x883   : > { %v1889_v48 = vpop.xlane.xlu1 %1888 }
 0x885   : > { %3511 = vmatpush3.bf16.xpose.msra.mxu1 %v2343_v12 }
 0x886   : > { %3597 = vmatprep.subr.msk.bf16.mxu1 %vm268_vm0, %v2303_v17  ;;  %v3866_v17 = vpop.eup %3865 }
 0x887   : > { %v2307_v35 = vpop.permute.xlu1 %2306  ;;  %v3868_v24 = vpop.eup %3867  ;;  %v1914_v7 = vmul.f32 %v3866_v17, %v5031_v5 }
 0x888   : > { %v2352_v1 = vsel %vm268_vm0, %v2307_v35, 0  ;;  %v1917_v4 = vmul.f32 %v3868_v24, %v5035_v33 }
 0x88d   : > { %3513 = vmatpush3.bf16.xpose.msra.mxu1 %v2346_v31 }
 0x88e   : > { %3598 = vmatprep.subr.msk.bf16.mxu1 %vm268_vm0, %v2305_v46 }
 0x895   : > { %3515 = vmatpush3.bf16.xpose.msra.mxu1 %v2349_v62 }
 0x896   : > { %3599 = vmatprep.subr.msk.bf16.mxu1 %vm268_vm0, %v2307_v35 }
 0x898   : > { %v1875_v13 = vpop.xlane.xlu0 %1874 }
 0x899   : > { %3869 = vrcp.f32 %v1875_v13 }
 0x89a   : > { %3871 = vrcp.f32 %v1881_v11 }
 0x89b   : > { %3873 = vrcp.f32 %v1879_v0 }
 0x89c   : > { %v1873_v45 = vpop.xlane.xlu0 %1872 }
 0x89d   : > { %3875 = vrcp.f32 %v1873_v45  ;;  %3517 = vmatpush3.bf16.xpose.msra.mxu1 %v2352_v1 }
 0x89e   : > { %3877 = vrcp.f32 %v1885_v47 }
 0x89f   : > { %3879 = vrcp.f32 %v1883_v21 }
 0x8a0   : > { %v1891_v3 = vpop.xlane.xlu0 %1890  ;;  %3881 = vrcp.f32 %v1889_v48 }
 0x8a3   : > { %v3870_v38 = vpop.eup %3869 }
 0x8a4   : > { %v1887_v39 = vpop.xlane.xlu0 %1886  ;;  %v3872_v30 = vpop.eup %3871  ;;  %v1916_v10 = vmul.f32 %v3870_v38, %v5075_v41 }
 0x8a5   : > { %3883 = vrcp.f32 %v1887_v39  ;;  %v3874_v59 = vpop.eup %3873  ;;  %v1919_v28 = vmul.f32 %v3872_v30, %v5054_v60 }
 0x8a6   : > { %v1918_v21 = vmul.f32 %v3874_v59, %v5046_v19  ;;  %v1929_v42 = vpack.c.bf16 %v1917_v4, %v1916_v10 }
 0x8a7   : > { %v3876_v36 = vpop.eup %3875 }
 0x8a8   : > { %v1893_v8 = vpop.xlane.xlu0 %1892  ;;  %v1915_v25 = vmul.f32 %v3876_v36, %v5079_v52  ;;  %v3878_v0 = vpop.eup %3877  ;;  %v1930_v47 = vpack.c.bf16 %v1919_v28, %v1918_v21 }
 0x8a9   : > { %3885 = vrcp.f32 %v1893_v8  ;;  %v3880_v41 = vpop.eup %3879  ;;  %v1921_v60 = vmul.f32 %v3878_v0, %v5051_v26 }
 0x8aa   : > { %v1928_v63 = vpack.c.bf16 %v1915_v25, %v1914_v7  ;;  %3887 = vrcp.f32 %v1891_v3  ;;  %v3882_v52 = vpop.eup %3881  ;;  %v1920_v31 = vmul.f32 %v3880_v41, %v5039_v49  ;;  %v2241_v3 = vpop.permute.xlu1 %2240 }
 0x8ab   : > { %v1923_v46 = vmul.f32 %v3882_v52, %v5057_v14 }
 0x8ac   : > { %3494 = vmatprep.mubr.bf16.mxu1 %v1928_v63  ;;  %v2309_v12 = vpop.permute.xlu0 %2308  ;;  %v1931_v48 = vpack.c.bf16 %v1921_v60, %v1920_v31 }
 0x8ad   : > { %3495 = vmatmul.mubr.bf16.gmra.mrb[36].mxu1 %v1929_v42  ;;  %3600 = vmatprep.subr.msk.bf16.mxu1 %vm268_vm0, %v2309_v12  ;;  %v2355_v5 = vsel %vm268_vm0, %v2309_v12, 0 }
 0x8ae   : > { %3498 = vmatprep.mubr.bf16.mxu1 %v1930_v47  ;;  %3519 = vmatpush3.bf16.xpose.msra.mxu1 %v2355_v5  ;;  %v2245_v14 = vpop.permute.xlu1 %2244 }
 0x8af   : > { %v3884_v33 = vpop.eup %3883 }
 0x8b0   : > { %v1922_v19 = vmul.f32 %v3884_v33, %v5089_v40  ;;  %v2311_v11 = vpop.permute.xlu0 %2310 }
 0x8b1   : > { %3601 = vmatprep.subr.msk.bf16.mxu1 %vm268_vm0, %v2311_v11  ;;  %v2358_v35 = vsel %vm268_vm0, %v2311_v11, 0 }
 0x8b2   : > { %v1932_v13 = vpack.c.bf16 %v1923_v46, %v1922_v19  ;;  %v2249_v24 = vpop.permute.xlu1 %2248 }
 0x8b3   : > { %v3886_v62 = vpop.eup %3885 }
 0x8b4   : > { %v3888_v1 = vpop.eup %3887  ;;  %v1925_v26 = vmul.f32 %v3886_v62, %v5093_v58  ;;  %v2243_v49 = vpop.permute.xlu0 %2242 }
 0x8b5   : > { %3499 = vmatmul.mubr.bf16.gmra.mrb[40].mxu1 %v1931_v48  ;;  %v1924_v40 = vmul.f32 %v3888_v1, %v5085_v27 }
 0x8b6   : > { %3502 = vmatprep.mubr.bf16.mxu1 %v1932_v13  ;;  %3521 = vmatpush3.bf16.xpose.msra.mxu1 %v2358_v35  ;;  %v2253_v58 = vpop.permute.xlu1 %2252 }
 0x8b7   : > { %v1933_v45 = vpack.c.bf16 %v1925_v26, %v1924_v40 }
 0x8b8   : > { %v2247_v17 = vpop.permute.xlu0 %2246 }
 0x8ba   : > { %v2628_v36 = vpop.permute.xlu1 %2627 }
 0x8bc   : > { %v2251_v27 = vpop.permute.xlu0 %2250 }
 0x8bd   : > { %3503 = vmatmul.mubr.bf16.gmra.mrb[44].mxu1 %v1933_v45 }
 0x8be   : > { %3522 = vmatprep.mubr.msk.bf16.mxu1 %vm268_vm0, %v2241_v3 }
 0x8c0   : > { %v2255_v38 = vpop.permute.xlu0 %2254 }
 0x8c4   : > { %v2626_v59 = vpop.permute.xlu0 %2625 }
 0x8c5   : > { %3523 = vmatmul.mubr.msk.bf16.vlgmr.msra.gmra.mrb[48].mxu1 %vm268_vm0, %v2243_v49  ;;  %3538 = vmatprep.subr.bf16.mxu0 %v2626_v59 }
 0x8c6   : > { %3526 = vmatprep.mubr.msk.bf16.mxu1 %vm268_vm0, %v2245_v14  ;;  %3539 = vmatpush3.bf16.msra.mxu0 %v2626_v59 }
 0x8c7   : > { %3540 = vmatprep.subr.bf16.mxu0 %v2628_v36 }
 0x8ca   : > { %3541 = vmatpush3.bf16.msra.mxu0 %v2628_v36 }
 0x8cd   : > { %3527 = vmatmul.mubr.msk.bf16.gmra.mrb[52].mxu1 %vm268_vm0, %v2247_v17 }
 0x8ce   : > { %3530 = vmatprep.mubr.msk.bf16.mxu1 %vm268_vm0, %v2249_v24 }
 0x8d5   : > { %3531 = vmatmul.mubr.msk.bf16.gmra.mrb[56].mxu1 %vm268_vm0, %v2251_v27 }
 0x8d6   : > { %3534 = vmatprep.mubr.msk.bf16.mxu1 %vm268_vm0, %v2253_v58 }
 0x8dd   : > { %3535 = vmatmul.mubr.msk.bf16.gmra.mrb[60].mxu1 %vm268_vm0, %v2255_v38 }
 0x947   : > { %v5160_v39 = vpop.f32.mrb[32].mxu1 }
 0x948   : > { %v5162_v30 = vpop.f32.mrb[33].mxu1 }
 0x949   : > { %v5164_v44 = vpop.f32.mrb[34].mxu1 }
 0x94a   : > { %v5166_v53 = vpop.f32.mrb[35].mxu1 }
 0x980   : > { %v5168_v10 = vpop.f32.mrb[36].mxu1 }
 0x981   : > { %v5170_v8 = vpop.f32.mrb[37].mxu1 }
 0x982   : > { %v5172_v7 = vpop.f32.mrb[38].mxu1 }
 0x983   : > { %v5174_v25 = vpop.f32.mrb[39].mxu1 }
 0x988   : > { %v5176_v28 = vpop.f32.mrb[40].mxu1 }
 0x989   : > { %v5178_v4 = vpop.f32.mrb[41].mxu1 }
 0x98a   : > { %v5180_v63 = vpop.f32.mrb[42].mxu1 }
 0x98b   : > { %v5182_v21 = vpop.f32.mrb[43].mxu1 }
 0x990   : > { %v5184_v42 = vpop.f32.mrb[44].mxu1 }
 0x991   : > { %v5186_v0 = vpop.f32.mrb[45].mxu1 }
 0x992   : > { %v5188_v47 = vpop.f32.mrb[46].mxu1 }
 0x993   : > { %v5190_v12 = vpop.f32.mrb[47].mxu1 }
 0x998   : > { %v3524_v41 = vpop.f32.mrb[48].mxu1 }
 0x999   : > { %v2459_v5 = vsel %vm139_vm1, %v3524_v41, -1e+30  ;;  %v2394_v52 = vpop.f32.mrb[49].mxu1 }
 0x99a   : > { %v2457_v33 = vsel %vm139_vm1, %v2394_v52, -1e+30  ;;  %2477 = vmax.xlane.f32.xlu0 %v2459_v5  ;;  %v3525_v60 = vpop.f32.mrb[50].mxu1 }
 0x99b   : > { %2473 = vmax.xlane.f32.xlu1 %v2457_v33  ;;  %v2397_v19 = vpop.f32.mrb[51].mxu1  ;;  %v2460_v31 = vsel %vm139_vm1, %v3525_v60, -1e+30 }
 0x99c   : > { %v2458_v11 = vsel %vm139_vm1, %v2397_v19, -1e+30 }
 0x99e   : > { %2475 = vmax.xlane.f32.xlu0 %v2458_v11 }
 0x99f   : > { %2479 = vmax.xlane.f32.xlu1 %v2460_v31 }
 0x9a0   : > { %v3528_v46 = vpop.f32.mrb[52].mxu1 }
 0x9a1   : > { %v2463_v48 = vsel %vm139_vm1, %v3528_v46, -1e+30  ;;  %v2410_v35 = vpop.f32.mrb[53].mxu1 }
 0x9a2   : > { %2485 = vmax.xlane.f32.xlu0 %v2463_v48  ;;  %v3529_v62 = vpop.f32.mrb[54].mxu1  ;;  %v2461_v26 = vsel %vm139_vm1, %v2410_v35, -1e+30 }
 0x9a3   : > { %v5204_v13 = vsel %vm139_vm1, %v3529_v62, -1e+30  ;;  %v2413_v1 = vpop.f32.mrb[55].mxu1 }
 0x9a4   : > { %2487 = vmax.xlane.f32.xlu1 %v5204_v13  ;;  %v5211_v40 = vsel %vm139_vm1, %v2413_v1, -1e+30 }
 0x9a6   : > { %2481 = vmax.xlane.f32.xlu0 %v2461_v26 }
 0x9a8   : > { %2483 = vmax.xlane.f32.xlu1 %v5211_v40  ;;  %v3532_v45 = vpop.f32.mrb[56].mxu1 }
 0x9a9   : > { %v5216_v3 = vsel %vm139_vm1, %v3532_v45, -1e+30  ;;  %v2426_v49 = vpop.f32.mrb[57].mxu1 }
 0x9aa   : > { %2493 = vmax.xlane.f32.xlu0 %v5216_v3  ;;  %v3533_v14 = vpop.f32.mrb[58].mxu1  ;;  %v5226_v27 = vsel %vm139_vm1, %v2426_v49, -1e+30 }
 0x9ab   : > { %v5221_v17 = vsel %vm139_vm1, %v3533_v14, -1e+30  ;;  %v2429_v24 = vpop.f32.mrb[59].mxu1 }
 0x9ac   : > { %2495 = vmax.xlane.f32.xlu1 %v5221_v17  ;;  %v5231_v58 = vsel %vm139_vm1, %v2429_v24, -1e+30 }
 0x9ae   : > { %2489 = vmax.xlane.f32.xlu0 %v5226_v27 }
 0x9b0   : > { %2491 = vmax.xlane.f32.xlu1 %v5231_v58  ;;  %v3536_v38 = vpop.f32.mrb[60].mxu1 }
 0x9b1   : > { %v5236_v59 = vsel %vm139_vm1, %v3536_v38, -1e+30  ;;  %v2442_v36 = vpop.f32.mrb[61].mxu1 }
 0x9b2   : > { %2501 = vmax.xlane.f32.xlu0 %v5236_v59  ;;  %v3537_v41 = vpop.f32.mrb[62].mxu1  ;;  %v5241_v52 = vsel %vm139_vm1, %v2442_v36, -1e+30 }
 0x9b3   : > { %v2445_v60 = vpop.f32.mrb[63].mxu1  ;;  %v5254_v19 = vsel %vm139_vm1, %v3537_v41, -1e+30 }
 0x9b4   : > { %v5259_v46 = vsel %vm139_vm1, %v2445_v60, -1e+30 }
 0x9b6   : > { %2497 = vmax.xlane.f32.xlu0 %v5241_v52 }
 0x9c1   : > { %2633 = vrot.lane.b32.xlu1 %v5044_v18, %s4064_s14 }
 0x9cc   : > { %2629 = vrot.lane.b32.xlu0 %v4990_v43, %s4064_s14 }
 0x9d0   : > { %2631 = vrot.lane.b32.xlu0 %v5018_v2, %s4064_s14 }
 0x9d4   : > { %2637 = vrot.lane.b32.xlu0 %v5096_v15, %s4064_s14 }
 0x9e5   : > { %2503 = vmax.xlane.f32.xlu1 %v5254_v19 }
 0x9e9   : > { %2499 = vmax.xlane.f32.xlu1 %v5259_v46 }
 0x9fa   : > { %2635 = vrot.lane.b32.xlu1 %v5065_v57, %s4064_s14 }
 0xa27   : > { %v2478_v43 = vpop.xlane.xlu0 %2477 }
 0xa28   : > { %v2507_v2 = vsub.f32 %v2459_v5, %v2478_v43  ;;  %v2474_v18 = vpop.xlane.xlu1 %2473 }
 0xa29   : > { %v2505_v35 = vsub.f32 %v2457_v33, %v2474_v18 }
 0xa2a   : > { %v2525_v15 = vmul.f32 1.442695, %v2507_v2 }
 0xa2b   : > { %v2476_v62 = vpop.xlane.xlu0 %2475  ;;  %v2521_v1 = vmul.f32 1.442695, %v2505_v35 }
 0xa2c   : > { %3889 = vpow2.f32 %v2525_v15  ;;  %v2480_v45 = vpop.xlane.xlu1 %2479  ;;  %v2506_v14 = vsub.f32 %v2458_v11, %v2476_v62 }
 0xa2d   : > { %v2508_v49 = vsub.f32 %v2460_v31, %v2480_v45  ;;  %3891 = vpow2.f32 %v2521_v1 }
 0xa2e   : > { %v2523_v60 = vmul.f32 1.442695, %v2506_v14 }
 0xa2f   : > { %v2527_v24 = vmul.f32 1.442695, %v2508_v49  ;;  %v2486_v9 = vpop.xlane.xlu0 %2485 }
 0xa30   : > { %v2511_v38 = vsub.f32 %v2463_v48, %v2486_v9 }
 0xa31   : > { %v2488_v36 = vpop.xlane.xlu1 %2487  ;;  %3893 = vpow2.f32 %v2527_v24 }
 0xa32   : > { %v2533_v41 = vmul.f32 1.442695, %v2511_v38  ;;  %v2512_v57 = vsub.f32 %v5204_v13, %v2488_v36 }
 0xa33   : > { %v2482_v5 = vpop.xlane.xlu0 %2481 }
 0xa34   : > { %3895 = vpow2.f32 %v2533_v41  ;;  %v2509_v33 = vsub.f32 %v2461_v26, %v2482_v5  ;;  %v2535_v11 = vmul.f32 1.442695, %v2512_v57 }
 0xa35   : > { %v2484_v43 = vpop.xlane.xlu1 %2483  ;;  %3897 = vpow2.f32 %v2523_v60 }
 0xa36   : > { %v5265_v2 = vpop.eup %3889  ;;  %v2529_v18 = vmul.f32 1.442695, %v2509_v33  ;;  %v2510_v31 = vsub.f32 %v5211_v40, %v2484_v43 }
 0xa37   : > { %2557 = vadd.xlane.f32.xlu1 %v5265_v2  ;;  %v2494_v48 = vpop.xlane.xlu0 %2493  ;;  %v5270_v13 = vpop.eup %3891 }
 0xa38   : > { %3899 = vpow2.f32 %v2529_v18  ;;  %v2531_v35 = vmul.f32 1.442695, %v2510_v31  ;;  %v2515_v15 = vsub.f32 %v5216_v3, %v2494_v48 }
 0xa39   : > { %v2496_v62 = vpop.xlane.xlu1 %2495  ;;  %3901 = vpow2.f32 %v2535_v11 }
 0xa3a   : > { %3903 = vpow2.f32 %v2531_v35  ;;  %v2541_v1 = vmul.f32 1.442695, %v2515_v15  ;;  %v2516_v3 = vsub.f32 %v5221_v17, %v2496_v62 }
 0xa3b   : > { %2553 = vadd.xlane.f32.xlu1 %v5270_v13  ;;  %v2490_v26 = vpop.xlane.xlu0 %2489  ;;  %v5274_v45 = vpop.eup %3893 }
 0xa3c   : > { %v2513_v40 = vsub.f32 %v5226_v27, %v2490_v26  ;;  %3905 = vpow2.f32 %v2541_v1  ;;  %v3138_v1 = vpack.c.bf16 %v4858_v20, %v4858_v20 }
 0xa3d   : > { %v2492_v49 = vpop.xlane.xlu1 %2491 }
 0xa3e   : > { %v5276_v14 = vpop.eup %3895  ;;  %v2514_v24 = vsub.f32 %v5231_v58, %v2492_v49  ;;  %v2537_v38 = vmul.f32 1.442695, %v2513_v40  ;;  %v2543_v58 = vmul.f32 1.442695, %v2516_v3  ;;  %v3139_v40 = vpack.c.bf16 %v4852_v54, %v4852_v54 }
 0xa3f   : > { %2559 = vadd.xlane.f32.xlu1 %v5274_v45  ;;  %2565 = vadd.xlane.f32.xlu0 %v5276_v14  ;;  %v2502_v9 = vpop.xlane.xlu0 %2501  ;;  %v5283_v27 = vpop.eup %3897  ;;  %v3141_v49 = vpack.c.bf16 %v4862_v56, %v4862_v56  ;;  %v3145_v54 = vpack.c.bf16 %v4870_v32, %v4870_v32  ;;  %v3151_v32 = vpack.c.bf16 %v4876_v50, %v4876_v50 }
 0xa40   : > { %v2539_v36 = vmul.f32 1.442695, %v2514_v24  ;;  %v2519_v41 = vsub.f32 %v5236_v59, %v2502_v9  ;;  %v3157_v50 = vpack.c.bf16 %v5170_v8, %v5170_v8  ;;  %v3165_v8 = vpack.c.bf16 %v5186_v0, %v5186_v0 }
 0xa41   : > { %v2634_v48 = vpop.permute.xlu1 %2633 }
 0xa42   : > { %v5285_v60 = vpop.eup %3899  ;;  %3907 = vpow2.f32 %v2539_v36  ;;  %v2549_v57 = vmul.f32 1.442695, %v2519_v41 }
 0xa43   : > { %2555 = vadd.xlane.f32.xlu1 %v5283_v27  ;;  %2561 = vadd.xlane.f32.xlu0 %v5285_v60  ;;  %v2498_v17 = vpop.xlane.xlu0 %2497  ;;  %3909 = vpow2.f32 %v2537_v38  ;;  %v5290_v33 = vpop.eup %3901 }
 0xa44   : > { %v2517_v5 = vsub.f32 %v5241_v52, %v2498_v17  ;;  %v5292_v43 = vpop.eup %3903  ;;  %3911 = vpow2.f32 %v2549_v57  ;;  %v3161_v17 = vpack.c.bf16 %v5178_v4, %v5178_v4  ;;  %v3167_v4 = vpack.c.bf16 %v5184_v42, %v5184_v42 }
 0xa45   : > { %3913 = vpow2.f32 %v2543_v58  ;;  %v3137_v58 = vpack.c.bf16 %v4854_v61, %v4854_v61  ;;  %v3142_v61 = vpack.c.bf16 %v4866_v23, %v4866_v23  ;;  %v3148_v42 = vpack.c.bf16 %v4872_v6, %v4872_v6  ;;  %v5614_v23 = vld [vmem:[#allocation9_spill] sm:$0xff] }
 0xa46   : > { %v2545_v59 = vmul.f32 1.442695, %v2517_v5  ;;  %v5296_v31 = vpop.eup %3905  ;;  %v3150_v0 = vpack.c.bf16 %v5614_v23, %v5614_v23  ;;  %v5615_v5 = vld [vmem:[#allocation8_spill] sm:$0xff]  ;;  %v3156_v6 = vpack.c.bf16 %v5164_v44, %v5164_v44 }
 0xa47   : > { %2563 = vadd.xlane.f32.xlu1 %v5292_v43  ;;  %2567 = vadd.xlane.f32.xlu0 %v5290_v33  ;;  %v2630_v18 = vpop.permute.xlu0 %2629 }
 0xa48   : > { %3542 = vmatprep.subr.bf16.mxu0 %v2630_v18  ;;  %3915 = vpow2.f32 %v2545_v59 }
 0xa49   : > { %3543 = vmatpush3.bf16.msra.mxu0 %v2630_v18  ;;  %v3158_v18 = vpack.c.bf16 %v5174_v25, %v5174_v25  ;;  %v3164_v25 = vpack.c.bf16 %v5180_v63, %v5180_v63 }
 0xa4b   : > { %2573 = vadd.xlane.f32.xlu0 %v5296_v31  ;;  %v2632_v52 = vpop.permute.xlu0 %2631 }
 0xa4c   : > { %v5299_v11 = vpop.eup %3907  ;;  %3544 = vmatprep.subr.bf16.mxu0 %v2632_v52 }
 0xa4d   : > { %2571 = vadd.xlane.f32.xlu1 %v5299_v11  ;;  %3545 = vmatpush3.bf16.msra.mxu0 %v2632_v52  ;;  %v5302_v35 = vpop.eup %3909 }
 0xa4e   : > { %3546 = vmatprep.subr.bf16.mxu0 %v2634_v48  ;;  %v5305_v15 = vpop.eup %3911 }
 0xa4f   : > { %2569 = vadd.xlane.f32.xlu0 %v5302_v35  ;;  %v5308_v62 = vpop.eup %3913  ;;  %v2638_v36 = vpop.permute.xlu0 %2637 }
 0xa51   : > { %2581 = vadd.xlane.f32.xlu1 %v5305_v15  ;;  %3547 = vmatpush3.bf16.msra.mxu0 %v2634_v48  ;;  %v3160_v48 = vpack.c.bf16 %v5172_v7, %v5172_v7  ;;  %v3166_v7 = vpack.c.bf16 %v5190_v12, %v5190_v12 }
 0xa52   : > { %v5311_v26 = vpop.eup %3915 }
 0xa53   : > { %2575 = vadd.xlane.f32.xlu0 %v5308_v62 }
 0xa55   : > { %2577 = vadd.xlane.f32.xlu1 %v5311_v26 }
 0xa66   : > { %2639 = vrot.lane.b32.xlu1 %v5102_v55, %s4064_s14  ;;  %v3143_v55 = vpack.c.bf16 %v4860_v37, %v4860_v37  ;;  %v3147_v37 = vpack.c.bf16 %v4868_v34, %v4868_v34  ;;  %v3153_v34 = vpack.c.bf16 %v5162_v30, %v5162_v30  ;;  %v3159_v30 = vpack.c.bf16 %v5168_v10, %v5168_v10 }
 0xa67   : > { %v3140_v10 = vpack.c.bf16 %v4856_v16, %v4856_v16  ;;  %v3146_v16 = vpack.c.bf16 %v4874_v51, %v4874_v51  ;;  %v3154_v51 = vpack.c.bf16 %v5166_v53, %v5166_v53 }
 0xa6a   : > { %1414 = vrot.lane.b32.xlu1 %v3138_v1, %s4065_s16 }
 0xa6e   : > { %1416 = vrot.lane.b32.xlu1 %v3139_v40, %s4065_s16  ;;  %v3162_v40 = vpack.c.bf16 %v5182_v21, %v5182_v21 }
 0xa72   : > { %v2504_v24 = vpop.xlane.xlu1 %2503  ;;  %1420 = vrot.lane.b32.xlu1 %v3141_v49, %s4065_s16 }
 0xa73   : > { %v2520_v20 = vsub.f32 %v5254_v19, %v2504_v24  ;;  %v3149_v19 = vpack.c.bf16 %v4878_v29, %v4878_v29  ;;  %v3155_v29 = vpack.c.bf16 %v5160_v39, %v5160_v39  ;;  %v3163_v39 = vpack.c.bf16 %v5176_v28, %v5176_v28 }
 0xa74   : > { %v3144_v28 = vpack.c.bf16 %v4864_v22, %v4864_v22  ;;  %v3152_v22 = vpack.c.bf16 %v5615_v5, %v5615_v5 }
 0xa75   : > { %v2551_v41 = vmul.f32 1.442695, %v2520_v20  ;;  %v3168_v20 = vpack.c.bf16 %v5188_v47, %v5188_v47 }
 0xa76   : > { %v2500_v3 = vpop.xlane.xlu1 %2499  ;;  %1424 = vrot.lane.b32.xlu1 %v3143_v55, %s4065_s16 }
 0xa77   : > { %v2518_v9 = vsub.f32 %v5259_v46, %v2500_v3 }
 0xa79   : > { %v2547_v38 = vmul.f32 1.442695, %v2518_v9 }
 0xa7a   : > { %1428 = vrot.lane.b32.xlu1 %v3145_v54, %s4065_s16  ;;  %v2636_v56 = vpop.permute.xlu1 %2635 }
 0xa7b   : > { %3917 = vpow2.f32 %v2547_v38  ;;  %3548 = vmatprep.subr.bf16.mxu0 %v2636_v56 }
 0xa7c   : > { %3549 = vmatpush3.bf16.msra.mxu0 %v2636_v56  ;;  %3919 = vpow2.f32 %v2551_v41 }
 0xa7d   : > { %3550 = vmatprep.subr.bf16.mxu0 %v2638_v36 }
 0xa7e   : > { %1432 = vrot.lane.b32.xlu1 %v3147_v37, %s4065_s16 }
 0xa80   : > { %3551 = vmatpush3.bf16.msra.mxu0 %v2638_v36 }
 0xa82   : > { %1436 = vrot.lane.b32.xlu1 %v3149_v19, %s4065_s16 }
 0xa85   : > { %v5341_v46 = vpop.eup %3917 }
 0xa86   : > { %2579 = vadd.xlane.f32.xlu0 %v5341_v46  ;;  %1440 = vrot.lane.b32.xlu1 %v3151_v32, %s4065_s16  ;;  %v5347_v57 = vpop.eup %3919 }
 0xa8a   : > { %2583 = vadd.xlane.f32.xlu0 %v5347_v57  ;;  %2103 = vrot.lane.b32.xlu1 %v3153_v34, %s4066_s20 }
 0xa8e   : > { %2107 = vrot.lane.b32.xlu1 %v3155_v29, %s4066_s20 }
 0xa92   : > { %2111 = vrot.lane.b32.xlu1 %v3157_v50, %s4066_s20 }
 0xa96   : > { %2115 = vrot.lane.b32.xlu1 %v3159_v30, %s4066_s20 }
 0xa9a   : > { %2119 = vrot.lane.b32.xlu1 %v3161_v17, %s4066_s20 }
 0xa9e   : > { %2123 = vrot.lane.b32.xlu1 %v3163_v39, %s4066_s20 }
 0xaa0   : > { %1412 = vrot.lane.b32.xlu0 %v3137_v58, %s4065_s16 }
 0xaa2   : > { %2127 = vrot.lane.b32.xlu1 %v3165_v8, %s4066_s20 }
 0xaa4   : > { %1418 = vrot.lane.b32.xlu0 %v3140_v10, %s4065_s16 }
 0xaa6   : > { %2131 = vrot.lane.b32.xlu1 %v3167_v4, %s4066_s20 }
 0xaa8   : > { %1422 = vrot.lane.b32.xlu0 %v3142_v61, %s4065_s16 }
 0xaac   : > { %1426 = vrot.lane.b32.xlu0 %v3144_v28, %s4065_s16 }
 0xab0   : > { %1430 = vrot.lane.b32.xlu0 %v3146_v16, %s4065_s16 }
 0xab4   : > { %1434 = vrot.lane.b32.xlu0 %v3148_v42, %s4065_s16 }
 0xab8   : > { %1438 = vrot.lane.b32.xlu0 %v3150_v0, %s4065_s16 }
 0xabc   : > { %1442 = vrot.lane.b32.xlu0 %v3152_v22, %s4065_s16 }
 0xac0   : > { %2105 = vrot.lane.b32.xlu0 %v3154_v51, %s4066_s20 }
 0xac4   : > { %v2558_v59 = vpop.xlane.xlu1 %2557  ;;  %2109 = vrot.lane.b32.xlu0 %v3156_v6, %s4066_s20 }
 0xac8   : > { %v2554_v52 = vpop.xlane.xlu1 %2553  ;;  %2113 = vrot.lane.b32.xlu0 %v3158_v18, %s4066_s20 }
 0xac9   : > { %3921 = vrcp.f32 %v2554_v52 }
 0xacc   : > { %v2560_v1 = vpop.xlane.xlu1 %2559  ;;  %2117 = vrot.lane.b32.xlu0 %v3160_v48, %s4066_s20  ;;  %v2566_v53 = vpop.xlane.xlu0 %2565 }
 0xad0   : > { %v2556_v44 = vpop.xlane.xlu1 %2555  ;;  %2121 = vrot.lane.b32.xlu0 %v3162_v40, %s4066_s20  ;;  %v2562_v49 = vpop.xlane.xlu0 %2561 }
 0xad1   : > { %3923 = vrcp.f32 %v2556_v44 }
 0xad2   : > { %3925 = vrcp.f32 %v2560_v1 }
 0xad3   : > { %v3922_v3 = vpop.eup %3921 }
 0xad4   : > { %2125 = vrot.lane.b32.xlu0 %v3164_v25, %s4066_s20  ;;  %v2568_v24 = vpop.xlane.xlu0 %2567  ;;  %v2564_v55 = vpop.xlane.xlu1 %2563  ;;  %v2601_v63 = vmul.f32 %v3922_v3, %v5270_v13 }
 0xad5   : > { %3927 = vrcp.f32 %v2564_v55 }
 0xad6   : > { %3929 = vrcp.f32 %v2558_v59 }
 0xad7   : > { %3931 = vrcp.f32 %v2562_v49 }
 0xad8   : > { %2129 = vrot.lane.b32.xlu0 %v3166_v7, %s4066_s20  ;;  %v2574_v21 = vpop.xlane.xlu0 %2573  ;;  %3933 = vrcp.f32 %v2568_v24 }
 0xada   : > { %v2572_v9 = vpop.xlane.xlu1 %2571 }
 0xadb   : > { %v3924_v54 = vpop.eup %3923 }
 0xadc   : > { %2133 = vrot.lane.b32.xlu0 %v3168_v20, %s4066_s20  ;;  %v2602_v12 = vmul.f32 %v3924_v54, %v5283_v27  ;;  %v2570_v38 = vpop.xlane.xlu0 %2569  ;;  %v3926_v41 = vpop.eup %3925 }
 0xadd   : > { %3935 = vrcp.f32 %v2570_v38  ;;  %v2604_v34 = vmul.f32 %v3926_v41, %v5274_v45 }
 0xade   : > { %v5422_v56 = vpop.xlane.xlu1 %2581  ;;  %v2617_v36 = vpack.c.bf16 %v2602_v12, %v2601_v63  ;;  %3937 = vrcp.f32 %v2566_v53 }
 0xadf   : > { %v3928_v37 = vpop.eup %3927  ;;  %3939 = vrcp.f32 %v2572_v9 }
 0xae0   : > { %3554 = vmatprep.mubr.bf16.mxu0 %v2617_v36  ;;  %v3930_v19 = vpop.eup %3929  ;;  %v2576_v13 = vpop.xlane.xlu0 %2575  ;;  %v2606_v27 = vmul.f32 %v3928_v37, %v5292_v43 }
 0xae1   : > { %v3932_v32 = vpop.eup %3931  ;;  %v2603_v50 = vmul.f32 %v3930_v19, %v5265_v2  ;;  %3941 = vrcp.f32 %v2576_v13 }
 0xae2   : > { %v2578_v47 = vpop.xlane.xlu1 %2577  ;;  %v2605_v30 = vmul.f32 %v3932_v32, %v5285_v60  ;;  %v3934_v39 = vpop.eup %3933  ;;  %3943 = vrcp.f32 %v2574_v21 }
 0xae3   : > { %v2618_v17 = vpack.c.bf16 %v2604_v34, %v2603_v50  ;;  %v2608_v10 = vmul.f32 %v3934_v39, %v5290_v33  ;;  %3945 = vrcp.f32 %v2578_v47 }
 0xae4   : > { %v2619_v8 = vpack.c.bf16 %v2606_v27, %v2605_v30 }
 0xae6   : > { %v2640_v29 = vpop.permute.xlu1 %2639 }
 0xae7   : > { %3552 = vmatprep.subr.bf16.mxu0 %v2640_v29  ;;  %v3936_v45 = vpop.eup %3935 }
 0xae8   : > { %3553 = vmatpush3.bf16.msra.mxu0 %v2640_v29  ;;  %v3938_v43 = vpop.eup %3937  ;;  %v2609_v61 = vmul.f32 %v3936_v45, %v5302_v35 }
 0xae9   : > { %v3940_v2 = vpop.eup %3939  ;;  %v2607_v60 = vmul.f32 %v3938_v43, %v5276_v14 }
 0xaea   : > { %v1415_v58 = vpop.permute.xlu1 %1414  ;;  %v2610_v28 = vmul.f32 %v3940_v2, %v5299_v11 }
 0xaeb   : > { %1462 = vst.msk [vmem:[%s4528_s2 + $0x4] sm:$0xf] %vm1460_vm3, %v1415_v58  ;;  %3555 = vmatmul.mubr.bf16.vlgmr.msra.gmra.mrb[48].mxu0 %v2618_v17  ;;  %v2620_v16 = vpack.c.bf16 %v2608_v10, %v2607_v60  ;;  %v3942_v42 = vpop.eup %3941 }
 0xaec   : > { %3558 = vmatprep.mubr.bf16.mxu0 %v2619_v8  ;;  %v2621_v0 = vpack.c.bf16 %v2610_v28, %v2609_v61  ;;  %v3944_v33 = vpop.eup %3943  ;;  %v2612_v35 = vmul.f32 %v3942_v42, %v5308_v62 }
 0xaed   : > { %v2611_v14 = vmul.f32 %v3944_v33, %v5296_v31  ;;  %v3946_v44 = vpop.eup %3945 }
 0xaee   : > { %v1417_v4 = vpop.permute.xlu1 %1416  ;;  %v2613_v7 = vmul.f32 %v3946_v44, %v5311_v26 }
 0xaef   : > { %1463 = vst.msk [vmem:[%s4528_s2 + $0x8] sm:$0xf] %vm1460_vm3, %v1417_v4  ;;  %v2622_v11 = vpack.c.bf16 %v2612_v35, %v2611_v14 }
 0xaf2   : > { %v1421_v23 = vpop.permute.xlu1 %1420 }
 0xaf3   : > { %1465 = vst.msk [vmem:[%s4528_s2 + $0x10] sm:$0xf] %vm1460_vm3, %v1421_v23  ;;  %3559 = vmatmul.mubr.bf16.gmra.mrb[52].mxu0 %v2620_v16 }
 0xaf4   : > { %3562 = vmatprep.mubr.bf16.mxu0 %v2621_v0 }
 0xaf6   : > { %v1425_v5 = vpop.permute.xlu1 %1424 }
 0xaf7   : > { %1467 = vst.msk [vmem:[%s4528_s2 + $0x18] sm:$0xf] %vm1460_vm3, %v1425_v5 }
 0xafa   : > { %v1429_v22 = vpop.permute.xlu1 %1428 }
 0xafb   : > { %1469 = vst.msk [vmem:[%s4528_s2 + $0x20] sm:$0xf] %vm1460_vm3, %v1429_v22  ;;  %3563 = vmatmul.mubr.bf16.gmra.mrb[56].mxu0 %v2622_v11 }
 0xafe   : > { %v1433_v51 = vpop.permute.xlu1 %1432 }
 0xaff   : > { %1471 = vst.msk [vmem:[%s4528_s2 + $0x28] sm:$0xf] %vm1460_vm3, %v1433_v51 }
 0xb02   : > { %v1437_v6 = vpop.permute.xlu1 %1436 }
 0xb03   : > { %1473 = vst.msk [vmem:[%s4528_s2 + $0x30] sm:$0xf] %vm1460_vm3, %v1437_v6 }
 0xb06   : > { %v1441_v62 = vpop.permute.xlu1 %1440 }
 0xb07   : > { %1475 = vst.msk [vmem:[%s4528_s2 + $0x38] sm:$0xf] %vm1460_vm3, %v1441_v62 }
 0xb0a   : > { %v2104_v59 = vpop.permute.xlu1 %2103 }
 0xb0e   : > { %v2108_v31 = vpop.permute.xlu1 %2107 }
 0xb0f   : > { %2154 = vst.msk [vmem:[%s4528_s2 + $0x8] sm:$0xf] %vm2151_vm4, %v2108_v31 }
 0xb12   : > { %v2112_v18 = vpop.permute.xlu1 %2111 }
 0xb13   : > { %2156 = vst.msk [vmem:[%s4528_s2 + $0x10] sm:$0xf] %vm2151_vm4, %v2112_v18  ;;  %v2580_v52 = vpop.xlane.xlu0 %2579 }
 0xb14   : > { %3947 = vrcp.f32 %v2580_v52 }
 0xb15   : > { %3949 = vrcp.f32 %v5422_v56 }
 0xb16   : > { %v2116_v48 = vpop.permute.xlu1 %2115 }
 0xb17   : > { %2158 = vst.msk [vmem:[%s4528_s2 + $0x18] sm:$0xf] %vm2151_vm4, %v2116_v48  ;;  %v2584_v1 = vpop.xlane.xlu0 %2583 }
 0xb18   : > { %3951 = vrcp.f32 %v2584_v1 }
 0xb1a   : > { %v2120_v53 = vpop.permute.xlu1 %2119 }
 0xb1b   : > { %2160 = vst.msk [vmem:[%s4528_s2 + $0x20] sm:$0xf] %vm2151_vm4, %v2120_v53  ;;  %v1413_v40 = vpop.permute.xlu0 %1412 }
 0xb1c   : > { %1461 = vst.msk [vmem:[%s4528_s2] sm:$0xf] %vm1460_vm3, %v1413_v40 }
 0xb1d   : > { %2152 = vst.msk [vmem:[%s4528_s2] sm:$0xf] %vm2151_vm4, %v2104_v59 }
 0xb1e   : > { %v3948_v49 = vpop.eup %3947  ;;  %v2124_v25 = vpop.permute.xlu1 %2123 }
 0xb1f   : > { %2162 = vst.msk [vmem:[%s4528_s2 + $0x28] sm:$0xf] %vm2151_vm4, %v2124_v25  ;;  %v1419_v24 = vpop.permute.xlu0 %1418  ;;  %v2614_v55 = vmul.f32 %v3948_v49, %v5341_v46  ;;  %v3950_v21 = vpop.eup %3949 }
 0xb20   : > { %1464 = vst.msk [vmem:[%s4528_s2 + $0xc] sm:$0xf] %vm1460_vm3, %v1419_v24  ;;  %v2615_v63 = vmul.f32 %v3950_v21, %v5305_v15 }
 0xb21   : > { %v2623_v3 = vpack.c.bf16 %v2614_v55, %v2613_v7 }
 0xb22   : > { %v3952_v20 = vpop.eup %3951  ;;  %v2128_v9 = vpop.permute.xlu1 %2127 }
 0xb23   : > { %2164 = vst.msk [vmem:[%s4528_s2 + $0x30] sm:$0xf] %vm2151_vm4, %v2128_v9  ;;  %3566 = vmatprep.mubr.bf16.mxu0 %v2623_v3  ;;  %v1423_v54 = vpop.permute.xlu0 %1422  ;;  %v2616_v26 = vmul.f32 %v3952_v20, %v5347_v57 }
 0xb24   : > { %1466 = vst.msk [vmem:[%s4528_s2 + $0x14] sm:$0xf] %vm1460_vm3, %v1423_v54 }
 0xb25   : > { %v2624_v46 = vpack.c.bf16 %v2616_v26, %v2615_v63 }
 0xb26   : > { %v2132_v12 = vpop.permute.xlu1 %2131 }
 0xb27   : > { %2166 = vst.msk [vmem:[%s4528_s2 + $0x38] sm:$0xf] %vm2151_vm4, %v2132_v12  ;;  %3567 = vmatmul.mubr.bf16.gmra.mrb[60].mxu0 %v2624_v46  ;;  %v1427_v38 = vpop.permute.xlu0 %1426 }
 0xb28   : > { %1468 = vst.msk [vmem:[%s4528_s2 + $0x1c] sm:$0xf] %vm1460_vm3, %v1427_v38 }
 0xb2b   : > { %v1431_v56 = vpop.permute.xlu0 %1430 }
 0xb2c   : > { %1470 = vst.msk [vmem:[%s4528_s2 + $0x24] sm:$0xf] %vm1460_vm3, %v1431_v56 }
 0xb2f   : > { %v1435_v15 = vpop.permute.xlu0 %1434 }
 0xb30   : > { %1472 = vst.msk [vmem:[%s4528_s2 + $0x2c] sm:$0xf] %vm1460_vm3, %v1435_v15 }
 0xb33   : > { %v1439_v57 = vpop.permute.xlu0 %1438 }
 0xb34   : > { %1474 = vst.msk [vmem:[%s4528_s2 + $0x34] sm:$0xf] %vm1460_vm3, %v1439_v57 }
 0xb37   : > { %v1443_v36 = vpop.permute.xlu0 %1442 }
 0xb38   : > { %1476 = vst.msk [vmem:[%s4528_s2 + $0x3c] sm:$0xf] %vm1460_vm3, %v1443_v36 }
 0xb3b   : > { %v2106_v41 = vpop.permute.xlu0 %2105 }
 0xb3c   : > { %2153 = vst.msk [vmem:[%s4528_s2 + $0x4] sm:$0xf] %vm2151_vm4, %v2106_v41 }
 0xb3f   : > { %v2110_v47 = vpop.permute.xlu0 %2109 }
 0xb40   : > { %2155 = vst.msk [vmem:[%s4528_s2 + $0xc] sm:$0xf] %vm2151_vm4, %v2110_v47 }
 0xb43   : > { %v2114_v37 = vpop.permute.xlu0 %2113 }
 0xb44   : > { %2157 = vst.msk [vmem:[%s4528_s2 + $0x14] sm:$0xf] %vm2151_vm4, %v2114_v37 }
 0xb47   : > { %v2118_v19 = vpop.permute.xlu0 %2117 }
 0xb48   : > { %2159 = vst.msk [vmem:[%s4528_s2 + $0x1c] sm:$0xf] %vm2151_vm4, %v2118_v19 }
 0xb4b   : > { %v2122_v32 = vpop.permute.xlu0 %2121 }
 0xb4c   : > { %2161 = vst.msk [vmem:[%s4528_s2 + $0x24] sm:$0xf] %vm2151_vm4, %v2122_v32 }
 0xb4f   : > { %v2126_v34 = vpop.permute.xlu0 %2125 }
 0xb50   : > { %2163 = vst.msk [vmem:[%s4528_s2 + $0x2c] sm:$0xf] %vm2151_vm4, %v2126_v34 }
 0xb53   : > { %v2130_v13 = vpop.permute.xlu0 %2129 }
 0xb54   : > { %2165 = vst.msk [vmem:[%s4528_s2 + $0x34] sm:$0xf] %vm2151_vm4, %v2130_v13 }
 0xb57   : > { %v2134_v29 = vpop.permute.xlu0 %2133 }
 0xb58   : > { %2167 = vst.msk [vmem:[%s4528_s2 + $0x3c] sm:$0xf] %vm2151_vm4, %v2134_v29 }
 0xbbe   : > { %v3556_v27 = vpop.f32.mrb[48].mxu0 }
 0xbbf   : > { %v3171_v50 = vpack.c.bf16 %v3556_v27, %v3556_v27  ;;  %v2683_v30 = vpop.f32.mrb[49].mxu0 }
 0xbc0   : > { %v3557_v17 = vpop.f32.mrb[50].mxu0  ;;  %v3169_v8 = vpack.c.bf16 %v2683_v30, %v2683_v30 }
 0xbc1   : > { %v3172_v39 = vpack.c.bf16 %v3557_v17, %v3557_v17  ;;  %2798 = vrot.lane.b32.xlu1 %v3171_v50, %s4067_s21  ;;  %v2686_v58 = vpop.f32.mrb[51].mxu0 }
 0xbc2   : > { %v3170_v45 = vpack.c.bf16 %v2686_v58, %v2686_v58 }
 0xbc3   : > { %2800 = vrot.lane.b32.xlu0 %v3172_v39, %s4067_s21 }
 0xbc5   : > { %2794 = vrot.lane.b32.xlu1 %v3169_v8, %s4067_s21 }
 0xbc6   : > { %v3560_v43 = vpop.f32.mrb[52].mxu0 }
 0xbc7   : > { %v3175_v2 = vpack.c.bf16 %v3560_v43, %v3560_v43  ;;  %2796 = vrot.lane.b32.xlu0 %v3170_v45, %s4067_s21  ;;  %v2699_v10 = vpop.f32.mrb[53].mxu0 }
 0xbc8   : > { %v3561_v4 = vpop.f32.mrb[54].mxu0  ;;  %v3173_v28 = vpack.c.bf16 %v2699_v10, %v2699_v10 }
 0xbc9   : > { %v3176_v61 = vpack.c.bf16 %v3561_v4, %v3561_v4  ;;  %2806 = vrot.lane.b32.xlu1 %v3175_v2, %s4067_s21  ;;  %v2702_v60 = vpop.f32.mrb[55].mxu0 }
 0xbca   : > { %v3174_v16 = vpack.c.bf16 %v2702_v60, %v2702_v60 }
 0xbcb   : > { %2808 = vrot.lane.b32.xlu0 %v3176_v61, %s4067_s21 }
 0xbcd   : > { %2802 = vrot.lane.b32.xlu1 %v3173_v28, %s4067_s21 }
 0xbce   : > { %v3564_v42 = vpop.f32.mrb[56].mxu0 }
 0xbcf   : > { %v3179_v23 = vpack.c.bf16 %v3564_v42, %v3564_v42  ;;  %2804 = vrot.lane.b32.xlu0 %v3174_v16, %s4067_s21  ;;  %v2715_v0 = vpop.f32.mrb[57].mxu0 }
 0xbd0   : > { %v3565_v33 = vpop.f32.mrb[58].mxu0  ;;  %v3177_v14 = vpack.c.bf16 %v2715_v0, %v2715_v0 }
 0xbd1   : > { %v3180_v35 = vpack.c.bf16 %v3565_v33, %v3565_v33  ;;  %2814 = vrot.lane.b32.xlu1 %v3179_v23, %s4067_s21  ;;  %v2718_v5 = vpop.f32.mrb[59].mxu0 }
 0xbd2   : > { %v3178_v11 = vpack.c.bf16 %v2718_v5, %v2718_v5 }
 0xbd3   : > { %2816 = vrot.lane.b32.xlu0 %v3180_v35, %s4067_s21 }
 0xbd5   : > { %2810 = vrot.lane.b32.xlu1 %v3177_v14, %s4067_s21 }
 0xbd7   : > { %2812 = vrot.lane.b32.xlu0 %v3178_v11, %s4067_s21 }
 0xbfa   : > { %v3568_v22 = vpop.f32.mrb[60].mxu0 }
 0xbfb   : > { %v2731_v51 = vpop.f32.mrb[61].mxu0  ;;  %v3183_v18 = vpack.c.bf16 %v3568_v22, %v3568_v22 }
 0xbfc   : > { %v3181_v6 = vpack.c.bf16 %v2731_v51, %v2731_v51  ;;  %v3569_v62 = vpop.f32.mrb[62].mxu0 }
 0xbfd   : > { %v2734_v59 = vpop.f32.mrb[63].mxu0  ;;  %v3184_v52 = vpack.c.bf16 %v3569_v62, %v3569_v62 }
 0xbfe   : > { %v3182_v31 = vpack.c.bf16 %v2734_v59, %v2734_v59  ;;  %2818 = vrot.lane.b32.xlu1 %v3181_v6, %s4067_s21 }
 0xc00   : > { %2820 = vrot.lane.b32.xlu0 %v3182_v31, %s4067_s21 }
 0xc02   : > { %2822 = vrot.lane.b32.xlu1 %v3183_v18, %s4067_s21 }
 0xc04   : > { %2824 = vrot.lane.b32.xlu0 %v3184_v52, %s4067_s21 }
 0xc33   : > { %v2799_v48 = vpop.permute.xlu1 %2798 }
 0xc34   : > { %2845 = vst.msk [vmem:[%s4528_s2 + $0x8] sm:$0xf] %vm2842_vm5, %v2799_v48 }
 0xc35   : > { %v2801_v1 = vpop.permute.xlu0 %2800 }
 0xc36   : > { %2846 = vst.msk [vmem:[%s4528_s2 + $0xc] sm:$0xf] %vm2842_vm5, %v2801_v1 }
 0xc37   : > { %v2795_v53 = vpop.permute.xlu1 %2794 }
 0xc38   : > { %2843 = vst.msk [vmem:[%s4528_s2] sm:$0xf] %vm2842_vm5, %v2795_v53 }
 0xc39   : > { %v2797_v40 = vpop.permute.xlu0 %2796 }
 0xc3a   : > { %2844 = vst.msk [vmem:[%s4528_s2 + $0x4] sm:$0xf] %vm2842_vm5, %v2797_v40 }
 0xc3b   : > { %v2807_v44 = vpop.permute.xlu1 %2806 }
 0xc3c   : > { %2849 = vst.msk [vmem:[%s4528_s2 + $0x18] sm:$0xf] %vm2842_vm5, %v2807_v44 }
 0xc3d   : > { %v2809_v49 = vpop.permute.xlu0 %2808 }
 0xc3e   : > { %2850 = vst.msk [vmem:[%s4528_s2 + $0x1c] sm:$0xf] %vm2842_vm5, %v2809_v49 }
 0xc3f   : > { %v2803_v25 = vpop.permute.xlu1 %2802 }
 0xc40   : > { %2847 = vst.msk [vmem:[%s4528_s2 + $0x10] sm:$0xf] %vm2842_vm5, %v2803_v25 }
 0xc41   : > { %v2805_v24 = vpop.permute.xlu0 %2804 }
 0xc42   : > { %2848 = vst.msk [vmem:[%s4528_s2 + $0x14] sm:$0xf] %vm2842_vm5, %v2805_v24 }
 0xc43   : > { %v2815_v7 = vpop.permute.xlu1 %2814 }
 0xc44   : > { %2853 = vst.msk [vmem:[%s4528_s2 + $0x28] sm:$0xf] %vm2842_vm5, %v2815_v7 }
 0xc45   : > { %v2817_v55 = vpop.permute.xlu0 %2816 }
 0xc46   : > { %2854 = vst.msk [vmem:[%s4528_s2 + $0x2c] sm:$0xf] %vm2842_vm5, %v2817_v55 }
 0xc47   : > { %v2811_v21 = vpop.permute.xlu1 %2810 }
 0xc48   : > { %2851 = vst.msk [vmem:[%s4528_s2 + $0x20] sm:$0xf] %vm2842_vm5, %v2811_v21 }
 0xc49   : > { %v2813_v3 = vpop.permute.xlu0 %2812 }
 0xc4a   : > { %2852 = vst.msk [vmem:[%s4528_s2 + $0x24] sm:$0xf] %vm2842_vm5, %v2813_v3 }
 0xc70   : > { %v2819_v20 = vpop.permute.xlu1 %2818 }
 0xc71   : > { %2855 = vst.msk [vmem:[%s4528_s2 + $0x30] sm:$0xf] %vm2842_vm5, %v2819_v20 }
 0xc72   : > { %v2821_v9 = vpop.permute.xlu0 %2820 }
 0xc73   : > { %2856 = vst.msk [vmem:[%s4528_s2 + $0x34] sm:$0xf] %vm2842_vm5, %v2821_v9 }
 0xc74   : > { %v2823_v54 = vpop.permute.xlu1 %2822 }
 0xc75   : > { %2857 = vst.msk [vmem:[%s4528_s2 + $0x38] sm:$0xf] %vm2842_vm5, %v2823_v54 }
 0xc76   : > { %v2825_v63 = vpop.permute.xlu0 %2824 }
 0xc77   : > { %2858 = vst.msk [vmem:[%s4528_s2 + $0x3c] sm:$0xf] %vm2842_vm5, %v2825_v63 }
 0xc78   : > { %3996 = shalt.err (!%p3993_p2)
}
 0xc79   : > { %s3997_s2 = scalar_lea.hbm %s5552_s17, 1024  ;;  %s4001_s11 = scalar_lea.hbm %s5605_s1, 2048 }
 0xc7a   : > { %p3998_p4 = scmp.ne.s32.totalorder %s5552_s17, %s3997_s2  ;;  %p4002_p9 = scmp.lt.u32.totalorder %s5552_s17, %s5605_s1 }
 0xc7b   : > { %p4003_p1 = scmp.lt.u32.totalorder %s4001_s11, %s3997_s2  ;;  %p4005_p6 = scmp.lt.u32.totalorder %s3997_s2, %s5552_s17 }
 0xc7c   : > { %p3999_p5 = pnand %p3998_p4, %p5616_p11 }
 0xc7d   : > { %p4004_p3 = por %p4003_p1, %p4002_p9 }
 0xc7e   : > { %p4000_p7 = pneg %p3999_p5 }
 0xc7f   : > { %p4006_p12 = por %p4005_p6, %p4004_p3 }
 0xc81   : > { %p4007_p13 = pnand %p4006_p12, %p4000_p7 }
 0xc83   : > { %4010 = shalt.err (!%p4007_p13)
}
 0xc84   : > { %s4069_s16 = smov 4  }
 0xc85   : > { %3604 = dma.vmem_to_hbm [thread:$0]  (%p5616_p11), %s5556_s24, 1024, %s5552_s17, %s2860_s10, %s4055_s25, %s4055_s25, %s4069_s16  }
 0xc86 PF: > { %s2888_s20 = sand.u32 1, %s4037_s6   ;;  %p5617_p8 = scmp.ne.s32.totalorder %s5610_s19, 0 }
 0xc87   : > { %p5618_p10 = scmp.ge.s32.totalorder %s4049_s9, 2  ;;  %s2889_s21 = scalar_lea.sflag [#allocation4], %s2888_s20 }
 0xc89   : > { %p3611_p0 = pnand %p5618_p10, %p5617_p8 }
 0xc8b   : > { %4032 = dma.done.wait (!%p3611_p0), %s2889_s21, 1024  }
 0xc8c   : > { %4034 = vsyncadd (!%p3611_p0), %s2889_s21, 4294966272  ;;  %p14_p2 = scmp.ge.s32.totalorder %s4105_s12, 4   ;;  %s5619_s6 = smov %s4041_s7 }
 0xc8d   : > { %s5620_s7 = smov %s4045_s8  ;;  %s5621_s8 = smov %s4117_s15 }
 0xc8e   : > { %s5622_s9 = smov %s4105_s12  ;;  %16 = sbr.rel (!%p14_p2) target bundleno = 5 (0x5), region = 69 }
 0xc95   :  { %2894 = vsyncpa [#allocation3], 1 }
 0xc96   :  { %2896 = vsyncpa [#allocation3 + $0x1], 1 }
 0xc97   :  { %2897 = vsyncpa [#allocation4], 1 }
 0xc98   :  { %2899 = vsyncpa [#allocation4 + $0x1], 1 }

// kernel: clip_encode_image.16
= control target key start
LH: loop header
LB: loop body
LE: loop exit
PB: predicated region body
PF: predicated region fallthrough
CT: control target
= control target key end

     0   :  { %12 = vsyncpa [#allocation3], 0  ;;  %s3239_s0 = inlined_call_operand.hbm [shape: bf16[256,32], index: 0, kind: input, shape index: {}]   ;;  %s3240_s1 = inlined_call_operand.hbm [shape: f32[1,32], index: 1, kind: input, shape index: {}]   ;;  %s3241_s2 = inlined_call_operand.hbm [shape: f32[1,32], index: 2, kind: input, shape index: {}]   ;;  %s3242_s3 = inlined_call_operand.hbm [shape: bf16[32,128], index: 3, kind: input, shape index: {}]   ;;  %s3243_s4 = inlined_call_operand.hbm [shape: f32[1,128], index: 4, kind: input, shape index: {}]   ;;  %s3244_s5 = inlined_call_operand.hbm [shape: bf16[128,32], index: 5, kind: input, shape index: {}]   ;;  %s3245_s6 = inlined_call_operand.hbm [shape: f32[1,32], index: 6, kind: input, shape index: {}]   ;;  %s3246_s7 = inlined_call_operand.hbm [shape: bf16[256,32], index: 7, kind: output, shape index: {}]  }
   0x1   :  { %13 = vsyncpa [#allocation6], 0 }
   0x2   :  { %14 = vsyncpa [#allocation9], 0 }
   0x3   :  { %15 = vsyncpa [#allocation12], 0 }
   0x4   :  { %16 = vsyncpa [#allocation4], 0  ;;  %s2385_s24 = smov [#allocation5]   ;;  %s2199_s28 = scalar_lea.hbm %s3240_s1, 16 }
   0x5   :  { %s35_s25 = sshll.u32 %s2385_s24, 4  ;;  %p2200_p0 = scmp.ne.s32.totalorder %s3240_s1, %s2199_s28  ;;  %s36_s25 = int_to_ptr.vmem [resolvable:$true] %s35_s25 }
   0x6   :  { %p2203_p1 = scmp.lt.u32.totalorder %s2199_s28, %s3240_s1 }
   0x8   :  { %p2205_p2 = pnand %p2203_p1, %p2200_p0 }
   0xa   :  { %2208 = shalt.err (!%p2205_p2)
}
   0xb   :  { %s2209_s10 = scalar_lea.vmem %s36_s25, 16  ;;  %s2213_s11 = scalar_lea.vmem %s36_s25, 32 }
   0xc   :  { %p2210_p3 = scmp.ne.s32.totalorder %s36_s25, %s2209_s10  ;;  %p2214_p4 = scmp.lt.s32.totalorder %s36_s25, %s36_s25 }
   0xd   :  { %p2215_p5 = scmp.lt.s32.totalorder %s2213_s11, %s2209_s10 }
   0xf   :  { %p2216_p6 = por %p2215_p5, %p2214_p4 }
  0x11   :  { %p2217_p7 = pnand %p2216_p6, %p2210_p3 }
  0x13   :  { %2220 = shalt.err (!%p2217_p7)
}
  0x14   :  { %38 = dma.hbm_to_vmem [thread:$0]  %s3240_s1, 16, %s36_s25, [#allocation6]  }
  0x15   :  { %s2386_s14 = smov [#allocation8]   ;;  %s2387_s16 = smov [#allocation11]  }
  0x16   :  { %s54_s15 = sshll.u32 %s2386_s14, 4  ;;  %s76_s17 = sshll.u32 %s2387_s16, 4  ;;  %s55_s15 = int_to_ptr.vmem [resolvable:$true] %s54_s15  ;;  %s77_s17 = int_to_ptr.vmem [resolvable:$true] %s76_s17 }
  0x17   :  { %s2221_s20 = scalar_lea.hbm %s3242_s3, 256 }
  0x18   :  { %p2222_p8 = scmp.ne.s32.totalorder %s3242_s3, %s2221_s20  ;;  %p2225_p9 = scmp.lt.u32.totalorder %s2221_s20, %s3242_s3 }
  0x1a   :  { %p2227_p10 = pnand %p2225_p9, %p2222_p8 }
  0x1c   :  { %2230 = shalt.err (!%p2227_p10)
}
  0x1d   :  { %s2231_s1 = scalar_lea.vmem %s55_s15, 256  ;;  %p2236_p12 = scmp.lt.s32.totalorder %s55_s15, %s55_s15 }
  0x1e   :  { %p2232_p11 = scmp.ne.s32.totalorder %s55_s15, %s2231_s1  ;;  %p2237_p13 = scmp.lt.s32.totalorder %s2231_s1, %s2231_s1 }
  0x20   :  { %p2238_p0 = por %p2237_p13, %p2236_p12 }
  0x22   :  { %p2239_p1 = pnand %p2238_p0, %p2232_p11 }
  0x24   :  { %2242 = shalt.err (!%p2239_p1)
}
  0x25   :  { %s2388_s25 = smov 64   ;;  %s2389_s26 = smov 4  }
  0x26   :  { %60 = dma.hbm_to_vmem [thread:$0]  %s3242_s3, 256, %s55_s15, [#allocation9], %s2388_s25, %s2388_s25, %s2389_s26  }
  0x27   :  { %s2243_s8 = scalar_lea.hbm %s3244_s5, 1024 }
  0x28   :  { %p2244_p2 = scmp.ne.s32.totalorder %s3244_s5, %s2243_s8  ;;  %p2247_p3 = scmp.lt.u32.totalorder %s2243_s8, %s3244_s5 }
  0x2a   :  { %p2249_p4 = pnand %p2247_p3, %p2244_p2 }
  0x2c   :  { %2252 = shalt.err (!%p2249_p4)
}
  0x2d   :  { %s2253_s13 = scalar_lea.vmem %s77_s17, 1024  ;;  %p2258_p6 = scmp.lt.s32.totalorder %s77_s17, %s77_s17 }
  0x2e   :  { %p2254_p5 = scmp.ne.s32.totalorder %s77_s17, %s2253_s13  ;;  %p2259_p7 = scmp.lt.s32.totalorder %s2253_s13, %s2253_s13 }
  0x30   :  { %p2260_p8 = por %p2259_p7, %p2258_p6 }
  0x32   :  { %p2261_p9 = pnand %p2260_p8, %p2254_p5 }
  0x34   :  { %2264 = shalt.err (!%p2261_p9)
}
  0x35   :  { %82 = dma.hbm_to_vmem [thread:$0]  %s3244_s5, 1024, %s77_s17, [#allocation12], %s2388_s25, %s2388_s25, %s2389_s26  }
  0x36   :  { %s2390_s15 = smov [#allocation2]   ;;  %s2391_s18 = smov [#allocation7]  }
  0x37   :  { %s22_s16 = sshll.u32 %s2390_s15, 4  ;;  %s45_s19 = sshll.u32 %s2391_s18, 4  ;;  %s23_s16 = int_to_ptr.vmem [resolvable:$true] %s22_s16  ;;  %s46_s19 = int_to_ptr.vmem [resolvable:$true] %s45_s19 }
  0x38   :  { %s2265_s22 = scalar_lea.hbm %s3239_s0, 2048 }
  0x39   :  { %p2266_p10 = scmp.ne.s32.totalorder %s3239_s0, %s2265_s22  ;;  %p2269_p11 = scmp.lt.u32.totalorder %s2265_s22, %s3239_s0 }
  0x3b   :  { %p2271_p12 = pnand %p2269_p11, %p2266_p10 }
  0x3d   :  { %2274 = shalt.err (!%p2271_p12)
}
  0x3e   :  { %s2275_s5 = scalar_lea.vmem %s23_s16, 2048  ;;  %p2280_p0 = scmp.lt.s32.totalorder %s23_s16, %s23_s16 }
  0x3f   :  { %p2276_p13 = scmp.ne.s32.totalorder %s23_s16, %s2275_s5  ;;  %p2281_p1 = scmp.lt.s32.totalorder %s2275_s5, %s2275_s5 }
  0x41   :  { %p2282_p2 = por %p2281_p1, %p2280_p0 }
  0x43   :  { %p2283_p3 = pnand %p2282_p2, %p2276_p13 }
  0x45   :  { %2286 = shalt.err (!%p2283_p3)
}
  0x46   :  { %28 = dma.hbm_to_vmem [thread:$0]  %s3239_s0, 2048, %s23_s16, [#allocation3], %s2388_s25, %s2388_s25, %s2389_s26  }
  0x47   :  { %s2287_s8 = scalar_lea.hbm %s3241_s2, 16 }
  0x48   :  { %p2288_p4 = scmp.ne.s32.totalorder %s3241_s2, %s2287_s8  ;;  %p2291_p5 = scmp.lt.u32.totalorder %s2287_s8, %s3241_s2 }
  0x4a   :  { %p2293_p6 = pnand %p2291_p5, %p2288_p4 }
  0x4c   :  { %2296 = shalt.err (!%p2293_p6)
}
  0x4d   :  { %s2297_s13 = scalar_lea.vmem %s46_s19, 16  ;;  %s2301_s3 = scalar_lea.vmem %s46_s19, 32 }
  0x4e   :  { %p2298_p7 = scmp.ne.s32.totalorder %s46_s19, %s2297_s13  ;;  %p2302_p8 = scmp.lt.s32.totalorder %s46_s19, %s46_s19 }
  0x4f   :  { %p2303_p9 = scmp.lt.s32.totalorder %s2301_s3, %s2297_s13 }
  0x51   :  { %p2304_p10 = por %p2303_p9, %p2302_p8 }
  0x53   :  { %p2305_p11 = pnand %p2304_p10, %p2298_p7 }
  0x55   :  { %2308 = shalt.err (!%p2305_p11)
}
  0x56   :  { %48 = dma.hbm_to_vmem [thread:$0]  %s3241_s2, 16, %s46_s19, [#allocation6]  }
  0x57   :  { %s2392_s15 = smov [#allocation10]   ;;  %s2393_s18 = smov [#allocation13]  }
  0x58   :  { %s67_s16 = sshll.u32 %s2392_s15, 4  ;;  %s89_s20 = sshll.u32 %s2393_s18, 4  ;;  %s68_s16 = int_to_ptr.vmem [resolvable:$true] %s67_s16  ;;  %s90_s20 = int_to_ptr.vmem [resolvable:$true] %s89_s20 }
  0x59   :  { %s2309_s23 = scalar_lea.hbm %s3243_s4, 16 }
  0x5a   :  { %p2310_p12 = scmp.ne.s32.totalorder %s3243_s4, %s2309_s23  ;;  %p2313_p13 = scmp.lt.u32.totalorder %s2309_s23, %s3243_s4 }
  0x5c   :  { %p2315_p0 = pnand %p2313_p13, %p2310_p12 }
  0x5e   :  { %2318 = shalt.err (!%p2315_p0)
}
  0x5f   :  { %s2319_s2 = scalar_lea.vmem %s68_s16, 16  ;;  %s2323_s19 = scalar_lea.vmem %s68_s16, 32 }
  0x60   :  { %p2320_p1 = scmp.ne.s32.totalorder %s68_s16, %s2319_s2  ;;  %p2324_p2 = scmp.lt.s32.totalorder %s68_s16, %s68_s16 }
  0x61   :  { %p2325_p3 = scmp.lt.s32.totalorder %s2323_s19, %s2319_s2 }
  0x63   :  { %p2326_p4 = por %p2325_p3, %p2324_p2 }
  0x65   :  { %p2327_p5 = pnand %p2326_p4, %p2320_p1 }
  0x67   :  { %2330 = shalt.err (!%p2327_p5)
}
  0x68   :  { %70 = dma.hbm_to_vmem [thread:$0]  %s3243_s4, 16, %s68_s16, [#allocation9]  }
  0x69   :  { %s2331_s8 = scalar_lea.hbm %s3245_s6, 16 }
  0x6a   :  { %p2332_p6 = scmp.ne.s32.totalorder %s3245_s6, %s2331_s8  ;;  %p2335_p7 = scmp.lt.u32.totalorder %s2331_s8, %s3245_s6 }
  0x6c   :  { %p2337_p8 = pnand %p2335_p7, %p2332_p6 }
  0x6e   :  { %2340 = shalt.err (!%p2337_p8)
}
  0x6f   :  { %s2341_s13 = scalar_lea.vmem %s90_s20, 16  ;;  %s2345_s3 = scalar_lea.vmem %s90_s20, 32 }
  0x70   :  { %p2342_p9 = scmp.ne.s32.totalorder %s90_s20, %s2341_s13  ;;  %p2346_p10 = scmp.lt.s32.totalorder %s90_s20, %s90_s20 }
  0x71   :  { %p2347_p11 = scmp.lt.s32.totalorder %s2345_s3, %s2341_s13 }
  0x73   :  { %p2348_p12 = por %p2347_p11, %p2346_p10 }
  0x75   :  { %p2349_p13 = pnand %p2348_p12, %p2342_p9 }
  0x77   :  { %2352 = shalt.err (!%p2349_p13)
}
  0x78   :  { %92 = dma.hbm_to_vmem [thread:$0]  %s3245_s6, 16, %s90_s20, [#allocation12]  }
  0x79   :  { %2375 = dma.done.wait [#allocation3], 2048  }
  0x7a   :  { %2376 = vsyncadd [#allocation3], 4294965248 }
  0x7b   :  { %2377 = dma.done.wait [#allocation6], 32  }
  0x7c   :  { %2378 = vsyncadd [#allocation6], 4294967264 }
  0x7d   :  { %2379 = dma.done.wait [#allocation9], 272  }
  0x7e   :  { %2380 = vsyncadd [#allocation9], 4294967024 }
  0x7f   :  { %2381 = dma.done.wait [#allocation12], 1040  }
  0x80   :  { %2382 = vsyncadd [#allocation12], 4294966256  ;;  %v1767_v0 = vld [vmem:[#allocation2] sm:$0xff]   ;;  %vm179_vm0 = vcmask 261120   ;;  %v1830_v1 = vld [vmem:[#allocation2 + $0x8] sm:$0xff]   ;;  %vm1587_vm1 = vcmask 257024  }
  0x81   :  { %v2528_v2 = vunpack.c.l.bf16 %v1767_v0  ;;  %v2530_v3 = vunpack.c.l.bf16 %v1830_v1  ;;  %v2532_v4 = vunpack.c.h.bf16 %v1767_v0  ;;  %v2534_v5 = vunpack.c.h.bf16 %v1830_v1  ;;  %v1831_v6 = vld [vmem:[#allocation2 + $0x10] sm:$0xff]   ;;  %v1832_v13 = vld [vmem:[#allocation2 + $0x18] sm:$0xff]   ;;  %v1833_v18 = vld [vmem:[#allocation2 + $0x20] sm:$0xff]   ;;  %s2394_s6 = smov [#allocation14]  }
  0x82   :  { %v2540_v9 = vunpack.c.l.bf16 %v1831_v6  ;;  %v2542_v10 = vunpack.c.h.bf16 %v1831_v6  ;;  %v2552_v16 = vunpack.c.l.bf16 %v1832_v13  ;;  %v2554_v17 = vunpack.c.h.bf16 %v1832_v13  ;;  %v1834_v21 = vld [vmem:[#allocation2 + $0x28] sm:$0xff]   ;;  %v1835_v28 = vld [vmem:[#allocation2 + $0x30] sm:$0xff]   ;;  %v1836_v33 = vld [vmem:[#allocation2 + $0x38] sm:$0xff]   ;;  %s1625_s14 = sshll.u32 %s2394_s6, 4  ;;  %s1626_s14 = int_to_ptr.vmem [resolvable:$true] %s1625_s14 }
  0x83   :  { %v180_v7 = vsel %vm179_vm0, %v2528_v2, 0.0  ;;  %v186_v8 = vsel %vm179_vm0, %v2530_v3, 0.0  ;;  %v183_v11 = vsel %vm179_vm0, %v2532_v4, 0.0  ;;  %v189_v12 = vsel %vm179_vm0, %v2534_v5, 0.0  ;;  %v1837_v38 = vld [vmem:[#allocation2 + $0x40] sm:$0xff]   ;;  %v1838_v43 = vld [vmem:[#allocation2 + $0x48] sm:$0xff]   ;;  %p2358_p1 = scmp.lt.s32.totalorder %s1626_s14, %s1626_s14 }
  0x84   :  { %181 = vadd.xlane.f32.xlu0 %v180_v7  ;;  %187 = vadd.xlane.f32.xlu1 %v186_v8  ;;  %v192_v14 = vsel %vm179_vm0, %v2540_v9, 0.0  ;;  %v195_v15 = vsel %vm179_vm0, %v2542_v10, 0.0  ;;  %v198_v19 = vsel %vm179_vm0, %v2552_v16, 0.0  ;;  %v201_v20 = vsel %vm179_vm0, %v2554_v17, 0.0  ;;  %v1839_v48 = vld [vmem:[#allocation2 + $0x50] sm:$0xff]   ;;  %v1840_v53 = vld [vmem:[#allocation2 + $0x58] sm:$0xff]  }
  0x85   :  { %v2560_v22 = vunpack.c.l.bf16 %v1833_v18  ;;  %v2562_v23 = vunpack.c.h.bf16 %v1833_v18  ;;  %v2568_v26 = vunpack.c.l.bf16 %v1834_v21  ;;  %v2570_v27 = vunpack.c.h.bf16 %v1834_v21  ;;  %v1841_v58 = vld [vmem:[#allocation2 + $0x60] sm:$0xff]   ;;  %v1842_v63 = vld [vmem:[#allocation2 + $0x68] sm:$0xff]   ;;  %v1843_v8 = vld [vmem:[#allocation2 + $0x70] sm:$0xff]   ;;  %s2353_s15 = scalar_lea.vmem %s1626_s14, 2048 }
  0x86   :  { %v2576_v31 = vunpack.c.l.bf16 %v1835_v28  ;;  %v2578_v32 = vunpack.c.h.bf16 %v1835_v28  ;;  %v2584_v36 = vunpack.c.l.bf16 %v1836_v33  ;;  %v2586_v37 = vunpack.c.h.bf16 %v1836_v33  ;;  %p2354_p0 = scmp.ne.s32.totalorder %s1626_s14, %s2353_s15  ;;  %p2359_p2 = scmp.lt.s32.totalorder %s2353_s15, %s2353_s15 }
  0x87   :  { %v204_v24 = vsel %vm179_vm0, %v2560_v22, 0.0  ;;  %v207_v25 = vsel %vm179_vm0, %v2562_v23, 0.0  ;;  %v210_v29 = vsel %vm179_vm0, %v2568_v26, 0.0  ;;  %v213_v30 = vsel %vm179_vm0, %v2570_v27, 0.0 }
  0x88   :  { %184 = vadd.xlane.f32.xlu0 %v183_v11  ;;  %190 = vadd.xlane.f32.xlu1 %v189_v12  ;;  %3267 = vst [vmem:[#allocation20_spill] sm:$0xff] %v2576_v31  ;;  %3268 = vst [vmem:[#allocation21_spill] sm:$0xff] %v2578_v32  ;;  %v216_v34 = vsel %vm179_vm0, %v2576_v31, 0.0  ;;  %v219_v35 = vsel %vm179_vm0, %v2578_v32, 0.0  ;;  %v222_v39 = vsel %vm179_vm0, %v2584_v36, 0.0  ;;  %v225_v40 = vsel %vm179_vm0, %v2586_v37, 0.0  ;;  %p2360_p3 = por %p2359_p2, %p2358_p1 }
  0x89   :  { %3269 = vst [vmem:[#allocation22_spill] sm:$0xff] %v2584_v36  ;;  %3270 = vst [vmem:[#allocation23_spill] sm:$0xff] %v2586_v37  ;;  %v2592_v41 = vunpack.c.l.bf16 %v1837_v38  ;;  %v2594_v42 = vunpack.c.h.bf16 %v1837_v38  ;;  %v2600_v46 = vunpack.c.l.bf16 %v1838_v43  ;;  %v2602_v47 = vunpack.c.h.bf16 %v1838_v43 }
  0x8a   :  { %v2608_v51 = vunpack.c.l.bf16 %v1839_v48  ;;  %v2610_v52 = vunpack.c.h.bf16 %v1839_v48  ;;  %v2616_v56 = vunpack.c.l.bf16 %v1840_v53  ;;  %v2618_v57 = vunpack.c.h.bf16 %v1840_v53  ;;  %p2361_p4 = pnand %p2360_p3, %p2354_p0 }
  0x8b   :  { %3271 = vst [vmem:[#allocation24_spill] sm:$0xff] %v2592_v41  ;;  %3272 = vst [vmem:[#allocation25_spill] sm:$0xff] %v2594_v42  ;;  %v228_v44 = vsel %vm179_vm0, %v2592_v41, 0.0  ;;  %v231_v45 = vsel %vm179_vm0, %v2594_v42, 0.0  ;;  %v234_v49 = vsel %vm179_vm0, %v2600_v46, 0.0  ;;  %v237_v50 = vsel %vm179_vm0, %v2602_v47, 0.0 }
  0x8c   :  { %193 = vadd.xlane.f32.xlu0 %v192_v14  ;;  %196 = vadd.xlane.f32.xlu1 %v195_v15  ;;  %3273 = vst [vmem:[#allocation26_spill] sm:$0xff] %v2600_v46  ;;  %3274 = vst [vmem:[#allocation27_spill] sm:$0xff] %v2602_v47  ;;  %v240_v54 = vsel %vm179_vm0, %v2608_v51, 0.0  ;;  %v243_v55 = vsel %vm179_vm0, %v2610_v52, 0.0  ;;  %v246_v59 = vsel %vm179_vm0, %v2616_v56, 0.0  ;;  %v249_v60 = vsel %vm179_vm0, %v2618_v57, 0.0 }
  0x8d   :  { %3275 = vst [vmem:[#allocation28_spill] sm:$0xff] %v2608_v51  ;;  %3276 = vst [vmem:[#allocation29_spill] sm:$0xff] %v2610_v52  ;;  %v2624_v61 = vunpack.c.l.bf16 %v1841_v58  ;;  %v2626_v62 = vunpack.c.h.bf16 %v1841_v58  ;;  %v2632_v6 = vunpack.c.l.bf16 %v1842_v63  ;;  %v2634_v7 = vunpack.c.h.bf16 %v1842_v63  ;;  %v1844_v15 = vld [vmem:[#allocation2 + $0x78] sm:$0xff]  }
  0x8e   :  { %3277 = vst [vmem:[#allocation30_spill] sm:$0xff] %v2616_v56  ;;  %3278 = vst [vmem:[#allocation31_spill] sm:$0xff] %v2618_v57  ;;  %v2640_v13 = vunpack.c.l.bf16 %v1843_v8  ;;  %v2642_v14 = vunpack.c.h.bf16 %v1843_v8  ;;  %v2650_v21 = vunpack.c.h.bf16 %v1844_v15 }
  0x8f   :  { %3279 = vst [vmem:[#allocation32_spill] sm:$0xff] %v2624_v61  ;;  %3280 = vst [vmem:[#allocation33_spill] sm:$0xff] %v2626_v62  ;;  %v252_v0 = vsel %vm179_vm0, %v2624_v61, 0.0  ;;  %v255_v1 = vsel %vm179_vm0, %v2626_v62, 0.0  ;;  %v258_v11 = vsel %vm179_vm0, %v2632_v6, 0.0  ;;  %v261_v12 = vsel %vm179_vm0, %v2634_v7, 0.0 }
  0x90   :  { %199 = vadd.xlane.f32.xlu0 %v198_v19  ;;  %202 = vadd.xlane.f32.xlu1 %v201_v20  ;;  %3281 = vst [vmem:[#allocation34_spill] sm:$0xff] %v2632_v6  ;;  %3282 = vst [vmem:[#allocation35_spill] sm:$0xff] %v2634_v7  ;;  %v264_v18 = vsel %vm179_vm0, %v2640_v13, 0.0  ;;  %v267_v19 = vsel %vm179_vm0, %v2642_v14, 0.0  ;;  %v2648_v20 = vunpack.c.l.bf16 %v1844_v15 }
  0x91   :  { %3283 = vst [vmem:[#allocation36_spill] sm:$0xff] %v2640_v13  ;;  %3284 = vst [vmem:[#allocation37_spill] sm:$0xff] %v2642_v14 }
  0x92   :  { %3285 = vst [vmem:[#allocation38_spill] sm:$0xff] %v2648_v20  ;;  %3286 = vst [vmem:[#allocation39_spill] sm:$0xff] %v2650_v21 }
  0x94   :  { %205 = vadd.xlane.f32.xlu0 %v204_v24  ;;  %208 = vadd.xlane.f32.xlu1 %v207_v25  ;;  %v270_v24 = vsel %vm179_vm0, %v2648_v20, 0.0  ;;  %v273_v25 = vsel %vm179_vm0, %v2650_v21, 0.0 }
  0x98   :  { %211 = vadd.xlane.f32.xlu0 %v210_v29  ;;  %214 = vadd.xlane.f32.xlu1 %v213_v30 }
  0x9c   :  { %217 = vadd.xlane.f32.xlu0 %v216_v34  ;;  %220 = vadd.xlane.f32.xlu1 %v219_v35 }
  0xa0   :  { %223 = vadd.xlane.f32.xlu0 %v222_v39  ;;  %226 = vadd.xlane.f32.xlu1 %v225_v40 }
  0xa4   :  { %229 = vadd.xlane.f32.xlu0 %v228_v44  ;;  %232 = vadd.xlane.f32.xlu1 %v231_v45 }
  0xa8   :  { %235 = vadd.xlane.f32.xlu0 %v234_v49  ;;  %238 = vadd.xlane.f32.xlu1 %v237_v50 }
  0xac   :  { %241 = vadd.xlane.f32.xlu0 %v240_v54  ;;  %244 = vadd.xlane.f32.xlu1 %v243_v55 }
  0xb0   :  { %247 = vadd.xlane.f32.xlu0 %v246_v59  ;;  %250 = vadd.xlane.f32.xlu1 %v249_v60 }
  0xb4   :  { %253 = vadd.xlane.f32.xlu0 %v252_v0  ;;  %256 = vadd.xlane.f32.xlu1 %v255_v1 }
  0xb8   :  { %259 = vadd.xlane.f32.xlu0 %v258_v11  ;;  %262 = vadd.xlane.f32.xlu1 %v261_v12 }
  0xbc   :  { %265 = vadd.xlane.f32.xlu0 %v264_v18  ;;  %268 = vadd.xlane.f32.xlu1 %v267_v19 }
  0xc0   :  { %271 = vadd.xlane.f32.xlu0 %v270_v24  ;;  %274 = vadd.xlane.f32.xlu1 %v273_v25 }
 0x111   :  { %v182_v28 = vpop.xlane.xlu0 %181  ;;  %v188_v29 = vpop.xlane.xlu1 %187 }
 0x112   :  { %v277_v30 = vmul.f32 0.03125, %v182_v28  ;;  %v279_v33 = vmul.f32 0.03125, %v188_v29 }
 0x114   :  { %v2657_v34 = vsub.f32 %v2528_v2, %v277_v30  ;;  %v2660_v35 = vsub.f32 %v2530_v3, %v279_v33 }
 0x115   :  { %v185_v38 = vpop.xlane.xlu0 %184  ;;  %v191_v39 = vpop.xlane.xlu1 %190 }
 0x116   :  { %v278_v40 = vmul.f32 0.03125, %v185_v38  ;;  %v280_v43 = vmul.f32 0.03125, %v191_v39  ;;  %v341_v44 = vmul.f32 %v2657_v34, %v2657_v34  ;;  %v343_v45 = vmul.f32 %v2660_v35, %v2660_v35 }
 0x118   :  { %v2667_v48 = vsub.f32 %v2532_v4, %v278_v40  ;;  %v2670_v49 = vsub.f32 %v2534_v5, %v280_v43  ;;  %v373_v50 = vsel %vm179_vm0, %v341_v44, 0.0  ;;  %v379_v55 = vsel %vm179_vm0, %v343_v45, 0.0 }
 0x119   :  { %374 = vadd.xlane.f32.xlu0 %v373_v50  ;;  %v194_v53 = vpop.xlane.xlu0 %193  ;;  %v197_v54 = vpop.xlane.xlu1 %196 }
 0x11a   :  { %v281_v58 = vmul.f32 0.03125, %v194_v53  ;;  %v282_v59 = vmul.f32 0.03125, %v197_v54  ;;  %v342_v60 = vmul.f32 %v2667_v48, %v2667_v48  ;;  %v344_v63 = vmul.f32 %v2670_v49, %v2670_v49 }
 0x11c   :  { %v2679_v0 = vsub.f32 %v2540_v9, %v281_v58  ;;  %v2682_v1 = vsub.f32 %v2542_v10, %v282_v59  ;;  %v376_v8 = vsel %vm179_vm0, %v342_v60, 0.0  ;;  %v382_v15 = vsel %vm179_vm0, %v344_v63, 0.0 }
 0x11d   :  { %380 = vadd.xlane.f32.xlu0 %v379_v55  ;;  %377 = vadd.xlane.f32.xlu1 %v376_v8  ;;  %v200_v11 = vpop.xlane.xlu0 %199  ;;  %v203_v12 = vpop.xlane.xlu1 %202 }
 0x11e   :  { %v283_v18 = vmul.f32 0.03125, %v200_v11  ;;  %v284_v19 = vmul.f32 0.03125, %v203_v12  ;;  %v345_v24 = vmul.f32 %v2679_v0, %v2679_v0  ;;  %v346_v25 = vmul.f32 %v2682_v1, %v2682_v1 }
 0x120   :  { %v2691_v28 = vsub.f32 %v2552_v16, %v283_v18  ;;  %v2694_v29 = vsub.f32 %v2554_v17, %v284_v19  ;;  %v385_v30 = vsel %vm179_vm0, %v345_v24, 0.0  ;;  %v388_v39 = vsel %vm179_vm0, %v346_v25, 0.0 }
 0x121   :  { %383 = vadd.xlane.f32.xlu1 %v382_v15  ;;  %386 = vadd.xlane.f32.xlu0 %v385_v30  ;;  %v206_v33 = vpop.xlane.xlu0 %205  ;;  %v209_v38 = vpop.xlane.xlu1 %208 }
 0x122   :  { %v285_v40 = vmul.f32 0.03125, %v206_v33  ;;  %v286_v43 = vmul.f32 0.03125, %v209_v38  ;;  %v347_v44 = vmul.f32 %v2691_v28, %v2691_v28  ;;  %v348_v45 = vmul.f32 %v2694_v29, %v2694_v29 }
 0x124   :  { %v2703_v50 = vsub.f32 %v2560_v22, %v285_v40  ;;  %v2706_v53 = vsub.f32 %v2562_v23, %v286_v43  ;;  %v391_v54 = vsel %vm179_vm0, %v347_v44, 0.0  ;;  %v394_v59 = vsel %vm179_vm0, %v348_v45, 0.0 }
 0x125   :  { %389 = vadd.xlane.f32.xlu1 %v388_v39  ;;  %392 = vadd.xlane.f32.xlu0 %v391_v54  ;;  %v212_v55 = vpop.xlane.xlu0 %211  ;;  %v215_v58 = vpop.xlane.xlu1 %214 }
 0x126   :  { %v287_v60 = vmul.f32 0.03125, %v212_v55  ;;  %v288_v63 = vmul.f32 0.03125, %v215_v58  ;;  %v349_v8 = vmul.f32 %v2703_v50, %v2703_v50  ;;  %v350_v11 = vmul.f32 %v2706_v53, %v2706_v53 }
 0x128   :  { %v2715_v12 = vsub.f32 %v2568_v26, %v287_v60  ;;  %v2718_v15 = vsub.f32 %v2570_v27, %v288_v63  ;;  %v397_v18 = vsel %vm179_vm0, %v349_v8, 0.0  ;;  %v400_v25 = vsel %vm179_vm0, %v350_v11, 0.0 }
 0x129   :  { %395 = vadd.xlane.f32.xlu1 %v394_v59  ;;  %398 = vadd.xlane.f32.xlu0 %v397_v18  ;;  %v218_v19 = vpop.xlane.xlu0 %217  ;;  %v221_v24 = vpop.xlane.xlu1 %220 }
 0x12a   :  { %v289_v30 = vmul.f32 0.03125, %v218_v19  ;;  %v290_v33 = vmul.f32 0.03125, %v221_v24  ;;  %v351_v38 = vmul.f32 %v2715_v12, %v2715_v12  ;;  %v352_v39 = vmul.f32 %v2718_v15, %v2718_v15 }
 0x12c   :  { %v2727_v40 = vsub.f32 %v2576_v31, %v289_v30  ;;  %v2730_v43 = vsub.f32 %v2578_v32, %v290_v33  ;;  %v403_v44 = vsel %vm179_vm0, %v351_v38, 0.0  ;;  %v406_v55 = vsel %vm179_vm0, %v352_v39, 0.0 }
 0x12d   :  { %401 = vadd.xlane.f32.xlu1 %v400_v25  ;;  %404 = vadd.xlane.f32.xlu0 %v403_v44  ;;  %v224_v45 = vpop.xlane.xlu0 %223  ;;  %v227_v54 = vpop.xlane.xlu1 %226 }
 0x12e   :  { %v291_v58 = vmul.f32 0.03125, %v224_v45  ;;  %v292_v59 = vmul.f32 0.03125, %v227_v54  ;;  %v353_v60 = vmul.f32 %v2727_v40, %v2727_v40  ;;  %v354_v63 = vmul.f32 %v2730_v43, %v2730_v43 }
 0x130   :  { %v2739_v8 = vsub.f32 %v2584_v36, %v291_v58  ;;  %v2742_v11 = vsub.f32 %v2586_v37, %v292_v59  ;;  %v409_v18 = vsel %vm179_vm0, %v353_v60, 0.0  ;;  %v412_v25 = vsel %vm179_vm0, %v354_v63, 0.0 }
 0x131   :  { %407 = vadd.xlane.f32.xlu1 %v406_v55  ;;  %410 = vadd.xlane.f32.xlu0 %v409_v18  ;;  %v230_v19 = vpop.xlane.xlu0 %229  ;;  %v233_v24 = vpop.xlane.xlu1 %232 }
 0x132   :  { %v293_v30 = vmul.f32 0.03125, %v230_v19  ;;  %v294_v33 = vmul.f32 0.03125, %v233_v24  ;;  %v355_v38 = vmul.f32 %v2739_v8, %v2739_v8  ;;  %v356_v39 = vmul.f32 %v2742_v11, %v2742_v11 }
 0x134   :  { %v2751_v44 = vsub.f32 %v2592_v41, %v293_v30  ;;  %v2754_v45 = vsub.f32 %v2594_v42, %v294_v33  ;;  %v415_v54 = vsel %vm179_vm0, %v355_v38, 0.0  ;;  %v418_v59 = vsel %vm179_vm0, %v356_v39, 0.0 }
 0x135   :  { %413 = vadd.xlane.f32.xlu1 %v412_v25  ;;  %416 = vadd.xlane.f32.xlu0 %v415_v54  ;;  %v236_v55 = vpop.xlane.xlu0 %235  ;;  %v239_v58 = vpop.xlane.xlu1 %238 }
 0x136   :  { %v295_v60 = vmul.f32 0.03125, %v236_v55  ;;  %v296_v63 = vmul.f32 0.03125, %v239_v58  ;;  %v357_v18 = vmul.f32 %v2751_v44, %v2751_v44  ;;  %v358_v19 = vmul.f32 %v2754_v45, %v2754_v45 }
 0x138   :  { %v2763_v24 = vsub.f32 %v2600_v46, %v295_v60  ;;  %v2766_v30 = vsub.f32 %v2602_v47, %v296_v63  ;;  %v421_v25 = vsel %vm179_vm0, %v357_v18, 0.0  ;;  %v424_v39 = vsel %vm179_vm0, %v358_v19, 0.0 }
 0x139   :  { %419 = vadd.xlane.f32.xlu1 %v418_v59  ;;  %422 = vadd.xlane.f32.xlu0 %v421_v25  ;;  %v242_v33 = vpop.xlane.xlu0 %241  ;;  %v245_v38 = vpop.xlane.xlu1 %244 }
 0x13a   :  { %v297_v54 = vmul.f32 0.03125, %v242_v33  ;;  %v298_v55 = vmul.f32 0.03125, %v245_v38  ;;  %v359_v58 = vmul.f32 %v2763_v24, %v2763_v24  ;;  %v360_v60 = vmul.f32 %v2766_v30, %v2766_v30  ;;  %v1997_v33 = vld [vmem:[#allocation8] sm:$0xff]  }
 0x13b   :  { %1887 = vmatprep.subr.bf16.mxu0 %v1997_v33 }
 0x13c   :  { %v2775_v42 = vsub.f32 %v2608_v51, %v297_v54  ;;  %v2778_v63 = vsub.f32 %v2610_v52, %v298_v55  ;;  %v427_v59 = vsel %vm179_vm0, %v359_v58, 0.0  ;;  %v430_v25 = vsel %vm179_vm0, %v360_v60, 0.0  ;;  %1888 = vmatpush3.bf16.msra.mxu0 %v1997_v33 }
 0x13d   :  { %425 = vadd.xlane.f32.xlu1 %v424_v39  ;;  %428 = vadd.xlane.f32.xlu0 %v427_v59  ;;  %v248_v18 = vpop.xlane.xlu0 %247  ;;  %v251_v19 = vpop.xlane.xlu1 %250 }
 0x13e   :  { %v299_v38 = vmul.f32 0.03125, %v248_v18  ;;  %v300_v47 = vmul.f32 0.03125, %v251_v19  ;;  %v361_v41 = vmul.f32 %v2775_v42, %v2775_v42  ;;  %v362_v54 = vmul.f32 %v2778_v63, %v2778_v63  ;;  %v1998_v19 = vld [vmem:[#allocation8 + $0x8] sm:$0xff]  }
 0x13f   :  { %1889 = vmatprep.subr.bf16.mxu0 %v1998_v19 }
 0x140   :  { %v2787_v55 = vsub.f32 %v2616_v56, %v299_v38  ;;  %v2790_v39 = vsub.f32 %v2618_v57, %v300_v47  ;;  %v433_v58 = vsel %vm179_vm0, %v361_v41, 0.0  ;;  %v436_v18 = vsel %vm179_vm0, %v362_v54, 0.0  ;;  %1890 = vmatpush3.bf16.msra.mxu0 %v1998_v19 }
 0x141   :  { %431 = vadd.xlane.f32.xlu1 %v430_v25  ;;  %434 = vadd.xlane.f32.xlu0 %v433_v58  ;;  %v254_v60 = vpop.xlane.xlu0 %253  ;;  %v257_v59 = vpop.xlane.xlu1 %256 }
 0x142   :  { %v301_v52 = vmul.f32 0.03125, %v254_v60  ;;  %v302_v51 = vmul.f32 0.03125, %v257_v59  ;;  %v363_v46 = vmul.f32 %v2787_v55, %v2787_v55  ;;  %v364_v38 = vmul.f32 %v2790_v39, %v2790_v39 }
 0x144   :  { %v2799_v47 = vsub.f32 %v2624_v61, %v301_v52  ;;  %v2802_v41 = vsub.f32 %v2626_v62, %v302_v51  ;;  %v439_v25 = vsel %vm179_vm0, %v363_v46, 0.0  ;;  %v442_v58 = vsel %vm179_vm0, %v364_v38, 0.0 }
 0x145   :  { %437 = vadd.xlane.f32.xlu1 %v436_v18  ;;  %440 = vadd.xlane.f32.xlu0 %v439_v25  ;;  %v260_v33 = vpop.xlane.xlu0 %259  ;;  %v263_v54 = vpop.xlane.xlu1 %262 }
 0x146   :  { %v303_v60 = vmul.f32 0.03125, %v260_v33  ;;  %v304_v59 = vmul.f32 0.03125, %v263_v54  ;;  %v365_v57 = vmul.f32 %v2799_v47, %v2799_v47  ;;  %v366_v52 = vmul.f32 %v2802_v41, %v2802_v41 }
 0x148   :  { %v2811_v51 = vsub.f32 %v2632_v6, %v303_v60  ;;  %v2814_v46 = vsub.f32 %v2634_v7, %v304_v59  ;;  %v445_v18 = vsel %vm179_vm0, %v365_v57, 0.0  ;;  %v448_v25 = vsel %vm179_vm0, %v366_v52, 0.0 }
 0x149   :  { %443 = vadd.xlane.f32.xlu1 %v442_v58  ;;  %446 = vadd.xlane.f32.xlu0 %v445_v18  ;;  %v266_v19 = vpop.xlane.xlu0 %265  ;;  %v269_v38 = vpop.xlane.xlu1 %268 }
 0x14a   :  { %v305_v33 = vmul.f32 0.03125, %v266_v19  ;;  %v306_v54 = vmul.f32 0.03125, %v269_v38  ;;  %v367_v62 = vmul.f32 %v2811_v51, %v2811_v51  ;;  %v368_v60 = vmul.f32 %v2814_v46, %v2814_v46 }
 0x14c   :  { %v2823_v61 = vsub.f32 %v2640_v13, %v305_v33  ;;  %v2826_v59 = vsub.f32 %v2642_v14, %v306_v54  ;;  %v451_v57 = vsel %vm179_vm0, %v367_v62, 0.0  ;;  %v454_v18 = vsel %vm179_vm0, %v368_v60, 0.0 }
 0x14d   :  { %449 = vadd.xlane.f32.xlu1 %v448_v25  ;;  %452 = vadd.xlane.f32.xlu0 %v451_v57  ;;  %v272_v58 = vpop.xlane.xlu0 %271  ;;  %v275_v52 = vpop.xlane.xlu1 %274 }
 0x14e   :  { %v307_v19 = vmul.f32 0.03125, %v272_v58  ;;  %v308_v38 = vmul.f32 0.03125, %v275_v52  ;;  %v369_v7 = vmul.f32 %v2823_v61, %v2823_v61  ;;  %v370_v33 = vmul.f32 %v2826_v59, %v2826_v59 }
 0x150   :  { %v2835_v13 = vsub.f32 %v2648_v20, %v307_v19  ;;  %v2838_v54 = vsub.f32 %v2650_v21, %v308_v38  ;;  %v457_v62 = vsel %vm179_vm0, %v369_v7, 0.0  ;;  %v460_v25 = vsel %vm179_vm0, %v370_v33, 0.0 }
 0x151   :  { %455 = vadd.xlane.f32.xlu1 %v454_v18  ;;  %458 = vadd.xlane.f32.xlu0 %v457_v62 }
 0x152   :  { %v371_v60 = vmul.f32 %v2835_v13, %v2835_v13  ;;  %v372_v57 = vmul.f32 %v2838_v54, %v2838_v54 }
 0x154   :  { %v463_v58 = vsel %vm179_vm0, %v371_v60, 0.0  ;;  %v466_v52 = vsel %vm179_vm0, %v372_v57, 0.0 }
 0x155   :  { %461 = vadd.xlane.f32.xlu1 %v460_v25  ;;  %464 = vadd.xlane.f32.xlu0 %v463_v58 }
 0x159   :  { %467 = vadd.xlane.f32.xlu1 %v466_v52 }
 0x1a6   :  { %v375_v19 = vpop.xlane.xlu0 %374 }
 0x1a7   :  { %v469_v38 = vmul.f32 0.03125, %v375_v19 }
 0x1a9   :  { %v501_v7 = vadd.f32 1e-05, %v469_v38 }
 0x1aa   :  { %v378_v18 = vpop.xlane.xlu1 %377  ;;  %v381_v62 = vpop.xlane.xlu0 %380 }
 0x1ab   :  { %2007 = vrsqrt.f32 %v501_v7  ;;  %v470_v33 = vmul.f32 0.03125, %v378_v18  ;;  %v471_v14 = vmul.f32 0.03125, %v381_v62 }
 0x1ad   :  { %v502_v21 = vadd.f32 1e-05, %v470_v33  ;;  %v503_v20 = vadd.f32 1e-05, %v471_v14 }
 0x1ae   :  { %v384_v6 = vpop.xlane.xlu1 %383  ;;  %v387_v56 = vpop.xlane.xlu0 %386 }
 0x1af   :  { %2009 = vrsqrt.f32 %v502_v21  ;;  %v472_v32 = vmul.f32 0.03125, %v384_v6  ;;  %v473_v60 = vmul.f32 0.03125, %v387_v56  ;;  %v2849_v56 = vld [vmem:[#allocation5] ss:$0 sm:$0xff] }
 0x1b0   :  { %2011 = vrsqrt.f32 %v503_v20 }
 0x1b1   :  { %v504_v25 = vadd.f32 1e-05, %v472_v32  ;;  %v505_v58 = vadd.f32 1e-05, %v473_v60 }
 0x1b2   :  { %v390_v57 = vpop.xlane.xlu1 %389  ;;  %v393_v52 = vpop.xlane.xlu0 %392 }
 0x1b3   :  { %2013 = vrsqrt.f32 %v504_v25  ;;  %v474_v19 = vmul.f32 0.03125, %v390_v57  ;;  %v475_v38 = vmul.f32 0.03125, %v393_v52 }
 0x1b4   :  { %2015 = vrsqrt.f32 %v505_v58 }
 0x1b5   :  { %v2008_v37 = vpop.eup %2007  ;;  %v506_v7 = vadd.f32 1e-05, %v474_v19  ;;  %v507_v18 = vadd.f32 1e-05, %v475_v38 }
 0x1b6   :  { %v396_v62 = vpop.xlane.xlu1 %395  ;;  %v399_v33 = vpop.xlane.xlu0 %398  ;;  %v565_v14 = vmul.f32 %v2008_v37, %v2657_v34 }
 0x1b7   :  { %2017 = vrsqrt.f32 %v506_v7  ;;  %v476_v21 = vmul.f32 0.03125, %v396_v62  ;;  %v477_v6 = vmul.f32 0.03125, %v399_v33  ;;  %v2854_v7 = vld [vmem:[#allocation7] ss:$0 sm:$0xff] }
 0x1b8   :  { %2019 = vrsqrt.f32 %v507_v18  ;;  %v604_v19 = vmul.f32 %v2849_v56, %v565_v14 }
 0x1b9   :  { %v2010_v32 = vpop.eup %2009  ;;  %v508_v20 = vadd.f32 1e-05, %v476_v21  ;;  %v509_v60 = vadd.f32 1e-05, %v477_v6 }
 0x1ba   :  { %v2012_v25 = vpop.eup %2011  ;;  %v402_v57 = vpop.xlane.xlu1 %401  ;;  %v566_v58 = vmul.f32 %v2010_v32, %v2667_v48  ;;  %v643_v14 = vadd.f32 %v2854_v7, %v604_v19 }
 0x1bb   :  { %v405_v52 = vpop.xlane.xlu0 %404  ;;  %v567_v38 = vmul.f32 %v2012_v25, %v2660_v35  ;;  %2021 = vrsqrt.f32 %v508_v20  ;;  %v478_v37 = vmul.f32 0.03125, %v402_v57 }
 0x1bc   :  { %v479_v34 = vmul.f32 0.03125, %v405_v52  ;;  %2023 = vrsqrt.f32 %v509_v60  ;;  %v605_v18 = vmul.f32 %v2849_v56, %v566_v58 }
 0x1bd   :  { %v2014_v62 = vpop.eup %2013  ;;  %v510_v33 = vadd.f32 1e-05, %v478_v37  ;;  %v606_v32 = vmul.f32 %v2849_v56, %v567_v38 }
 0x1be   :  { %v511_v21 = vadd.f32 1e-05, %v479_v34  ;;  %v2016_v6 = vpop.eup %2015  ;;  %v568_v31 = vmul.f32 %v2014_v62, %v2670_v49  ;;  %v408_v36 = vpop.xlane.xlu1 %407  ;;  %v644_v35 = vadd.f32 %v2854_v7, %v605_v18 }
 0x1bf   :  { %v411_v48 = vpop.xlane.xlu0 %410  ;;  %v569_v20 = vmul.f32 %v2016_v6, %v2679_v0  ;;  %2025 = vrsqrt.f32 %v510_v33  ;;  %v480_v60 = vmul.f32 0.03125, %v408_v36  ;;  %v645_v38 = vadd.f32 %v2854_v7, %v606_v32 }
 0x1c0   :  { %v481_v25 = vmul.f32 0.03125, %v411_v48  ;;  %2027 = vrsqrt.f32 %v511_v21  ;;  %v675_v57 = vpack.c.bf16 %v644_v35, %v643_v14  ;;  %v607_v52 = vmul.f32 %v2849_v56, %v568_v31 }
 0x1c1   :  { %v2018_v58 = vpop.eup %2017  ;;  %v512_v37 = vadd.f32 1e-05, %v480_v60  ;;  %v608_v36 = vmul.f32 %v2849_v56, %v569_v20 }
 0x1c2   :  { %v513_v49 = vadd.f32 1e-05, %v481_v25  ;;  %v2020_v34 = vpop.eup %2019  ;;  %v570_v62 = vmul.f32 %v2018_v58, %v2682_v1  ;;  %v414_v19 = vpop.xlane.xlu1 %413  ;;  %1891 = vmatprep.mubr.msk.bf16.mxu0 %vm179_vm0, %v675_v57  ;;  %v646_v0 = vadd.f32 %v2854_v7, %v607_v52 }
 0x1c3   :  { %v417_v18 = vpop.xlane.xlu0 %416  ;;  %v571_v33 = vmul.f32 %v2020_v34, %v2691_v28  ;;  %2029 = vrsqrt.f32 %v512_v37  ;;  %v482_v31 = vmul.f32 0.03125, %v414_v19  ;;  %v647_v20 = vadd.f32 %v2854_v7, %v608_v36 }
 0x1c4   :  { %v483_v21 = vmul.f32 0.03125, %v417_v18  ;;  %2031 = vrsqrt.f32 %v513_v49  ;;  %v676_v6 = vpack.c.bf16 %v646_v0, %v645_v38  ;;  %v609_v48 = vmul.f32 %v2849_v56, %v570_v62 }
 0x1c5   :  { %v2022_v1 = vpop.eup %2021  ;;  %v514_v14 = vadd.f32 1e-05, %v482_v31  ;;  %v610_v52 = vmul.f32 %v2849_v56, %v571_v33 }
 0x1c6   :  { %v515_v35 = vadd.f32 1e-05, %v483_v21  ;;  %v2024_v60 = vpop.eup %2023  ;;  %v572_v25 = vmul.f32 %v2022_v1, %v2694_v29  ;;  %v420_v32 = vpop.xlane.xlu1 %419  ;;  %1892 = vmatmul.mubr.msk.bf16.vlgmr.msra.gmra.mrb[0].mxu0 %vm179_vm0, %v676_v6  ;;  %v648_v28 = vadd.f32 %v2854_v7, %v609_v48 }
 0x1c7   :  { %v423_v57 = vpop.xlane.xlu0 %422  ;;  %v573_v58 = vmul.f32 %v2024_v60, %v2703_v50  ;;  %2033 = vrsqrt.f32 %v514_v14  ;;  %v484_v37 = vmul.f32 0.03125, %v420_v32  ;;  %v649_v33 = vadd.f32 %v2854_v7, %v610_v52 }
 0x1c8   :  { %v485_v49 = vmul.f32 0.03125, %v423_v57  ;;  %2035 = vrsqrt.f32 %v515_v35  ;;  %v677_v34 = vpack.c.bf16 %v648_v28, %v647_v20  ;;  %v611_v62 = vmul.f32 %v2849_v56, %v572_v25 }
 0x1c9   :  { %v2026_v29 = vpop.eup %2025  ;;  %v516_v19 = vadd.f32 1e-05, %v484_v37  ;;  %v612_v21 = vmul.f32 %v2849_v56, %v573_v58 }
 0x1ca   :  { %v517_v18 = vadd.f32 1e-05, %v485_v49  ;;  %v2028_v38 = vpop.eup %2027  ;;  %v574_v0 = vmul.f32 %v2026_v29, %v2706_v53  ;;  %v426_v36 = vpop.xlane.xlu1 %425  ;;  %1895 = vmatprep.mubr.msk.bf16.mxu0 %vm179_vm0, %v677_v34  ;;  %v650_v50 = vadd.f32 %v2854_v7, %v611_v62 }
 0x1cb   :  { %v429_v31 = vpop.xlane.xlu0 %428  ;;  %v575_v6 = vmul.f32 %v2028_v38, %v2715_v12  ;;  %2037 = vrsqrt.f32 %v516_v19  ;;  %v486_v48 = vmul.f32 0.03125, %v426_v36  ;;  %v651_v52 = vadd.f32 %v2854_v7, %v612_v21 }
 0x1cc   :  { %v487_v1 = vmul.f32 0.03125, %v429_v31  ;;  %2039 = vrsqrt.f32 %v517_v18  ;;  %v678_v14 = vpack.c.bf16 %v650_v50, %v649_v33  ;;  %v613_v35 = vmul.f32 %v2849_v56, %v574_v0 }
 0x1cd   :  { %v2030_v53 = vpop.eup %2029  ;;  %v518_v60 = vadd.f32 1e-05, %v486_v48  ;;  %v614_v58 = vmul.f32 %v2849_v56, %v575_v6 }
 0x1ce   :  { %v519_v25 = vadd.f32 1e-05, %v487_v1  ;;  %v2032_v32 = vpop.eup %2031  ;;  %v576_v57 = vmul.f32 %v2030_v53, %v2718_v15  ;;  %v432_v20 = vpop.xlane.xlu1 %431  ;;  %1896 = vmatmul.mubr.msk.bf16.gmra.mrb[4].mxu0 %vm179_vm0, %v678_v14  ;;  %v652_v12 = vadd.f32 %v2854_v7, %v613_v35 }
 0x1cf   :  { %v435_v28 = vpop.xlane.xlu0 %434  ;;  %v577_v37 = vmul.f32 %v2032_v32, %v2727_v40  ;;  %2041 = vrsqrt.f32 %v518_v60  ;;  %v488_v49 = vmul.f32 0.03125, %v432_v20  ;;  %v653_v33 = vadd.f32 %v2854_v7, %v614_v58 }
 0x1d0   :  { %v489_v34 = vmul.f32 0.03125, %v435_v28  ;;  %2043 = vrsqrt.f32 %v519_v25  ;;  %v679_v62 = vpack.c.bf16 %v652_v12, %v651_v52  ;;  %v615_v29 = vmul.f32 %v2849_v56, %v576_v57 }
 0x1d1   :  { %v2034_v15 = vpop.eup %2033  ;;  %v520_v19 = vadd.f32 1e-05, %v488_v49  ;;  %v616_v50 = vmul.f32 %v2849_v56, %v577_v37 }
 0x1d2   :  { %v521_v18 = vadd.f32 1e-05, %v489_v34  ;;  %v2036_v38 = vpop.eup %2035  ;;  %v578_v0 = vmul.f32 %v2034_v15, %v2730_v43  ;;  %v438_v36 = vpop.xlane.xlu1 %437  ;;  %1899 = vmatprep.mubr.msk.bf16.mxu0 %vm179_vm0, %v679_v62  ;;  %v654_v40 = vadd.f32 %v2854_v7, %v615_v29 }
 0x1d3   :  { %v441_v31 = vpop.xlane.xlu0 %440  ;;  %v579_v21 = vmul.f32 %v2036_v38, %v2739_v8  ;;  %2045 = vrsqrt.f32 %v520_v19  ;;  %v490_v6 = vmul.f32 0.03125, %v438_v36  ;;  %v655_v20 = vadd.f32 %v2854_v7, %v616_v50 }
 0x1d4   :  { %v491_v48 = vmul.f32 0.03125, %v441_v31  ;;  %2047 = vrsqrt.f32 %v521_v18  ;;  %v680_v1 = vpack.c.bf16 %v654_v40, %v653_v33  ;;  %v617_v14 = vmul.f32 %v2849_v56, %v578_v0 }
 0x1d5   :  { %v2038_v43 = vpop.eup %2037  ;;  %v522_v35 = vadd.f32 1e-05, %v490_v6  ;;  %v618_v28 = vmul.f32 %v2849_v56, %v579_v21 }
 0x1d6   :  { %v523_v53 = vadd.f32 1e-05, %v491_v48  ;;  %v2040_v60 = vpop.eup %2039  ;;  %v580_v25 = vmul.f32 %v2038_v43, %v2742_v11  ;;  %v444_v32 = vpop.xlane.xlu1 %443  ;;  %1900 = vmatmul.mubr.msk.bf16.gmra.mrb[8].mxu0 %vm179_vm0, %v680_v1  ;;  %v656_v8 = vadd.f32 %v2854_v7, %v617_v14 }
 0x1d7   :  { %v447_v57 = vpop.xlane.xlu0 %446  ;;  %v581_v52 = vmul.f32 %v2040_v60, %v2751_v44  ;;  %2049 = vrsqrt.f32 %v522_v35  ;;  %v492_v12 = vmul.f32 0.03125, %v444_v32  ;;  %v657_v38 = vadd.f32 %v2854_v7, %v618_v28 }
 0x1d8   :  { %v493_v58 = vmul.f32 0.03125, %v447_v57  ;;  %2051 = vrsqrt.f32 %v523_v53  ;;  %v681_v37 = vpack.c.bf16 %v656_v8, %v655_v20  ;;  %v619_v49 = vmul.f32 %v2849_v56, %v580_v25 }
 0x1d9   :  { %v2042_v11 = vpop.eup %2041  ;;  %v524_v34 = vadd.f32 1e-05, %v492_v12  ;;  %v620_v0 = vmul.f32 %v2849_v56, %v581_v52 }
 0x1da   :  { %v525_v62 = vadd.f32 1e-05, %v493_v58  ;;  %v2044_v29 = vpop.eup %2043  ;;  %v582_v15 = vmul.f32 %v2042_v11, %v2754_v45  ;;  %v450_v19 = vpop.xlane.xlu1 %449  ;;  %1903 = vmatprep.mubr.msk.bf16.mxu0 %vm179_vm0, %v681_v37  ;;  %v658_v44 = vadd.f32 %v2854_v7, %v619_v49 }
 0x1db   :  { %v453_v18 = vpop.xlane.xlu0 %452  ;;  %v583_v36 = vmul.f32 %v2044_v29, %v2763_v24  ;;  %2053 = vrsqrt.f32 %v524_v34  ;;  %v494_v31 = vmul.f32 0.03125, %v450_v19  ;;  %v659_v35 = vadd.f32 %v2854_v7, %v620_v0 }
 0x1dc   :  { %v495_v33 = vmul.f32 0.03125, %v453_v18  ;;  %2055 = vrsqrt.f32 %v525_v62  ;;  %v682_v40 = vpack.c.bf16 %v658_v44, %v657_v38  ;;  %v621_v50 = vmul.f32 %v2849_v56, %v582_v15 }
 0x1dd   :  { %v2046_v45 = vpop.eup %2045  ;;  %v526_v21 = vadd.f32 1e-05, %v494_v31  ;;  %v622_v53 = vmul.f32 %v2849_v56, %v583_v36 }
 0x1de   :  { %v527_v6 = vadd.f32 1e-05, %v495_v33  ;;  %v2048_v48 = vpop.eup %2047  ;;  %v584_v1 = vmul.f32 %v2046_v45, %v2766_v30  ;;  %v456_v14 = vpop.xlane.xlu1 %455  ;;  %1904 = vmatmul.mubr.msk.bf16.gmra.mrb[12].mxu0 %vm179_vm0, %v682_v40  ;;  %v660_v24 = vadd.f32 %v2854_v7, %v621_v50 }
 0x1df   :  { %v459_v43 = vpop.xlane.xlu0 %458  ;;  %v585_v60 = vmul.f32 %v2048_v48, %v2775_v42  ;;  %2057 = vrsqrt.f32 %v526_v21  ;;  %v496_v25 = vmul.f32 0.03125, %v456_v14  ;;  %v661_v49 = vadd.f32 %v2854_v7, %v622_v53 }
 0x1e0   :  { %v497_v32 = vmul.f32 0.03125, %v459_v43  ;;  %2059 = vrsqrt.f32 %v527_v6  ;;  %v683_v57 = vpack.c.bf16 %v660_v24, %v659_v35  ;;  %v623_v20 = vmul.f32 %v2849_v56, %v584_v1 }
 0x1e1   :  { %v2050_v30 = vpop.eup %2049  ;;  %v528_v8 = vadd.f32 1e-05, %v496_v25  ;;  %v624_v11 = vmul.f32 %v2849_v56, %v585_v60 }
 0x1e2   :  { %v529_v28 = vadd.f32 1e-05, %v497_v32  ;;  %v2052_v52 = vpop.eup %2051  ;;  %v586_v12 = vmul.f32 %v2050_v30, %v2778_v63  ;;  %v462_v58 = vpop.xlane.xlu1 %461  ;;  %1907 = vmatprep.mubr.msk.bf16.mxu0 %vm179_vm0, %v683_v57  ;;  %v662_v42 = vadd.f32 %v2854_v7, %v623_v20 }
 0x1e3   :  { %v465_v37 = vpop.xlane.xlu0 %464  ;;  %v587_v34 = vmul.f32 %v2052_v52, %v2787_v55  ;;  %2061 = vrsqrt.f32 %v528_v8  ;;  %v498_v62 = vmul.f32 0.03125, %v462_v58  ;;  %v663_v31 = vadd.f32 %v2854_v7, %v624_v11 }
 0x1e4   :  { %v499_v29 = vmul.f32 0.03125, %v465_v37  ;;  %2063 = vrsqrt.f32 %v529_v28  ;;  %v684_v15 = vpack.c.bf16 %v662_v42, %v661_v49  ;;  %v625_v19 = vmul.f32 %v2849_v56, %v586_v12 }
 0x1e5   :  { %v2054_v63 = vpop.eup %2053  ;;  %v530_v18 = vadd.f32 1e-05, %v498_v62  ;;  %v626_v33 = vmul.f32 %v2849_v56, %v587_v34 }
 0x1e6   :  { %v531_v38 = vadd.f32 1e-05, %v499_v29  ;;  %v2056_v44 = vpop.eup %2055  ;;  %v588_v0 = vmul.f32 %v2054_v63, %v2790_v39  ;;  %v468_v36 = vpop.xlane.xlu1 %467  ;;  %1908 = vmatmul.mubr.msk.bf16.gmra.mrb[16].mxu0 %vm179_vm0, %v684_v15  ;;  %v664_v55 = vadd.f32 %v2854_v7, %v625_v19 }
 0x1e7   :  { %v589_v40 = vmul.f32 %v2056_v44, %v2799_v47  ;;  %2065 = vrsqrt.f32 %v530_v18  ;;  %v500_v50 = vmul.f32 0.03125, %v468_v36  ;;  %v665_v14 = vadd.f32 %v2854_v7, %v626_v33  ;;  %v2002_v44 = vld [vmem:[#allocation11 + $0x18] sm:$0xff]   ;;  %v2005_v36 = vld [vmem:[#allocation11 + $0x30] sm:$0xff]  }
 0x1e8   :  { %2067 = vrsqrt.f32 %v531_v38  ;;  %v685_v45 = vpack.c.bf16 %v664_v55, %v663_v31  ;;  %v627_v21 = vmul.f32 %v2849_v56, %v588_v0  ;;  %v2000_v38 = vld [vmem:[#allocation11 + $0x8] sm:$0xff]   ;;  %v2006_v31 = vld [vmem:[#allocation11 + $0x38] sm:$0xff]  }
 0x1e9   :  { %v2058_v6 = vpop.eup %2057  ;;  %v532_v48 = vadd.f32 1e-05, %v500_v50  ;;  %v628_v35 = vmul.f32 %v2849_v56, %v589_v40  ;;  %v2004_v0 = vld [vmem:[#allocation11 + $0x28] sm:$0xff]   ;;  %v2964_v55 = vld [vmem:[#allocation10] ss:$0 sm:$0xff] }
 0x1ea   :  { %v2060_v39 = vpop.eup %2059  ;;  %v590_v1 = vmul.f32 %v2058_v6, %v2802_v41  ;;  %1911 = vmatprep.mubr.msk.bf16.mxu0 %vm179_vm0, %v685_v45  ;;  %v666_v43 = vadd.f32 %v2854_v7, %v627_v21 }
 0x1eb   :  { %v591_v47 = vmul.f32 %v2060_v39, %v2811_v51  ;;  %2069 = vrsqrt.f32 %v532_v48  ;;  %v667_v41 = vadd.f32 %v2854_v7, %v628_v35 }
 0x1ec   :  { %v686_v24 = vpack.c.bf16 %v666_v43, %v665_v14  ;;  %v629_v53 = vmul.f32 %v2849_v56, %v590_v1 }
 0x1ed   :  { %v2062_v60 = vpop.eup %2061  ;;  %v630_v20 = vmul.f32 %v2849_v56, %v591_v47 }
 0x1ee   :  { %v2064_v25 = vpop.eup %2063  ;;  %v592_v32 = vmul.f32 %v2062_v60, %v2814_v46  ;;  %1912 = vmatmul.mubr.msk.bf16.gmra.mrb[20].mxu0 %vm179_vm0, %v686_v24  ;;  %v668_v57 = vadd.f32 %v2854_v7, %v629_v53 }
 0x1ef   :  { %v593_v30 = vmul.f32 %v2064_v25, %v2823_v61  ;;  %v669_v46 = vadd.f32 %v2854_v7, %v630_v20 }
 0x1f0   :  { %v687_v8 = vpack.c.bf16 %v668_v57, %v667_v41  ;;  %v631_v51 = vmul.f32 %v2849_v56, %v592_v32 }
 0x1f1   :  { %v2066_v28 = vpop.eup %2065  ;;  %v632_v37 = vmul.f32 %v2849_v56, %v593_v30 }
 0x1f2   :  { %v2068_v52 = vpop.eup %2067  ;;  %v594_v12 = vmul.f32 %v2066_v28, %v2826_v59  ;;  %1915 = vmatprep.mubr.msk.bf16.mxu0 %vm179_vm0, %v687_v8  ;;  %v670_v58 = vadd.f32 %v2854_v7, %v631_v51 }
 0x1f3   :  { %v595_v49 = vmul.f32 %v2068_v52, %v2835_v13  ;;  %v671_v59 = vadd.f32 %v2854_v7, %v632_v37 }
 0x1f4   :  { %v688_v42 = vpack.c.bf16 %v670_v58, %v669_v46  ;;  %v633_v61 = vmul.f32 %v2849_v56, %v594_v12 }
 0x1f5   :  { %v2070_v11 = vpop.eup %2069  ;;  %v634_v29 = vmul.f32 %v2849_v56, %v595_v49 }
 0x1f6   :  { %v596_v34 = vmul.f32 %v2070_v11, %v2838_v54  ;;  %1916 = vmatmul.mubr.msk.bf16.gmra.mrb[24].mxu0 %vm179_vm0, %v688_v42  ;;  %v672_v62 = vadd.f32 %v2854_v7, %v633_v61  ;;  %v1999_v54 = vld [vmem:[#allocation11] sm:$0xff]  }
 0x1f7   :  { %v673_v13 = vadd.f32 %v2854_v7, %v634_v29  ;;  %1923 = vmatprep.subr.bf16.mxu0 %v1999_v54  ;;  %1971 = vmatprep.subr.bf16.mxu1 %v1999_v54 }
 0x1f8   :  { %v689_v15 = vpack.c.bf16 %v672_v62, %v671_v59  ;;  %v635_v19 = vmul.f32 %v2849_v56, %v596_v34  ;;  %1924 = vmatpush3.bf16.msra.mxu0 %v1999_v54  ;;  %1979 = vmatpush3.bf16.msra.mxu1 %v1999_v54  ;;  %v2001_v56 = vld [vmem:[#allocation11 + $0x10] sm:$0xff]  }
 0x1f9   :  { %1925 = vmatprep.subr.bf16.mxu0 %v2000_v38  ;;  %1972 = vmatprep.subr.bf16.mxu1 %v2000_v38 }
 0x1fa   :  { %1919 = vmatprep.mubr.msk.bf16.mxu0 %vm179_vm0, %v689_v15  ;;  %v674_v63 = vadd.f32 %v2854_v7, %v635_v19  ;;  %v2003_v7 = vld [vmem:[#allocation11 + $0x20] sm:$0xff]  }
 0x1fc   :  { %v690_v18 = vpack.c.bf16 %v674_v63, %v673_v13  ;;  %1926 = vmatpush3.bf16.msra.mxu0 %v2000_v38  ;;  %1980 = vmatpush3.bf16.msra.mxu1 %v2000_v38 }
 0x1fd   :  { %1927 = vmatprep.subr.bf16.mxu0 %v2001_v56  ;;  %1973 = vmatprep.subr.bf16.mxu1 %v2001_v56 }
 0x1fe   :  { %1920 = vmatmul.mubr.msk.bf16.gmra.mrb[28].mxu0 %vm179_vm0, %v690_v18 }
 0x200   :  { %1928 = vmatpush3.bf16.msra.mxu0 %v2001_v56  ;;  %1981 = vmatpush3.bf16.msra.mxu1 %v2001_v56 }
 0x201   :  { %1929 = vmatprep.subr.bf16.mxu0 %v2002_v44  ;;  %1974 = vmatprep.subr.bf16.mxu1 %v2002_v44 }
 0x204   :  { %1930 = vmatpush3.bf16.msra.mxu0 %v2002_v44  ;;  %1982 = vmatpush3.bf16.msra.mxu1 %v2002_v44 }
 0x205   :  { %1931 = vmatprep.subr.bf16.mxu0 %v2003_v7  ;;  %1975 = vmatprep.subr.bf16.mxu1 %v2003_v7 }
 0x208   :  { %1932 = vmatpush3.bf16.msra.mxu0 %v2003_v7  ;;  %1983 = vmatpush3.bf16.msra.mxu1 %v2003_v7 }
 0x209   :  { %1933 = vmatprep.subr.bf16.mxu0 %v2004_v0  ;;  %1976 = vmatprep.subr.bf16.mxu1 %v2004_v0 }
 0x20c   :  { %1934 = vmatpush3.bf16.msra.mxu0 %v2004_v0  ;;  %1984 = vmatpush3.bf16.msra.mxu1 %v2004_v0 }
 0x20d   :  { %1935 = vmatprep.subr.bf16.mxu0 %v2005_v36  ;;  %1977 = vmatprep.subr.bf16.mxu1 %v2005_v36 }
 0x210   :  { %1936 = vmatpush3.bf16.msra.mxu0 %v2005_v36  ;;  %1985 = vmatpush3.bf16.msra.mxu1 %v2005_v36 }
 0x211   :  { %1937 = vmatprep.subr.bf16.mxu0 %v2006_v31  ;;  %1978 = vmatprep.subr.bf16.mxu1 %v2006_v31 }
 0x214   :  { %1938 = vmatpush3.bf16.msra.mxu0 %v2006_v31  ;;  %1986 = vmatpush3.bf16.msra.mxu1 %v2006_v31 }
 0x299   :  { %v1893_v33 = vpop.f32.mrb[0].mxu0 }
 0x29a   :  { %v2967_v40 = vadd.f32 %v1893_v33, %v2964_v55  ;;  %v796_v50 = vpop.f32.mrb[1].mxu0 }
 0x29b   :  { %v2970_v45 = vadd.f32 %v2964_v55, %v796_v50  ;;  %v1894_v21 = vpop.f32.mrb[2].mxu0 }
 0x29c   :  { %v1663_v6 = vmul.f32 -1.702, %v2967_v40  ;;  %v2974_v48 = vadd.f32 %v1894_v21, %v2964_v55  ;;  %v799_v39 = vpop.f32.mrb[3].mxu0 }
 0x29d   :  { %v1661_v1 = vmul.f32 -1.702, %v2970_v45  ;;  %v2978_v14 = vadd.f32 %v2964_v55, %v799_v39 }
 0x29e   :  { %v991_v43 = vmul.f32 1.442695, %v1663_v6  ;;  %v1664_v35 = vmul.f32 -1.702, %v2974_v48 }
 0x29f   :  { %v987_v47 = vmul.f32 1.442695, %v1661_v1  ;;  %v1662_v24 = vmul.f32 -1.702, %v2978_v14 }
 0x2a0   :  { %2071 = vpow2.f32 %v991_v43  ;;  %v993_v53 = vmul.f32 1.442695, %v1664_v35 }
 0x2a1   :  { %2073 = vpow2.f32 %v987_v47  ;;  %v989_v60 = vmul.f32 1.442695, %v1662_v24  ;;  %v1897_v25 = vpop.f32.mrb[4].mxu0 }
 0x2a2   :  { %2075 = vpow2.f32 %v993_v53  ;;  %v2983_v32 = vadd.f32 %v1897_v25, %v2964_v55  ;;  %v812_v41 = vpop.f32.mrb[5].mxu0 }
 0x2a3   :  { %2077 = vpow2.f32 %v989_v60  ;;  %v2986_v57 = vadd.f32 %v2964_v55, %v812_v41  ;;  %v1898_v20 = vpop.f32.mrb[6].mxu0 }
 0x2a4   :  { %v1667_v30 = vmul.f32 -1.702, %v2983_v32  ;;  %v2990_v8 = vadd.f32 %v1898_v20, %v2964_v55  ;;  %v815_v51 = vpop.f32.mrb[7].mxu0 }
 0x2a5   :  { %v1665_v28 = vmul.f32 -1.702, %v2986_v57  ;;  %v2994_v52 = vadd.f32 %v2964_v55, %v815_v51 }
 0x2a6   :  { %v999_v12 = vmul.f32 1.442695, %v1667_v30  ;;  %v1668_v46 = vmul.f32 -1.702, %v2990_v8 }
 0x2a7   :  { %v995_v58 = vmul.f32 1.442695, %v1665_v28  ;;  %v1666_v37 = vmul.f32 -1.702, %v2994_v52 }
 0x2a8   :  { %2079 = vpow2.f32 %v999_v12  ;;  %v1001_v49 = vmul.f32 1.442695, %v1668_v46 }
 0x2a9   :  { %2081 = vpow2.f32 %v995_v58  ;;  %v997_v42 = vmul.f32 1.442695, %v1666_v37  ;;  %v1901_v61 = vpop.f32.mrb[8].mxu0 }
 0x2aa   :  { %v2072_v11 = vpop.eup %2071  ;;  %2083 = vpow2.f32 %v1001_v49  ;;  %v2999_v34 = vadd.f32 %v1901_v61, %v2964_v55  ;;  %v828_v59 = vpop.f32.mrb[9].mxu0 }
 0x2ab   :  { %v2074_v62 = vpop.eup %2073  ;;  %v1053_v29 = vadd.f32 1.0, %v2072_v11  ;;  %2085 = vpow2.f32 %v997_v42  ;;  %v3002_v15 = vadd.f32 %v2964_v55, %v828_v59  ;;  %v1902_v19 = vpop.f32.mrb[10].mxu0 }
 0x2ac   :  { %v2076_v13 = vpop.eup %2075  ;;  %v1051_v63 = vadd.f32 1.0, %v2074_v62  ;;  %v1671_v18 = vmul.f32 -1.702, %v2999_v34  ;;  %v3006_v54 = vadd.f32 %v1902_v19, %v2964_v55  ;;  %v831_v38 = vpop.f32.mrb[11].mxu0 }
 0x2ad   :  { %v2078_v56 = vpop.eup %2077  ;;  %2087 = vrcp.f32 %v1053_v29  ;;  %v1054_v44 = vadd.f32 1.0, %v2076_v13  ;;  %v1669_v7 = vmul.f32 -1.702, %v3002_v15  ;;  %v3010_v0 = vadd.f32 %v2964_v55, %v831_v38 }
 0x2ae   :  { %2089 = vrcp.f32 %v1051_v63  ;;  %v1052_v36 = vadd.f32 1.0, %v2078_v56  ;;  %v1007_v31 = vmul.f32 1.442695, %v1671_v18  ;;  %v1672_v33 = vmul.f32 -1.702, %v3006_v54 }
 0x2af   :  { %2091 = vrcp.f32 %v1054_v44  ;;  %v1003_v50 = vmul.f32 1.442695, %v1669_v7  ;;  %v1670_v21 = vmul.f32 -1.702, %v3010_v0 }
 0x2b0   :  { %2093 = vrcp.f32 %v1052_v36  ;;  %v1009_v6 = vmul.f32 1.442695, %v1672_v33 }
 0x2b1   :  { %2095 = vpow2.f32 %v1007_v31  ;;  %v1005_v39 = vmul.f32 1.442695, %v1670_v21  ;;  %v1905_v1 = vpop.f32.mrb[12].mxu0 }
 0x2b2   :  { %v2080_v43 = vpop.eup %2079  ;;  %2097 = vpow2.f32 %v1003_v50  ;;  %v3015_v35 = vadd.f32 %v1905_v1, %v2964_v55  ;;  %v844_v47 = vpop.f32.mrb[13].mxu0 }
 0x2b3   :  { %v2082_v24 = vpop.eup %2081  ;;  %v1057_v53 = vadd.f32 1.0, %v2080_v43  ;;  %2099 = vpow2.f32 %v1009_v6  ;;  %v3018_v60 = vadd.f32 %v2964_v55, %v844_v47  ;;  %v1906_v25 = vpop.f32.mrb[14].mxu0 }
 0x2b4   :  { %v2084_v41 = vpop.eup %2083  ;;  %v1055_v20 = vadd.f32 1.0, %v2082_v24  ;;  %2101 = vpow2.f32 %v1005_v39  ;;  %v1675_v30 = vmul.f32 -1.702, %v3015_v35  ;;  %v3022_v51 = vadd.f32 %v1906_v25, %v2964_v55  ;;  %v847_v28 = vpop.f32.mrb[15].mxu0 }
 0x2b5   :  { %v2086_v12 = vpop.eup %2085  ;;  %2103 = vrcp.f32 %v1057_v53  ;;  %v1058_v46 = vadd.f32 1.0, %v2084_v41  ;;  %v1673_v58 = vmul.f32 -1.702, %v3018_v60  ;;  %v3026_v37 = vadd.f32 %v2964_v55, %v847_v28 }
 0x2b6   :  { %2105 = vrcp.f32 %v1055_v20  ;;  %v1056_v49 = vadd.f32 1.0, %v2086_v12  ;;  %v1015_v42 = vmul.f32 1.442695, %v1675_v30  ;;  %v1676_v61 = vmul.f32 -1.702, %v3022_v51 }
 0x2b7   :  { %v2088_v11 = vpop.eup %2087  ;;  %2107 = vrcp.f32 %v1058_v46  ;;  %v1011_v59 = vmul.f32 1.442695, %v1673_v58  ;;  %v1674_v62 = vmul.f32 -1.702, %v3026_v37 }
 0x2b8   :  { %v2090_v29 = vpop.eup %2089  ;;  %2109 = vrcp.f32 %v1056_v49  ;;  %v1017_v19 = vmul.f32 1.442695, %v1676_v61  ;;  %v1149_v56 = vmul.f32 %v2088_v11, %v2967_v40 }
 0x2b9   :  { %v2092_v13 = vpop.eup %2091  ;;  %2111 = vpow2.f32 %v1015_v42  ;;  %v1013_v63 = vmul.f32 1.442695, %v1674_v62  ;;  %v1909_v18 = vpop.f32.mrb[16].mxu0  ;;  %v1147_v33 = vmul.f32 %v2090_v29, %v2970_v45 }
 0x2ba   :  { %v2094_v38 = vpop.eup %2093  ;;  %v1150_v44 = vmul.f32 %v2092_v13, %v2974_v48  ;;  %2113 = vpow2.f32 %v1011_v59  ;;  %v3033_v7 = vadd.f32 %v1909_v18, %v2964_v55  ;;  %v860_v36 = vpop.f32.mrb[17].mxu0 }
 0x2bb   :  { %v2096_v31 = vpop.eup %2095  ;;  %v1148_v50 = vmul.f32 %v2094_v38, %v2978_v14  ;;  %2115 = vpow2.f32 %v1017_v19  ;;  %v3038_v21 = vadd.f32 %v2964_v55, %v860_v36  ;;  %v1910_v6 = vpop.f32.mrb[18].mxu0 }
 0x2bc   :  { %v2098_v39 = vpop.eup %2097  ;;  %v1180_v1 = vpack.c.bf16 %v1150_v44, %v1149_v56  ;;  %v1061_v40 = vadd.f32 1.0, %v2096_v31  ;;  %2117 = vpow2.f32 %v1013_v63  ;;  %v1679_v48 = vmul.f32 -1.702, %v3033_v7  ;;  %v863_v43 = vpop.f32.mrb[19].mxu0 }
 0x2bd   :  { %v2100_v47 = vpop.eup %2099  ;;  %v1059_v24 = vadd.f32 1.0, %v2098_v39  ;;  %v1677_v53 = vmul.f32 -1.702, %v3038_v21  ;;  %v3043_v45 = vadd.f32 %v1910_v6, %v2964_v55  ;;  %v3046_v14 = vadd.f32 %v2964_v55, %v863_v43 }
 0x2be   :  { %v2102_v25 = vpop.eup %2101  ;;  %2119 = vrcp.f32 %v1061_v40  ;;  %v1062_v41 = vadd.f32 1.0, %v2100_v47  ;;  %v1023_v20 = vmul.f32 1.442695, %v1679_v48  ;;  %v1179_v30 = vpack.c.bf16 %v1148_v50, %v1147_v33 }
 0x2bf   :  { %v2104_v28 = vpop.eup %2103  ;;  %2121 = vrcp.f32 %v1059_v24  ;;  %v1060_v12 = vadd.f32 1.0, %v2102_v25  ;;  %v1019_v46 = vmul.f32 1.442695, %v1677_v53  ;;  %v1680_v58 = vmul.f32 -1.702, %v3043_v45 }
 0x2c0   :  { %v2106_v49 = vpop.eup %2105  ;;  %2123 = vrcp.f32 %v1062_v41  ;;  %v1678_v42 = vmul.f32 -1.702, %v3046_v14  ;;  %1939 = vmatprep.mubr.bf16.mxu0 %v1179_v30  ;;  %v1153_v11 = vmul.f32 %v2104_v28, %v2983_v32 }
 0x2c1   :  { %v2108_v61 = vpop.eup %2107  ;;  %2125 = vrcp.f32 %v1060_v12  ;;  %v1025_v59 = vmul.f32 1.442695, %v1680_v58  ;;  %1940 = vmatmul.mubr.bf16.vlgmr.msra.gmra.mrb[32].mxu0 %v1180_v1  ;;  %v1913_v62 = vpop.f32.mrb[20].mxu0  ;;  %v1151_v18 = vmul.f32 %v2106_v49, %v2986_v57 }
 0x2c2   :  { %v2110_v29 = vpop.eup %2109  ;;  %2127 = vpow2.f32 %v1023_v20  ;;  %v1021_v19 = vmul.f32 1.442695, %v1678_v42  ;;  %v3052_v13 = vadd.f32 %v1913_v62, %v2964_v55  ;;  %v876_v63 = vpop.f32.mrb[21].mxu0  ;;  %v1154_v56 = vmul.f32 %v2108_v61, %v2990_v8 }
 0x2c3   :  { %v2112_v38 = vpop.eup %2111  ;;  %2129 = vpow2.f32 %v1019_v46  ;;  %v3057_v44 = vadd.f32 %v2964_v55, %v876_v63  ;;  %v1914_v32 = vpop.f32.mrb[22].mxu0  ;;  %v1152_v36 = vmul.f32 %v2110_v29, %v2994_v52 }
 0x2c4   :  { %v2114_v31 = vpop.eup %2113  ;;  %v1065_v33 = vadd.f32 1.0, %v2112_v38  ;;  %2131 = vpow2.f32 %v1025_v59  ;;  %v1683_v50 = vmul.f32 -1.702, %v3052_v13  ;;  %v3062_v6 = vadd.f32 %v1914_v32, %v2964_v55  ;;  %v879_v39 = vpop.f32.mrb[23].mxu0 }
 0x2c5   :  { %v2116_v57 = vpop.eup %2115  ;;  %v1063_v1 = vadd.f32 1.0, %v2114_v31  ;;  %2133 = vpow2.f32 %v1021_v19  ;;  %v1681_v8 = vmul.f32 -1.702, %v3057_v44  ;;  %v3066_v40 = vadd.f32 %v2964_v55, %v879_v39 }
 0x2c6   :  { %v2118_v48 = vpop.eup %2117  ;;  %2135 = vrcp.f32 %v1065_v33  ;;  %v1066_v52 = vadd.f32 1.0, %v2116_v57  ;;  %v1031_v43 = vmul.f32 1.442695, %v1683_v50  ;;  %v1684_v47 = vmul.f32 -1.702, %v3062_v6 }
 0x2c7   :  { %2137 = vrcp.f32 %v1063_v1  ;;  %v1064_v24 = vadd.f32 1.0, %v2118_v48  ;;  %v1027_v53 = vmul.f32 1.442695, %v1681_v8  ;;  %v1682_v25 = vmul.f32 -1.702, %v3066_v40 }
 0x2c8   :  { %v2120_v41 = vpop.eup %2119  ;;  %2139 = vrcp.f32 %v1066_v52  ;;  %v1033_v20 = vmul.f32 1.442695, %v1684_v47  ;;  %v1181_v30 = vpack.c.bf16 %v1152_v36, %v1151_v18  ;;  %v1182_v28 = vpack.c.bf16 %v1154_v56, %v1153_v11 }
 0x2c9   :  { %v2122_v12 = vpop.eup %2121  ;;  %2141 = vrcp.f32 %v1064_v24  ;;  %v1029_v46 = vmul.f32 1.442695, %v1682_v25  ;;  %v1917_v58 = vpop.f32.mrb[24].mxu0  ;;  %v1157_v50 = vmul.f32 %v2120_v41, %v2999_v34 }
 0x2ca   :  { %v2124_v49 = vpop.eup %2123  ;;  %2143 = vpow2.f32 %v1031_v43  ;;  %1943 = vmatprep.mubr.bf16.mxu1 %v1181_v30  ;;  %v3071_v42 = vadd.f32 %v1917_v58, %v2964_v55  ;;  %v892_v61 = vpop.f32.mrb[25].mxu0  ;;  %v1155_v62 = vmul.f32 %v2122_v12, %v3002_v15 }
 0x2cb   :  { %v2126_v59 = vpop.eup %2125  ;;  %v1158_v29 = vmul.f32 %v2124_v49, %v3006_v54  ;;  %2145 = vpow2.f32 %v1027_v53  ;;  %1944 = vmatmul.mubr.bf16.vlgmr.msra.gmra.mrb[0].mxu1 %v1182_v28  ;;  %v3076_v11 = vadd.f32 %v2964_v55, %v892_v61  ;;  %v1918_v19 = vpop.f32.mrb[26].mxu0 }
 0x2cc   :  { %v2128_v63 = vpop.eup %2127  ;;  %v1156_v18 = vmul.f32 %v2126_v59, %v3010_v0  ;;  %2147 = vpow2.f32 %v1033_v20  ;;  %v1687_v38 = vmul.f32 -1.702, %v3071_v42  ;;  %v3081_v56 = vadd.f32 %v1918_v19, %v2964_v55  ;;  %v895_v32 = vpop.f32.mrb[27].mxu0 }
 0x2cd   :  { %v2130_v36 = vpop.eup %2129  ;;  %v1069_v15 = vadd.f32 1.0, %v2128_v63  ;;  %2149 = vpow2.f32 %v1029_v46  ;;  %v1685_v54 = vmul.f32 -1.702, %v3076_v11  ;;  %v3085_v31 = vadd.f32 %v2964_v55, %v895_v32 }
 0x2ce   :  { %v2132_v33 = vpop.eup %2131  ;;  %v1067_v39 = vadd.f32 1.0, %v2130_v36  ;;  %v1688_v0 = vmul.f32 -1.702, %v3081_v56  ;;  %v1183_v57 = vpack.c.bf16 %v1156_v18, %v1155_v62  ;;  %v1039_v48 = vmul.f32 1.442695, %v1687_v38 }
 0x2cf   :  { %v2134_v1 = vpop.eup %2133  ;;  %2151 = vrcp.f32 %v1069_v15  ;;  %v1070_v8 = vadd.f32 1.0, %v2132_v33  ;;  %v1686_v52 = vmul.f32 -1.702, %v3085_v31  ;;  %v1035_v24 = vmul.f32 1.442695, %v1685_v54 }
 0x2d0   :  { %v2136_v43 = vpop.eup %2135  ;;  %2153 = vrcp.f32 %v1067_v39  ;;  %v1068_v47 = vadd.f32 1.0, %v2134_v1  ;;  %1947 = vmatprep.mubr.bf16.mxu1 %v1183_v57  ;;  %v1184_v53 = vpack.c.bf16 %v1158_v29, %v1157_v50  ;;  %v1041_v20 = vmul.f32 1.442695, %v1688_v0 }
 0x2d1   :  { %v2138_v25 = vpop.eup %2137  ;;  %2155 = vrcp.f32 %v1070_v8  ;;  %v1921_v34 = vpop.f32.mrb[28].mxu0  ;;  %v1037_v30 = vmul.f32 1.442695, %v1686_v52  ;;  %v1161_v58 = vmul.f32 %v2136_v43, %v3015_v35 }
 0x2d2   :  { %v2140_v41 = vpop.eup %2139  ;;  %2157 = vrcp.f32 %v1068_v47  ;;  %v3091_v28 = vadd.f32 %v1921_v34, %v2964_v55  ;;  %v908_v12 = vpop.f32.mrb[29].mxu0  ;;  %v1159_v15 = vmul.f32 %v2138_v25, %v3018_v60 }
 0x2d3   :  { %v2142_v46 = vpop.eup %2141  ;;  %v1162_v49 = vmul.f32 %v2140_v41, %v3022_v51  ;;  %2159 = vpow2.f32 %v1039_v48  ;;  %1948 = vmatmul.mubr.bf16.gmra.mrb[4].mxu1 %v1184_v53  ;;  %v3096_v61 = vadd.f32 %v2964_v55, %v908_v12  ;;  %v1922_v59 = vpop.f32.mrb[30].mxu0 }
 0x2d4   :  { %v2144_v62 = vpop.eup %2143  ;;  %v1160_v29 = vmul.f32 %v2142_v46, %v3026_v37  ;;  %2161 = vpow2.f32 %v1035_v24  ;;  %v1691_v19 = vmul.f32 -1.702, %v3091_v28  ;;  %v3101_v63 = vadd.f32 %v1922_v59, %v2964_v55  ;;  %v911_v18 = vpop.f32.mrb[31].mxu0 }
 0x2d5   :  { %v2146_v38 = vpop.eup %2145  ;;  %v1073_v35 = vadd.f32 1.0, %v2144_v62  ;;  %2163 = vpow2.f32 %v1041_v20  ;;  %v1689_v51 = vmul.f32 -1.702, %v3096_v61  ;;  %v3105_v32 = vadd.f32 %v2964_v55, %v911_v18 }
 0x2d6   :  { %v2148_v36 = vpop.eup %2147  ;;  %v1071_v54 = vadd.f32 1.0, %v2146_v38  ;;  %2165 = vpow2.f32 %v1037_v30  ;;  %v1692_v37 = vmul.f32 -1.702, %v3101_v63  ;;  %v1047_v39 = vmul.f32 1.442695, %v1691_v19 }
 0x2d7   :  { %v2150_v33 = vpop.eup %2149  ;;  %2167 = vrcp.f32 %v1073_v35  ;;  %v1074_v50 = vadd.f32 1.0, %v2148_v36  ;;  %v1690_v0 = vmul.f32 -1.702, %v3105_v32  ;;  %v1043_v1 = vmul.f32 1.442695, %v1689_v51 }
 0x2d8   :  { %2169 = vrcp.f32 %v1071_v54  ;;  %v1072_v57 = vadd.f32 1.0, %v2150_v33  ;;  %v1185_v8 = vpack.c.bf16 %v1160_v29, %v1159_v15  ;;  %v1049_v55 = vmul.f32 1.442695, %v1692_v37 }
 0x2d9   :  { %v2152_v48 = vpop.eup %2151  ;;  %2171 = vrcp.f32 %v1074_v50  ;;  %v1186_v52 = vpack.c.bf16 %v1162_v49, %v1161_v58  ;;  %v1045_v60 = vmul.f32 1.442695, %v1690_v0 }
 0x2da   :  { %v2154_v43 = vpop.eup %2153  ;;  %2173 = vrcp.f32 %v1072_v57  ;;  %1951 = vmatprep.mubr.bf16.mxu1 %v1185_v8  ;;  %v1165_v53 = vmul.f32 %v2152_v48, %v3033_v7 }
 0x2db   :  { %v2156_v47 = vpop.eup %2155  ;;  %2175 = vpow2.f32 %v1047_v39  ;;  %1952 = vmatmul.mubr.bf16.gmra.mrb[8].mxu1 %v1186_v52  ;;  %v1163_v34 = vmul.f32 %v2154_v43, %v3038_v21 }
 0x2dc   :  { %v2158_v24 = vpop.eup %2157  ;;  %v1166_v25 = vmul.f32 %v2156_v47, %v3043_v45  ;;  %2177 = vpow2.f32 %v1043_v1 }
 0x2dd   :  { %v2160_v20 = vpop.eup %2159  ;;  %v1164_v41 = vmul.f32 %v2158_v24, %v3046_v14  ;;  %2179 = vpow2.f32 %v1049_v55 }
 0x2de   :  { %v2162_v30 = vpop.eup %2161  ;;  %v1077_v12 = vadd.f32 1.0, %v2160_v20  ;;  %2181 = vpow2.f32 %v1045_v60  ;;  %v1188_v46 = vpack.c.bf16 %v1166_v25, %v1165_v53 }
 0x2df   :  { %v2164_v58 = vpop.eup %2163  ;;  %v1075_v49 = vadd.f32 1.0, %v2162_v30  ;;  %v1187_v59 = vpack.c.bf16 %v1164_v41, %v1163_v34 }
 0x2e0   :  { %v2166_v62 = vpop.eup %2165  ;;  %2183 = vrcp.f32 %v1077_v12  ;;  %v1078_v29 = vadd.f32 1.0, %v2164_v58 }
 0x2e1   :  { %v2168_v7 = vpop.eup %2167  ;;  %2185 = vrcp.f32 %v1075_v49  ;;  %v1076_v45 = vadd.f32 1.0, %v2166_v62  ;;  %1955 = vmatprep.mubr.bf16.mxu1 %v1187_v59 }
 0x2e2   :  { %v2170_v19 = vpop.eup %2169  ;;  %2187 = vrcp.f32 %v1078_v29  ;;  %v1169_v18 = vmul.f32 %v2168_v7, %v3052_v13 }
 0x2e3   :  { %v2172_v21 = vpop.eup %2171  ;;  %2189 = vrcp.f32 %v1076_v45  ;;  %1956 = vmatmul.mubr.bf16.gmra.mrb[12].mxu1 %v1188_v46  ;;  %v1167_v51 = vmul.f32 %v2170_v19, %v3057_v44 }
 0x2e4   :  { %v2174_v14 = vpop.eup %2173  ;;  %v1170_v38 = vmul.f32 %v2172_v21, %v3062_v6 }
 0x2e5   :  { %v2176_v35 = vpop.eup %2175  ;;  %v1168_v36 = vmul.f32 %v2174_v14, %v3066_v40 }
 0x2e6   :  { %v2178_v15 = vpop.eup %2177  ;;  %v1081_v54 = vadd.f32 1.0, %v2176_v35  ;;  %v1190_v37 = vpack.c.bf16 %v1170_v38, %v1169_v18 }
 0x2e7   :  { %v2180_v33 = vpop.eup %2179  ;;  %v1079_v50 = vadd.f32 1.0, %v2178_v15  ;;  %v1189_v39 = vpack.c.bf16 %v1168_v36, %v1167_v51 }
 0x2e8   :  { %v2182_v0 = vpop.eup %2181  ;;  %2191 = vrcp.f32 %v1081_v54  ;;  %v1082_v57 = vadd.f32 1.0, %v2180_v33 }
 0x2e9   :  { %2193 = vrcp.f32 %v1079_v50  ;;  %v1080_v1 = vadd.f32 1.0, %v2182_v0  ;;  %1959 = vmatprep.mubr.bf16.mxu1 %v1189_v39 }
 0x2ea   :  { %v2184_v13 = vpop.eup %2183  ;;  %2195 = vrcp.f32 %v1082_v57 }
 0x2eb   :  { %v2186_v6 = vpop.eup %2185  ;;  %2197 = vrcp.f32 %v1080_v1  ;;  %1960 = vmatmul.mubr.bf16.gmra.mrb[16].mxu1 %v1190_v37  ;;  %v1173_v40 = vmul.f32 %v2184_v13, %v3071_v42 }
 0x2ec   :  { %v2188_v44 = vpop.eup %2187  ;;  %v1171_v55 = vmul.f32 %v2186_v6, %v3076_v11 }
 0x2ed   :  { %v2190_v8 = vpop.eup %2189  ;;  %v1174_v48 = vmul.f32 %v2188_v44, %v3081_v56 }
 0x2ee   :  { %v1172_v52 = vmul.f32 %v2190_v8, %v3085_v31  ;;  %v3126_v31 = vld [vmem:[#allocation13] ss:$0 sm:$0xff] }
 0x2ef   :  { %v1192_v43 = vpack.c.bf16 %v1174_v48, %v1173_v40 }
 0x2f0   :  { %v1191_v60 = vpack.c.bf16 %v1172_v52, %v1171_v55 }
 0x2f2   :  { %v2192_v47 = vpop.eup %2191  ;;  %1963 = vmatprep.mubr.bf16.mxu1 %v1191_v60 }
 0x2f3   :  { %v2194_v24 = vpop.eup %2193  ;;  %1964 = vmatmul.mubr.bf16.gmra.mrb[20].mxu1 %v1192_v43  ;;  %v1177_v20 = vmul.f32 %v2192_v47, %v3091_v28 }
 0x2f4   :  { %v2196_v53 = vpop.eup %2195  ;;  %v1175_v42 = vmul.f32 %v2194_v24, %v3096_v61  ;;  %v3287_v24 = vld [vmem:[#allocation22_spill] sm:$0xff] }
 0x2f5   :  { %v2198_v25 = vpop.eup %2197  ;;  %v1178_v34 = vmul.f32 %v2196_v53, %v3101_v63 }
 0x2f6   :  { %v1176_v56 = vmul.f32 %v2198_v25, %v3105_v32 }
 0x2f7   :  { %v1194_v41 = vpack.c.bf16 %v1178_v34, %v1177_v20  ;;  %v3288_v20 = vld [vmem:[#allocation20_spill] sm:$0xff] }
 0x2f8   :  { %v1193_v11 = vpack.c.bf16 %v1176_v56, %v1175_v42 }
 0x2fa   :  { %1967 = vmatprep.mubr.bf16.mxu1 %v1193_v11 }
 0x2fb   :  { %1968 = vmatmul.mubr.bf16.gmra.mrb[24].mxu1 %v1194_v41  ;;  %v3289_v41 = vld [vmem:[#allocation23_spill] sm:$0xff] }
 0x394   :  { %v1941_v30 = vpop.f32.mrb[32].mxu0 }
 0x395   :  { %v1309_v12 = vadd.f32 %v1941_v30, %v3126_v31  ;;  %v1300_v46 = vpop.f32.mrb[33].mxu0 }
 0x396   :  { %v1301_v58 = vadd.f32 %v3126_v31, %v1300_v46  ;;  %v1942_v49 = vpop.f32.mrb[34].mxu0 }
 0x397   :  { %v1429_v28 = vadd.f32 %v2530_v3, %v1309_v12  ;;  %v1312_v63 = vadd.f32 %v1942_v49, %v3126_v31  ;;  %v1303_v61 = vpop.f32.mrb[35].mxu0  ;;  %v3290_v12 = vld [vmem:[#allocation21_spill] sm:$0xff] }
 0x398   :  { %v1427_v32 = vadd.f32 %v2528_v2, %v1301_v58  ;;  %v1304_v59 = vadd.f32 %v3126_v31, %v1303_v61 }
 0x399   :  { %v1736_v62 = vpack.c.bf16 %v1429_v28, %v1429_v28  ;;  %v1430_v29 = vadd.f32 %v2534_v5, %v1312_v63 }
 0x39a   :  { %v1734_v7 = vpack.c.bf16 %v1427_v32, %v1427_v32  ;;  %v1428_v45 = vadd.f32 %v2532_v4, %v1304_v59 }
 0x39b   :  { %1590 = vst.msk [vmem:[#allocation14 + $0x8] sm:$0xf] %vm1587_vm1, %v1736_v62  ;;  %v1737_v19 = vpack.c.bf16 %v1430_v29, %v1430_v29  ;;  %v3291_v62 = vld [vmem:[#allocation26_spill] sm:$0xff] }
 0x39c   :  { %1588 = vst.msk [vmem:[#allocation14] sm:$0xf] %vm1587_vm1, %v1734_v7  ;;  %v1735_v3 = vpack.c.bf16 %v1428_v45, %v1428_v45 }
 0x39d   :  { %1591 = vst.msk [vmem:[#allocation14 + $0xc] sm:$0xf] %vm1587_vm1, %v1737_v19  ;;  %v3292_v19 = vld [vmem:[#allocation24_spill] sm:$0xff] }
 0x39e   :  { %1589 = vst.msk [vmem:[#allocation14 + $0x4] sm:$0xf] %vm1587_vm1, %v1735_v3  ;;  %v1945_v21 = vpop.f32.mrb[0].mxu1 }
 0x39f   :  { %v1325_v2 = vadd.f32 %v1945_v21, %v3126_v31  ;;  %v1316_v14 = vpop.f32.mrb[1].mxu1 }
 0x3a0   :  { %v1317_v18 = vadd.f32 %v3126_v31, %v1316_v14  ;;  %v1946_v5 = vpop.f32.mrb[2].mxu1  ;;  %v3293_v14 = vld [vmem:[#allocation27_spill] sm:$0xff] }
 0x3a1   :  { %v1433_v38 = vadd.f32 %v2552_v16, %v1325_v2  ;;  %v1328_v4 = vadd.f32 %v1946_v5, %v3126_v31  ;;  %v1319_v35 = vpop.f32.mrb[3].mxu1 }
 0x3a2   :  { %v1431_v51 = vadd.f32 %v2540_v9, %v1317_v18  ;;  %v1320_v36 = vadd.f32 %v3126_v31, %v1319_v35 }
 0x3a3   :  { %v1740_v15 = vpack.c.bf16 %v1433_v38, %v1433_v38  ;;  %v1434_v54 = vadd.f32 %v2554_v17, %v1328_v4  ;;  %v3294_v38 = vld [vmem:[#allocation25_spill] sm:$0xff] }
 0x3a4   :  { %v1738_v37 = vpack.c.bf16 %v1431_v51, %v1431_v51  ;;  %v1432_v33 = vadd.f32 %v2542_v10, %v1320_v36 }
 0x3a5   :  { %1594 = vst.msk [vmem:[#allocation14 + $0x18] sm:$0xf] %vm1587_vm1, %v1740_v15  ;;  %v1741_v50 = vpack.c.bf16 %v1434_v54, %v1434_v54 }
 0x3a6   :  { %1592 = vst.msk [vmem:[#allocation14 + $0x10] sm:$0xf] %vm1587_vm1, %v1738_v37  ;;  %v1739_v39 = vpack.c.bf16 %v1432_v33, %v1432_v33  ;;  %v1949_v16 = vpop.f32.mrb[4].mxu1 }
 0x3a7   :  { %1595 = vst.msk [vmem:[#allocation14 + $0x1c] sm:$0xf] %vm1587_vm1, %v1741_v50  ;;  %v1341_v0 = vadd.f32 %v1949_v16, %v3126_v31  ;;  %v1332_v9 = vpop.f32.mrb[5].mxu1  ;;  %v3295_v50 = vld [vmem:[#allocation30_spill] sm:$0xff] }
 0x3a8   :  { %1593 = vst.msk [vmem:[#allocation14 + $0x14] sm:$0xf] %vm1587_vm1, %v1739_v39  ;;  %v1333_v57 = vadd.f32 %v3126_v31, %v1332_v9  ;;  %v1950_v17 = vpop.f32.mrb[6].mxu1  ;;  %v3296_v9 = vld [vmem:[#allocation28_spill] sm:$0xff] }
 0x3a9   :  { %v1437_v1 = vadd.f32 %v2568_v26, %v1341_v0  ;;  %v1344_v10 = vadd.f32 %v1950_v17, %v3126_v31  ;;  %v1335_v13 = vpop.f32.mrb[7].mxu1 }
 0x3aa   :  { %v1435_v6 = vadd.f32 %v2560_v22, %v1333_v57  ;;  %v1336_v44 = vadd.f32 %v3126_v31, %v1335_v13 }
 0x3ab   :  { %v1744_v8 = vpack.c.bf16 %v1437_v1, %v1437_v1  ;;  %v1438_v40 = vadd.f32 %v2570_v27, %v1344_v10  ;;  %v3297_v10 = vld [vmem:[#allocation31_spill] sm:$0xff] }
 0x3ac   :  { %v1742_v48 = vpack.c.bf16 %v1435_v6, %v1435_v6  ;;  %v1436_v55 = vadd.f32 %v2562_v23, %v1336_v44  ;;  %v3298_v44 = vld [vmem:[#allocation29_spill] sm:$0xff] }
 0x3ad   :  { %1598 = vst.msk [vmem:[#allocation14 + $0x28] sm:$0xf] %vm1587_vm1, %v1744_v8  ;;  %v1745_v52 = vpack.c.bf16 %v1438_v40, %v1438_v40 }
 0x3ae   :  { %1596 = vst.msk [vmem:[#allocation14 + $0x20] sm:$0xf] %vm1587_vm1, %v1742_v48  ;;  %v1743_v43 = vpack.c.bf16 %v1436_v55, %v1436_v55  ;;  %v1953_v26 = vpop.f32.mrb[8].mxu1 }
 0x3af   :  { %1599 = vst.msk [vmem:[#allocation14 + $0x2c] sm:$0xf] %vm1587_vm1, %v1745_v52  ;;  %v1357_v60 = vadd.f32 %v1953_v26, %v3126_v31  ;;  %v1348_v22 = vpop.f32.mrb[9].mxu1 }
 0x3b0   :  { %1597 = vst.msk [vmem:[#allocation14 + $0x24] sm:$0xf] %vm1587_vm1, %v1743_v43  ;;  %v1349_v47 = vadd.f32 %v3126_v31, %v1348_v22  ;;  %v1954_v27 = vpop.f32.mrb[10].mxu1  ;;  %v3299_v22 = vld [vmem:[#allocation34_spill] sm:$0xff] }
 0x3b1   :  { %v1441_v53 = vadd.f32 %v3287_v24, %v1357_v60  ;;  %v1360_v23 = vadd.f32 %v1954_v27, %v3126_v31  ;;  %v1351_v25 = vpop.f32.mrb[11].mxu1 }
 0x3b2   :  { %v1439_v34 = vadd.f32 %v3288_v20, %v1349_v47  ;;  %v1352_v42 = vadd.f32 %v3126_v31, %v1351_v25 }
 0x3b3   :  { %v1748_v56 = vpack.c.bf16 %v1441_v53, %v1441_v53  ;;  %v1442_v11 = vadd.f32 %v3289_v41, %v1360_v23  ;;  %v3300_v53 = vld [vmem:[#allocation32_spill] sm:$0xff]  ;;  %v3302_v41 = vld [vmem:[#allocation33_spill] sm:$0xff] }
 0x3b4   :  { %v1746_v30 = vpack.c.bf16 %v1439_v34, %v1439_v34  ;;  %v1440_v46 = vadd.f32 %v3290_v12, %v1352_v42  ;;  %v3301_v34 = vld [vmem:[#allocation35_spill] sm:$0xff] }
 0x3b5   :  { %1602 = vst.msk [vmem:[#allocation14 + $0x38] sm:$0xf] %vm1587_vm1, %v1748_v56  ;;  %v1749_v58 = vpack.c.bf16 %v1442_v11, %v1442_v11 }
 0x3b6   :  { %1600 = vst.msk [vmem:[#allocation14 + $0x30] sm:$0xf] %vm1587_vm1, %v1746_v30  ;;  %v1747_v49 = vpack.c.bf16 %v1440_v46, %v1440_v46  ;;  %v1957_v28 = vpop.f32.mrb[12].mxu1 }
 0x3b7   :  { %1603 = vst.msk [vmem:[#allocation14 + $0x3c] sm:$0xf] %vm1587_vm1, %v1749_v58  ;;  %v1373_v63 = vadd.f32 %v1957_v28, %v3126_v31  ;;  %v1364_v61 = vpop.f32.mrb[13].mxu1 }
 0x3b8   :  { %1601 = vst.msk [vmem:[#allocation14 + $0x34] sm:$0xf] %vm1587_vm1, %v1747_v49  ;;  %v1365_v32 = vadd.f32 %v3126_v31, %v1364_v61  ;;  %v1958_v59 = vpop.f32.mrb[14].mxu1  ;;  %v3303_v61 = vld [vmem:[#allocation38_spill] sm:$0xff] }
 0x3b9   :  { %v1445_v29 = vadd.f32 %v3291_v62, %v1373_v63  ;;  %v1376_v7 = vadd.f32 %v1958_v59, %v3126_v31  ;;  %v1367_v45 = vpop.f32.mrb[15].mxu1 }
 0x3ba   :  { %v1443_v3 = vadd.f32 %v3292_v19, %v1365_v32  ;;  %v1368_v21 = vadd.f32 %v3126_v31, %v1367_v45 }
 0x3bb   :  { %v1752_v2 = vpack.c.bf16 %v1445_v29, %v1445_v29  ;;  %v1446_v18 = vadd.f32 %v3293_v14, %v1376_v7  ;;  %v3304_v29 = vld [vmem:[#allocation36_spill] sm:$0xff]  ;;  %v3306_v14 = vld [vmem:[#allocation37_spill] sm:$0xff] }
 0x3bc   :  { %v1750_v5 = vpack.c.bf16 %v1443_v3, %v1443_v3  ;;  %v1444_v4 = vadd.f32 %v3294_v38, %v1368_v21  ;;  %v3305_v3 = vld [vmem:[#allocation39_spill] sm:$0xff] }
 0x3bd   :  { %1606 = vst.msk [vmem:[#allocation14 + $0x48] sm:$0xf] %vm1587_vm1, %v1752_v2  ;;  %v1753_v35 = vpack.c.bf16 %v1446_v18, %v1446_v18 }
 0x3be   :  { %1604 = vst.msk [vmem:[#allocation14 + $0x40] sm:$0xf] %vm1587_vm1, %v1750_v5  ;;  %v1751_v51 = vpack.c.bf16 %v1444_v4, %v1444_v4  ;;  %v1961_v36 = vpop.f32.mrb[16].mxu1 }
 0x3bf   :  { %1607 = vst.msk [vmem:[#allocation14 + $0x4c] sm:$0xf] %vm1587_vm1, %v1753_v35  ;;  %v1389_v15 = vadd.f32 %v1961_v36, %v3126_v31  ;;  %v1380_v54 = vpop.f32.mrb[17].mxu1 }
 0x3c0   :  { %1605 = vst.msk [vmem:[#allocation14 + $0x44] sm:$0xf] %vm1587_vm1, %v1751_v51  ;;  %v1381_v37 = vadd.f32 %v3126_v31, %v1380_v54  ;;  %v1962_v33 = vpop.f32.mrb[18].mxu1 }
 0x3c1   :  { %v1449_v39 = vadd.f32 %v3295_v50, %v1389_v15  ;;  %v1392_v16 = vadd.f32 %v1962_v33, %v3126_v31  ;;  %v1383_v0 = vpop.f32.mrb[19].mxu1 }
 0x3c2   :  { %v1447_v57 = vadd.f32 %v3296_v9, %v1381_v37  ;;  %v1384_v17 = vadd.f32 %v3126_v31, %v1383_v0 }
 0x3c3   :  { %v1756_v1 = vpack.c.bf16 %v1449_v39, %v1449_v39  ;;  %v1450_v13 = vadd.f32 %v3297_v10, %v1392_v16 }
 0x3c4   :  { %v1754_v6 = vpack.c.bf16 %v1447_v57, %v1447_v57  ;;  %v1448_v8 = vadd.f32 %v3298_v44, %v1384_v17 }
 0x3c5   :  { %1610 = vst.msk [vmem:[#allocation14 + $0x58] sm:$0xf] %vm1587_vm1, %v1756_v1  ;;  %v1757_v40 = vpack.c.bf16 %v1450_v13, %v1450_v13 }
 0x3c6   :  { %1608 = vst.msk [vmem:[#allocation14 + $0x50] sm:$0xf] %vm1587_vm1, %v1754_v6  ;;  %v1755_v48 = vpack.c.bf16 %v1448_v8, %v1448_v8  ;;  %v1965_v55 = vpop.f32.mrb[20].mxu1 }
 0x3c7   :  { %1611 = vst.msk [vmem:[#allocation14 + $0x5c] sm:$0xf] %vm1587_vm1, %v1757_v40  ;;  %v1405_v52 = vadd.f32 %v1965_v55, %v3126_v31  ;;  %v1396_v43 = vpop.f32.mrb[21].mxu1 }
 0x3c8   :  { %1609 = vst.msk [vmem:[#allocation14 + $0x54] sm:$0xf] %vm1587_vm1, %v1755_v48  ;;  %v1397_v26 = vadd.f32 %v3126_v31, %v1396_v43  ;;  %v1966_v60 = vpop.f32.mrb[22].mxu1 }
 0x3c9   :  { %v1453_v47 = vadd.f32 %v3299_v22, %v1405_v52  ;;  %v1408_v27 = vadd.f32 %v1966_v60, %v3126_v31  ;;  %v1399_v24 = vpop.f32.mrb[23].mxu1 }
 0x3ca   :  { %v1451_v23 = vadd.f32 %v3300_v53, %v1397_v26  ;;  %v1400_v25 = vadd.f32 %v3126_v31, %v1399_v24 }
 0x3cb   :  { %v1760_v20 = vpack.c.bf16 %v1453_v47, %v1453_v47  ;;  %v1454_v42 = vadd.f32 %v3301_v34, %v1408_v27 }
 0x3cc   :  { %v1758_v56 = vpack.c.bf16 %v1451_v23, %v1451_v23  ;;  %v1452_v11 = vadd.f32 %v3302_v41, %v1400_v25 }
 0x3cd   :  { %1614 = vst.msk [vmem:[#allocation14 + $0x68] sm:$0xf] %vm1587_vm1, %v1760_v20  ;;  %v1761_v30 = vpack.c.bf16 %v1454_v42, %v1454_v42 }
 0x3ce   :  { %1612 = vst.msk [vmem:[#allocation14 + $0x60] sm:$0xf] %vm1587_vm1, %v1758_v56  ;;  %v1759_v12 = vpack.c.bf16 %v1452_v11, %v1452_v11  ;;  %v1969_v46 = vpop.f32.mrb[24].mxu1 }
 0x3cf   :  { %1615 = vst.msk [vmem:[#allocation14 + $0x6c] sm:$0xf] %vm1587_vm1, %v1761_v30  ;;  %v1421_v58 = vadd.f32 %v1969_v46, %v3126_v31  ;;  %v1412_v49 = vpop.f32.mrb[25].mxu1 }
 0x3d0   :  { %1613 = vst.msk [vmem:[#allocation14 + $0x64] sm:$0xf] %vm1587_vm1, %v1759_v12  ;;  %v1413_v28 = vadd.f32 %v3126_v31, %v1412_v49  ;;  %v1970_v63 = vpop.f32.mrb[26].mxu1 }
 0x3d1   :  { %v1457_v32 = vadd.f32 %v3303_v61, %v1421_v58  ;;  %v1424_v59 = vadd.f32 %v1970_v63, %v3126_v31  ;;  %v1415_v62 = vpop.f32.mrb[27].mxu1 }
 0x3d2   :  { %v1455_v7 = vadd.f32 %v3304_v29, %v1413_v28  ;;  %v1416_v45 = vadd.f32 %v3126_v31, %v1415_v62 }
 0x3d3   :  { %v1764_v19 = vpack.c.bf16 %v1457_v32, %v1457_v32  ;;  %v1458_v21 = vadd.f32 %v3305_v3, %v1424_v59 }
 0x3d4   :  { %v1762_v2 = vpack.c.bf16 %v1455_v7, %v1455_v7  ;;  %v1456_v18 = vadd.f32 %v3306_v14, %v1416_v45 }
 0x3d5   :  { %1618 = vst.msk [vmem:[#allocation14 + $0x78] sm:$0xf] %vm1587_vm1, %v1764_v19  ;;  %v1765_v5 = vpack.c.bf16 %v1458_v21, %v1458_v21 }
 0x3d6   :  { %1616 = vst.msk [vmem:[#allocation14 + $0x70] sm:$0xf] %vm1587_vm1, %v1762_v2  ;;  %v1763_v38 = vpack.c.bf16 %v1456_v18, %v1456_v18 }
 0x3d7   :  { %1619 = vst.msk [vmem:[#allocation14 + $0x7c] sm:$0xf] %vm1587_vm1, %v1765_v5 }
 0x3d8   :  { %1617 = vst.msk [vmem:[#allocation14 + $0x74] sm:$0xf] %vm1587_vm1, %v1763_v38 }
 0x3d9   :  { %2364 = shalt.err (!%p2361_p4)
}
 0x3da   :  { %s2365_s20 = scalar_lea.hbm %s3246_s7, 2048 }
 0x3db   :  { %p2366_p5 = scmp.ne.s32.totalorder %s3246_s7, %s2365_s20  ;;  %p2369_p6 = scmp.lt.u32.totalorder %s2365_s20, %s3246_s7 }
 0x3dd   :  { %p2371_p7 = pnand %p2369_p6, %p2366_p5 }
 0x3df   :  { %2374 = shalt.err (!%p2371_p7)
}
 0x3e0   :  { %1631 = dma.vmem_to_hbm [thread:$0]  %s1626_s14, 2048, %s3246_s7, [#allocation4], %s2388_s25, %s2388_s25, %s2389_s26  }
 0x3e1   :  { %2383 = dma.done.wait [#allocation4], 2048  }
 0x3e2   :  { %2384 = vsyncadd [#allocation4], 4294965248 }
 0x3e3   :  { %1635 = vsyncpa [#allocation3], 1 }
 0x3e4   :  { %1636 = vsyncpa [#allocation6], 1 }
 0x3e5   :  { %1637 = vsyncpa [#allocation9], 1 }
 0x3e6   :  { %1638 = vsyncpa [#allocation12], 1 }
 0x3e7   :  { %1639 = vsyncpa [#allocation4], 1 }

</bundles_post_ra>
